<compile_context>
chip_gen: v7x
topology: tpu7x:2x2x1
jax: 0.10.0
libtpu: 0.0.40
codegen_flags: <defaults>
</compile_context>

<pallas_src>
import math
import jax
import jax.numpy as jnp
from jax.experimental import pallas as pl
from jax.experimental.pallas import tpu as pltpu

# ----------------------- small synthetic BERT config -----------------------
VOCAB = 100
TYPE_VOCAB = 2
MAX_POS = 16
HIDDEN = 32          # logical hidden size
N_HEADS = 2
HEAD_DIM = HIDDEN // N_HEADS
INTER = 64           # logical FFN intermediate size
N_LAYERS = 2
SEQ = 8
BATCH = 2
LN_EPS = 1e-12

# padded (lane-dense) sizes
HP = 128             # padded hidden (also padded per-128-lane Q/K/V block width)
IP = 128             # padded intermediate
N_VEC = 7            # packed per-layer vectors: bo, ln1(g,b), b1, b2, ln2(g,b)

GROUPS = ['c', 'neg', 'q', 'q_neg1', 'dense_neg1', 'dense_neg2']


# ------------------------------ Pallas kernel -------------------------------
def encoder_kernel(x_ref, bias_ref, emb_ln_ref, wqkv_ref, bqkv_ref, wo_ref,
                   w1_ref, w2_ref, vecs_ref, o_ref):
    bb, seq, hp = x_ref.shape
    bs = bb * seq
    bh = bb * N_HEADS

    # mask selecting the real (non-padded) hidden features
    feat_mask = (jax.lax.broadcasted_iota(jnp.int32, (1, hp), 1) < HIDDEN
                 ).astype(jnp.float32)

    def layernorm(x2d, g, b):
        # statistics over the real HIDDEN features only (padded cols stay zero)
        mu = jnp.sum(x2d, axis=-1, keepdims=True) * (1.0 / HIDDEN)
        d = (x2d - mu) * feat_mask
        var = jnp.sum(d * d, axis=-1, keepdims=True) * (1.0 / HIDDEN)
        return d * jax.lax.rsqrt(var + LN_EPS) * g + b

    def gelu(x):
        c = math.sqrt(2.0 / math.pi)
        return 0.5 * x * (1.0 + jnp.tanh(c * (x + 0.044715 * x * x * x)))

    # per-head lane mask (NH, 1, HP) selecting lanes [h*HEAD_DIM, (h+1)*HEAD_DIM)
    lane = jax.lax.broadcasted_iota(jnp.int32, (N_HEADS, 1, hp), 2)
    hidx = jax.lax.broadcasted_iota(jnp.int32, (N_HEADS, 1, hp), 0)
    head_mask = ((lane >= hidx * HEAD_DIM) &
                 (lane < (hidx + 1) * HEAD_DIM)).astype(jnp.float32)

    # embeddings + embedding layernorm, flattened to (B*S, HP)
    x2d = x_ref[...].reshape(bs, hp)
    x2d = layernorm(x2d, emb_ln_ref[0:1, :], emb_ln_ref[1:2, :])

    # additive key bias, already replicated per (batch, head) by the wrapper
    kb_bh = bias_ref[...]                                     # (bb*NH, 1, S)

    for l in range(N_LAYERS):                 # all layers fused in one kernel
        vecs = vecs_ref[l]                    # (N_VEC, HP) f32

        # fused QKV projection, 3 lane-dense 128-wide blocks
        # (1/sqrt(head_dim) already folded into the Q weights/bias)
        qkv = jnp.dot(x2d.astype(jnp.bfloat16), wqkv_ref[l],
                      preferred_element_type=jnp.float32) + bqkv_ref[l]   # (bs, 3*HP)

        q3 = qkv[:, 0 * HP:1 * HP].reshape(bb, seq, hp)
        k3 = qkv[:, 1 * HP:2 * HP].reshape(bb, seq, hp)
        v3 = qkv[:, 2 * HP:3 * HP].reshape(bb, seq, hp)

        # split heads with lane masks and merge them into the batch axis:
        # one batched scores einsum + one batched context einsum per layer.
        qh = (q3[:, None] * head_mask[None]).reshape(bh, seq, hp).astype(jnp.bfloat16)
        kh = (k3[:, None] * head_mask[None]).reshape(bh, seq, hp).astype(jnp.bfloat16)
        vh = (v3[:, None] * head_mask[None]).reshape(bh, seq, hp).astype(jnp.bfloat16)

        s = jnp.einsum('bqd,bkd->bqk', qh, kh,
                       preferred_element_type=jnp.float32) + kb_bh        # (bh, S, S)
        m = jnp.max(s, axis=-1, keepdims=True)
        e = jnp.exp(s - m)
        p = e * pl.reciprocal(jnp.sum(e, axis=-1, keepdims=True), approx=True)

        ctx = jnp.einsum('bqk,bkd->bqd', p.astype(jnp.bfloat16), vh,
                         preferred_element_type=jnp.float32)              # (bh, S, HP)
        # heads occupy disjoint lanes -> summing the head axis == concat over heads
        ctx2d = jnp.sum(ctx.reshape(bb, N_HEADS, seq, hp), axis=1).reshape(bs, hp)

        # single fused output projection, seeded with the output bias
        attn2d = jnp.dot(ctx2d.astype(jnp.bfloat16), wo_ref[l],
                         preferred_element_type=jnp.float32) + vecs[0:1, :]
        h1 = layernorm(x2d + attn2d, vecs[1:2, :], vecs[2:3, :])

        inter = gelu(jnp.dot(h1.astype(jnp.bfloat16), w1_ref[l],
                             preferred_element_type=jnp.float32) + vecs[3:4, :])
        ffn = jnp.dot(inter.astype(jnp.bfloat16), w2_ref[l],
                      preferred_element_type=jnp.float32) + vecs[4:5, :]
        x2d = layernorm(h1 + ffn, vecs[5:6, :], vecs[6:7, :])

    # Store the full final hidden states as one lane-dense, >=8-sublane slab
    # (unmasked stores); the wrapper extracts the CLS rows.
    o_ref[0] = x2d


# ------------------------------ Pallas wrapper ------------------------------
def _num_parallel_blocks(batch):
    # 2 blocks only on dual-TensorCore chips (v7x); 1 block on v5e/v6e.
    try:
        kind = jax.devices()[0].device_kind.lower()
    except Exception:
        kind = ''
    two_tc = ('v7' in kind) or ('7x' in kind)
    return 2 if (two_tc and batch % 2 == 0 and batch >= 2) else 1


def encode_seq(params, input_ids, mask, type_ids=None):
    B, S = input_ids.shape
    if type_ids is None:
        type_ids = jnp.zeros_like(input_ids)

    # embedding gathers are plain-JAX glue (tables pre-padded to HP lanes)
    emb = (params['word_emb'][input_ids]
           + params['pos_emb'][:S][None, :, :]
           + params['type_emb'][type_ids]).astype(jnp.float32)          # (B,S,HP)
    key_bias = (1.0 - mask.astype(jnp.float32))[:, None, :] * -10000.0  # (B,1,S)
    key_bias_bh = jnp.repeat(key_bias, N_HEADS, axis=0)                 # (B*NH,1,S)

    nblk = _num_parallel_blocks(B)
    bb = B // nblk

    hidden = pl.pallas_call(
        encoder_kernel,
        out_shape=jax.ShapeDtypeStruct((nblk, bb * S, HP), jnp.float32),
        grid=(nblk,),
        in_specs=[
            pl.BlockSpec((bb, S, HP), lambda i: (i, 0, 0)),                    # emb
            pl.BlockSpec((bb * N_HEADS, 1, S), lambda i: (i, 0, 0)),           # key bias
            pl.BlockSpec((2, HP), lambda i: (0, 0)),                           # emb LN g/b
            pl.BlockSpec((N_LAYERS, HP, 3 * HP), lambda i: (0, 0, 0)),         # Wqkv
            pl.BlockSpec((N_LAYERS, 1, 3 * HP), lambda i: (0, 0, 0)),          # qkv bias
            pl.BlockSpec((N_LAYERS, HP, HP), lambda i: (0, 0, 0)),             # Wo
            pl.BlockSpec((N_LAYERS, HP, IP), lambda i: (0, 0, 0)),             # W1
            pl.BlockSpec((N_LAYERS, IP, HP), lambda i: (0, 0, 0)),             # W2
            pl.BlockSpec((N_LAYERS, N_VEC, HP), lambda i: (0, 0, 0)),          # biases/LN
        ],
        out_specs=pl.BlockSpec((1, bb * S, HP), lambda i: (i, 0, 0)),
        compiler_params=pltpu.CompilerParams(dimension_semantics=("parallel",)),
    )(emb, key_bias_bh, params['emb_ln'], params['wqkv'], params['bqkv'],
      params['wo'], params['w1'], params['w2'], params['vecs'])

    # CLS representations (B, HIDDEN)
    return hidden.reshape(B, S, HP)[:, 0, :HIDDEN]


# ------------------------------- model (glue) -------------------------------
def init_params(key):
    keys = iter(jax.random.split(key, 3 + N_LAYERS * 6))

    def rnd(shape, scale=0.02):
        return (scale * jax.random.normal(next(keys), shape)).astype(jnp.float32)

    word = jnp.zeros((VOCAB, HP), jnp.float32).at[:, :HIDDEN].set(rnd((VOCAB, HIDDEN)))
    pos = jnp.zeros((MAX_POS, HP), jnp.float32).at[:, :HIDDEN].set(rnd((MAX_POS, HIDDEN)))
    typ = jnp.zeros((TYPE_VOCAB, HP), jnp.float32).at[:, :HIDDEN].set(rnd((TYPE_VOCAB, HIDDEN)))
    emb_ln = jnp.zeros((2, HP), jnp.float32).at[0, :HIDDEN].set(1.0)   # gamma=1, beta=0

    att_scale = 1.0 / math.sqrt(HEAD_DIM)

    wqkv_l, bqkv_l, wo_l, w1_l, w2_l, vec_l = [], [], [], [], [], []
    for _ in range(N_LAYERS):
        wq, wk = rnd((HIDDEN, HIDDEN)), rnd((HIDDEN, HIDDEN))
        wv, wo = rnd((HIDDEN, HIDDEN)), rnd((HIDDEN, HIDDEN))
        w1, w2 = rnd((HIDDEN, INTER)), rnd((INTER, HIDDEN))

        # Q|K|V packed as three 128-lane blocks in the natural head order
        # (head h at lanes h*HEAD_DIM .. (h+1)*HEAD_DIM); 1/sqrt(d) folded into Q.
        wqkv_p = jnp.zeros((HP, 3 * HP), jnp.float32)
        wqkv_p = wqkv_p.at[:HIDDEN, 0 * HP:0 * HP + HIDDEN].set(wq * att_scale)
        wqkv_p = wqkv_p.at[:HIDDEN, 1 * HP:1 * HP + HIDDEN].set(wk)
        wqkv_p = wqkv_p.at[:HIDDEN, 2 * HP:2 * HP + HIDDEN].set(wv)
        # packed QKV bias (q region would also be scaled by att_scale; zero here)
        bqkv_p = jnp.zeros((1, 3 * HP), jnp.float32)

        wo_p = jnp.zeros((HP, HP), jnp.float32).at[:HIDDEN, :HIDDEN].set(wo)
        w1_p = jnp.zeros((HP, IP), jnp.float32).at[:HIDDEN, :INTER].set(w1)
        w2_p = jnp.zeros((IP, HP), jnp.float32).at[:INTER, :HIDDEN].set(w2)

        # packed per-layer vectors: 0 bo, 1 ln1 gamma, 2 ln1 beta, 3 b1, 4 b2,
        # 5 ln2 gamma, 6 ln2 beta  (pad lanes stay exactly zero -> LN invariant)
        vec = jnp.zeros((N_VEC, HP), jnp.float32)
        vec = vec.at[1, :HIDDEN].set(1.0)
        vec = vec.at[5, :HIDDEN].set(1.0)

        wqkv_l.append(wqkv_p); bqkv_l.append(bqkv_p); wo_l.append(wo_p)
        w1_l.append(w1_p); w2_l.append(w2_p); vec_l.append(vec)

    return {
        'word_emb': word, 'pos_emb': pos, 'type_emb': typ, 'emb_ln': emb_ln,
        'wqkv': jnp.stack(wqkv_l).astype(jnp.bfloat16),
        'bqkv': jnp.stack(bqkv_l),          # f32 (added to f32 accumulation)
        'wo': jnp.stack(wo_l).astype(jnp.bfloat16),
        'w1': jnp.stack(w1_l).astype(jnp.bfloat16),
        'w2': jnp.stack(w2_l).astype(jnp.bfloat16),
        'vecs': jnp.stack(vec_l),           # f32
    }


def bert_nq_retriever_forward(params, batch):
    # Fuse all 6 groups along batch -> a single encoder invocation.
    ids = jnp.concatenate([batch[f'{g}_input_ids'] for g in GROUPS], axis=0)
    mask = jnp.concatenate([batch[f'{g}_mask'] for g in GROUPS], axis=0)
    type_ids = jnp.concatenate(
        [batch.get(f'{g}_type_ids', jnp.zeros_like(batch[f'{g}_input_ids']))
         for g in GROUPS], axis=0)

    cls = encode_seq(params, ids, mask, type_ids)          # (6*B, HIDDEN)

    B = batch['c_input_ids'].shape[0]
    per = {g: cls[k * B:(k + 1) * B] for k, g in enumerate(GROUPS)}
    return {'q': per['q'], 'c': per['c'], 'neg': per['neg'], 'q_neg1': per['q_neg1'],
            'dense_neg1': per['dense_neg1'], 'dense_neg2': per['dense_neg2']}


# ----------------------------------- main -----------------------------------
if __name__ == "__main__":
    key = jax.random.PRNGKey(0)
    pkey, dkey = jax.random.split(key)
    params = init_params(pkey)

    batch = {}
    dkeys = jax.random.split(dkey, len(GROUPS))
    for name, k in zip(GROUPS, dkeys):
        k_ids, k_type = jax.random.split(k)
        ids = jax.random.randint(k_ids, (BATCH, SEQ), 0, VOCAB, dtype=jnp.int32)
        mask = jnp.ones((BATCH, SEQ), jnp.int32).at[1, -2:].set(0)   # some padding
        type_ids = jax.random.randint(k_type, (BATCH, SEQ), 0, TYPE_VOCAB, dtype=jnp.int32)
        batch[f'{name}_input_ids'] = ids
        batch[f'{name}_mask'] = mask
        batch[f'{name}_type_ids'] = type_ids

    vectors = bert_nq_retriever_forward(params, batch)
    jax.block_until_ready(vectors)

    expected_keys = {'q', 'c', 'neg', 'q_neg1', 'dense_neg1', 'dense_neg2'}
    assert set(vectors.keys()) == expected_keys
    for v in vectors.values():
        assert v.shape == (BATCH, HIDDEN) and v.dtype == jnp.float32
        assert bool(jnp.all(jnp.isfinite(v)))

    print("KERNEL_OK")
</pallas_src>

<mosaic_0001>
module attributes {stable_mosaic.version = 11 : i64} {
  func.func @encoder_kernel(%arg0: i32, %arg1: memref<12x8x128xf32, #tpu.memory_space<vmem>>, %arg2: memref<24x1x8xf32, #tpu.memory_space<vmem>>, %arg3: memref<2x128xf32, #tpu.memory_space<vmem>>, %arg4: memref<2x128x384xbf16, #tpu.memory_space<vmem>>, %arg5: memref<2x1x384xf32, #tpu.memory_space<vmem>>, %arg6: memref<2x128x128xbf16, #tpu.memory_space<vmem>>, %arg7: memref<2x128x128xbf16, #tpu.memory_space<vmem>>, %arg8: memref<2x128x128xbf16, #tpu.memory_space<vmem>>, %arg9: memref<2x7x128xf32, #tpu.memory_space<vmem>>, %arg10: memref<1x96x128xf32, #tpu.memory_space<vmem>>) attributes {dimension_semantics = [#tpu.dimension_semantics<parallel>], iteration_bounds = array<i64: 1>, scalar_prefetch = 0 : i64, scratch_operands = 0 : i64, tpu.core_type = #tpu.core_type<tc>, window_params = [{transform_indices = @transform_0, window_bounds = array<i64: 12, 8, 128>}, {transform_indices = @transform_1, window_bounds = array<i64: 24, 1, 8>}, {pipeline_mode = #tpu.pipeline_mode<synchronous>, transform_indices = @transform_2, window_bounds = array<i64: 2, 128>}, {pipeline_mode = #tpu.pipeline_mode<synchronous>, transform_indices = @transform_3, window_bounds = array<i64: 2, 128, 384>}, {pipeline_mode = #tpu.pipeline_mode<synchronous>, transform_indices = @transform_4, window_bounds = array<i64: 2, 1, 384>}, {pipeline_mode = #tpu.pipeline_mode<synchronous>, transform_indices = @transform_5, window_bounds = array<i64: 2, 128, 128>}, {pipeline_mode = #tpu.pipeline_mode<synchronous>, transform_indices = @transform_6, window_bounds = array<i64: 2, 128, 128>}, {pipeline_mode = #tpu.pipeline_mode<synchronous>, transform_indices = @transform_7, window_bounds = array<i64: 2, 128, 128>}, {pipeline_mode = #tpu.pipeline_mode<synchronous>, transform_indices = @transform_8, window_bounds = array<i64: 2, 7, 128>}, {transform_indices = @transform_9, window_bounds = array<i64: 1, 96, 128>}]} {
    %0 = tpu.iota {dimensions = array<i32: 1>} : vector<1x128xi32>
    %c32_i32 = arith.constant 32 : i32
    %1 = vector.broadcast %c32_i32 : i32 to vector<1x128xi32>
    %2 = arith.cmpi slt, %0, %1 : vector<1x128xi32>
    %3 = arith.extui %2 : vector<1x128xi1> to vector<1x128xi32>
    %4 = arith.sitofp %3 : vector<1x128xi32> to vector<1x128xf32>
    %5 = tpu.iota {dimensions = array<i32: 2>} : vector<2x1x128xi32>
    %6 = tpu.iota {dimensions = array<i32: 0>} : vector<2x1x128xi32>
    %c16_i32 = arith.constant 16 : i32
    %7 = vector.broadcast %c16_i32 : i32 to vector<2x1x128xi32>
    %8 = arith.muli %6, %7 : vector<2x1x128xi32>
    %9 = arith.cmpi sge, %5, %8 : vector<2x1x128xi32>
    %c1_i32 = arith.constant 1 : i32
    %10 = vector.broadcast %c1_i32 : i32 to vector<2x1x128xi32>
    %11 = arith.addi %6, %10 : vector<2x1x128xi32>
    %c16_i32_0 = arith.constant 16 : i32
    %12 = vector.broadcast %c16_i32_0 : i32 to vector<2x1x128xi32>
    %13 = arith.muli %11, %12 : vector<2x1x128xi32>
    %14 = arith.cmpi slt, %5, %13 : vector<2x1x128xi32>
    %15 = arith.andi %9, %14 : vector<2x1x128xi1>
    %16 = arith.extui %15 : vector<2x1x128xi1> to vector<2x1x128xi32>
    %17 = arith.sitofp %16 : vector<2x1x128xi32> to vector<2x1x128xf32>
    %c0 = arith.constant 0 : index
    %c0_1 = arith.constant 0 : index
    %c0_2 = arith.constant 0 : index
    %18 = vector.load %arg1[%c0, %c0_1, %c0_2] : memref<12x8x128xf32, #tpu.memory_space<vmem>>, vector<12x8x128xf32>
    %19 = vector.shape_cast %18 : vector<12x8x128xf32> to vector<96x128xf32>
    %c0_3 = arith.constant 0 : index
    %c0_4 = arith.constant 0 : index
    %20 = vector.load %arg3[%c0_3, %c0_4] : memref<2x128xf32, #tpu.memory_space<vmem>>, vector<1x128xf32>
    %c1 = arith.constant 1 : index
    %c0_5 = arith.constant 0 : index
    %21 = vector.load %arg3[%c1, %c0_5] : memref<2x128xf32, #tpu.memory_space<vmem>>, vector<1x128xf32>
    %cst = arith.constant dense<0.000000e+00> : vector<96xf32>
    %22 = vector.multi_reduction <add>, %19, %cst [1] : vector<96x128xf32> to vector<96xf32>
    %23 = vector.shape_cast %22 : vector<96xf32> to vector<96x1xf32>
    %cst_6 = arith.constant 3.125000e-02 : f32
    %24 = vector.broadcast %cst_6 : f32 to vector<96x1xf32>
    %25 = arith.mulf %23, %24 : vector<96x1xf32>
    %26 = vector.broadcast %25 : vector<96x1xf32> to vector<96x128xf32>
    %27 = arith.subf %19, %26 : vector<96x128xf32>
    %28 = vector.broadcast %4 : vector<1x128xf32> to vector<96x128xf32>
    %29 = arith.mulf %27, %28 : vector<96x128xf32>
    %30 = arith.mulf %29, %29 : vector<96x128xf32>
    %cst_7 = arith.constant dense<0.000000e+00> : vector<96xf32>
    %31 = vector.multi_reduction <add>, %30, %cst_7 [1] : vector<96x128xf32> to vector<96xf32>
    %32 = vector.shape_cast %31 : vector<96xf32> to vector<96x1xf32>
    %cst_8 = arith.constant 3.125000e-02 : f32
    %33 = vector.broadcast %cst_8 : f32 to vector<96x1xf32>
    %34 = arith.mulf %32, %33 : vector<96x1xf32>
    %cst_9 = arith.constant 9.99999996E-13 : f32
    %35 = vector.broadcast %cst_9 : f32 to vector<96x1xf32>
    %36 = arith.addf %34, %35 : vector<96x1xf32>
    %37 = math.rsqrt %36 : vector<96x1xf32>
    %38 = vector.broadcast %37 : vector<96x1xf32> to vector<96x128xf32>
    %39 = arith.mulf %29, %38 : vector<96x128xf32>
    %40 = vector.broadcast %20 : vector<1x128xf32> to vector<96x128xf32>
    %41 = arith.mulf %39, %40 : vector<96x128xf32>
    %42 = vector.broadcast %21 : vector<1x128xf32> to vector<96x128xf32>
    %43 = arith.addf %41, %42 : vector<96x128xf32>
    %c0_10 = arith.constant 0 : index
    %c0_11 = arith.constant 0 : index
    %c0_12 = arith.constant 0 : index
    %44 = vector.load %arg2[%c0_10, %c0_11, %c0_12] : memref<24x1x8xf32, #tpu.memory_space<vmem>>, vector<24x1x8xf32>
    %c0_13 = arith.constant 0 : index
    %c0_14 = arith.constant 0 : index
    %c0_15 = arith.constant 0 : index
    %45 = vector.load %arg9[%c0_13, %c0_14, %c0_15] : memref<2x7x128xf32, #tpu.memory_space<vmem>>, vector<1x7x128xf32>
    %46 = vector.shape_cast %45 : vector<1x7x128xf32> to vector<7x128xf32>
    %47 = arith.truncf %43 : vector<96x128xf32> to vector<96x128xbf16>
    %c0_16 = arith.constant 0 : index
    %c0_17 = arith.constant 0 : index
    %c0_18 = arith.constant 0 : index
    %48 = vector.load %arg4[%c0_16, %c0_17, %c0_18] : memref<2x128x384xbf16, #tpu.memory_space<vmem>>, vector<1x128x384xbf16>
    %49 = vector.shape_cast %48 : vector<1x128x384xbf16> to vector<128x384xbf16>
    %cst_19 = arith.constant dense<0.000000e+00> : vector<96x384xf32>
    %50 = tpu.matmul %47, %49, %cst_19 {dimension_numbers = #tpu.dot_dimension_numbers<[1], [0], [0], [1], [0, 0, 1, 1], [], []>} : vector<96x128xbf16>, vector<128x384xbf16>, vector<96x384xf32> -> vector<96x384xf32>
    %c0_20 = arith.constant 0 : index
    %c0_21 = arith.constant 0 : index
    %c0_22 = arith.constant 0 : index
    %51 = vector.load %arg5[%c0_20, %c0_21, %c0_22] : memref<2x1x384xf32, #tpu.memory_space<vmem>>, vector<1x1x384xf32>
    %52 = vector.shape_cast %51 : vector<1x1x384xf32> to vector<1x384xf32>
    %53 = vector.broadcast %52 : vector<1x384xf32> to vector<96x384xf32>
    %54 = arith.addf %50, %53 : vector<96x384xf32>
    %55 = vector.extract_strided_slice %54 {offsets = [0, 0], sizes = [96, 128], strides = [1, 1]} : vector<96x384xf32> to vector<96x128xf32>
    %56 = vector.shape_cast %55 : vector<96x128xf32> to vector<12x8x128xf32>
    %57 = vector.extract_strided_slice %54 {offsets = [0, 128], sizes = [96, 128], strides = [1, 1]} : vector<96x384xf32> to vector<96x128xf32>
    %58 = vector.shape_cast %57 : vector<96x128xf32> to vector<12x8x128xf32>
    %59 = vector.extract_strided_slice %54 {offsets = [0, 256], sizes = [96, 128], strides = [1, 1]} : vector<96x384xf32> to vector<96x128xf32>
    %60 = vector.shape_cast %59 : vector<96x128xf32> to vector<12x8x128xf32>
    %61 = vector.shape_cast %56 : vector<12x8x128xf32> to vector<12x1x8x128xf32>
    %62 = vector.shape_cast %17 : vector<2x1x128xf32> to vector<1x2x1x128xf32>
    %63 = vector.broadcast %61 : vector<12x1x8x128xf32> to vector<12x2x8x128xf32>
    %64 = vector.broadcast %62 : vector<1x2x1x128xf32> to vector<12x2x8x128xf32>
    %65 = arith.mulf %63, %64 : vector<12x2x8x128xf32>
    %66 = vector.shape_cast %65 : vector<12x2x8x128xf32> to vector<24x8x128xf32>
    %67 = arith.truncf %66 : vector<24x8x128xf32> to vector<24x8x128xbf16>
    %68 = vector.shape_cast %58 : vector<12x8x128xf32> to vector<12x1x8x128xf32>
    %69 = vector.shape_cast %17 : vector<2x1x128xf32> to vector<1x2x1x128xf32>
    %70 = vector.broadcast %68 : vector<12x1x8x128xf32> to vector<12x2x8x128xf32>
    %71 = vector.broadcast %69 : vector<1x2x1x128xf32> to vector<12x2x8x128xf32>
    %72 = arith.mulf %70, %71 : vector<12x2x8x128xf32>
    %73 = vector.shape_cast %72 : vector<12x2x8x128xf32> to vector<24x8x128xf32>
    %74 = arith.truncf %73 : vector<24x8x128xf32> to vector<24x8x128xbf16>
    %75 = vector.shape_cast %60 : vector<12x8x128xf32> to vector<12x1x8x128xf32>
    %76 = vector.shape_cast %17 : vector<2x1x128xf32> to vector<1x2x1x128xf32>
    %77 = vector.broadcast %75 : vector<12x1x8x128xf32> to vector<12x2x8x128xf32>
    %78 = vector.broadcast %76 : vector<1x2x1x128xf32> to vector<12x2x8x128xf32>
    %79 = arith.mulf %77, %78 : vector<12x2x8x128xf32>
    %80 = vector.shape_cast %79 : vector<12x2x8x128xf32> to vector<24x8x128xf32>
    %81 = arith.truncf %80 : vector<24x8x128xf32> to vector<24x8x128xbf16>
    "tpu.trace_start"() <{level = 10 : i32, message = "bqd,bkd->bqk"}> : () -> ()
    %cst_23 = arith.constant dense<0.000000e+00> : vector<24x8x8xf32>
    %82 = tpu.matmul %67, %74, %cst_23 {dimension_numbers = #tpu.dot_dimension_numbers<[2], [2], [1], [1], [0, 0, 0, 1, 1, 1], [0], [0]>} : vector<24x8x128xbf16>, vector<24x8x128xbf16>, vector<24x8x8xf32> -> vector<24x8x8xf32>
    "tpu.trace_stop"() : () -> ()
    %83 = vector.broadcast %44 : vector<24x1x8xf32> to vector<24x8x8xf32>
    %84 = arith.addf %82, %83 : vector<24x8x8xf32>
    %cst_24 = arith.constant dense<0xFF800000> : vector<24x8xf32>
    %85 = vector.multi_reduction <maximumf>, %84, %cst_24 [2] : vector<24x8x8xf32> to vector<24x8xf32>
    %86 = vector.shape_cast %85 : vector<24x8xf32> to vector<24x8x1xf32>
    %87 = vector.broadcast %86 : vector<24x8x1xf32> to vector<24x8x8xf32>
    %88 = arith.subf %84, %87 : vector<24x8x8xf32>
    %89 = math.exp %88 : vector<24x8x8xf32>
    %cst_25 = arith.constant dense<0.000000e+00> : vector<24x8xf32>
    %90 = vector.multi_reduction <add>, %89, %cst_25 [2] : vector<24x8x8xf32> to vector<24x8xf32>
    %91 = vector.shape_cast %90 : vector<24x8xf32> to vector<24x8x1xf32>
    %92 = tpu.reciprocal %91 {approx = true} : vector<24x8x1xf32> -> vector<24x8x1xf32>
    %93 = vector.broadcast %92 : vector<24x8x1xf32> to vector<24x8x8xf32>
    %94 = arith.mulf %89, %93 : vector<24x8x8xf32>
    %95 = arith.truncf %94 : vector<24x8x8xf32> to vector<24x8x8xbf16>
    "tpu.trace_start"() <{level = 10 : i32, message = "bqk,bkd->bqd"}> : () -> ()
    %cst_26 = arith.constant dense<0.000000e+00> : vector<24x8x128xf32>
    %96 = tpu.matmul %95, %81, %cst_26 {dimension_numbers = #tpu.dot_dimension_numbers<[2], [1], [1], [2], [0, 0, 0, 1, 1, 2], [0], [0]>} : vector<24x8x8xbf16>, vector<24x8x128xbf16>, vector<24x8x128xf32> -> vector<24x8x128xf32>
    "tpu.trace_stop"() : () -> ()
    %97 = vector.shape_cast %96 : vector<24x8x128xf32> to vector<12x2x8x128xf32>
    %cst_27 = arith.constant dense<0.000000e+00> : vector<12x8x128xf32>
    %98 = vector.multi_reduction <add>, %97, %cst_27 [1] : vector<12x2x8x128xf32> to vector<12x8x128xf32>
    %99 = vector.shape_cast %98 : vector<12x8x128xf32> to vector<96x128xf32>
    %100 = arith.truncf %99 : vector<96x128xf32> to vector<96x128xbf16>
    %c0_28 = arith.constant 0 : index
    %c0_29 = arith.constant 0 : index
    %c0_30 = arith.constant 0 : index
    %101 = vector.load %arg6[%c0_28, %c0_29, %c0_30] : memref<2x128x128xbf16, #tpu.memory_space<vmem>>, vector<1x128x128xbf16>
    %102 = vector.shape_cast %101 : vector<1x128x128xbf16> to vector<128x128xbf16>
    %cst_31 = arith.constant dense<0.000000e+00> : vector<96x128xf32>
    %103 = tpu.matmul %100, %102, %cst_31 {dimension_numbers = #tpu.dot_dimension_numbers<[1], [0], [0], [1], [0, 0, 1, 1], [], []>} : vector<96x128xbf16>, vector<128x128xbf16>, vector<96x128xf32> -> vector<96x128xf32>
    %104 = vector.extract_strided_slice %46 {offsets = [0, 0], sizes = [1, 128], strides = [1, 1]} : vector<7x128xf32> to vector<1x128xf32>
    %105 = vector.broadcast %104 : vector<1x128xf32> to vector<96x128xf32>
    %106 = arith.addf %103, %105 : vector<96x128xf32>
    %107 = arith.addf %43, %106 : vector<96x128xf32>
    %108 = vector.extract_strided_slice %46 {offsets = [1, 0], sizes = [1, 128], strides = [1, 1]} : vector<7x128xf32> to vector<1x128xf32>
    %109 = vector.extract_strided_slice %46 {offsets = [2, 0], sizes = [1, 128], strides = [1, 1]} : vector<7x128xf32> to vector<1x128xf32>
    %cst_32 = arith.constant dense<0.000000e+00> : vector<96xf32>
    %110 = vector.multi_reduction <add>, %107, %cst_32 [1] : vector<96x128xf32> to vector<96xf32>
    %111 = vector.shape_cast %110 : vector<96xf32> to vector<96x1xf32>
    %cst_33 = arith.constant 3.125000e-02 : f32
    %112 = vector.broadcast %cst_33 : f32 to vector<96x1xf32>
    %113 = arith.mulf %111, %112 : vector<96x1xf32>
    %114 = vector.broadcast %113 : vector<96x1xf32> to vector<96x128xf32>
    %115 = arith.subf %107, %114 : vector<96x128xf32>
    %116 = vector.broadcast %4 : vector<1x128xf32> to vector<96x128xf32>
    %117 = arith.mulf %115, %116 : vector<96x128xf32>
    %118 = arith.mulf %117, %117 : vector<96x128xf32>
    %cst_34 = arith.constant dense<0.000000e+00> : vector<96xf32>
    %119 = vector.multi_reduction <add>, %118, %cst_34 [1] : vector<96x128xf32> to vector<96xf32>
    %120 = vector.shape_cast %119 : vector<96xf32> to vector<96x1xf32>
    %cst_35 = arith.constant 3.125000e-02 : f32
    %121 = vector.broadcast %cst_35 : f32 to vector<96x1xf32>
    %122 = arith.mulf %120, %121 : vector<96x1xf32>
    %cst_36 = arith.constant 9.99999996E-13 : f32
    %123 = vector.broadcast %cst_36 : f32 to vector<96x1xf32>
    %124 = arith.addf %122, %123 : vector<96x1xf32>
    %125 = math.rsqrt %124 : vector<96x1xf32>
    %126 = vector.broadcast %125 : vector<96x1xf32> to vector<96x128xf32>
    %127 = arith.mulf %117, %126 : vector<96x128xf32>
    %128 = vector.broadcast %108 : vector<1x128xf32> to vector<96x128xf32>
    %129 = arith.mulf %127, %128 : vector<96x128xf32>
    %130 = vector.broadcast %109 : vector<1x128xf32> to vector<96x128xf32>
    %131 = arith.addf %129, %130 : vector<96x128xf32>
    %132 = arith.truncf %131 : vector<96x128xf32> to vector<96x128xbf16>
    %c0_37 = arith.constant 0 : index
    %c0_38 = arith.constant 0 : index
    %c0_39 = arith.constant 0 : index
    %133 = vector.load %arg7[%c0_37, %c0_38, %c0_39] : memref<2x128x128xbf16, #tpu.memory_space<vmem>>, vector<1x128x128xbf16>
    %134 = vector.shape_cast %133 : vector<1x128x128xbf16> to vector<128x128xbf16>
    %cst_40 = arith.constant dense<0.000000e+00> : vector<96x128xf32>
    %135 = tpu.matmul %132, %134, %cst_40 {dimension_numbers = #tpu.dot_dimension_numbers<[1], [0], [0], [1], [0, 0, 1, 1], [], []>} : vector<96x128xbf16>, vector<128x128xbf16>, vector<96x128xf32> -> vector<96x128xf32>
    %136 = vector.extract_strided_slice %46 {offsets = [3, 0], sizes = [1, 128], strides = [1, 1]} : vector<7x128xf32> to vector<1x128xf32>
    %137 = vector.broadcast %136 : vector<1x128xf32> to vector<96x128xf32>
    %138 = arith.addf %135, %137 : vector<96x128xf32>
    %cst_41 = arith.constant 5.000000e-01 : f32
    %139 = vector.broadcast %cst_41 : f32 to vector<96x128xf32>
    %140 = arith.mulf %139, %138 : vector<96x128xf32>
    %cst_42 = arith.constant 4.471500e-02 : f32
    %141 = vector.broadcast %cst_42 : f32 to vector<96x128xf32>
    %142 = arith.mulf %141, %138 : vector<96x128xf32>
    %143 = arith.mulf %142, %138 : vector<96x128xf32>
    %144 = arith.mulf %143, %138 : vector<96x128xf32>
    %145 = arith.addf %138, %144 : vector<96x128xf32>
    %cst_43 = arith.constant 0.797884583 : f32
    %146 = vector.broadcast %cst_43 : f32 to vector<96x128xf32>
    %147 = arith.mulf %146, %145 : vector<96x128xf32>
    %148 = math.tanh %147 : vector<96x128xf32>
    %cst_44 = arith.constant 1.000000e+00 : f32
    %149 = vector.broadcast %cst_44 : f32 to vector<96x128xf32>
    %150 = arith.addf %149, %148 : vector<96x128xf32>
    %151 = arith.mulf %140, %150 : vector<96x128xf32>
    %152 = arith.truncf %151 : vector<96x128xf32> to vector<96x128xbf16>
    %c0_45 = arith.constant 0 : index
    %c0_46 = arith.constant 0 : index
    %c0_47 = arith.constant 0 : index
    %153 = vector.load %arg8[%c0_45, %c0_46, %c0_47] : memref<2x128x128xbf16, #tpu.memory_space<vmem>>, vector<1x128x128xbf16>
    %154 = vector.shape_cast %153 : vector<1x128x128xbf16> to vector<128x128xbf16>
    %cst_48 = arith.constant dense<0.000000e+00> : vector<96x128xf32>
    %155 = tpu.matmul %152, %154, %cst_48 {dimension_numbers = #tpu.dot_dimension_numbers<[1], [0], [0], [1], [0, 0, 1, 1], [], []>} : vector<96x128xbf16>, vector<128x128xbf16>, vector<96x128xf32> -> vector<96x128xf32>
    %156 = vector.extract_strided_slice %46 {offsets = [4, 0], sizes = [1, 128], strides = [1, 1]} : vector<7x128xf32> to vector<1x128xf32>
    %157 = vector.broadcast %156 : vector<1x128xf32> to vector<96x128xf32>
    %158 = arith.addf %155, %157 : vector<96x128xf32>
    %159 = arith.addf %131, %158 : vector<96x128xf32>
    %160 = vector.extract_strided_slice %46 {offsets = [5, 0], sizes = [1, 128], strides = [1, 1]} : vector<7x128xf32> to vector<1x128xf32>
    %161 = vector.extract_strided_slice %46 {offsets = [6, 0], sizes = [1, 128], strides = [1, 1]} : vector<7x128xf32> to vector<1x128xf32>
    %cst_49 = arith.constant dense<0.000000e+00> : vector<96xf32>
    %162 = vector.multi_reduction <add>, %159, %cst_49 [1] : vector<96x128xf32> to vector<96xf32>
    %163 = vector.shape_cast %162 : vector<96xf32> to vector<96x1xf32>
    %cst_50 = arith.constant 3.125000e-02 : f32
    %164 = vector.broadcast %cst_50 : f32 to vector<96x1xf32>
    %165 = arith.mulf %163, %164 : vector<96x1xf32>
    %166 = vector.broadcast %165 : vector<96x1xf32> to vector<96x128xf32>
    %167 = arith.subf %159, %166 : vector<96x128xf32>
    %168 = vector.broadcast %4 : vector<1x128xf32> to vector<96x128xf32>
    %169 = arith.mulf %167, %168 : vector<96x128xf32>
    %170 = arith.mulf %169, %169 : vector<96x128xf32>
    %cst_51 = arith.constant dense<0.000000e+00> : vector<96xf32>
    %171 = vector.multi_reduction <add>, %170, %cst_51 [1] : vector<96x128xf32> to vector<96xf32>
    %172 = vector.shape_cast %171 : vector<96xf32> to vector<96x1xf32>
    %cst_52 = arith.constant 3.125000e-02 : f32
    %173 = vector.broadcast %cst_52 : f32 to vector<96x1xf32>
    %174 = arith.mulf %172, %173 : vector<96x1xf32>
    %cst_53 = arith.constant 9.99999996E-13 : f32
    %175 = vector.broadcast %cst_53 : f32 to vector<96x1xf32>
    %176 = arith.addf %174, %175 : vector<96x1xf32>
    %177 = math.rsqrt %176 : vector<96x1xf32>
    %178 = vector.broadcast %177 : vector<96x1xf32> to vector<96x128xf32>
    %179 = arith.mulf %169, %178 : vector<96x128xf32>
    %180 = vector.broadcast %160 : vector<1x128xf32> to vector<96x128xf32>
    %181 = arith.mulf %179, %180 : vector<96x128xf32>
    %182 = vector.broadcast %161 : vector<1x128xf32> to vector<96x128xf32>
    %183 = arith.addf %181, %182 : vector<96x128xf32>
    %c1_54 = arith.constant 1 : index
    %c0_55 = arith.constant 0 : index
    %c0_56 = arith.constant 0 : index
    %184 = vector.load %arg9[%c1_54, %c0_55, %c0_56] : memref<2x7x128xf32, #tpu.memory_space<vmem>>, vector<1x7x128xf32>
    %185 = vector.shape_cast %184 : vector<1x7x128xf32> to vector<7x128xf32>
    %186 = arith.truncf %183 : vector<96x128xf32> to vector<96x128xbf16>
    %c1_57 = arith.constant 1 : index
    %c0_58 = arith.constant 0 : index
    %c0_59 = arith.constant 0 : index
    %187 = vector.load %arg4[%c1_57, %c0_58, %c0_59] : memref<2x128x384xbf16, #tpu.memory_space<vmem>>, vector<1x128x384xbf16>
    %188 = vector.shape_cast %187 : vector<1x128x384xbf16> to vector<128x384xbf16>
    %cst_60 = arith.constant dense<0.000000e+00> : vector<96x384xf32>
    %189 = tpu.matmul %186, %188, %cst_60 {dimension_numbers = #tpu.dot_dimension_numbers<[1], [0], [0], [1], [0, 0, 1, 1], [], []>} : vector<96x128xbf16>, vector<128x384xbf16>, vector<96x384xf32> -> vector<96x384xf32>
    %c1_61 = arith.constant 1 : index
    %c0_62 = arith.constant 0 : index
    %c0_63 = arith.constant 0 : index
    %190 = vector.load %arg5[%c1_61, %c0_62, %c0_63] : memref<2x1x384xf32, #tpu.memory_space<vmem>>, vector<1x1x384xf32>
    %191 = vector.shape_cast %190 : vector<1x1x384xf32> to vector<1x384xf32>
    %192 = vector.broadcast %191 : vector<1x384xf32> to vector<96x384xf32>
    %193 = arith.addf %189, %192 : vector<96x384xf32>
    %194 = vector.extract_strided_slice %193 {offsets = [0, 0], sizes = [96, 128], strides = [1, 1]} : vector<96x384xf32> to vector<96x128xf32>
    %195 = vector.shape_cast %194 : vector<96x128xf32> to vector<12x8x128xf32>
    %196 = vector.extract_strided_slice %193 {offsets = [0, 128], sizes = [96, 128], strides = [1, 1]} : vector<96x384xf32> to vector<96x128xf32>
    %197 = vector.shape_cast %196 : vector<96x128xf32> to vector<12x8x128xf32>
    %198 = vector.extract_strided_slice %193 {offsets = [0, 256], sizes = [96, 128], strides = [1, 1]} : vector<96x384xf32> to vector<96x128xf32>
    %199 = vector.shape_cast %198 : vector<96x128xf32> to vector<12x8x128xf32>
    %200 = vector.shape_cast %195 : vector<12x8x128xf32> to vector<12x1x8x128xf32>
    %201 = vector.shape_cast %17 : vector<2x1x128xf32> to vector<1x2x1x128xf32>
    %202 = vector.broadcast %200 : vector<12x1x8x128xf32> to vector<12x2x8x128xf32>
    %203 = vector.broadcast %201 : vector<1x2x1x128xf32> to vector<12x2x8x128xf32>
    %204 = arith.mulf %202, %203 : vector<12x2x8x128xf32>
    %205 = vector.shape_cast %204 : vector<12x2x8x128xf32> to vector<24x8x128xf32>
    %206 = arith.truncf %205 : vector<24x8x128xf32> to vector<24x8x128xbf16>
    %207 = vector.shape_cast %197 : vector<12x8x128xf32> to vector<12x1x8x128xf32>
    %208 = vector.shape_cast %17 : vector<2x1x128xf32> to vector<1x2x1x128xf32>
    %209 = vector.broadcast %207 : vector<12x1x8x128xf32> to vector<12x2x8x128xf32>
    %210 = vector.broadcast %208 : vector<1x2x1x128xf32> to vector<12x2x8x128xf32>
    %211 = arith.mulf %209, %210 : vector<12x2x8x128xf32>
    %212 = vector.shape_cast %211 : vector<12x2x8x128xf32> to vector<24x8x128xf32>
    %213 = arith.truncf %212 : vector<24x8x128xf32> to vector<24x8x128xbf16>
    %214 = vector.shape_cast %199 : vector<12x8x128xf32> to vector<12x1x8x128xf32>
    %215 = vector.shape_cast %17 : vector<2x1x128xf32> to vector<1x2x1x128xf32>
    %216 = vector.broadcast %214 : vector<12x1x8x128xf32> to vector<12x2x8x128xf32>
    %217 = vector.broadcast %215 : vector<1x2x1x128xf32> to vector<12x2x8x128xf32>
    %218 = arith.mulf %216, %217 : vector<12x2x8x128xf32>
    %219 = vector.shape_cast %218 : vector<12x2x8x128xf32> to vector<24x8x128xf32>
    %220 = arith.truncf %219 : vector<24x8x128xf32> to vector<24x8x128xbf16>
    "tpu.trace_start"() <{level = 10 : i32, message = "bqd,bkd->bqk"}> : () -> ()
    %cst_64 = arith.constant dense<0.000000e+00> : vector<24x8x8xf32>
    %221 = tpu.matmul %206, %213, %cst_64 {dimension_numbers = #tpu.dot_dimension_numbers<[2], [2], [1], [1], [0, 0, 0, 1, 1, 1], [0], [0]>} : vector<24x8x128xbf16>, vector<24x8x128xbf16>, vector<24x8x8xf32> -> vector<24x8x8xf32>
    "tpu.trace_stop"() : () -> ()
    %222 = vector.broadcast %44 : vector<24x1x8xf32> to vector<24x8x8xf32>
    %223 = arith.addf %221, %222 : vector<24x8x8xf32>
    %cst_65 = arith.constant dense<0xFF800000> : vector<24x8xf32>
    %224 = vector.multi_reduction <maximumf>, %223, %cst_65 [2] : vector<24x8x8xf32> to vector<24x8xf32>
    %225 = vector.shape_cast %224 : vector<24x8xf32> to vector<24x8x1xf32>
    %226 = vector.broadcast %225 : vector<24x8x1xf32> to vector<24x8x8xf32>
    %227 = arith.subf %223, %226 : vector<24x8x8xf32>
    %228 = math.exp %227 : vector<24x8x8xf32>
    %cst_66 = arith.constant dense<0.000000e+00> : vector<24x8xf32>
    %229 = vector.multi_reduction <add>, %228, %cst_66 [2] : vector<24x8x8xf32> to vector<24x8xf32>
    %230 = vector.shape_cast %229 : vector<24x8xf32> to vector<24x8x1xf32>
    %231 = tpu.reciprocal %230 {approx = true} : vector<24x8x1xf32> -> vector<24x8x1xf32>
    %232 = vector.broadcast %231 : vector<24x8x1xf32> to vector<24x8x8xf32>
    %233 = arith.mulf %228, %232 : vector<24x8x8xf32>
    %234 = arith.truncf %233 : vector<24x8x8xf32> to vector<24x8x8xbf16>
    "tpu.trace_start"() <{level = 10 : i32, message = "bqk,bkd->bqd"}> : () -> ()
    %cst_67 = arith.constant dense<0.000000e+00> : vector<24x8x128xf32>
    %235 = tpu.matmul %234, %220, %cst_67 {dimension_numbers = #tpu.dot_dimension_numbers<[2], [1], [1], [2], [0, 0, 0, 1, 1, 2], [0], [0]>} : vector<24x8x8xbf16>, vector<24x8x128xbf16>, vector<24x8x128xf32> -> vector<24x8x128xf32>
    "tpu.trace_stop"() : () -> ()
    %236 = vector.shape_cast %235 : vector<24x8x128xf32> to vector<12x2x8x128xf32>
    %cst_68 = arith.constant dense<0.000000e+00> : vector<12x8x128xf32>
    %237 = vector.multi_reduction <add>, %236, %cst_68 [1] : vector<12x2x8x128xf32> to vector<12x8x128xf32>
    %238 = vector.shape_cast %237 : vector<12x8x128xf32> to vector<96x128xf32>
    %239 = arith.truncf %238 : vector<96x128xf32> to vector<96x128xbf16>
    %c1_69 = arith.constant 1 : index
    %c0_70 = arith.constant 0 : index
    %c0_71 = arith.constant 0 : index
    %240 = vector.load %arg6[%c1_69, %c0_70, %c0_71] : memref<2x128x128xbf16, #tpu.memory_space<vmem>>, vector<1x128x128xbf16>
    %241 = vector.shape_cast %240 : vector<1x128x128xbf16> to vector<128x128xbf16>
    %cst_72 = arith.constant dense<0.000000e+00> : vector<96x128xf32>
    %242 = tpu.matmul %239, %241, %cst_72 {dimension_numbers = #tpu.dot_dimension_numbers<[1], [0], [0], [1], [0, 0, 1, 1], [], []>} : vector<96x128xbf16>, vector<128x128xbf16>, vector<96x128xf32> -> vector<96x128xf32>
    %243 = vector.extract_strided_slice %185 {offsets = [0, 0], sizes = [1, 128], strides = [1, 1]} : vector<7x128xf32> to vector<1x128xf32>
    %244 = vector.broadcast %243 : vector<1x128xf32> to vector<96x128xf32>
    %245 = arith.addf %242, %244 : vector<96x128xf32>
    %246 = arith.addf %183, %245 : vector<96x128xf32>
    %247 = vector.extract_strided_slice %185 {offsets = [1, 0], sizes = [1, 128], strides = [1, 1]} : vector<7x128xf32> to vector<1x128xf32>
    %248 = vector.extract_strided_slice %185 {offsets = [2, 0], sizes = [1, 128], strides = [1, 1]} : vector<7x128xf32> to vector<1x128xf32>
    %cst_73 = arith.constant dense<0.000000e+00> : vector<96xf32>
    %249 = vector.multi_reduction <add>, %246, %cst_73 [1] : vector<96x128xf32> to vector<96xf32>
    %250 = vector.shape_cast %249 : vector<96xf32> to vector<96x1xf32>
    %cst_74 = arith.constant 3.125000e-02 : f32
    %251 = vector.broadcast %cst_74 : f32 to vector<96x1xf32>
    %252 = arith.mulf %250, %251 : vector<96x1xf32>
    %253 = vector.broadcast %252 : vector<96x1xf32> to vector<96x128xf32>
    %254 = arith.subf %246, %253 : vector<96x128xf32>
    %255 = vector.broadcast %4 : vector<1x128xf32> to vector<96x128xf32>
    %256 = arith.mulf %254, %255 : vector<96x128xf32>
    %257 = arith.mulf %256, %256 : vector<96x128xf32>
    %cst_75 = arith.constant dense<0.000000e+00> : vector<96xf32>
    %258 = vector.multi_reduction <add>, %257, %cst_75 [1] : vector<96x128xf32> to vector<96xf32>
    %259 = vector.shape_cast %258 : vector<96xf32> to vector<96x1xf32>
    %cst_76 = arith.constant 3.125000e-02 : f32
    %260 = vector.broadcast %cst_76 : f32 to vector<96x1xf32>
    %261 = arith.mulf %259, %260 : vector<96x1xf32>
    %cst_77 = arith.constant 9.99999996E-13 : f32
    %262 = vector.broadcast %cst_77 : f32 to vector<96x1xf32>
    %263 = arith.addf %261, %262 : vector<96x1xf32>
    %264 = math.rsqrt %263 : vector<96x1xf32>
    %265 = vector.broadcast %264 : vector<96x1xf32> to vector<96x128xf32>
    %266 = arith.mulf %256, %265 : vector<96x128xf32>
    %267 = vector.broadcast %247 : vector<1x128xf32> to vector<96x128xf32>
    %268 = arith.mulf %266, %267 : vector<96x128xf32>
    %269 = vector.broadcast %248 : vector<1x128xf32> to vector<96x128xf32>
    %270 = arith.addf %268, %269 : vector<96x128xf32>
    %271 = arith.truncf %270 : vector<96x128xf32> to vector<96x128xbf16>
    %c1_78 = arith.constant 1 : index
    %c0_79 = arith.constant 0 : index
    %c0_80 = arith.constant 0 : index
    %272 = vector.load %arg7[%c1_78, %c0_79, %c0_80] : memref<2x128x128xbf16, #tpu.memory_space<vmem>>, vector<1x128x128xbf16>
    %273 = vector.shape_cast %272 : vector<1x128x128xbf16> to vector<128x128xbf16>
    %cst_81 = arith.constant dense<0.000000e+00> : vector<96x128xf32>
    %274 = tpu.matmul %271, %273, %cst_81 {dimension_numbers = #tpu.dot_dimension_numbers<[1], [0], [0], [1], [0, 0, 1, 1], [], []>} : vector<96x128xbf16>, vector<128x128xbf16>, vector<96x128xf32> -> vector<96x128xf32>
    %275 = vector.extract_strided_slice %185 {offsets = [3, 0], sizes = [1, 128], strides = [1, 1]} : vector<7x128xf32> to vector<1x128xf32>
    %276 = vector.broadcast %275 : vector<1x128xf32> to vector<96x128xf32>
    %277 = arith.addf %274, %276 : vector<96x128xf32>
    %cst_82 = arith.constant 5.000000e-01 : f32
    %278 = vector.broadcast %cst_82 : f32 to vector<96x128xf32>
    %279 = arith.mulf %278, %277 : vector<96x128xf32>
    %cst_83 = arith.constant 4.471500e-02 : f32
    %280 = vector.broadcast %cst_83 : f32 to vector<96x128xf32>
    %281 = arith.mulf %280, %277 : vector<96x128xf32>
    %282 = arith.mulf %281, %277 : vector<96x128xf32>
    %283 = arith.mulf %282, %277 : vector<96x128xf32>
    %284 = arith.addf %277, %283 : vector<96x128xf32>
    %cst_84 = arith.constant 0.797884583 : f32
    %285 = vector.broadcast %cst_84 : f32 to vector<96x128xf32>
    %286 = arith.mulf %285, %284 : vector<96x128xf32>
    %287 = math.tanh %286 : vector<96x128xf32>
    %cst_85 = arith.constant 1.000000e+00 : f32
    %288 = vector.broadcast %cst_85 : f32 to vector<96x128xf32>
    %289 = arith.addf %288, %287 : vector<96x128xf32>
    %290 = arith.mulf %279, %289 : vector<96x128xf32>
    %291 = arith.truncf %290 : vector<96x128xf32> to vector<96x128xbf16>
    %c1_86 = arith.constant 1 : index
    %c0_87 = arith.constant 0 : index
    %c0_88 = arith.constant 0 : index
    %292 = vector.load %arg8[%c1_86, %c0_87, %c0_88] : memref<2x128x128xbf16, #tpu.memory_space<vmem>>, vector<1x128x128xbf16>
    %293 = vector.shape_cast %292 : vector<1x128x128xbf16> to vector<128x128xbf16>
    %cst_89 = arith.constant dense<0.000000e+00> : vector<96x128xf32>
    %294 = tpu.matmul %291, %293, %cst_89 {dimension_numbers = #tpu.dot_dimension_numbers<[1], [0], [0], [1], [0, 0, 1, 1], [], []>} : vector<96x128xbf16>, vector<128x128xbf16>, vector<96x128xf32> -> vector<96x128xf32>
    %295 = vector.extract_strided_slice %185 {offsets = [4, 0], sizes = [1, 128], strides = [1, 1]} : vector<7x128xf32> to vector<1x128xf32>
    %296 = vector.broadcast %295 : vector<1x128xf32> to vector<96x128xf32>
    %297 = arith.addf %294, %296 : vector<96x128xf32>
    %298 = arith.addf %270, %297 : vector<96x128xf32>
    %299 = vector.extract_strided_slice %185 {offsets = [5, 0], sizes = [1, 128], strides = [1, 1]} : vector<7x128xf32> to vector<1x128xf32>
    %300 = vector.extract_strided_slice %185 {offsets = [6, 0], sizes = [1, 128], strides = [1, 1]} : vector<7x128xf32> to vector<1x128xf32>
    %cst_90 = arith.constant dense<0.000000e+00> : vector<96xf32>
    %301 = vector.multi_reduction <add>, %298, %cst_90 [1] : vector<96x128xf32> to vector<96xf32>
    %302 = vector.shape_cast %301 : vector<96xf32> to vector<96x1xf32>
    %cst_91 = arith.constant 3.125000e-02 : f32
    %303 = vector.broadcast %cst_91 : f32 to vector<96x1xf32>
    %304 = arith.mulf %302, %303 : vector<96x1xf32>
    %305 = vector.broadcast %304 : vector<96x1xf32> to vector<96x128xf32>
    %306 = arith.subf %298, %305 : vector<96x128xf32>
    %307 = vector.broadcast %4 : vector<1x128xf32> to vector<96x128xf32>
    %308 = arith.mulf %306, %307 : vector<96x128xf32>
    %309 = arith.mulf %308, %308 : vector<96x128xf32>
    %cst_92 = arith.constant dense<0.000000e+00> : vector<96xf32>
    %310 = vector.multi_reduction <add>, %309, %cst_92 [1] : vector<96x128xf32> to vector<96xf32>
    %311 = vector.shape_cast %310 : vector<96xf32> to vector<96x1xf32>
    %cst_93 = arith.constant 3.125000e-02 : f32
    %312 = vector.broadcast %cst_93 : f32 to vector<96x1xf32>
    %313 = arith.mulf %311, %312 : vector<96x1xf32>
    %cst_94 = arith.constant 9.99999996E-13 : f32
    %314 = vector.broadcast %cst_94 : f32 to vector<96x1xf32>
    %315 = arith.addf %313, %314 : vector<96x1xf32>
    %316 = math.rsqrt %315 : vector<96x1xf32>
    %317 = vector.broadcast %316 : vector<96x1xf32> to vector<96x128xf32>
    %318 = arith.mulf %308, %317 : vector<96x128xf32>
    %319 = vector.broadcast %299 : vector<1x128xf32> to vector<96x128xf32>
    %320 = arith.mulf %318, %319 : vector<96x128xf32>
    %321 = vector.broadcast %300 : vector<1x128xf32> to vector<96x128xf32>
    %322 = arith.addf %320, %321 : vector<96x128xf32>
    %c0_95 = arith.constant 0 : index
    %c0_96 = arith.constant 0 : index
    %c0_97 = arith.constant 0 : index
    %323 = vector.load %arg10[%c0_95, %c0_96, %c0_97] : memref<1x96x128xf32, #tpu.memory_space<vmem>>, vector<1x96x128xf32>
    %324 = vector.shape_cast %323 : vector<1x96x128xf32> to vector<96x128xf32>
    %325 = vector.shape_cast %322 : vector<96x128xf32> to vector<1x96x128xf32>
    tpu.vector_store %arg10[%c0_95, %c0_96, %c0_97], %325 {strides = array<i32>} : memref<1x96x128xf32, #tpu.memory_space<vmem>>, vector<1x96x128xf32>,
    return
  }
  func.func @transform_0(%arg0: i32) -> (i32, i32, i32) {
    %c0_i32 = arith.constant 0 : i32
    %c0_i32_0 = arith.constant 0 : i32
    %c0_i32_1 = arith.constant 0 : i32
    return %arg0, %c0_i32, %c0_i32_0 : i32, i32, i32
  }
  func.func @transform_1(%arg0: i32) -> (i32, i32, i32) {
    %c0_i32 = arith.constant 0 : i32
    %c0_i32_0 = arith.constant 0 : i32
    %c0_i32_1 = arith.constant 0 : i32
    return %arg0, %c0_i32, %c0_i32_0 : i32, i32, i32
  }
  func.func @transform_2(%arg0: i32) -> (i32, i32) {
    %c0_i32 = arith.constant 0 : i32
    %c0_i32_0 = arith.constant 0 : i32
    %c0_i32_1 = arith.constant 0 : i32
    return %c0_i32, %c0_i32_0 : i32, i32
  }
  func.func @transform_3(%arg0: i32) -> (i32, i32, i32) {
    %c0_i32 = arith.constant 0 : i32
    %c0_i32_0 = arith.constant 0 : i32
    %c0_i32_1 = arith.constant 0 : i32
    %c0_i32_2 = arith.constant 0 : i32
    return %c0_i32, %c0_i32_0, %c0_i32_1 : i32, i32, i32
  }
  func.func @transform_4(%arg0: i32) -> (i32, i32, i32) {
    %c0_i32 = arith.constant 0 : i32
    %c0_i32_0 = arith.constant 0 : i32
    %c0_i32_1 = arith.constant 0 : i32
    %c0_i32_2 = arith.constant 0 : i32
    return %c0_i32, %c0_i32_0, %c0_i32_1 : i32, i32, i32
  }
  func.func @transform_5(%arg0: i32) -> (i32, i32, i32) {
    %c0_i32 = arith.constant 0 : i32
    %c0_i32_0 = arith.constant 0 : i32
    %c0_i32_1 = arith.constant 0 : i32
    %c0_i32_2 = arith.constant 0 : i32
    return %c0_i32, %c0_i32_0, %c0_i32_1 : i32, i32, i32
  }
  func.func @transform_6(%arg0: i32) -> (i32, i32, i32) {
    %c0_i32 = arith.constant 0 : i32
    %c0_i32_0 = arith.constant 0 : i32
    %c0_i32_1 = arith.constant 0 : i32
    %c0_i32_2 = arith.constant 0 : i32
    return %c0_i32, %c0_i32_0, %c0_i32_1 : i32, i32, i32
  }
  func.func @transform_7(%arg0: i32) -> (i32, i32, i32) {
    %c0_i32 = arith.constant 0 : i32
    %c0_i32_0 = arith.constant 0 : i32
    %c0_i32_1 = arith.constant 0 : i32
    %c0_i32_2 = arith.constant 0 : i32
    return %c0_i32, %c0_i32_0, %c0_i32_1 : i32, i32, i32
  }
  func.func @transform_8(%arg0: i32) -> (i32, i32, i32) {
    %c0_i32 = arith.constant 0 : i32
    %c0_i32_0 = arith.constant 0 : i32
    %c0_i32_1 = arith.constant 0 : i32
    %c0_i32_2 = arith.constant 0 : i32
    return %c0_i32, %c0_i32_0, %c0_i32_1 : i32, i32, i32
  }
  func.func @transform_9(%arg0: i32) -> (i32, i32, i32) {
    %c0_i32 = arith.constant 0 : i32
    %c0_i32_0 = arith.constant 0 : i32
    %c0_i32_1 = arith.constant 0 : i32
    return %arg0, %c0_i32, %c0_i32_0 : i32, i32, i32
  }
}

</mosaic_0001>

<bundles_post_ra>
// kernel: tpu_custom_call.1
= control target key start
LH: loop header
LB: loop body
LE: loop exit
PB: predicated region body
PF: predicated region fallthrough
CT: control target
= control target key end

     0   :  { %14 = vsyncpa [#allocation3], 0  ;;  %s12663_s0 = inlined_call_operand.hbm [shape: f32[12,8,128], index: 0, kind: input, shape index: {}]   ;;  %s12664_s1 = inlined_call_operand.vmem [shape: f32[24,1,8], index: 1, kind: input, shape index: {}]   ;;  %s12665_s2 = inlined_call_operand.vmem [shape: f32[2,128], index: 2, kind: input, shape index: {}]   ;;  %s12666_s3 = inlined_call_operand.hbm [shape: bf16[2,128,384], index: 3, kind: input, shape index: {}]   ;;  %s12667_s4 = inlined_call_operand.vmem [shape: f32[2,1,384], index: 4, kind: input, shape index: {}]   ;;  %s12668_s5 = inlined_call_operand.hbm [shape: bf16[2,128,128], index: 5, kind: input, shape index: {}]   ;;  %s12669_s6 = inlined_call_operand.hbm [shape: bf16[2,128,128], index: 6, kind: input, shape index: {}]   ;;  %s12670_s7 = inlined_call_operand.hbm [shape: bf16[2,128,128], index: 7, kind: input, shape index: {}]   ;;  %s12671_s8 = inlined_call_operand.vmem [shape: f32[2,7,128], index: 8, kind: input, shape index: {}]   ;;  %s12672_s9 = inlined_call_operand.hbm [shape: f32[1,96,128], index: 9, kind: output, shape index: {}]  }
   0x1   :  { %15 = vsyncpa [#allocation6], 0 }
   0x2   :  { %16 = vsyncpa [#allocation9], 0 }
   0x3   :  { %17 = vsyncpa [#allocation4], 0  ;;  %s10171_s30 = smov [#allocation5]   ;;  %s10031_s13 = scalar_lea.hbm %s12666_s3, 6144 }
   0x4   :  { %s39_s10 = sshll.u32 %s10171_s30, 4  ;;  %p10032_p0 = scmp.ne.s32.totalorder %s12666_s3, %s10031_s13  ;;  %s40_s10 = int_to_ptr.vmem [resolvable:$true] %s39_s10 }
   0x5   :  { %p10035_p1 = scmp.lt.u32.totalorder %s10031_s13, %s12666_s3 }
   0x7   :  { %p10037_p2 = pnand %p10035_p1, %p10032_p0 }
   0x9   :  { %10040 = shalt.err (!%p10037_p2)
}
   0xa   :  { %s10041_s18 = scalar_lea.vmem %s40_s10, 6144  ;;  %p10046_p4 = scmp.lt.s32.totalorder %s40_s10, %s40_s10 }
   0xb   :  { %p10042_p3 = scmp.ne.s32.totalorder %s40_s10, %s10041_s18  ;;  %p10047_p5 = scmp.lt.s32.totalorder %s10041_s18, %s10041_s18 }
   0xd   :  { %p10048_p6 = por %p10047_p5, %p10046_p4 }
   0xf   :  { %p10049_p7 = pnand %p10048_p6, %p10042_p3 }
  0x11   :  { %10052 = shalt.err (!%p10049_p7)
}
  0x12   :  { %s10172_s19 = smov 192   ;;  %s10173_s20 = smov 12  }
  0x13   :  { %45 = dma.hbm_to_vmem [thread:$0]  %s12666_s3, 6144, %s40_s10, [#allocation6], %s10172_s19, %s10172_s19, %s10173_s20  }
  0x14   :  { %s10174_s23 = smov [#allocation8]   ;;  %s10175_s25 = smov [#allocation2]  }
  0x15   :  { %s65_s24 = sshll.u32 %s10174_s23, 4  ;;  %s23_s26 = sshll.u32 %s10175_s25, 4  ;;  %s66_s24 = int_to_ptr.vmem [resolvable:$true] %s65_s24  ;;  %s24_s26 = int_to_ptr.vmem [resolvable:$true] %s23_s26 }
  0x16   :  { %s10053_s29 = scalar_lea.hbm %s12669_s6, 2048 }
  0x17   :  { %p10054_p8 = scmp.ne.s32.totalorder %s12669_s6, %s10053_s29  ;;  %p10057_p9 = scmp.lt.u32.totalorder %s10053_s29, %s12669_s6 }
  0x19   :  { %p10059_p10 = pnand %p10057_p9, %p10054_p8 }
  0x1b   :  { %10062 = shalt.err (!%p10059_p10)
}
  0x1c   :  { %s10063_s3 = scalar_lea.vmem %s66_s24, 2048  ;;  %p10068_p12 = scmp.lt.s32.totalorder %s66_s24, %s66_s24 }
  0x1d   :  { %p10064_p11 = scmp.ne.s32.totalorder %s66_s24, %s10063_s3  ;;  %p10069_p13 = scmp.lt.s32.totalorder %s10063_s3, %s10063_s3 }
  0x1f   :  { %p10070_p0 = por %p10069_p13, %p10068_p12 }
  0x21   :  { %p10071_p1 = pnand %p10070_p0, %p10064_p11 }
  0x23   :  { %10074 = shalt.err (!%p10071_p1)
}
  0x24   :  { %s10176_s10 = smov 64   ;;  %s10177_s14 = smov 4  }
  0x25   :  { %71 = dma.hbm_to_vmem [thread:$0]  %s12669_s6, 2048, %s66_s24, [#allocation9], %s10176_s10, %s10176_s10, %s10177_s14  }
  0x26   :  { %s10075_s19 = scalar_lea.hbm %s12663_s0, 1536 }
  0x27   :  { %p10076_p2 = scmp.ne.s32.totalorder %s12663_s0, %s10075_s19  ;;  %p10079_p3 = scmp.lt.u32.totalorder %s10075_s19, %s12663_s0 }
  0x29   :  { %p10081_p4 = pnand %p10079_p3, %p10076_p2 }
  0x2b   :  { %10084 = shalt.err (!%p10081_p4)
}
  0x2c   :  { %s10085_s25 = scalar_lea.vmem %s24_s26, 1536  ;;  %p10090_p6 = scmp.lt.s32.totalorder %s24_s26, %s24_s26 }
  0x2d   :  { %p10086_p5 = scmp.ne.s32.totalorder %s24_s26, %s10085_s25  ;;  %p10091_p7 = scmp.lt.s32.totalorder %s10085_s25, %s10085_s25 }
  0x2f   :  { %p10092_p8 = por %p10091_p7, %p10090_p6 }
  0x31   :  { %p10093_p9 = pnand %p10092_p8, %p10086_p5 }
  0x33   :  { %10096 = shalt.err (!%p10093_p9)
}
  0x34   :  { %s10178_s6 = smov 128   ;;  %s10179_s24 = smov 8  }
  0x35   :  { %29 = dma.hbm_to_vmem [thread:$0]  %s12663_s0, 1536, %s24_s26, [#allocation3], %s10178_s6, %s10178_s6, %s10179_s24  }
  0x36   :  { %s10180_s29 = smov [#allocation7]   ;;  %s10181_s11 = smov [#allocation10]  }
  0x37   :  { %s53_s30 = sshll.u32 %s10180_s29, 4  ;;  %s77_s12 = sshll.u32 %s10181_s11, 4  ;;  %s54_s30 = int_to_ptr.vmem [resolvable:$true] %s53_s30  ;;  %s78_s12 = int_to_ptr.vmem [resolvable:$true] %s77_s12 }
  0x38   :  { %s10097_s15 = scalar_lea.hbm %s12668_s5, 2048 }
  0x39   :  { %p10098_p10 = scmp.ne.s32.totalorder %s12668_s5, %s10097_s15  ;;  %p10101_p11 = scmp.lt.u32.totalorder %s10097_s15, %s12668_s5 }
  0x3b   :  { %p10103_p12 = pnand %p10101_p11, %p10098_p10 }
  0x3d   :  { %10106 = shalt.err (!%p10103_p12)
}
  0x3e   :  { %s10107_s0 = scalar_lea.vmem %s54_s30, 2048  ;;  %p10112_p0 = scmp.lt.s32.totalorder %s54_s30, %s54_s30 }
  0x3f   :  { %p10108_p13 = scmp.ne.s32.totalorder %s54_s30, %s10107_s0  ;;  %p10113_p1 = scmp.lt.s32.totalorder %s10107_s0, %s10107_s0 }
  0x41   :  { %p10114_p2 = por %p10113_p1, %p10112_p0 }
  0x43   :  { %p10115_p3 = pnand %p10114_p2, %p10108_p13 }
  0x45   :  { %10118 = shalt.err (!%p10115_p3)
}
  0x46   :  { %59 = dma.hbm_to_vmem [thread:$0]  %s12668_s5, 2048, %s54_s30, [#allocation6], %s10176_s10, %s10176_s10, %s10177_s14  }
  0x47   :  { %s10119_s23 = scalar_lea.hbm %s12670_s7, 2048 }
  0x48   :  { %p10120_p4 = scmp.ne.s32.totalorder %s12670_s7, %s10119_s23  ;;  %p10123_p5 = scmp.lt.u32.totalorder %s10119_s23, %s12670_s7 }
  0x4a   :  { %p10125_p6 = pnand %p10123_p5, %p10120_p4 }
  0x4c   :  { %10128 = shalt.err (!%p10125_p6)
}
  0x4d   :  { %s10129_s11 = scalar_lea.vmem %s78_s12, 2048  ;;  %p10134_p8 = scmp.lt.s32.totalorder %s78_s12, %s78_s12 }
  0x4e   :  { %p10130_p7 = scmp.ne.s32.totalorder %s78_s12, %s10129_s11  ;;  %p10135_p9 = scmp.lt.s32.totalorder %s10129_s11, %s10129_s11 }
  0x50   :  { %p10136_p10 = por %p10135_p9, %p10134_p8 }
  0x52   :  { %p10137_p11 = pnand %p10136_p10, %p10130_p7 }
  0x54   :  { %10140 = shalt.err (!%p10137_p11)
}
  0x55   :  { %83 = dma.hbm_to_vmem [thread:$0]  %s12670_s7, 2048, %s78_s12, [#allocation9], %s10176_s10, %s10176_s10, %s10177_s14  }
  0x56   :  { %10163 = dma.done.wait [#allocation3], 1536  }
  0x57   :  { %10164 = vsyncadd [#allocation3], 4294965760 }
  0x58   :  { %10165 = dma.done.wait [#allocation6], 8192  }
  0x59   :  { %10166 = vsyncadd [#allocation6], 4294959104 }
  0x5a   :  { %10167 = dma.done.wait [#allocation9], 4096  }
  0x5b   :  { %10168 = vsyncadd [#allocation9], 4294963200  ;;  %v116_v0 = vld [vmem:[#allocation2] sm:$0xff]  ;;  %v118_v1 = vld [vmem:[#allocation2 + $0x10] sm:$0xff]  ;;  %v102_v8 = vlaneseq  ;;  %v12675_v18 = vmov 0.0   ;;  %vm10184_vm3 = vmmov 0  }
  0x5c   :  { %130 = vadd.xlane.f32.xlu0 %v116_v0  ;;  %134 = vadd.xlane.f32.xlu1 %v118_v1  ;;  %v117_v2 = vld [vmem:[#allocation2 + $0x8] sm:$0xff]  ;;  %v119_v3 = vld [vmem:[#allocation2 + $0x18] sm:$0xff]  ;;  %v120_v4 = vld [vmem:[#allocation2 + $0x20] sm:$0xff]  ;;  %vm2228_vm5 = vcmask 1043456   ;;  %vm1936_vm6 = vcmask 64512  }
  0x5d   :  { %v10308_v5 = vld [vmem:[#allocation2 + $0x28] sm:$0xff]  ;;  %v10310_v6 = vld [vmem:[#allocation2 + $0x30] sm:$0xff]  ;;  %v10312_v7 = vld [vmem:[#allocation2 + $0x38] sm:$0xff]  ;;  %v10318_v9 = vand.u32 127, %v102_v8 }
  0x5e   :  { %v9533_v11 = vld [vmem:[#allocation5 + $0x4] ss:$12 sps:$4 sm:$0xff]   ;;  %v9535_v12 = vld [vmem:[#allocation5] ss:$12 sps:$4 sm:$0xff]   ;;  %v9536_v13 = vld [vmem:[#allocation5 + $0x1c] ss:$12 sps:$4 sm:$0xff]  }
  0x5f   :  { %vm104_vm0 = vcmp.lt.s32.totalorder %v10318_v9, 32  ;;  %vm108_vm1 = vcmp.ge.s32.totalorder %v10318_v9, 16  ;;  %514 = vmatprep.subr.bf16.mxu0 %v9533_v11  ;;  %v10340_v35 = vld [vmem:[#allocation2 + $0x40] sm:$0xff]  ;;  %v10350_v43 = vld [vmem:[#allocation2 + $0x48] sm:$0xff]  ;;  %v10360_v50 = vld [vmem:[#allocation2 + $0x50] sm:$0xff]  ;;  %vm109_vm4 = vcmp.lt.s32.totalorder %v10318_v9, 16 }
  0x60   :  { %132 = vadd.xlane.f32.xlu0 %v117_v2  ;;  %136 = vadd.xlane.f32.xlu1 %v119_v3  ;;  %vm10322_vm2 = vmand %vm108_vm1, %vm104_vm0  ;;  %v10327_v19 = vsel %vm104_vm0, 1.0, %v12675_v18  ;;  %v9538_v55 = vld [vmem:[#allocation5 + $0x18] ss:$12 sps:$4 sm:$0xff]   ;;  %v9539_v57 = vld [vmem:[#allocation5 + $0x34] ss:$12 sps:$4 sm:$0xff]  }
  0x61   :  { %515 = vmatpush1.bf16.msra.mxu0 %v9535_v12  ;;  %v10372_v56 = vld [vmem:[#allocation2 + $0x58] sm:$0xff]  ;;  %v9541_v58 = vld [vmem:[#allocation5 + $0x8] ss:$12 sps:$4 sm:$0xff]  }
  0x62   :  { %516 = vmatprep.subr.bf16.mxu0 %v9536_v13  ;;  %v9542_v62 = vld [vmem:[#allocation5 + $0x30] ss:$12 sps:$4 sm:$0xff]   ;;  %8622 = vmatprep.subr.bf16.mxu1 %v9541_v58  ;;  %v9543_v63 = vld [vmem:[#allocation5 + $0x4c] ss:$12 sps:$4 sm:$0xff]   ;;  %v9555_v12 = vld [vmem:[#allocation5 + $0x94] ss:$12 sps:$4 sm:$0xff]  }
  0x63   :  { %8623 = vmatpush3.bf16.msra.mxu1 %v9541_v58  ;;  %v9554_v11 = vld [vmem:[#allocation5 + $0x78] ss:$12 sps:$4 sm:$0xff]   ;;  %v9557_v13 = vld [vmem:[#allocation5 + $0x68] ss:$12 sps:$4 sm:$0xff]  }
  0x64   :  { %138 = vadd.xlane.f32.xlu0 %v120_v4  ;;  %140 = vadd.xlane.f32.xlu1 %v10308_v5 }
  0x65   :  { %517 = vmatpush1.bf16.msra.mxu0 %v9538_v55 }
  0x66   :  { %518 = vmatprep.subr.bf16.mxu0 %v9539_v57 }
  0x68   :  { %142 = vadd.xlane.f32.xlu0 %v10310_v6  ;;  %144 = vadd.xlane.f32.xlu1 %v10312_v7 }
  0x69   :  { %519 = vmatpush1.bf16.msra.mxu0 %v9542_v62 }
  0x6a   :  { %520 = vmatprep.subr.bf16.mxu0 %v9543_v63 }
  0xe9   :  { %v131_v14 = vpop.xlane.xlu0 %130  ;;  %v135_v15 = vpop.xlane.xlu1 %134 }
  0xea   :  { %v154_v16 = vmul.f32 0.03125, %v131_v14  ;;  %v156_v17 = vmul.f32 0.03125, %v135_v15  ;;  %v9558_v14 = vld [vmem:[#allocation5 + $0x90] ss:$12 sps:$4 sm:$0xff]   ;;  %v9559_v15 = vld [vmem:[#allocation5 + $0xac] ss:$12 sps:$4 sm:$0xff]  }
  0xec   :  { %v166_v20 = vsub.f32 %v116_v0, %v154_v16  ;;  %v168_v24 = vsub.f32 %v118_v1, %v156_v17  ;;  %v9545_v0 = vld [vmem:[#allocation5 + $0x20] ss:$12 sps:$4 sm:$0xff]   ;;  %v9562_v17 = vld [vmem:[#allocation5 + $0xa8] ss:$12 sps:$4 sm:$0xff]  }
  0xed   :  { %v133_v21 = vpop.xlane.xlu0 %132  ;;  %v137_v22 = vpop.xlane.xlu1 %136  ;;  %8624 = vmatprep.subr.bf16.mxu1 %v9545_v0  ;;  %v9561_v16 = vld [vmem:[#allocation5 + $0x80] ss:$12 sps:$4 sm:$0xff]  }
  0xee   :  { %v155_v23 = vmul.f32 0.03125, %v133_v21  ;;  %v10330_v25 = vmul.f32 %v10327_v19, %v166_v20  ;;  %v157_v26 = vmul.f32 0.03125, %v137_v22  ;;  %v10338_v34 = vmul.f32 %v10327_v19, %v168_v24  ;;  %8625 = vmatpush3.bf16.msra.mxu1 %v9545_v0  ;;  %v9563_v20 = vld [vmem:[#allocation5 + $0x98] ss:$12 sps:$4 sm:$0xff]   ;;  %v9564_v22 = vld [vmem:[#allocation5 + $0xb0] ss:$12 sps:$4 sm:$0xff]  }
  0xef   :  { %v12673_v21 = vmov 0  }
  0xf0   :  { %v167_v27 = vsub.f32 %v117_v2, %v155_v23  ;;  %v190_v28 = vmul.f32 %v10330_v25, %v10330_v25  ;;  %v169_v31 = vsub.f32 %v119_v3, %v157_v26  ;;  %v192_v40 = vmul.f32 %v10338_v34, %v10338_v34  ;;  %v9546_v2 = vld [vmem:[#allocation5 + $0x48] ss:$12 sps:$4 sm:$0xff]   ;;  %v9547_v3 = vld [vmem:[#allocation5 + $0x64] ss:$12 sps:$4 sm:$0xff]   ;;  %546 = vmatprep.mubr.bf16.mxu0 %v12673_v21 }
  0xf1   :  { %v139_v29 = vpop.xlane.xlu0 %138  ;;  %v141_v30 = vpop.xlane.xlu1 %140  ;;  %521 = vmatpush1.bf16.msra.mxu0 %v9546_v2 }
  0xf2   :  { %202 = vadd.xlane.f32.xlu0 %v190_v28  ;;  %v10335_v32 = vmul.f32 %v10327_v19, %v167_v27  ;;  %v158_v33 = vmul.f32 0.03125, %v139_v29  ;;  %v159_v37 = vmul.f32 0.03125, %v141_v30  ;;  %v10348_v42 = vmul.f32 %v10327_v19, %v169_v31  ;;  %522 = vmatprep.subr.bf16.mxu0 %v9547_v3 }
  0xf4   :  { %v191_v36 = vmul.f32 %v10335_v32, %v10335_v32  ;;  %v170_v39 = vsub.f32 %v120_v4, %v158_v33  ;;  %v171_v45 = vsub.f32 %v10308_v5, %v159_v37  ;;  %v193_v47 = vmul.f32 %v10348_v42, %v10348_v42  ;;  %v9549_v4 = vld [vmem:[#allocation5 + $0x38] ss:$12 sps:$4 sm:$0xff]   ;;  %v9550_v5 = vld [vmem:[#allocation5 + $0x60] ss:$12 sps:$4 sm:$0xff]  }
  0xf5   :  { %v143_v38 = vpop.xlane.xlu0 %142  ;;  %v145_v44 = vpop.xlane.xlu1 %144  ;;  %8626 = vmatprep.subr.bf16.mxu1 %v9549_v4  ;;  %523 = vmatpush1.bf16.msra.mxu0 %v9550_v5 }
  0xf6   :  { %146 = vadd.xlane.f32.xlu0 %v10340_v35  ;;  %204 = vadd.xlane.f32.xlu1 %v191_v36  ;;  %v160_v41 = vmul.f32 0.03125, %v143_v38  ;;  %v161_v48 = vmul.f32 0.03125, %v145_v44  ;;  %v10358_v49 = vmul.f32 %v10327_v19, %v170_v39  ;;  %v10363_v51 = vmul.f32 %v10327_v19, %v171_v45 }
  0xf7   :  { %8627 = vmatpush3.bf16.msra.mxu1 %v9549_v4 }
  0xf8   :  { %v172_v46 = vsub.f32 %v10310_v6, %v160_v41  ;;  %v173_v52 = vsub.f32 %v10312_v7, %v161_v48  ;;  %v194_v53 = vmul.f32 %v10358_v49, %v10358_v49  ;;  %v195_v59 = vmul.f32 %v10363_v51, %v10363_v51  ;;  %v9551_v6 = vld [vmem:[#allocation5 + $0x7c] ss:$12 sps:$4 sm:$0xff]  }
  0xf9   :  { %v9553_v7 = vld [vmem:[#allocation5 + $0x50] ss:$12 sps:$4 sm:$0xff]   ;;  %524 = vmatprep.subr.bf16.mxu0 %v9551_v6 }
  0xfa   :  { %206 = vadd.xlane.f32.xlu0 %v192_v40  ;;  %148 = vadd.xlane.f32.xlu1 %v10350_v43  ;;  %v10370_v54 = vmul.f32 %v10327_v19, %v172_v46  ;;  %v10380_v61 = vmul.f32 %v10327_v19, %v173_v52 }
  0xfb   :  { %8628 = vmatprep.subr.bf16.mxu1 %v9553_v7  ;;  %525 = vmatpush1.bf16.msra.mxu0 %v9554_v11 }
  0xfc   :  { %v196_v60 = vmul.f32 %v10370_v54, %v10370_v54  ;;  %v197_v1 = vmul.f32 %v10380_v61, %v10380_v61  ;;  %8629 = vmatpush3.bf16.msra.mxu1 %v9553_v7  ;;  %526 = vmatprep.subr.bf16.mxu0 %v9555_v12 }
  0xfd   :  { %8630 = vmatprep.subr.bf16.mxu1 %v9557_v13 }
  0xfe   :  { %150 = vadd.xlane.f32.xlu0 %v10360_v50  ;;  %208 = vadd.xlane.f32.xlu1 %v193_v47 }
  0xff   :  { %527 = vmatpush1.bf16.msra.mxu0 %v9558_v14 }
 0x100   :  { %8631 = vmatpush3.bf16.msra.mxu1 %v9557_v13  ;;  %528 = vmatprep.subr.bf16.mxu0 %v9559_v15 }
 0x101   :  { %8632 = vmatprep.subr.bf16.mxu1 %v9561_v16 }
 0x102   :  { %152 = vadd.xlane.f32.xlu1 %v10372_v56  ;;  %210 = vadd.xlane.f32.xlu0 %v194_v53 }
 0x103   :  { %529 = vmatpush1.bf16.msra.mxu0 %v9562_v17 }
 0x104   :  { %8633 = vmatpush3.bf16.msra.mxu1 %v9561_v16  ;;  %8692 = vmatprep.subr.bf16.mxu0 %v12675_v18 }
 0x105   :  { %8634 = vmatprep.subr.bf16.mxu1 %v9563_v20 }
 0x106   :  { %212 = vadd.xlane.f32.xlu1 %v195_v59  ;;  %214 = vadd.xlane.f32.xlu0 %v196_v60 }
 0x108   :  { %8635 = vmatpush3.bf16.msra.mxu1 %v9563_v20 }
 0x109   :  { %8636 = vmatprep.subr.bf16.mxu1 %v9564_v22 }
 0x10a   :  { %216 = vadd.xlane.f32.xlu1 %v197_v1  ;;  %v10407_v1 = vld [vmem:[%s12665_s2] ss:$0 sm:$0xff] }
 0x10c   :  { %8637 = vmatpush3.bf16.msra.mxu1 %v9564_v22 }
 0x10d   :  { %8650 = vmatprep.subr.bf16.mxu1 %v12675_v18 }
 0x17f   :  { %v203_v23 = vpop.xlane.xlu0 %202 }
 0x180   :  { %v226_v24 = vmul.f32 0.03125, %v203_v23 }
 0x182   :  { %v238_v26 = vadd.f32 1e-12, %v226_v24 }
 0x183   :  { %v205_v27 = vpop.xlane.xlu1 %204  ;;  %v147_v28 = vpop.xlane.xlu0 %146 }
 0x184   :  { %9645 = vrsqrt.f32 %v238_v26  ;;  %v227_v29 = vmul.f32 0.03125, %v205_v27  ;;  %v162_v30 = vmul.f32 0.03125, %v147_v28 }
 0x186   :  { %v239_v31 = vadd.f32 1e-12, %v227_v29  ;;  %v174_v33 = vsub.f32 %v10340_v35, %v162_v30 }
 0x187   :  { %v149_v36 = vpop.xlane.xlu1 %148  ;;  %v207_v37 = vpop.xlane.xlu0 %206 }
 0x188   :  { %9647 = vrsqrt.f32 %v239_v31  ;;  %v163_v38 = vmul.f32 0.03125, %v149_v36  ;;  %v228_v39 = vmul.f32 0.03125, %v207_v37  ;;  %v10389_v40 = vmul.f32 %v10327_v19, %v174_v33 }
 0x18a   :  { %v175_v41 = vsub.f32 %v10350_v43, %v163_v38  ;;  %v240_v44 = vadd.f32 1e-12, %v228_v39  ;;  %v198_v45 = vmul.f32 %v10389_v40, %v10389_v40 }
 0x18b   :  { %v209_v46 = vpop.xlane.xlu1 %208  ;;  %v151_v47 = vpop.xlane.xlu0 %150 }
 0x18c   :  { %9649 = vrsqrt.f32 %v240_v44  ;;  %v229_v48 = vmul.f32 0.03125, %v209_v46  ;;  %v164_v52 = vmul.f32 0.03125, %v151_v47  ;;  %218 = vadd.xlane.f32.xlu0 %v198_v45  ;;  %v10395_v35 = vmul.f32 %v10327_v19, %v175_v41 }
 0x18e   :  { %v9646_v53 = vpop.eup %9645  ;;  %v241_v55 = vadd.f32 1e-12, %v229_v48  ;;  %v176_v57 = vsub.f32 %v10360_v50, %v164_v52  ;;  %v199_v43 = vmul.f32 %v10395_v35, %v10395_v35 }
 0x18f   :  { %v153_v58 = vpop.xlane.xlu1 %152  ;;  %v211_v59 = vpop.xlane.xlu0 %210  ;;  %v262_v60 = vmul.f32 %v9646_v53, %v10330_v25 }
 0x190   :  { %9651 = vrsqrt.f32 %v241_v55  ;;  %v165_v62 = vmul.f32 0.03125, %v153_v58  ;;  %v230_v63 = vmul.f32 0.03125, %v211_v59  ;;  %220 = vadd.xlane.f32.xlu1 %v199_v43  ;;  %v10402_v0 = vmul.f32 %v10327_v19, %v176_v57 }
 0x191   :  { %v278_v7 = vmul.f32 %v10407_v1, %v262_v60 }
 0x192   :  { %v9648_v50 = vpop.eup %9647  ;;  %v177_v2 = vsub.f32 %v10372_v56, %v165_v62  ;;  %v242_v3 = vadd.f32 1e-12, %v230_v63  ;;  %v200_v4 = vmul.f32 %v10402_v0, %v10402_v0  ;;  %v10420_v56 = vld [vmem:[%s12665_s2 + $0x1] ss:$0 sm:$0xff] }
 0x193   :  { %v213_v25 = vpop.xlane.xlu1 %212  ;;  %v215_v5 = vpop.xlane.xlu0 %214  ;;  %v263_v6 = vmul.f32 %v9648_v50, %v10335_v32  ;;  %v10426_v22 = vadd.f32 %v10420_v56, %v278_v7 }
 0x194   :  { %9653 = vrsqrt.f32 %v242_v3  ;;  %v231_v11 = vmul.f32 0.03125, %v213_v25  ;;  %v232_v12 = vmul.f32 0.03125, %v215_v5  ;;  %222 = vadd.xlane.f32.xlu0 %v200_v4  ;;  %v10415_v13 = vmul.f32 %v10327_v19, %v177_v2 }
 0x195   :  { %v279_v14 = vmul.f32 %v10407_v1, %v263_v6 }
 0x196   :  { %v9650_v15 = vpop.eup %9649  ;;  %v243_v16 = vadd.f32 1e-12, %v231_v11  ;;  %v244_v17 = vadd.f32 1e-12, %v232_v12  ;;  %v201_v32 = vmul.f32 %v10415_v13, %v10415_v13 }
 0x197   :  { %v217_v20 = vpop.xlane.xlu1 %216  ;;  %v10429_v23 = vadd.f32 %v10420_v56, %v279_v14  ;;  %v264_v24 = vmul.f32 %v9650_v15, %v10338_v34 }
 0x198   :  { %9655 = vrsqrt.f32 %v243_v16  ;;  %v233_v26 = vmul.f32 0.03125, %v217_v20  ;;  %224 = vadd.xlane.f32.xlu1 %v201_v32 }
 0x199   :  { %9657 = vrsqrt.f32 %v244_v17  ;;  %v331_v27 = vpack.c.bf16 %v10429_v23, %v10426_v22  ;;  %v280_v31 = vmul.f32 %v10407_v1, %v264_v24 }
 0x19a   :  { %v9652_v28 = vpop.eup %9651  ;;  %v245_v29 = vadd.f32 1e-12, %v233_v26 }
 0x19b   :  { %547 = vmatmul.mubr.bf16.vlgmr.msra.gmra.mrb[0].mxu0 %v331_v27  ;;  %8638 = vmatprep.mubr.bf16.mxu1 %v331_v27  ;;  %v265_v30 = vmul.f32 %v9652_v28, %v10348_v42  ;;  %v10439_v36 = vadd.f32 %v10420_v56, %v280_v31 }
 0x19c   :  { %9659 = vrsqrt.f32 %v245_v29  ;;  %556 = vmatprep.mubr.bf16.mxu0 %v12673_v21 }
 0x19d   :  { %v281_v34 = vmul.f32 %v10407_v1, %v265_v30 }
 0x19e   :  { %v9654_v33 = vpop.eup %9653 }
 0x19f   :  { %v10442_v37 = vadd.f32 %v10420_v56, %v281_v34  ;;  %v266_v38 = vmul.f32 %v9654_v33, %v10358_v49 }
 0x1a1   :  { %v332_v39 = vpack.c.bf16 %v10442_v37, %v10439_v36  ;;  %v282_v45 = vmul.f32 %v10407_v1, %v266_v38 }
 0x1a2   :  { %v9656_v42 = vpop.eup %9655 }
 0x1a3   :  { %v9658_v41 = vpop.eup %9657  ;;  %557 = vmatmul.mubr.bf16.gmra.mrb[4].mxu0 %v332_v39  ;;  %8639 = vmatmul.mubr.bf16.vlgmr.msra.gmra.mrb[0].mxu1 %v332_v39  ;;  %v267_v44 = vmul.f32 %v9656_v42, %v10363_v51  ;;  %v10453_v49 = vadd.f32 %v10420_v56, %v282_v45 }
 0x1a4   :  { %566 = vmatprep.mubr.bf16.mxu0 %v12673_v21  ;;  %v268_v46 = vmul.f32 %v9658_v41, %v10370_v54 }
 0x1a5   :  { %v283_v47 = vmul.f32 %v10407_v1, %v267_v44 }
 0x1a6   :  { %v9660_v48 = vpop.eup %9659  ;;  %v284_v55 = vmul.f32 %v10407_v1, %v268_v46 }
 0x1a7   :  { %v10456_v52 = vadd.f32 %v10420_v56, %v283_v47  ;;  %v269_v53 = vmul.f32 %v9660_v48, %v10380_v61  ;;  %v10534_v47 = vsel %vm10322_vm2, 1.0, %v12675_v18 }
 0x1a8   :  { %v10464_v54 = vadd.f32 %v10420_v56, %v284_v55 }
 0x1a9   :  { %v333_v51 = vpack.c.bf16 %v10456_v52, %v10453_v49  ;;  %v285_v57 = vmul.f32 %v10407_v1, %v269_v53 }
 0x1ab   :  { %567 = vmatmul.mubr.bf16.gmra.mrb[8].mxu0 %v333_v51  ;;  %8642 = vmatprep.mubr.bf16.mxu1 %v333_v51  ;;  %v10467_v43 = vadd.f32 %v10420_v56, %v285_v57 }
 0x1ac   :  { %576 = vmatprep.mubr.bf16.mxu0 %v12673_v21 }
 0x1ad   :  { %v334_v61 = vpack.c.bf16 %v10467_v43, %v10464_v54 }
 0x1af   :  { %8643 = vmatmul.mubr.bf16.gmra.mrb[4].mxu1 %v334_v61 }
 0x1b3   :  { %577 = vmatmul.mubr.bf16.gmra.mrb[12].mxu0 %v334_v61 }
 0x1b4   :  { %586 = vmatprep.mubr.bf16.mxu0 %v12673_v21 }
 0x219   :  { %v219_v58 = vpop.xlane.xlu0 %218 }
 0x21a   :  { %v234_v59 = vmul.f32 0.03125, %v219_v58 }
 0x21c   :  { %v246_v60 = vadd.f32 1e-12, %v234_v59 }
 0x21d   :  { %v221_v62 = vpop.xlane.xlu1 %220 }
 0x21e   :  { %9661 = vrsqrt.f32 %v246_v60  ;;  %v235_v63 = vmul.f32 0.03125, %v221_v62 }
 0x220   :  { %v247_v50 = vadd.f32 1e-12, %v235_v63 }
 0x221   :  { %v223_v2 = vpop.xlane.xlu0 %222 }
 0x222   :  { %9663 = vrsqrt.f32 %v247_v50  ;;  %v236_v3 = vmul.f32 0.03125, %v223_v2 }
 0x224   :  { %v248_v4 = vadd.f32 1e-12, %v236_v3 }
 0x225   :  { %v225_v25 = vpop.xlane.xlu1 %224 }
 0x226   :  { %9665 = vrsqrt.f32 %v248_v4  ;;  %v237_v5 = vmul.f32 0.03125, %v225_v25 }
 0x228   :  { %v9662_v6 = vpop.eup %9661  ;;  %v249_v7 = vadd.f32 1e-12, %v237_v5 }
 0x229   :  { %v270_v11 = vmul.f32 %v9662_v6, %v10389_v40 }
 0x22a   :  { %9667 = vrsqrt.f32 %v249_v7 }
 0x22b   :  { %v286_v15 = vmul.f32 %v10407_v1, %v270_v11 }
 0x22c   :  { %v9664_v12 = vpop.eup %9663 }
 0x22d   :  { %v271_v14 = vmul.f32 %v9664_v12, %v10395_v35  ;;  %v10478_v32 = vadd.f32 %v10420_v56, %v286_v15 }
 0x22f   :  { %v287_v16 = vmul.f32 %v10407_v1, %v271_v14 }
 0x230   :  { %v9666_v17 = vpop.eup %9665 }
 0x231   :  { %v10481_v20 = vadd.f32 %v10420_v56, %v287_v16  ;;  %v272_v24 = vmul.f32 %v9666_v17, %v10402_v0 }
 0x233   :  { %12695 = vst [vmem:[#allocation16_spill] sm:$0xff] %v10481_v20  ;;  %v335_v40 = vpack.c.bf16 %v10481_v20, %v10478_v32  ;;  %v288_v27 = vmul.f32 %v10407_v1, %v272_v24 }
 0x234   :  { %v9668_v26 = vpop.eup %9667 }
 0x235   :  { %587 = vmatmul.mubr.bf16.gmra.mrb[16].mxu0 %v335_v40  ;;  %8646 = vmatprep.mubr.bf16.mxu1 %v335_v40  ;;  %v273_v35 = vmul.f32 %v9668_v26, %v10415_v13  ;;  %v10491_v29 = vadd.f32 %v10420_v56, %v288_v27 }
 0x236   :  { %596 = vmatprep.mubr.bf16.mxu0 %v12673_v21 }
 0x237   :  { %v289_v28 = vmul.f32 %v10407_v1, %v273_v35  ;;  %v10503_v1 = vshrl.u32 %v102_v8, 7  ;;  %v10522_v8 = vsel %vm109_vm4, 1.0, %v12675_v18 }
 0x239   :  { %v10494_v30 = vadd.f32 %v10420_v56, %v289_v28  ;;  %12696 = vst [vmem:[#allocation17_spill] sm:$0xff] %v10503_v1  ;;  %v10506_v13 = vsub.s32 1, %v10503_v1  ;;  %v10511_v56 = vld [vmem:[%s12667_s4] sm:$0x7]  ;;  %v10514_v31 = vsub.s32 0, %v10503_v1 }
 0x23b   :  { %v336_v0 = vpack.c.bf16 %v10494_v30, %v10491_v29  ;;  %12697 = vst [vmem:[#allocation18_spill] sm:$0xff] %v10506_v13  ;;  %v10519_v34 = vrot.slane %v10511_v56, %v10506_v13  ;;  %v10526_v38 = vrot.slane %v10511_v56, %v10514_v31 }
 0x23d   :  { %597 = vmatmul.mubr.bf16.gmra.mrb[20].mxu0 %v336_v0  ;;  %8647 = vmatmul.mubr.bf16.gmra.mrb[8].mxu1 %v336_v0 }
 0x23e   :  { %8652 = vmatprep.mubr.msk.bf16.mxu1 %vm10184_vm3, %v12675_v18  ;;  %8694 = vmatprep.mubr.msk.bf16.mxu0 %vm10184_vm3, %v12675_v18 }
 0x26e   :  { %v548_v33 = vpop.f32.mrb[0].mxu0 }
 0x26f   :  { %v550_v39 = vpop.f32.mrb[1].mxu0  ;;  %v549_v9 = vadd.f32 %v548_v33, %v10526_v38 }
 0x270   :  { %v551_v42 = vadd.f32 %v550_v39, %v10519_v34  ;;  %v552_v41 = vpop.f32.mrb[2].mxu0 }
 0x271   :  { %v554_v44 = vpop.f32.mrb[3].mxu0  ;;  %v688_v55 = vmul.f32 %v10522_v8, %v549_v9  ;;  %v689_v4 = vmul.f32 %v10534_v47, %v549_v9  ;;  %v553_v17 = vadd.f32 %v552_v41, %v10526_v38 }
 0x272   :  { %v736_v45 = vmul.f32 %v10522_v8, %v551_v42  ;;  %v737_v61 = vmul.f32 %v10534_v47, %v551_v42  ;;  %v555_v50 = vadd.f32 %v554_v44, %v10519_v34 }
 0x273   :  { %v712_v62 = vpack.c.bf16 %v688_v55, %v688_v55  ;;  %v713_v16 = vpack.c.bf16 %v689_v4, %v689_v4  ;;  %v690_v39 = vmul.f32 %v10522_v8, %v553_v17 }
 0x274   :  { %v760_v46 = vpack.c.bf16 %v736_v45, %v736_v45  ;;  %v761_v63 = vpack.c.bf16 %v737_v61, %v737_v61  ;;  %v738_v5 = vmul.f32 %v10522_v8, %v555_v50  ;;  %v739_v41 = vmul.f32 %v10534_v47, %v555_v50 }
 0x276   :  { %v10536_v48 = vpop.f32.mrb[4].mxu0  ;;  %v10538_v53 = vpop.f32.mrb[0].mxu1  ;;  %8651 = vmatpush3.bf16.xpose.msra.mxu1 %v760_v46  ;;  %v762_v26 = vpack.c.bf16 %v738_v5, %v738_v5 }
 0x277   :  { %v560_v51 = vpop.f32.mrb[5].mxu0  ;;  %v10541_v57 = vpop.f32.mrb[1].mxu1  ;;  %8656 = vmatprep.subr.bf16.mxu1 %v12675_v18 }
 0x278   :  { %v562_v58 = vpop.f32.mrb[6].mxu0  ;;  %v10545_v59 = vpop.f32.mrb[2].mxu1 }
 0x279   :  { %v564_v10 = vpop.f32.mrb[7].mxu0  ;;  %v10547_v60 = vpop.f32.mrb[3].mxu1  ;;  %v10561_v11 = vadd.f32 %v562_v58, %v10526_v38  ;;  %v714_v58 = vpack.c.bf16 %v690_v39, %v690_v39 }
 0x27a   :  { %v10551_v2 = vadd.f32 %v564_v10, %v10519_v34  ;;  %v763_v10 = vpack.c.bf16 %v739_v41, %v739_v41 }
 0x27b   :  { %v695_v27 = vmul.f32 %v10534_v47, %v10561_v11 }
 0x27c   :  { %v743_v6 = vmul.f32 %v10534_v47, %v10551_v2 }
 0x27d   :  { %8653 = vmatmul.mubr.bf16.vlgmr.msra.gmra.mrb[12].mxu1 %v712_v62  ;;  %v719_v45 = vpack.c.bf16 %v695_v27, %v695_v27  ;;  %v561_v62 = vadd.f32 %v560_v51, %v10519_v34 }
 0x27e   :  { %v568_v3 = vpop.f32.mrb[8].mxu0  ;;  %8657 = vmatpush3.bf16.xpose.msra.mxu1 %v761_v63  ;;  %8658 = vmatprep.mubr.msk.bf16.mxu1 %vm10184_vm3, %v12675_v18  ;;  %v767_v14 = vpack.c.bf16 %v743_v6, %v743_v6 }
 0x27f   :  { %v570_v25 = vpop.f32.mrb[9].mxu0  ;;  %8662 = vmatprep.subr.bf16.mxu1 %v12675_v18  ;;  %v10585_v9 = vadd.f32 %v568_v3, %v10526_v38  ;;  %v691_v3 = vmul.f32 %v10534_v47, %v553_v17  ;;  %v740_v4 = vmul.f32 %v10522_v8, %v561_v62 }
 0x280   :  { %v572_v7 = vpop.f32.mrb[10].mxu0  ;;  %v10567_v24 = vadd.f32 %v570_v25, %v10519_v34  ;;  %8693 = vmatpush3.bf16.xpose.msra.mxu0 %v767_v14  ;;  %v559_v14 = vadd.f32 %v10536_v48, %v10526_v38  ;;  %v741_v48 = vmul.f32 %v10534_v47, %v561_v62 }
 0x281   :  { %v574_v12 = vpop.f32.mrb[11].mxu0  ;;  %8704 = vmatprep.subr.bf16.mxu0 %v12675_v18  ;;  %v697_v63 = vmul.f32 %v10534_v47, %v10585_v9  ;;  %v10604_v25 = vadd.f32 %v572_v7, %v10526_v38 }
 0x282   :  { %v10563_v15 = vpop.f32.mrb[4].mxu1  ;;  %v745_v0 = vmul.f32 %v10534_v47, %v10567_v24  ;;  %v10589_v61 = vadd.f32 %v574_v12, %v10519_v34  ;;  %v715_v12 = vpack.c.bf16 %v691_v3, %v691_v3 }
 0x283   :  { %v10569_v40 = vpop.f32.mrb[5].mxu1  ;;  %v721_v51 = vpack.c.bf16 %v697_v63, %v697_v63  ;;  %v699_v17 = vmul.f32 %v10534_v47, %v10604_v25 }
 0x284   :  { %v10571_v35 = vpop.f32.mrb[6].mxu1  ;;  %v769_v55 = vpack.c.bf16 %v745_v0, %v745_v0  ;;  %v747_v50 = vmul.f32 %v10534_v47, %v10589_v61 }
 0x285   :  { %v10575_v28 = vpop.f32.mrb[7].mxu1  ;;  %8659 = vmatmul.mubr.bf16.vlgmr.msra.gmra.mrb[16].mxu1 %v713_v16  ;;  %v764_v16 = vpack.c.bf16 %v740_v4, %v740_v4  ;;  %v723_v27 = vpack.c.bf16 %v699_v17, %v699_v17  ;;  %v698_v17 = vmul.f32 %v10522_v8, %v10604_v25 }
 0x286   :  { %v578_v33 = vpop.f32.mrb[12].mxu0  ;;  %8663 = vmatpush3.bf16.xpose.msra.mxu1 %v762_v26  ;;  %8664 = vmatprep.mubr.msk.bf16.mxu1 %vm10184_vm3, %v12675_v18  ;;  %v771_v5 = vpack.c.bf16 %v747_v50, %v747_v50  ;;  %v692_v26 = vmul.f32 %v10522_v8, %v559_v14 }
 0x287   :  { %v580_v42 = vpop.f32.mrb[13].mxu0  ;;  %8668 = vmatprep.subr.bf16.mxu1 %v12675_v18  ;;  %8695 = vmatmul.mubr.bf16.vlgmr.msra.gmra.mrb[24].mxu0 %v719_v45  ;;  %v579_v0 = vadd.f32 %v578_v33, %v10526_v38  ;;  %v765_v45 = vpack.c.bf16 %v741_v48, %v741_v48  ;;  %v693_v33 = vmul.f32 %v10534_v47, %v559_v14 }
 0x288   :  { %v582_v44 = vpop.f32.mrb[14].mxu0  ;;  %8705 = vmatpush3.bf16.xpose.msra.mxu0 %v769_v55  ;;  %8706 = vmatprep.mubr.msk.bf16.mxu0 %vm10184_vm3, %v12675_v18  ;;  %v10608_v6 = vadd.f32 %v580_v42, %v10519_v34  ;;  %v716_v41 = vpack.c.bf16 %v692_v26, %v692_v26 }
 0x289   :  { %v584_v46 = vpop.f32.mrb[15].mxu0  ;;  %8716 = vmatprep.subr.bf16.mxu0 %v12675_v18  ;;  %v701_v55 = vmul.f32 %v10534_v47, %v579_v0  ;;  %v583_v62 = vadd.f32 %v582_v44, %v10526_v38  ;;  %v717_v50 = vpack.c.bf16 %v693_v33, %v693_v33  ;;  %v744_v44 = vmul.f32 %v10522_v8, %v10567_v24 }
 0x28a   :  { %v749_v7 = vmul.f32 %v10534_v47, %v10608_v6  ;;  %v585_v42 = vadd.f32 %v584_v46, %v10519_v34  ;;  %v742_v46 = vmul.f32 %v10522_v8, %v10551_v2  ;;  %v694_v2 = vmul.f32 %v10522_v8, %v10561_v11 }
 0x28b   :  { %v703_v4 = vmul.f32 %v10534_v47, %v583_v62  ;;  %v696_v11 = vmul.f32 %v10522_v8, %v10585_v9  ;;  %v746_v24 = vmul.f32 %v10522_v8, %v10589_v61  ;;  %v748_v9 = vmul.f32 %v10522_v8, %v10608_v6 }
 0x28c   :  { %v773_v39 = vpack.c.bf16 %v749_v7, %v749_v7  ;;  %v766_v3 = vpack.c.bf16 %v742_v46, %v742_v46  ;;  %v722_v7 = vpack.c.bf16 %v698_v17, %v698_v17  ;;  %v700_v61 = vmul.f32 %v10522_v8, %v579_v0 }
 0x28d   :  { %8665 = vmatmul.mubr.bf16.vlgmr.msra.gmra.mrb[20].mxu1 %v714_v58  ;;  %v751_v58 = vmul.f32 %v10534_v47, %v585_v42  ;;  %v720_v14 = vpack.c.bf16 %v696_v11, %v696_v11  ;;  %v772_v26 = vpack.c.bf16 %v748_v9, %v748_v9  ;;  %v750_v48 = vmul.f32 %v10522_v8, %v585_v42 }
 0x28e   :  { %8669 = vmatpush3.bf16.xpose.msra.mxu1 %v763_v10  ;;  %8670 = vmatprep.mubr.msk.bf16.mxu1 %vm10184_vm3, %v12675_v18  ;;  %v725_v10 = vpack.c.bf16 %v701_v55, %v701_v55  ;;  %v702_v6 = vmul.f32 %v10522_v8, %v583_v62 }
 0x28f   :  { %8674 = vmatprep.subr.bf16.mxu1 %v12675_v18  ;;  %8707 = vmatmul.mubr.bf16.vlgmr.msra.gmra.mrb[28].mxu0 %v721_v51  ;;  %v775_v63 = vpack.c.bf16 %v751_v58, %v751_v58  ;;  %v727_v51 = vpack.c.bf16 %v703_v4, %v703_v4  ;;  %v774_v25 = vpack.c.bf16 %v750_v48, %v750_v48 }
 0x290   :  { %8717 = vmatpush3.bf16.xpose.msra.mxu0 %v771_v5  ;;  %8718 = vmatprep.mubr.msk.bf16.mxu0 %vm10184_vm3, %v12675_v18  ;;  %v718_v5 = vpack.c.bf16 %v694_v2, %v694_v2 }
 0x291   :  { %8728 = vmatprep.subr.bf16.mxu0 %v12675_v18 }
 0x295   :  { %8671 = vmatmul.mubr.bf16.vlgmr.msra.gmra.mrb[24].mxu1 %v715_v12  ;;  %v768_v12 = vpack.c.bf16 %v744_v44, %v744_v44 }
 0x296   :  { %8675 = vmatpush3.bf16.xpose.msra.mxu1 %v764_v16  ;;  %8676 = vmatprep.mubr.msk.bf16.mxu1 %vm10184_vm3, %v12675_v18  ;;  %v770_v16 = vpack.c.bf16 %v746_v24, %v746_v24 }
 0x297   :  { %8680 = vmatprep.subr.bf16.mxu1 %v12675_v18  ;;  %8719 = vmatmul.mubr.bf16.vlgmr.msra.gmra.mrb[32].mxu0 %v723_v27  ;;  %v724_v27 = vpack.c.bf16 %v700_v61, %v700_v61 }
 0x298   :  { %8729 = vmatpush3.bf16.xpose.msra.mxu0 %v773_v39  ;;  %8730 = vmatprep.mubr.msk.bf16.mxu0 %vm10184_vm3, %v12675_v18  ;;  %v726_v39 = vpack.c.bf16 %v702_v6, %v702_v6 }
 0x299   :  { %8740 = vmatprep.subr.bf16.mxu0 %v12675_v18 }
 0x29d   :  { %8677 = vmatmul.mubr.bf16.vlgmr.msra.gmra.mrb[28].mxu1 %v716_v41 }
 0x29e   :  { %8681 = vmatpush3.bf16.xpose.msra.mxu1 %v765_v45  ;;  %8682 = vmatprep.mubr.msk.bf16.mxu1 %vm10184_vm3, %v12675_v18 }
 0x29f   :  { %8686 = vmatprep.subr.bf16.mxu1 %v12675_v18  ;;  %8731 = vmatmul.mubr.bf16.vlgmr.msra.gmra.mrb[36].mxu0 %v725_v10 }
 0x2a0   :  { %8741 = vmatpush3.bf16.xpose.msra.mxu0 %v775_v63  ;;  %8742 = vmatprep.mubr.msk.bf16.mxu0 %vm10184_vm3, %v12675_v18 }
 0x2a1   :  { %8752 = vmatprep.subr.bf16.mxu0 %v12675_v18 }
 0x2a5   :  { %8683 = vmatmul.mubr.bf16.vlgmr.msra.gmra.mrb[32].mxu1 %v717_v50 }
 0x2a6   :  { %8687 = vmatpush3.bf16.xpose.msra.mxu1 %v766_v3  ;;  %8688 = vmatprep.mubr.msk.bf16.mxu1 %vm10184_vm3, %v12675_v18 }
 0x2a7   :  { %8698 = vmatprep.subr.bf16.mxu1 %v12675_v18  ;;  %8743 = vmatmul.mubr.bf16.vlgmr.msra.gmra.mrb[40].mxu0 %v727_v51 }
 0x2a8   :  { %8754 = vmatprep.mubr.msk.bf16.mxu0 %vm10184_vm3, %v12675_v18 }
 0x2ad   :  { %8689 = vmatmul.mubr.bf16.vlgmr.msra.gmra.mrb[36].mxu1 %v718_v5 }
 0x2ae   :  { %8699 = vmatpush3.bf16.xpose.msra.mxu1 %v768_v12  ;;  %8700 = vmatprep.mubr.msk.bf16.mxu1 %vm10184_vm3, %v12675_v18 }
 0x2af   :  { %8710 = vmatprep.subr.bf16.mxu1 %v12675_v18 }
 0x2b5   :  { %8701 = vmatmul.mubr.bf16.vlgmr.msra.gmra.mrb[40].mxu1 %v720_v14 }
 0x2b6   :  { %8711 = vmatpush3.bf16.xpose.msra.mxu1 %v770_v16  ;;  %8712 = vmatprep.mubr.msk.bf16.mxu1 %vm10184_vm3, %v12675_v18 }
 0x2b7   :  { %8722 = vmatprep.subr.bf16.mxu1 %v12675_v18 }
 0x2bd   :  { %8713 = vmatmul.mubr.bf16.vlgmr.msra.gmra.mrb[44].mxu1 %v722_v7 }
 0x2be   :  { %8723 = vmatpush3.bf16.xpose.msra.mxu1 %v772_v26  ;;  %8724 = vmatprep.mubr.msk.bf16.mxu1 %vm10184_vm3, %v12675_v18 }
 0x2bf   :  { %8734 = vmatprep.subr.bf16.mxu1 %v12675_v18 }
 0x2c5   :  { %8725 = vmatmul.mubr.bf16.vlgmr.msra.gmra.mrb[48].mxu1 %v724_v27 }
 0x2c6   :  { %8735 = vmatpush3.bf16.xpose.msra.mxu1 %v774_v25  ;;  %8736 = vmatprep.mubr.msk.bf16.mxu1 %vm10184_vm3, %v12675_v18 }
 0x2c7   :  { %8746 = vmatprep.subr.bf16.mxu1 %v12675_v18 }
 0x2cd   :  { %8737 = vmatmul.mubr.bf16.vlgmr.msra.gmra.mrb[52].mxu1 %v726_v39  ;;  %v10703_v39 = vsub.s32 2, %v10503_v1 }
 0x2ce   :  { %8748 = vmatprep.mubr.msk.bf16.mxu1 %vm10184_vm3, %v12675_v18 }
 0x2cf   :  { %12698 = vst [vmem:[#allocation19_spill] sm:$0xff] %v10703_v39 }
 0x308   :  { %v588_v0 = vpop.f32.mrb[16].mxu0 }
 0x309   :  { %v590_v41 = vpop.f32.mrb[17].mxu0  ;;  %v589_v46 = vadd.f32 %v588_v0, %v10526_v38 }
 0x30a   :  { %v591_v42 = vadd.f32 %v590_v41, %v10519_v34  ;;  %v592_v45 = vpop.f32.mrb[18].mxu0 }
 0x30b   :  { %v594_v55 = vpop.f32.mrb[19].mxu0  ;;  %v704_v4 = vmul.f32 %v10522_v8, %v589_v46  ;;  %v705_v51 = vmul.f32 %v10534_v47, %v589_v46  ;;  %v593_v9 = vadd.f32 %v592_v45, %v10526_v38 }
 0x30c   :  { %v752_v58 = vmul.f32 %v10522_v8, %v591_v42  ;;  %v753_v33 = vmul.f32 %v10534_v47, %v591_v42  ;;  %v595_v63 = vadd.f32 %v594_v55, %v10519_v34 }
 0x30d   :  { %v728_v17 = vpack.c.bf16 %v704_v4, %v704_v4  ;;  %v729_v7 = vpack.c.bf16 %v705_v51, %v705_v51  ;;  %v706_v27 = vmul.f32 %v10522_v8, %v593_v9  ;;  %v707_v25 = vmul.f32 %v10534_v47, %v593_v9 }
 0x30e   :  { %v776_v10 = vpack.c.bf16 %v752_v58, %v752_v58  ;;  %v777_v62 = vpack.c.bf16 %v753_v33, %v753_v33  ;;  %v754_v5 = vmul.f32 %v10522_v8, %v595_v63  ;;  %v755_v24 = vmul.f32 %v10534_v47, %v595_v63 }
 0x30f   :  { %v730_v41 = vpack.c.bf16 %v706_v27, %v706_v27  ;;  %v731_v45 = vpack.c.bf16 %v707_v25, %v707_v25  ;;  %v10714_v33 = vrot.slane %v10511_v56, %v10703_v39 }
 0x310   :  { %v598_v50 = vpop.f32.mrb[20].mxu0  ;;  %v10681_v3 = vpop.f32.mrb[8].mxu1  ;;  %8747 = vmatpush3.bf16.xpose.msra.mxu1 %v776_v10  ;;  %8753 = vmatpush3.bf16.xpose.msra.mxu0 %v777_v62  ;;  %v778_v26 = vpack.c.bf16 %v754_v5, %v754_v5  ;;  %v779_v48 = vpack.c.bf16 %v755_v24, %v755_v24 }
 0x311   :  { %v600_v2 = vpop.f32.mrb[21].mxu0  ;;  %v10684_v44 = vpop.f32.mrb[9].mxu1  ;;  %8758 = vmatprep.subr.bf16.mxu1 %v12675_v18  ;;  %8764 = vmatprep.subr.bf16.mxu0 %v12675_v18  ;;  %v599_v42 = vadd.f32 %v598_v50, %v10526_v38  ;;  %v10726_v56 = vadd.f32 %v10541_v57, %v10714_v33  ;;  %v10732_v50 = vadd.f32 %v10547_v60, %v10714_v33 }
 0x312   :  { %v602_v12 = vpop.f32.mrb[22].mxu0  ;;  %v10690_v11 = vpop.f32.mrb[10].mxu1  ;;  %v601_v61 = vadd.f32 %v600_v2, %v10519_v34 }
 0x313   :  { %v604_v14 = vpop.f32.mrb[23].mxu0  ;;  %v10693_v16 = vpop.f32.mrb[11].mxu1  ;;  %v708_v10 = vmul.f32 %v10522_v8, %v599_v42  ;;  %v709_v62 = vmul.f32 %v10534_v47, %v599_v42  ;;  %v603_v2 = vadd.f32 %v602_v12, %v10526_v38  ;;  %v784_v24 = vmul.f32 %v10522_v8, %v10726_v56 }
 0x314   :  { %v756_v6 = vmul.f32 %v10522_v8, %v601_v61  ;;  %v757_v0 = vmul.f32 %v10534_v47, %v601_v61  ;;  %v605_v58 = vadd.f32 %v604_v14, %v10519_v34  ;;  %v786_v57 = vmul.f32 %v10522_v8, %v10732_v50 }
 0x315   :  { %v732_v4 = vpack.c.bf16 %v708_v10, %v708_v10  ;;  %v733_v51 = vpack.c.bf16 %v709_v62, %v709_v62  ;;  %v711_v38 = vmul.f32 %v10534_v47, %v603_v2  ;;  %v808_v60 = vpack.c.bf16 %v784_v24, %v784_v24 }
 0x316   :  { %v780_v55 = vpack.c.bf16 %v756_v6, %v756_v6  ;;  %v781_v46 = vpack.c.bf16 %v757_v0, %v757_v0  ;;  %v758_v63 = vmul.f32 %v10522_v8, %v605_v58  ;;  %v759_v34 = vmul.f32 %v10534_v47, %v605_v58 }
 0x317   :  { %8749 = vmatmul.mubr.bf16.vlgmr.msra.gmra.mrb[56].mxu1 %v728_v17  ;;  %8755 = vmatmul.mubr.bf16.vlgmr.msra.gmra.mrb[44].mxu0 %v729_v7  ;;  %v710_v17 = vmul.f32 %v10522_v8, %v603_v2  ;;  %v810_v12 = vpack.c.bf16 %v786_v57, %v786_v57  ;;  %v735_v7 = vpack.c.bf16 %v711_v38, %v711_v38 }
 0x318   :  { %8759 = vmatpush3.bf16.xpose.msra.mxu1 %v778_v26  ;;  %8765 = vmatpush3.bf16.xpose.msra.mxu0 %v779_v48  ;;  %v782_v5 = vpack.c.bf16 %v758_v63, %v758_v63  ;;  %v783_v14 = vpack.c.bf16 %v759_v34, %v759_v34  ;;  %v2230_v26 = vsel %vm2228_vm5, %v808_v60, 0  ;;  %v8172_v48 = vld [vmem:[%s12664_s1] ss:$0 sm:$0xff] }
 0x319   :  { %8760 = vmatprep.mubr.msk.bf16.mxu1 %vm10184_vm3, %v12675_v18  ;;  %8766 = vmatprep.mubr.msk.bf16.mxu0 %vm10184_vm3, %v12675_v18  ;;  %v734_v9 = vpack.c.bf16 %v710_v17, %v710_v17  ;;  %v2322_v61 = vsel %vm2228_vm5, %v810_v12, 0 }
 0x31a   :  { %8770 = vmatprep.subr.bf16.mxu1 %v12675_v18  ;;  %8776 = vmatprep.subr.bf16.mxu0 %v12675_v18 }
 0x31f   :  { %8761 = vmatmul.mubr.bf16.vlgmr.msra.gmra.mrb[60].mxu1 %v730_v41  ;;  %8767 = vmatmul.mubr.bf16.vlgmr.msra.gmra.mrb[48].mxu0 %v731_v45  ;;  %v8173_v45 = vld [vmem:[%s12664_s1 + $0x1] ss:$0 sm:$0xff] }
 0x320   :  { %8771 = vmatpush3.bf16.xpose.msra.mxu1 %v780_v55  ;;  %8777 = vmatpush3.bf16.xpose.msra.mxu0 %v781_v46 }
 0x321   :  { %8772 = vmatprep.mubr.msk.bf16.mxu1 %vm10184_vm3, %v12675_v18  ;;  %8778 = vmatprep.mubr.msk.bf16.mxu0 %vm10184_vm3, %v12675_v18 }
 0x322   :  { %8782 = vmatprep.subr.bf16.mxu1 %v12675_v18  ;;  %8788 = vmatprep.subr.bf16.mxu0 %v12675_v18 }
 0x327   :  { %8773 = vmatmul.mubr.bf16.vlgmr.msra.gmra.mrb[64].mxu1 %v732_v4  ;;  %8779 = vmatmul.mubr.bf16.vlgmr.msra.gmra.mrb[52].mxu0 %v733_v51  ;;  %v8174_v4 = vld [vmem:[%s12664_s1 + $0x2] ss:$0 sm:$0xff] }
 0x328   :  { %8783 = vmatpush3.bf16.xpose.msra.mxu1 %v782_v5  ;;  %8789 = vmatpush3.bf16.xpose.msra.mxu0 %v783_v14 }
 0x329   :  { %8784 = vmatprep.mubr.msk.bf16.mxu1 %vm10184_vm3, %v12675_v18  ;;  %8790 = vmatprep.mubr.msk.bf16.mxu0 %vm10184_vm3, %v12675_v18 }
 0x32a   :  { %8794 = vmatprep.subr.bf16.mxu1 %v12675_v18  ;;  %8806 = vmatprep.subr.bf16.mxu0 %v12675_v18 }
 0x32f   :  { %8785 = vmatmul.mubr.bf16.vlgmr.msra.gmra.mrb[68].mxu1 %v734_v9  ;;  %8791 = vmatmul.mubr.bf16.vlgmr.msra.gmra.mrb[56].mxu0 %v735_v7  ;;  %v8175_v9 = vld [vmem:[%s12664_s1 + $0x3] ss:$0 sm:$0xff] }
 0x330   :  { %8795 = vmatpush3.bf16.msra.mxu1 %v2230_v26  ;;  %8807 = vmatpush3.bf16.msra.mxu0 %v2322_v61 }
 0x331   :  { %8796 = vmatprep.mubr.msk.bf16.mxu1 %vm10184_vm3, %v12675_v18  ;;  %8800 = vmatprep.subr.bf16.mxu1 %v12675_v18 }
 0x332   :  { %8808 = vmatprep.mubr.msk.bf16.mxu0 %vm10184_vm3, %v12675_v18  ;;  %8812 = vmatprep.subr.bf16.mxu0 %v12675_v18 }
 0x350   :  { %v1010_v27 = vpop.f32.mrb[12].mxu1 }
 0x351   :  { %v10758_v25 = vadd.f32 %v8172_v48, %v1010_v27  ;;  %v8654_v6 = vpop.f32.mrb[13].mxu1 }
 0x352   :  { %v1013_v0 = vpop.f32.mrb[14].mxu1 }
 0x353   :  { %v8655_v41 = vpop.f32.mrb[15].mxu1  ;;  %v1937_v42 = vsel %vm1936_vm6, %v10758_v25, -inf }
 0x354   :  { %1938 = vmax.xlane.f32.xlu0 %v1937_v42 }
 0x358   :  { %v1050_v55 = vpop.f32.mrb[16].mxu1 }
 0x359   :  { %v10765_v58 = vadd.f32 %v8173_v45, %v1050_v55  ;;  %v8660_v46 = vpop.f32.mrb[17].mxu1  ;;  %v8176_v55 = vld [vmem:[%s12664_s1 + $0x4] ss:$0 sm:$0xff] }
 0x35a   :  { %v1053_v10 = vpop.f32.mrb[18].mxu1  ;;  %v1290_v34 = vpop.f32.mrb[24].mxu0 }
 0x35b   :  { %v8661_v62 = vpop.f32.mrb[19].mxu1  ;;  %v1940_v63 = vsel %vm1936_vm6, %v10765_v58, -inf  ;;  %v8696_v2 = vpop.f32.mrb[25].mxu0 }
 0x35c   :  { %1941 = vmax.xlane.f32.xlu0 %v1940_v63  ;;  %v1293_v51 = vpop.f32.mrb[26].mxu0 }
 0x35d   :  { %v8697_v24 = vpop.f32.mrb[27].mxu0 }
 0x360   :  { %v1090_v5 = vpop.f32.mrb[20].mxu1 }
 0x361   :  { %v10772_v14 = vadd.f32 %v8174_v4, %v1090_v5  ;;  %v8666_v57 = vpop.f32.mrb[21].mxu1 }
 0x362   :  { %v1093_v17 = vpop.f32.mrb[22].mxu1  ;;  %v1370_v12 = vpop.f32.mrb[28].mxu0 }
 0x363   :  { %v8667_v38 = vpop.f32.mrb[23].mxu1  ;;  %v1943_v60 = vsel %vm1936_vm6, %v10772_v14, -inf  ;;  %v8708_v7 = vpop.f32.mrb[29].mxu0  ;;  %v8177_v17 = vld [vmem:[%s12664_s1 + $0x5] ss:$0 sm:$0xff] }
 0x364   :  { %1944 = vmax.xlane.f32.xlu1 %v1943_v60  ;;  %v1373_v26 = vpop.f32.mrb[30].mxu0 }
 0x365   :  { %v8709_v48 = vpop.f32.mrb[31].mxu0 }
 0x368   :  { %v1130_v61 = vpop.f32.mrb[24].mxu1 }
 0x369   :  { %v10779_v27 = vadd.f32 %v8175_v9, %v1130_v61  ;;  %v8672_v6 = vpop.f32.mrb[25].mxu1 }
 0x36a   :  { %v1133_v0 = vpop.f32.mrb[26].mxu1  ;;  %v1450_v45 = vpop.f32.mrb[32].mxu0 }
 0x36b   :  { %v8673_v41 = vpop.f32.mrb[27].mxu1  ;;  %v1946_v42 = vsel %vm1936_vm6, %v10779_v27, -inf  ;;  %v8720_v46 = vpop.f32.mrb[33].mxu0 }
 0x36c   :  { %1947 = vmax.xlane.f32.xlu1 %v1946_v42  ;;  %v1453_v10 = vpop.f32.mrb[34].mxu0  ;;  %v8178_v42 = vld [vmem:[%s12664_s1 + $0x6] ss:$0 sm:$0xff]  ;;  %v8179_v46 = vld [vmem:[%s12664_s1 + $0x7] ss:$0 sm:$0xff] }
 0x36d   :  { %v8721_v63 = vpop.f32.mrb[35].mxu0 }
 0x370   :  { %v1170_v62 = vpop.f32.mrb[28].mxu1 }
 0x371   :  { %v10786_v4 = vadd.f32 %v8176_v55, %v1170_v62  ;;  %v8678_v2 = vpop.f32.mrb[29].mxu1 }
 0x372   :  { %v1173_v51 = vpop.f32.mrb[30].mxu1  ;;  %v1530_v57 = vpop.f32.mrb[36].mxu0 }
 0x373   :  { %v8679_v5 = vpop.f32.mrb[31].mxu1  ;;  %v1949_v24 = vsel %vm1936_vm6, %v10786_v4, -inf  ;;  %v8732_v38 = vpop.f32.mrb[37].mxu0 }
 0x374   :  { %1950 = vmax.xlane.f32.xlu0 %v1949_v24  ;;  %v1533_v60 = vpop.f32.mrb[38].mxu0  ;;  %v10805_v24 = vadd.f32 %v8179_v46, %v1290_v34  ;;  %v8182_v46 = vld [vmem:[%s12664_s1 + $0xa] ss:$0 sm:$0xff] }
 0x375   :  { %v8733_v7 = vpop.f32.mrb[39].mxu0  ;;  %v8180_v60 = vld [vmem:[%s12664_s1 + $0x8] ss:$0 sm:$0xff] }
 0x376   :  { %v8181_v7 = vld [vmem:[%s12664_s1 + $0x9] ss:$0 sm:$0xff] }
 0x378   :  { %v1210_v9 = vpop.f32.mrb[32].mxu1 }
 0x379   :  { %v10793_v26 = vadd.f32 %v8177_v17, %v1210_v9  ;;  %v8684_v61 = vpop.f32.mrb[33].mxu1  ;;  %v1958_v9 = vsel %vm1936_vm6, %v10805_v24, -inf }
 0x37a   :  { %v1213_v48 = vpop.f32.mrb[34].mxu1  ;;  %v1610_v41 = vpop.f32.mrb[40].mxu0 }
 0x37b   :  { %v8685_v6 = vpop.f32.mrb[35].mxu1  ;;  %v1952_v0 = vsel %vm1936_vm6, %v10793_v26, -inf  ;;  %v8744_v55 = vpop.f32.mrb[41].mxu0 }
 0x37c   :  { %1953 = vmax.xlane.f32.xlu0 %v1952_v0  ;;  %v1613_v10 = vpop.f32.mrb[42].mxu0  ;;  %v10819_v0 = vadd.f32 %v8181_v7, %v1370_v12 }
 0x37d   :  { %v8745_v63 = vpop.f32.mrb[43].mxu0 }
 0x37e   :  { %v1964_v10 = vsel %vm1936_vm6, %v10819_v0, -inf }
 0x380   :  { %v1250_v62 = vpop.f32.mrb[36].mxu1 }
 0x381   :  { %v10803_v2 = vadd.f32 %v8178_v42, %v1250_v62  ;;  %v8690_v51 = vpop.f32.mrb[37].mxu1  ;;  %v8183_v62 = vld [vmem:[%s12664_s1 + $0xb] ss:$0 sm:$0xff] }
 0x382   :  { %v1253_v5 = vpop.f32.mrb[38].mxu1 }
 0x383   :  { %v8691_v17 = vpop.f32.mrb[39].mxu1  ;;  %v1955_v38 = vsel %vm1936_vm6, %v10803_v2, -inf }
 0x384   :  { %1956 = vmax.xlane.f32.xlu1 %v1955_v38  ;;  %v10833_v17 = vadd.f32 %v8183_v62, %v1450_v45  ;;  %v8186_v62 = vld [vmem:[%s12664_s1 + $0xe] ss:$0 sm:$0xff] }
 0x386   :  { %v1970_v7 = vsel %vm1936_vm6, %v10833_v17, -inf }
 0x388   :  { %v1330_v61 = vpop.f32.mrb[40].mxu1  ;;  %1959 = vmax.xlane.f32.xlu1 %v1958_v9  ;;  %v8184_v9 = vld [vmem:[%s12664_s1 + $0xc] ss:$0 sm:$0xff] }
 0x389   :  { %v10817_v34 = vadd.f32 %v8180_v60, %v1330_v61  ;;  %v8702_v48 = vpop.f32.mrb[41].mxu1  ;;  %v8185_v61 = vld [vmem:[%s12664_s1 + $0xd] ss:$0 sm:$0xff] }
 0x38a   :  { %v1333_v6 = vpop.f32.mrb[42].mxu1 }
 0x38b   :  { %v8703_v42 = vpop.f32.mrb[43].mxu1  ;;  %v1961_v55 = vsel %vm1936_vm6, %v10817_v34, -inf }
 0x38c   :  { %1962 = vmax.xlane.f32.xlu0 %v1961_v55  ;;  %v10847_v55 = vadd.f32 %v8185_v61, %v1530_v57 }
 0x390   :  { %v1410_v63 = vpop.f32.mrb[44].mxu1  ;;  %1965 = vmax.xlane.f32.xlu0 %v1964_v10 }
 0x391   :  { %v10831_v12 = vadd.f32 %v8182_v46, %v1410_v63  ;;  %v8714_v51 = vpop.f32.mrb[45].mxu1  ;;  %v1976_v63 = vsel %vm1936_vm6, %v10847_v55, -inf }
 0x392   :  { %v1413_v5 = vpop.f32.mrb[46].mxu1  ;;  %v8187_v51 = vld [vmem:[%s12664_s1 + $0xf] ss:$0 sm:$0xff] }
 0x393   :  { %v8715_v38 = vpop.f32.mrb[47].mxu1  ;;  %v1967_v60 = vsel %vm1936_vm6, %v10831_v12, -inf }
 0x394   :  { %1968 = vmax.xlane.f32.xlu1 %v1967_v60 }
 0x398   :  { %v1490_v48 = vpop.f32.mrb[48].mxu1  ;;  %1971 = vmax.xlane.f32.xlu1 %v1970_v7 }
 0x399   :  { %v10845_v45 = vadd.f32 %v8184_v9, %v1490_v48  ;;  %v8726_v6 = vpop.f32.mrb[49].mxu1  ;;  %v10861_v9 = vadd.f32 %v8187_v51, %v1610_v41 }
 0x39a   :  { %v1493_v42 = vpop.f32.mrb[50].mxu1 }
 0x39b   :  { %v8727_v46 = vpop.f32.mrb[51].mxu1  ;;  %v1973_v10 = vsel %vm1936_vm6, %v10845_v45, -inf  ;;  %v1982_v48 = vsel %vm1936_vm6, %v10861_v9, -inf }
 0x39c   :  { %1974 = vmax.xlane.f32.xlu0 %v1973_v10  ;;  %v8188_v10 = vld [vmem:[%s12664_s1 + $0x10] ss:$0 sm:$0xff] }
 0x3a0   :  { %v1570_v5 = vpop.f32.mrb[52].mxu1  ;;  %1977 = vmax.xlane.f32.xlu0 %v1976_v63 }
 0x3a1   :  { %v10859_v57 = vadd.f32 %v8186_v62, %v1570_v5  ;;  %v8738_v38 = vpop.f32.mrb[53].mxu1 }
 0x3a2   :  { %v1573_v60 = vpop.f32.mrb[54].mxu1 }
 0x3a3   :  { %v8739_v7 = vpop.f32.mrb[55].mxu1  ;;  %v1979_v61 = vsel %vm1936_vm6, %v10859_v57, -inf }
 0x3a4   :  { %1980 = vmax.xlane.f32.xlu1 %v1979_v61 }
 0x3a8   :  { %1983 = vmax.xlane.f32.xlu1 %v1982_v48 }
 0x3e1   :  { %v1939_v6 = vpop.xlane.xlu0 %1938 }
 0x3e2   :  { %v2009_v42 = vsub.f32 %v10758_v25, %v1939_v6  ;;  %v8189_v6 = vld [vmem:[%s12664_s1 + $0x11] ss:$0 sm:$0xff] }
 0x3e4   :  { %v2033_v46 = vmul.f32 1.442695, %v2009_v42 }
 0x3e6   :  { %9669 = vpow2.f32 %v2033_v46 }
 0x3e9   :  { %v1942_v41 = vpop.xlane.xlu0 %1941 }
 0x3ea   :  { %v1650_v62 = vpop.f32.mrb[56].mxu1  ;;  %v1690_v51 = vpop.f32.mrb[44].mxu0  ;;  %v2010_v38 = vsub.f32 %v10765_v58, %v1942_v41  ;;  %v8190_v58 = vld [vmem:[%s12664_s1 + $0x12] ss:$0 sm:$0xff] }
 0x3eb   :  { %v10871_v63 = vadd.f32 %v8188_v10, %v1650_v62  ;;  %v8750_v5 = vpop.f32.mrb[57].mxu1  ;;  %v8756_v60 = vpop.f32.mrb[45].mxu0  ;;  %v10884_v41 = vadd.f32 %v8189_v6, %v1690_v51 }
 0x3ec   :  { %v1653_v7 = vpop.f32.mrb[58].mxu1  ;;  %v1693_v61 = vpop.f32.mrb[46].mxu0  ;;  %v2035_v10 = vmul.f32 1.442695, %v2010_v38 }
 0x3ed   :  { %v8751_v48 = vpop.f32.mrb[59].mxu1  ;;  %v1985_v25 = vsel %vm1936_vm6, %v10871_v63, -inf  ;;  %v8757_v42 = vpop.f32.mrb[47].mxu0  ;;  %v1988_v6 = vsel %vm1936_vm6, %v10884_v41, -inf }
 0x3ee   :  { %1986 = vmax.xlane.f32.xlu0 %v1985_v25  ;;  %9671 = vpow2.f32 %v2035_v10 }
 0x3f0   :  { %v10879_v46 = vpop.eup %9669 }
 0x3f1   :  { %v1945_v62 = vpop.xlane.xlu1 %1944  ;;  %v2081_v5 = vsel %vm1936_vm6, %v10879_v46, 0.0 }
 0x3f2   :  { %v2011_v60 = vsub.f32 %v10772_v14, %v1945_v62  ;;  %v1730_v7 = vpop.f32.mrb[60].mxu1  ;;  %2082 = vadd.xlane.f32.xlu0 %v2081_v5  ;;  %v1770_v48 = vpop.f32.mrb[48].mxu0 }
 0x3f3   :  { %v10889_v61 = vadd.f32 %v8190_v58, %v1730_v7  ;;  %v8762_v25 = vpop.f32.mrb[61].mxu1  ;;  %v8768_v42 = vpop.f32.mrb[49].mxu0  ;;  %v8192_v58 = vld [vmem:[%s12664_s1 + $0x14] ss:$0 sm:$0xff] }
 0x3f4   :  { %v2037_v38 = vmul.f32 1.442695, %v2011_v60  ;;  %v1733_v21 = vpop.f32.mrb[62].mxu1  ;;  %v1773_v18 = vpop.f32.mrb[50].mxu0 }
 0x3f5   :  { %v8763_v1 = vpop.f32.mrb[63].mxu1  ;;  %v1991_v51 = vsel %vm1936_vm6, %v10889_v61, -inf  ;;  %v8769_v14 = vpop.f32.mrb[51].mxu0 }
 0x3f6   :  { %9673 = vpow2.f32 %v2037_v38  ;;  %1992 = vmax.xlane.f32.xlu1 %v1991_v51  ;;  %1989 = vmax.xlane.f32.xlu0 %v1988_v6  ;;  %v8191_v14 = vld [vmem:[%s12664_s1 + $0x13] ss:$0 sm:$0xff] }
 0x3f8   :  { %v10903_v6 = vpop.eup %9671 }
 0x3f9   :  { %v1948_v10 = vpop.xlane.xlu1 %1947 }
 0x3fa   :  { %v2012_v62 = vsub.f32 %v10779_v27, %v1948_v10  ;;  %v1810_v21 = vpop.f32.mrb[64].mxu1  ;;  %v1850_v1 = vpop.f32.mrb[52].mxu0  ;;  %v10910_v10 = vadd.f32 %v8191_v14, %v1770_v48 }
 0x3fb   :  { %v10899_v18 = vadd.f32 %v8192_v58, %v1810_v21  ;;  %v8774_v5 = vpop.f32.mrb[65].mxu1  ;;  %v8780_v7 = vpop.f32.mrb[53].mxu0 }
 0x3fc   :  { %v2039_v60 = vmul.f32 1.442695, %v2012_v62  ;;  %v1813_v25 = vpop.f32.mrb[66].mxu1  ;;  %v1853_v42 = vpop.f32.mrb[54].mxu0  ;;  %v2084_v5 = vsel %vm1936_vm6, %v10903_v6, 0.0  ;;  %v1994_v20 = vsel %vm1936_vm6, %v10910_v10, -inf }
 0x3fd   :  { %v8775_v38 = vpop.f32.mrb[67].mxu1  ;;  %v1997_v51 = vsel %vm1936_vm6, %v10899_v18, -inf  ;;  %v8781_v27 = vpop.f32.mrb[55].mxu0  ;;  %v8194_v25 = vld [vmem:[%s12664_s1 + $0x16] ss:$0 sm:$0xff] }
 0x3fe   :  { %1998 = vmax.xlane.f32.xlu0 %v1997_v51  ;;  %9675 = vpow2.f32 %v2039_v60 }
 0x400   :  { %v10908_v58 = vpop.eup %9673 }
 0x401   :  { %v1951_v62 = vpop.xlane.xlu0 %1950  ;;  %v2087_v21 = vsel %vm1936_vm6, %v10908_v58, 0.0 }
 0x402   :  { %v2013_v7 = vsub.f32 %v10786_v4, %v1951_v62  ;;  %2088 = vadd.xlane.f32.xlu1 %v2087_v21  ;;  %2085 = vadd.xlane.f32.xlu0 %v2084_v5  ;;  %v1890_v42 = vpop.f32.mrb[68].mxu1  ;;  %v1930_v38 = vpop.f32.mrb[56].mxu0 }
 0x403   :  { %v8786_v60 = vpop.f32.mrb[69].mxu1  ;;  %v8792_v51 = vpop.f32.mrb[57].mxu0  ;;  %v10920_v27 = vadd.f32 %v8194_v25, %v1890_v42 }
 0x404   :  { %v2041_v48 = vmul.f32 1.442695, %v2013_v7  ;;  %v1893_v14 = vpop.f32.mrb[70].mxu1  ;;  %v1933_v39 = vpop.f32.mrb[58].mxu0 }
 0x405   :  { %v8787_v13 = vpop.f32.mrb[71].mxu1  ;;  %v8793_v4 = vpop.f32.mrb[59].mxu0  ;;  %v2003_v21 = vsel %vm1936_vm6, %v10920_v27, -inf }
 0x406   :  { %9677 = vpow2.f32 %v2041_v48  ;;  %1995 = vmax.xlane.f32.xlu1 %v1994_v20  ;;  %v8193_v13 = vld [vmem:[%s12664_s1 + $0x15] ss:$0 sm:$0xff] }
 0x407   :  { %v10936_v25 = vadd.f32 %v8193_v13, %v1850_v1 }
 0x408   :  { %v10926_v5 = vpop.eup %9675 }
 0x409   :  { %v1954_v62 = vpop.xlane.xlu0 %1953  ;;  %v2090_v39 = vsel %vm1936_vm6, %v10926_v5, 0.0  ;;  %v2000_v4 = vsel %vm1936_vm6, %v10936_v25, -inf }
 0x40a   :  { %v2014_v7 = vsub.f32 %v10793_v26, %v1954_v62  ;;  %2004 = vmax.xlane.f32.xlu1 %v2003_v21 }
 0x40c   :  { %v2043_v60 = vmul.f32 1.442695, %v2014_v7 }
 0x40e   :  { %9679 = vpow2.f32 %v2043_v60  ;;  %2091 = vadd.xlane.f32.xlu1 %v2090_v39 }
 0x410   :  { %v10934_v20 = vpop.eup %9677 }
 0x411   :  { %v1957_v42 = vpop.xlane.xlu1 %1956  ;;  %v2093_v48 = vsel %vm1936_vm6, %v10934_v20, 0.0 }
 0x412   :  { %v2015_v26 = vsub.f32 %v10803_v2, %v1957_v42  ;;  %2094 = vadd.xlane.f32.xlu0 %v2093_v48  ;;  %v8195_v42 = vld [vmem:[%s12664_s1 + $0x17] ss:$0 sm:$0xff] }
 0x414   :  { %v2045_v51 = vmul.f32 1.442695, %v2015_v26 }
 0x415   :  { %v1960_v14 = vpop.xlane.xlu1 %1959 }
 0x416   :  { %9681 = vpow2.f32 %v2045_v51  ;;  %v2016_v62 = vsub.f32 %v10805_v24, %v1960_v14  ;;  %2001 = vmax.xlane.f32.xlu0 %v2000_v4  ;;  %v10955_v51 = vadd.f32 %v8195_v42, %v1930_v38 }
 0x418   :  { %v10944_v21 = vpop.eup %9679  ;;  %v2047_v1 = vmul.f32 1.442695, %v2016_v62 }
 0x419   :  { %v1963_v7 = vpop.xlane.xlu0 %1962  ;;  %v2096_v60 = vsel %vm1936_vm6, %v10944_v21, 0.0 }
 0x41a   :  { %v2017_v39 = vsub.f32 %v10817_v34, %v1963_v7  ;;  %2097 = vadd.xlane.f32.xlu0 %v2096_v60  ;;  %9683 = vpow2.f32 %v2047_v1  ;;  %v2006_v7 = vsel %vm1936_vm6, %v10955_v51, -inf }
 0x41c   :  { %v2049_v2 = vmul.f32 1.442695, %v2017_v39 }
 0x41d   :  { %v1966_v13 = vpop.xlane.xlu0 %1965 }
 0x41e   :  { %9685 = vpow2.f32 %v2049_v2  ;;  %v2018_v24 = vsub.f32 %v10819_v0, %v1966_v13 }
 0x420   :  { %v10953_v48 = vpop.eup %9681  ;;  %v2051_v26 = vmul.f32 1.442695, %v2018_v24 }
 0x421   :  { %v1969_v14 = vpop.xlane.xlu1 %1968  ;;  %v2099_v34 = vsel %vm1936_vm6, %v10953_v48, 0.0 }
 0x422   :  { %9687 = vpow2.f32 %v2051_v26  ;;  %v2019_v4 = vsub.f32 %v10831_v12, %v1969_v14  ;;  %2100 = vadd.xlane.f32.xlu1 %v2099_v34 }
 0x424   :  { %v2053_v62 = vmul.f32 1.442695, %v2019_v4  ;;  %v10962_v60 = vpop.eup %9683 }
 0x425   :  { %v1972_v1 = vpop.xlane.xlu1 %1971  ;;  %v2102_v12 = vsel %vm1936_vm6, %v10962_v60, 0.0 }
 0x426   :  { %9689 = vpow2.f32 %v2053_v62  ;;  %v2020_v0 = vsub.f32 %v10833_v17, %v1972_v1  ;;  %2007 = vmax.xlane.f32.xlu1 %v2006_v7 }
 0x428   :  { %v10965_v38 = vpop.eup %9685  ;;  %v2055_v39 = vmul.f32 1.442695, %v2020_v0 }
 0x429   :  { %v1975_v2 = vpop.xlane.xlu0 %1974  ;;  %v2105_v13 = vsel %vm1936_vm6, %v10965_v38, 0.0 }
 0x42a   :  { %9691 = vpow2.f32 %v2055_v39  ;;  %v2021_v42 = vsub.f32 %v10845_v45, %v1975_v2  ;;  %2106 = vadd.xlane.f32.xlu0 %v2105_v13  ;;  %2103 = vadd.xlane.f32.xlu1 %v2102_v12 }
 0x42c   :  { %v10972_v24 = vpop.eup %9687  ;;  %v2057_v26 = vmul.f32 1.442695, %v2021_v42 }
 0x42d   :  { %v1978_v17 = vpop.xlane.xlu0 %1977  ;;  %v2108_v14 = vsel %vm1936_vm6, %v10972_v24, 0.0 }
 0x42e   :  { %9693 = vpow2.f32 %v2057_v26  ;;  %v2022_v34 = vsub.f32 %v10847_v55, %v1978_v17  ;;  %2109 = vadd.xlane.f32.xlu0 %v2108_v14 }
 0x430   :  { %v10977_v4 = vpop.eup %9689  ;;  %v2059_v62 = vmul.f32 1.442695, %v2022_v34 }
 0x431   :  { %v1981_v1 = vpop.xlane.xlu1 %1980  ;;  %v2111_v45 = vsel %vm1936_vm6, %v10977_v4, 0.0 }
 0x432   :  { %9695 = vpow2.f32 %v2059_v62  ;;  %v2023_v7 = vsub.f32 %v10859_v57, %v1981_v1  ;;  %2112 = vadd.xlane.f32.xlu1 %v2111_v45 }
 0x434   :  { %v10982_v0 = vpop.eup %9691  ;;  %v2061_v39 = vmul.f32 1.442695, %v2023_v7 }
 0x435   :  { %v1984_v2 = vpop.xlane.xlu1 %1983  ;;  %v2114_v13 = vsel %vm1936_vm6, %v10982_v0, 0.0 }
 0x436   :  { %9697 = vpow2.f32 %v2061_v39  ;;  %v2024_v55 = vsub.f32 %v10861_v9, %v1984_v2  ;;  %2115 = vadd.xlane.f32.xlu1 %v2114_v13 }
 0x438   :  { %v10987_v12 = vpop.eup %9693  ;;  %v2063_v42 = vmul.f32 1.442695, %v2024_v55 }
 0x439   :  { %v2117_v26 = vsel %vm1936_vm6, %v10987_v12, 0.0 }
 0x43a   :  { %9699 = vpow2.f32 %v2063_v42  ;;  %2118 = vadd.xlane.f32.xlu0 %v2117_v26 }
 0x43c   :  { %v10991_v57 = vpop.eup %9695 }
 0x43d   :  { %v2120_v17 = vsel %vm1936_vm6, %v10991_v57, 0.0 }
 0x43e   :  { %2121 = vadd.xlane.f32.xlu0 %v2120_v17 }
 0x440   :  { %v10995_v14 = vpop.eup %9697 }
 0x441   :  { %v2123_v9 = vsel %vm1936_vm6, %v10995_v14, 0.0 }
 0x442   :  { %2124 = vadd.xlane.f32.xlu1 %v2123_v9  ;;  %v785_v9 = vmul.f32 %v10534_v47, %v10726_v56 }
 0x444   :  { %v10999_v34 = vpop.eup %9699 }
 0x445   :  { %v2126_v62 = vsel %vm1936_vm6, %v10999_v34, 0.0 }
 0x446   :  { %2127 = vadd.xlane.f32.xlu1 %v2126_v62 }
 0x47b   :  { %v1987_v1 = vpop.xlane.xlu0 %1986 }
 0x47c   :  { %v2025_v45 = vsub.f32 %v10871_v63, %v1987_v1 }
 0x47e   :  { %v2065_v7 = vmul.f32 1.442695, %v2025_v45 }
 0x47f   :  { %v2083_v39 = vpop.xlane.xlu0 %2082 }
 0x480   :  { %9701 = vpow2.f32 %v2065_v7  ;;  %v809_v7 = vpack.c.bf16 %v785_v9, %v785_v9 }
 0x481   :  { %9703 = vrcp.f32 %v2083_v39 }
 0x482   :  { %v2276_v56 = vsel %vm2228_vm5, %v809_v7, 0 }
 0x483   :  { %v1993_v2 = vpop.xlane.xlu1 %1992  ;;  %v1990_v13 = vpop.xlane.xlu0 %1989 }
 0x484   :  { %v2027_v55 = vsub.f32 %v10889_v61, %v1993_v2  ;;  %v2026_v42 = vsub.f32 %v10884_v41, %v1990_v13 }
 0x486   :  { %v2069_v26 = vmul.f32 1.442695, %v2027_v55  ;;  %v2067_v17 = vmul.f32 1.442695, %v2026_v42  ;;  %v12699_v42 = vmov 0.0  }
 0x488   :  { %9705 = vpow2.f32 %v2069_v26 }
 0x489   :  { %9707 = vpow2.f32 %v2067_v17 }
 0x48a   :  { %v11008_v62 = vpop.eup %9701 }
 0x48b   :  { %v9704_v63 = vpop.eup %9703  ;;  %v1999_v1 = vpop.xlane.xlu0 %1998  ;;  %v2129_v45 = vsel %vm1936_vm6, %v11008_v62, 0.0 }
 0x48c   :  { %v2029_v39 = vsub.f32 %v10899_v18, %v1999_v1  ;;  %2130 = vadd.xlane.f32.xlu0 %v2129_v45  ;;  %v2177_v41 = vmul.f32 %v9704_v63, %v10879_v46  ;;  %v650_v1 = vadd.f32 %v10538_v53, %v10714_v33 }
 0x48e   :  { %v2073_v61 = vmul.f32 1.442695, %v2029_v39  ;;  %v2201_v2 = vpack.c.bf16 %v2177_v41, %v2177_v41  ;;  %v787_v39 = vmul.f32 %v10534_v47, %v10732_v50 }
 0x48f   :  { %v2089_v13 = vpop.xlane.xlu1 %2088  ;;  %v2086_v55 = vpop.xlane.xlu0 %2085 }
 0x490   :  { %9709 = vpow2.f32 %v2073_v61  ;;  %8797 = vmatmul.mubr.msk.bf16.vlgmr.msra.gmra.mrb[72].mxu1 %vm1936_vm6, %v2201_v2  ;;  %v788_v61 = vmul.f32 %v10522_v8, %v650_v1 }
 0x491   :  { %9711 = vrcp.f32 %v2089_v13  ;;  %8801 = vmatpush3.bf16.msra.mxu1 %v2276_v56  ;;  %8802 = vmatprep.mubr.msk.bf16.mxu1 %vm10184_vm3, %v12699_v42 }
 0x492   :  { %v11018_v26 = vpop.eup %9705  ;;  %9713 = vrcp.f32 %v2086_v55  ;;  %8818 = vmatprep.subr.bf16.mxu1 %v12699_v42  ;;  %v812_v50 = vpack.c.bf16 %v788_v61, %v788_v61 }
 0x493   :  { %v11021_v46 = vpop.eup %9707  ;;  %v1996_v18 = vpop.xlane.xlu1 %1995  ;;  %v2135_v17 = vsel %vm1936_vm6, %v11018_v26, 0.0 }
 0x494   :  { %v2028_v9 = vsub.f32 %v10910_v10, %v1996_v18  ;;  %v2132_v63 = vsel %vm1936_vm6, %v11021_v46, 0.0  ;;  %2136 = vadd.xlane.f32.xlu1 %v2135_v17  ;;  %v811_v18 = vpack.c.bf16 %v787_v39, %v787_v39 }
 0x495   :  { %2133 = vadd.xlane.f32.xlu0 %v2132_v63 }
 0x496   :  { %v2071_v45 = vmul.f32 1.442695, %v2028_v9 }
 0x497   :  { %v2005_v7 = vpop.xlane.xlu1 %2004 }
 0x498   :  { %9715 = vpow2.f32 %v2071_v45  ;;  %v2031_v41 = vsub.f32 %v10920_v27, %v2005_v7  ;;  %v653_v7 = vadd.f32 %v10545_v59, %v10714_v33 }
 0x49a   :  { %v11034_v2 = vpop.eup %9709  ;;  %v2077_v10 = vmul.f32 1.442695, %v2031_v41  ;;  %v2368_v41 = vsel %vm2228_vm5, %v811_v18, 0  ;;  %v790_v61 = vmul.f32 %v10522_v8, %v653_v7 }
 0x49b   :  { %v9712_v13 = vpop.eup %9711  ;;  %v2092_v55 = vpop.xlane.xlu1 %2091  ;;  %v2141_v56 = vsel %vm1936_vm6, %v11034_v2, 0.0 }
 0x49c   :  { %v9714_v53 = vpop.eup %9713  ;;  %9717 = vpow2.f32 %v2077_v10  ;;  %2142 = vadd.xlane.f32.xlu0 %v2141_v56  ;;  %v2179_v17 = vmul.f32 %v9712_v13, %v10908_v58  ;;  %v2414_v58 = vsel %vm2228_vm5, %v812_v50, 0  ;;  %v814_v50 = vpack.c.bf16 %v790_v61, %v790_v61 }
 0x49d   :  { %9719 = vrcp.f32 %v2092_v55  ;;  %v2178_v27 = vmul.f32 %v9714_v53, %v10903_v6  ;;  %v789_v53 = vmul.f32 %v10534_v47, %v650_v1 }
 0x49e   :  { %v2203_v9 = vpack.c.bf16 %v2179_v17, %v2179_v17 }
 0x49f   :  { %v2202_v63 = vpack.c.bf16 %v2178_v27, %v2178_v27  ;;  %v2095_v45 = vpop.xlane.xlu0 %2094 }
 0x4a0   :  { %8809 = vmatmul.mubr.msk.bf16.vlgmr.msra.gmra.mrb[60].mxu0 %vm1936_vm6, %v2203_v9  ;;  %9721 = vrcp.f32 %v2095_v45 }
 0x4a1   :  { %8803 = vmatmul.mubr.msk.bf16.vlgmr.msra.gmra.mrb[72].mxu1 %vm1936_vm6, %v2202_v63  ;;  %8813 = vmatpush3.bf16.msra.mxu0 %v2368_v41  ;;  %v813_v63 = vpack.c.bf16 %v789_v53, %v789_v53  ;;  %v2506_v41 = vsel %vm2228_vm5, %v814_v50, 0 }
 0x4a2   :  { %v11046_v39 = vpop.eup %9715  ;;  %8819 = vmatpush3.bf16.msra.mxu1 %v2414_v58  ;;  %8814 = vmatprep.mubr.msk.bf16.mxu0 %vm10184_vm3, %v12699_v42 }
 0x4a3   :  { %v2002_v6 = vpop.xlane.xlu0 %2001  ;;  %v2138_v59 = vsel %vm1936_vm6, %v11046_v39, 0.0  ;;  %8830 = vmatprep.subr.bf16.mxu0 %v12699_v42  ;;  %8820 = vmatprep.mubr.msk.bf16.mxu1 %vm10184_vm3, %v12699_v42  ;;  %v2460_v58 = vsel %vm2228_vm5, %v813_v63, 0 }
 0x4a4   :  { %v2030_v10 = vsub.f32 %v10936_v25, %v2002_v6  ;;  %2139 = vadd.xlane.f32.xlu1 %v2138_v59  ;;  %8824 = vmatprep.subr.bf16.mxu1 %v12699_v42 }
 0x4a6   :  { %v11058_v13 = vpop.eup %9717  ;;  %v2075_v55 = vmul.f32 1.442695, %v2030_v10 }
 0x4a7   :  { %v9720_v56 = vpop.eup %9719  ;;  %v2098_v18 = vpop.xlane.xlu0 %2097  ;;  %v2147_v17 = vsel %vm1936_vm6, %v11058_v13, 0.0 }
 0x4a8   :  { %9723 = vpow2.f32 %v2075_v55  ;;  %2148 = vadd.xlane.f32.xlu1 %v2147_v17  ;;  %v2180_v27 = vmul.f32 %v9720_v56, %v10926_v5  ;;  %v658_v5 = vadd.f32 %v10569_v40, %v10714_v33 }
 0x4a9   :  { %9725 = vrcp.f32 %v2098_v18  ;;  %v791_v18 = vmul.f32 %v10534_v47, %v653_v7 }
 0x4aa   :  { %v9722_v25 = vpop.eup %9721  ;;  %v2204_v9 = vpack.c.bf16 %v2180_v27, %v2180_v27  ;;  %v792_v61 = vmul.f32 %v10522_v8, %v658_v5 }
 0x4ab   :  { %v2181_v45 = vmul.f32 %v9722_v25, %v10934_v20  ;;  %v815_v63 = vpack.c.bf16 %v791_v18, %v791_v18 }
 0x4ac   :  { %8815 = vmatmul.mubr.msk.bf16.vlgmr.msra.gmra.mrb[60].mxu0 %vm1936_vm6, %v2204_v9  ;;  %v816_v17 = vpack.c.bf16 %v792_v61, %v792_v61 }
 0x4ad   :  { %8831 = vmatpush3.bf16.msra.mxu0 %v2506_v41  ;;  %v2205_v1 = vpack.c.bf16 %v2181_v45, %v2181_v45  ;;  %8832 = vmatprep.mubr.msk.bf16.mxu0 %vm10184_vm3, %v12699_v42  ;;  %v661_v41 = vadd.f32 %v10575_v28, %v10714_v33 }
 0x4ae   :  { %8836 = vmatprep.subr.bf16.mxu0 %v12699_v42  ;;  %v2598_v45 = vsel %vm2228_vm5, %v816_v17, 0  ;;  %v666_v17 = vadd.f32 %v10563_v15, %v10714_v33 }
 0x4af   :  { %8821 = vmatmul.mubr.msk.bf16.vlgmr.msra.gmra.mrb[76].mxu1 %vm1936_vm6, %v2205_v1  ;;  %v2101_v6 = vpop.xlane.xlu1 %2100  ;;  %v2552_v1 = vsel %vm2228_vm5, %v815_v63, 0  ;;  %v794_v28 = vmul.f32 %v10522_v8, %v661_v41 }
 0x4b0   :  { %8825 = vmatpush3.bf16.msra.mxu1 %v2460_v58  ;;  %9727 = vrcp.f32 %v2101_v6  ;;  %8826 = vmatprep.mubr.msk.bf16.mxu1 %vm10184_vm3, %v12699_v42  ;;  %v793_v6 = vmul.f32 %v10534_v47, %v658_v5  ;;  %v796_v63 = vmul.f32 %v10522_v8, %v666_v17 }
 0x4b1   :  { %8842 = vmatprep.subr.bf16.mxu1 %v12699_v42 }
 0x4b2   :  { %v11077_v20 = vpop.eup %9723 }
 0x4b3   :  { %v9726_v59 = vpop.eup %9725  ;;  %v2008_v10 = vpop.xlane.xlu1 %2007  ;;  %v2144_v40 = vsel %vm1936_vm6, %v11077_v20, 0.0 }
 0x4b4   :  { %v2032_v55 = vsub.f32 %v10955_v51, %v2008_v10  ;;  %2145 = vadd.xlane.f32.xlu0 %v2144_v40  ;;  %v2182_v56 = vmul.f32 %v9726_v59, %v10944_v21  ;;  %v817_v40 = vpack.c.bf16 %v793_v6, %v793_v6 }
 0x4b6   :  { %v2079_v53 = vmul.f32 1.442695, %v2032_v55  ;;  %v2206_v25 = vpack.c.bf16 %v2182_v56, %v2182_v56 }
 0x4b7   :  { %v2107_v50 = vpop.xlane.xlu0 %2106  ;;  %v2104_v27 = vpop.xlane.xlu1 %2103 }
 0x4b8   :  { %9729 = vpow2.f32 %v2079_v53  ;;  %v818_v53 = vpack.c.bf16 %v794_v28, %v794_v28  ;;  %v669_v28 = vadd.f32 %v10571_v35, %v10714_v33 }
 0x4b9   :  { %9731 = vrcp.f32 %v2107_v50  ;;  %v2644_v50 = vsel %vm2228_vm5, %v817_v40, 0 }
 0x4ba   :  { %v9728_v9 = vpop.eup %9727  ;;  %9733 = vrcp.f32 %v2104_v27  ;;  %v2690_v15 = vsel %vm2228_vm5, %v818_v53, 0  ;;  %v798_v40 = vmul.f32 %v10522_v8, %v669_v28 }
 0x4bb   :  { %8827 = vmatmul.mubr.msk.bf16.vlgmr.msra.gmra.mrb[76].mxu1 %vm1936_vm6, %v2206_v25  ;;  %v2183_v51 = vmul.f32 %v9728_v9, %v10953_v48  ;;  %v2110_v7 = vpop.xlane.xlu0 %2109  ;;  %v795_v9 = vmul.f32 %v10534_v47, %v661_v41 }
 0x4bc   :  { %8843 = vmatpush3.bf16.msra.mxu1 %v2598_v45  ;;  %8844 = vmatprep.mubr.msk.bf16.mxu1 %vm10184_vm3, %v12699_v42  ;;  %v822_v53 = vpack.c.bf16 %v798_v40, %v798_v40  ;;  %v682_v40 = vadd.f32 %v10681_v3, %v10714_v33 }
 0x4bd   :  { %v2207_v21 = vpack.c.bf16 %v2183_v51, %v2183_v51  ;;  %8848 = vmatprep.subr.bf16.mxu1 %v12699_v42 }
 0x4bf   :  { %8833 = vmatmul.mubr.msk.bf16.vlgmr.msra.gmra.mrb[64].mxu0 %vm1936_vm6, %v2207_v21  ;;  %v2113_v58 = vpop.xlane.xlu1 %2112  ;;  %v819_v21 = vpack.c.bf16 %v795_v9, %v795_v9 }
 0x4c0   :  { %8837 = vmatpush3.bf16.msra.mxu0 %v2552_v1  ;;  %9735 = vrcp.f32 %v2113_v58  ;;  %8838 = vmatprep.mubr.msk.bf16.mxu0 %vm10184_vm3, %v12699_v42 }
 0x4c1   :  { %9737 = vrcp.f32 %v2110_v7  ;;  %8854 = vmatprep.subr.bf16.mxu0 %v12699_v42  ;;  %v820_v7 = vpack.c.bf16 %v796_v63, %v796_v63 }
 0x4c2   :  { %v11099_v48 = vpop.eup %9729 }
 0x4c3   :  { %v9732_v59 = vpop.eup %9731  ;;  %v2150_v61 = vsel %vm1936_vm6, %v11099_v48, 0.0  ;;  %v2116_v27 = vpop.xlane.xlu1 %2115 }
 0x4c4   :  { %v9734_v10 = vpop.eup %9733  ;;  %2151 = vadd.xlane.f32.xlu1 %v2150_v61  ;;  %v2185_v5 = vmul.f32 %v9732_v59, %v10965_v38  ;;  %v2736_v61 = vsel %vm2228_vm5, %v819_v21, 0  ;;  %v677_v21 = vadd.f32 %v10693_v16, %v10714_v33 }
 0x4c5   :  { %v2184_v55 = vmul.f32 %v9734_v10, %v10962_v60  ;;  %v797_v10 = vmul.f32 %v10534_v47, %v666_v17 }
 0x4c6   :  { %v2209_v56 = vpack.c.bf16 %v2185_v5, %v2185_v5  ;;  %v802_v16 = vmul.f32 %v10522_v8, %v677_v21 }
 0x4c7   :  { %v2119_v18 = vpop.xlane.xlu0 %2118  ;;  %v2208_v25 = vpack.c.bf16 %v2184_v55, %v2184_v55  ;;  %v821_v5 = vpack.c.bf16 %v797_v10, %v797_v10 }
 0x4c8   :  { %8845 = vmatmul.mubr.msk.bf16.vlgmr.msra.gmra.mrb[80].mxu1 %vm1936_vm6, %v2209_v56  ;;  %9739 = vrcp.f32 %v2119_v18  ;;  %v674_v18 = vadd.f32 %v10684_v44, %v10714_v33  ;;  %v2874_v44 = vsel %vm2228_vm5, %v822_v53, 0 }
 0x4c9   :  { %8849 = vmatpush3.bf16.msra.mxu1 %v2644_v50  ;;  %8850 = vmatprep.mubr.msk.bf16.mxu1 %vm10184_vm3, %v12699_v42  ;;  %9741 = vrcp.f32 %v2116_v27  ;;  %v2828_v17 = vsel %vm2228_vm5, %v821_v5, 0  ;;  %v803_v5 = vmul.f32 %v10534_v47, %v677_v21  ;;  %v9565_v21 = vld [vmem:[#allocation7] sm:$0xff]  }
 0x4ca   :  { %v9736_v38 = vpop.eup %9735  ;;  %8866 = vmatprep.subr.bf16.mxu1 %v12699_v42 }
 0x4cb   :  { %v9738_v60 = vpop.eup %9737  ;;  %8839 = vmatmul.mubr.msk.bf16.vlgmr.msra.gmra.mrb[64].mxu0 %vm1936_vm6, %v2208_v25  ;;  %v2187_v45 = vmul.f32 %v9736_v38, %v10977_v4  ;;  %v2122_v58 = vpop.xlane.xlu0 %2121  ;;  %v800_v38 = vmul.f32 %v10522_v8, %v674_v18 }
 0x4cc   :  { %8855 = vmatpush3.bf16.msra.mxu0 %v2690_v15  ;;  %8856 = vmatprep.mubr.msk.bf16.mxu0 %vm10184_vm3, %v12699_v42  ;;  %v2186_v51 = vmul.f32 %v9738_v60, %v10972_v24  ;;  %v2782_v24 = vsel %vm2228_vm5, %v820_v7, 0 }
 0x4cd   :  { %8860 = vmatprep.subr.bf16.mxu0 %v12699_v42  ;;  %v2211_v1 = vpack.c.bf16 %v2187_v45, %v2187_v45  ;;  %v824_v63 = vpack.c.bf16 %v800_v38, %v800_v38 }
 0x4ce   :  { %v2210_v6 = vpack.c.bf16 %v2186_v51, %v2186_v51 }
 0x4cf   :  { %v2125_v41 = vpop.xlane.xlu1 %2124 }
 0x4d0   :  { %9743 = vrcp.f32 %v2125_v41  ;;  %v2966_v41 = vsel %vm2228_vm5, %v824_v63, 0 }
 0x4d1   :  { %9745 = vrcp.f32 %v2122_v58 }
 0x4d2   :  { %v9740_v59 = vpop.eup %9739 }
 0x4d3   :  { %8857 = vmatmul.mubr.msk.bf16.vlgmr.msra.gmra.mrb[68].mxu0 %vm1936_vm6, %v2211_v1  ;;  %v9742_v4 = vpop.eup %9741  ;;  %v2189_v35 = vmul.f32 %v9740_v59, %v10987_v12  ;;  %v2128_v12 = vpop.xlane.xlu1 %2127  ;;  %v826_v1 = vpack.c.bf16 %v802_v16, %v802_v16 }
 0x4d4   :  { %8851 = vmatmul.mubr.msk.bf16.vlgmr.msra.gmra.mrb[80].mxu1 %vm1936_vm6, %v2210_v6  ;;  %8861 = vmatpush3.bf16.msra.mxu0 %v2736_v61  ;;  %v2188_v55 = vmul.f32 %v9742_v4, %v10982_v0  ;;  %v799_v0 = vmul.f32 %v10534_v47, %v669_v28  ;;  %9747 = vrcp.f32 %v2128_v12  ;;  %v801_v28 = vmul.f32 %v10534_v47, %v674_v18 }
 0x4d5   :  { %8867 = vmatpush3.bf16.msra.mxu1 %v2782_v24  ;;  %8868 = vmatprep.mubr.msk.bf16.mxu1 %vm10184_vm3, %v12699_v42  ;;  %v2213_v56 = vpack.c.bf16 %v2189_v35, %v2189_v35  ;;  %v3058_v6 = vsel %vm2228_vm5, %v826_v1, 0  ;;  %v804_v18 = vmul.f32 %v10522_v8, %v682_v40 }
 0x4d6   :  { %8872 = vmatprep.subr.bf16.mxu1 %v12699_v42  ;;  %8862 = vmatprep.mubr.msk.bf16.mxu0 %vm10184_vm3, %v12699_v42  ;;  %v2212_v50 = vpack.c.bf16 %v2188_v55, %v2188_v55  ;;  %v823_v15 = vpack.c.bf16 %v799_v0, %v799_v0  ;;  %v825_v24 = vpack.c.bf16 %v801_v28, %v801_v28 }
 0x4d7   :  { %8878 = vmatprep.subr.bf16.mxu0 %v12699_v42 }
 0x4d8   :  { %v2920_v7 = vsel %vm2228_vm5, %v823_v15, 0  ;;  %v3012_v55 = vsel %vm2228_vm5, %v825_v24, 0 }
 0x4da   :  { %v9744_v27 = vpop.eup %9743 }
 0x4db   :  { %v9746_v25 = vpop.eup %9745  ;;  %v2191_v60 = vmul.f32 %v9744_v27, %v10995_v14  ;;  %v828_v27 = vpack.c.bf16 %v804_v18, %v804_v18 }
 0x4dc   :  { %8869 = vmatmul.mubr.msk.bf16.vlgmr.msra.gmra.mrb[84].mxu1 %vm1936_vm6, %v2213_v56  ;;  %v2190_v9 = vmul.f32 %v9746_v25, %v10991_v57 }
 0x4dd   :  { %8873 = vmatpush3.bf16.msra.mxu1 %v2828_v17  ;;  %8874 = vmatprep.mubr.msk.bf16.mxu1 %vm10184_vm3, %v12699_v42  ;;  %v2215_v45 = vpack.c.bf16 %v2191_v60, %v2191_v60  ;;  %v827_v17 = vpack.c.bf16 %v803_v5, %v803_v5  ;;  %v3150_v60 = vsel %vm2228_vm5, %v828_v27, 0 }
 0x4de   :  { %8890 = vmatprep.subr.bf16.mxu1 %v12699_v42  ;;  %v2214_v51 = vpack.c.bf16 %v2190_v9, %v2190_v9  ;;  %v9748_v57 = vpop.eup %9747 }
 0x4df   :  { %8863 = vmatmul.mubr.msk.bf16.vlgmr.msra.gmra.mrb[68].mxu0 %vm1936_vm6, %v2212_v50  ;;  %v2192_v14 = vmul.f32 %v9748_v57, %v10999_v34  ;;  %v3104_v25 = vsel %vm2228_vm5, %v827_v17, 0 }
 0x4e0   :  { %8879 = vmatpush3.bf16.msra.mxu0 %v2874_v44  ;;  %8880 = vmatprep.mubr.msk.bf16.mxu0 %vm10184_vm3, %v12699_v42 }
 0x4e1   :  { %8884 = vmatprep.subr.bf16.mxu0 %v12699_v42  ;;  %v2216_v58 = vpack.c.bf16 %v2192_v14, %v2192_v14 }
 0x4e7   :  { %8881 = vmatmul.mubr.msk.bf16.vlgmr.msra.gmra.mrb[72].mxu0 %vm1936_vm6, %v2215_v45 }
 0x4e8   :  { %8875 = vmatmul.mubr.msk.bf16.vlgmr.msra.gmra.mrb[84].mxu1 %vm1936_vm6, %v2214_v51  ;;  %8885 = vmatpush3.bf16.msra.mxu0 %v2920_v7 }
 0x4e9   :  { %8891 = vmatpush3.bf16.msra.mxu1 %v2966_v41  ;;  %8886 = vmatprep.mubr.msk.bf16.mxu0 %vm10184_vm3, %v12699_v42 }
 0x4ea   :  { %8902 = vmatprep.subr.bf16.mxu0 %v12699_v42  ;;  %8892 = vmatprep.mubr.msk.bf16.mxu1 %vm10184_vm3, %v12699_v42 }
 0x4eb   :  { %8896 = vmatprep.subr.bf16.mxu1 %v12699_v42 }
 0x4f3   :  { %8887 = vmatmul.mubr.msk.bf16.vlgmr.msra.gmra.mrb[72].mxu0 %vm1936_vm6, %v2216_v58 }
 0x4f4   :  { %8903 = vmatpush3.bf16.msra.mxu0 %v3058_v6  ;;  %8904 = vmatprep.mubr.msk.bf16.mxu0 %vm10184_vm3, %v12699_v42 }
 0x4f5   :  { %8908 = vmatprep.subr.bf16.mxu0 %v12699_v42 }
 0x519   :  { %v2131_v59 = vpop.xlane.xlu0 %2130 }
 0x51a   :  { %9749 = vrcp.f32 %v2131_v59 }
 0x521   :  { %v2137_v61 = vpop.xlane.xlu1 %2136 }
 0x522   :  { %v2134_v10 = vpop.xlane.xlu0 %2133  ;;  %9751 = vrcp.f32 %v2137_v61 }
 0x523   :  { %9753 = vrcp.f32 %v2134_v10 }
 0x524   :  { %v9750_v34 = vpop.eup %9749 }
 0x525   :  { %v2193_v4 = vmul.f32 %v9750_v34, %v11008_v62  ;;  %v9566_v34 = vld [vmem:[#allocation7 + $0x8] sm:$0xff]  }
 0x527   :  { %v2217_v35 = vpack.c.bf16 %v2193_v4, %v2193_v4  ;;  %v9568_v4 = vld [vmem:[#allocation7 + $0x18] sm:$0xff]  }
 0x529   :  { %8893 = vmatmul.mubr.msk.bf16.vlgmr.msra.gmra.mrb[88].mxu1 %vm1936_vm6, %v2217_v35  ;;  %v2143_v56 = vpop.xlane.xlu0 %2142  ;;  %v9569_v35 = vld [vmem:[#allocation7 + $0x20] sm:$0xff]  }
 0x52a   :  { %8897 = vmatpush3.bf16.msra.mxu1 %v3012_v55  ;;  %9755 = vrcp.f32 %v2143_v56  ;;  %8898 = vmatprep.mubr.msk.bf16.mxu1 %vm10184_vm3, %v12699_v42  ;;  %v9570_v55 = vld [vmem:[#allocation7 + $0x28] sm:$0xff]   ;;  %v9571_v56 = vld [vmem:[#allocation7 + $0x30] sm:$0xff]  }
 0x52b   :  { %8914 = vmatprep.subr.bf16.mxu1 %v12699_v42 }
 0x52c   :  { %v9752_v53 = vpop.eup %9751 }
 0x52d   :  { %v9754_v62 = vpop.eup %9753  ;;  %v2195_v3 = vmul.f32 %v9752_v53, %v11018_v26  ;;  %v805_v26 = vmul.f32 %v10534_v47, %v682_v40  ;;  %v9572_v53 = vld [vmem:[#allocation7 + $0x38] sm:$0xff]  }
 0x52e   :  { %v2194_v50 = vmul.f32 %v9754_v62, %v11021_v46  ;;  %v685_v46 = vadd.f32 %v10690_v11, %v10714_v33 }
 0x52f   :  { %v2219_v12 = vpack.c.bf16 %v2195_v3, %v2195_v3  ;;  %v829_v63 = vpack.c.bf16 %v805_v26, %v805_v26 }
 0x530   :  { %v2218_v44 = vpack.c.bf16 %v2194_v50, %v2194_v50  ;;  %v806_v45 = vmul.f32 %v10522_v8, %v685_v46  ;;  %v807_v16 = vmul.f32 %v10534_v47, %v685_v46 }
 0x531   :  { %8905 = vmatmul.mubr.msk.bf16.vlgmr.msra.gmra.mrb[76].mxu0 %vm1936_vm6, %v2219_v12  ;;  %v2140_v0 = vpop.xlane.xlu1 %2139  ;;  %v3196_v7 = vsel %vm2228_vm5, %v829_v63, 0 }
 0x532   :  { %8909 = vmatpush3.bf16.msra.mxu0 %v3104_v25  ;;  %9757 = vrcp.f32 %v2140_v0  ;;  %8910 = vmatprep.mubr.msk.bf16.mxu0 %vm10184_vm3, %v12699_v42  ;;  %v830_v33 = vpack.c.bf16 %v806_v45, %v806_v45  ;;  %v831_v58 = vpack.c.bf16 %v807_v16, %v807_v16 }
 0x533   :  { %8926 = vmatprep.subr.bf16.mxu0 %v12699_v42 }
 0x534   :  { %v9756_v38 = vpop.eup %9755  ;;  %v3242_v1 = vsel %vm2228_vm5, %v830_v33, 0  ;;  %v3288_v59 = vsel %vm2228_vm5, %v831_v58, 0 }
 0x535   :  { %8899 = vmatmul.mubr.msk.bf16.vlgmr.msra.gmra.mrb[88].mxu1 %vm1936_vm6, %v2218_v44  ;;  %v2149_v9 = vpop.xlane.xlu1 %2148  ;;  %v2197_v15 = vmul.f32 %v9756_v38, %v11034_v2 }
 0x536   :  { %8915 = vmatpush3.bf16.msra.mxu1 %v3150_v60  ;;  %9759 = vrcp.f32 %v2149_v9  ;;  %8916 = vmatprep.mubr.msk.bf16.mxu1 %vm10184_vm3, %v12699_v42 }
 0x537   :  { %8920 = vmatprep.subr.bf16.mxu1 %v12699_v42  ;;  %v2221_v51 = vpack.c.bf16 %v2197_v15, %v2197_v15 }
 0x53c   :  { %v9758_v11 = vpop.eup %9757 }
 0x53d   :  { %8917 = vmatmul.mubr.msk.bf16.vlgmr.msra.gmra.mrb[92].mxu1 %vm1936_vm6, %v2221_v51  ;;  %v2196_v41 = vmul.f32 %v9758_v11, %v11046_v39 }
 0x53e   :  { %8921 = vmatpush3.bf16.msra.mxu1 %v3196_v7  ;;  %8922 = vmatprep.mubr.msk.bf16.mxu1 %vm10184_vm3, %v12699_v42 }
 0x53f   :  { %v2220_v57 = vpack.c.bf16 %v2196_v41, %v2196_v41  ;;  %8938 = vmatprep.subr.bf16.mxu1 %v9565_v21 }
 0x540   :  { %v9760_v2 = vpop.eup %9759 }
 0x541   :  { %v2146_v14 = vpop.xlane.xlu0 %2145  ;;  %8911 = vmatmul.mubr.msk.bf16.vlgmr.msra.gmra.mrb[76].mxu0 %vm1936_vm6, %v2220_v57  ;;  %v2199_v39 = vmul.f32 %v9760_v2, %v11058_v13  ;;  %v9567_v13 = vld [vmem:[#allocation7 + $0x10] sm:$0xff]  }
 0x542   :  { %9761 = vrcp.f32 %v2146_v14  ;;  %8927 = vmatpush3.bf16.msra.mxu0 %v3242_v1  ;;  %8928 = vmatprep.mubr.msk.bf16.mxu0 %vm10184_vm3, %v12699_v42 }
 0x543   :  { %8932 = vmatprep.subr.bf16.mxu0 %v12699_v42  ;;  %v2223_v6 = vpack.c.bf16 %v2199_v39, %v2199_v39 }
 0x549   :  { %8929 = vmatmul.mubr.msk.bf16.vlgmr.msra.gmra.mrb[80].mxu0 %vm1936_vm6, %v2223_v6 }
 0x54a   :  { %8933 = vmatpush3.bf16.msra.mxu0 %v3288_v59  ;;  %8934 = vmatprep.mubr.msk.bf16.mxu0 %vm10184_vm3, %v12699_v42 }
 0x54c   :  { %v9762_v28 = vpop.eup %9761 }
 0x54d   :  { %v2198_v61 = vmul.f32 %v9762_v28, %v11077_v20 }
 0x54f   :  { %v2222_v10 = vpack.c.bf16 %v2198_v61, %v2198_v61 }
 0x551   :  { %8923 = vmatmul.mubr.msk.bf16.vlgmr.msra.gmra.mrb[92].mxu1 %vm1936_vm6, %v2222_v10  ;;  %v2152_v24 = vpop.xlane.xlu1 %2151 }
 0x552   :  { %9763 = vrcp.f32 %v2152_v24  ;;  %8939 = vmatpush3.bf16.msra.mxu1 %v9565_v21 }
 0x553   :  { %8940 = vmatprep.subr.bf16.mxu1 %v9566_v34 }
 0x556   :  { %8941 = vmatpush3.bf16.msra.mxu1 %v9566_v34 }
 0x557   :  { %8942 = vmatprep.subr.bf16.mxu1 %v9567_v13 }
 0x55a   :  { %8943 = vmatpush3.bf16.msra.mxu1 %v9567_v13 }
 0x55b   :  { %8944 = vmatprep.subr.bf16.mxu1 %v9568_v4 }
 0x55c   :  { %v9764_v40 = vpop.eup %9763 }
 0x55d   :  { %v2200_v5 = vmul.f32 %v9764_v40, %v11099_v48 }
 0x55e   :  { %8945 = vmatpush3.bf16.msra.mxu1 %v9568_v4 }
 0x55f   :  { %v2224_v20 = vpack.c.bf16 %v2200_v5, %v2200_v5  ;;  %8946 = vmatprep.subr.bf16.mxu1 %v9569_v35 }
 0x561   :  { %8935 = vmatmul.mubr.msk.bf16.vlgmr.msra.gmra.mrb[80].mxu0 %vm1936_vm6, %v2224_v20 }
 0x562   :  { %8947 = vmatpush3.bf16.msra.mxu1 %v9569_v35 }
 0x563   :  { %8948 = vmatprep.subr.bf16.mxu1 %v9570_v55 }
 0x566   :  { %8949 = vmatpush3.bf16.msra.mxu1 %v9570_v55 }
 0x567   :  { %8950 = vmatprep.subr.bf16.mxu1 %v9571_v56 }
 0x56a   :  { %8951 = vmatpush3.bf16.msra.mxu1 %v9571_v56 }
 0x56b   :  { %8952 = vmatprep.subr.bf16.mxu1 %v9572_v53 }
 0x56e   :  { %8953 = vmatpush3.bf16.msra.mxu1 %v9572_v53 }
 0x574   :  { %v2312_v62 = vpop.f32.mrb[72].mxu1 }
 0x575   :  { %v8804_v18 = vpop.f32.mrb[73].mxu1 }
 0x576   :  { %v2315_v17 = vpop.f32.mrb[74].mxu1 }
 0x577   :  { %v8805_v3 = vpop.f32.mrb[75].mxu1 }
 0x57f   :  { %v2404_v48 = vpop.f32.mrb[60].mxu0 }
 0x580   :  { %v3342_v12 = vpack.c.bf16 %v2404_v48, %v2312_v62  ;;  %v8816_v50 = vpop.f32.mrb[61].mxu0 }
 0x581   :  { %v2407_v27 = vpop.f32.mrb[62].mxu0  ;;  %v11224_v50 = vld [vmem:[%s12671_s8] sm:$0x7f] }
 0x582   :  { %v8817_v25 = vpop.f32.mrb[63].mxu0  ;;  %8954 = vmatprep.mubr.bf16.mxu1 %v3342_v12  ;;  %v3367_v27 = vrot.slane %v11224_v50, %v10514_v31 }
 0x58e   :  { %v2496_v0 = vpop.f32.mrb[76].mxu1 }
 0x58f   :  { %v8828_v44 = vpop.f32.mrb[77].mxu1 }
 0x590   :  { %v2499_v38 = vpop.f32.mrb[78].mxu1 }
 0x591   :  { %v8829_v26 = vpop.f32.mrb[79].mxu1 }
 0x59e   :  { %v2588_v46 = vpop.f32.mrb[64].mxu0 }
 0x59f   :  { %v3343_v60 = vpack.c.bf16 %v2588_v46, %v2496_v0  ;;  %v8840_v9 = vpop.f32.mrb[65].mxu0 }
 0x5a0   :  { %v2591_v15 = vpop.f32.mrb[66].mxu0 }
 0x5a1   :  { %v8841_v63 = vpop.f32.mrb[67].mxu0  ;;  %8955 = vmatmul.mubr.bf16.vlgmr.msra.gmra.mrb[96].mxu1 %v3343_v60 }
 0x5a7   :  { %v2680_v45 = vpop.f32.mrb[80].mxu1 }
 0x5a8   :  { %v8852_v51 = vpop.f32.mrb[81].mxu1 }
 0x5a9   :  { %v2683_v21 = vpop.f32.mrb[82].mxu1 }
 0x5aa   :  { %v8853_v11 = vpop.f32.mrb[83].mxu1 }
 0x5b2   :  { %v2772_v33 = vpop.f32.mrb[68].mxu0 }
 0x5b3   :  { %v3344_v7 = vpack.c.bf16 %v2772_v33, %v2680_v45  ;;  %v8864_v41 = vpop.f32.mrb[69].mxu0 }
 0x5b4   :  { %v2775_v57 = vpop.f32.mrb[70].mxu0 }
 0x5b5   :  { %v8865_v2 = vpop.f32.mrb[71].mxu0  ;;  %8958 = vmatprep.mubr.bf16.mxu1 %v3344_v7 }
 0x5bb   :  { %v2864_v16 = vpop.f32.mrb[84].mxu1 }
 0x5bc   :  { %v8876_v14 = vpop.f32.mrb[85].mxu1 }
 0x5bd   :  { %v2867_v1 = vpop.f32.mrb[86].mxu1 }
 0x5be   :  { %v8877_v39 = vpop.f32.mrb[87].mxu1 }
 0x5c6   :  { %v2956_v58 = vpop.f32.mrb[72].mxu0 }
 0x5c7   :  { %v3345_v6 = vpack.c.bf16 %v2956_v58, %v2864_v16  ;;  %v8888_v59 = vpop.f32.mrb[73].mxu0 }
 0x5c8   :  { %v2959_v28 = vpop.f32.mrb[74].mxu0 }
 0x5c9   :  { %v8889_v61 = vpop.f32.mrb[75].mxu0  ;;  %8959 = vmatmul.mubr.bf16.gmra.mrb[100].mxu1 %v3345_v6 }
 0x608   :  { %v3048_v10 = vpop.f32.mrb[88].mxu1 }
 0x609   :  { %v8900_v34 = vpop.f32.mrb[89].mxu1 }
 0x60a   :  { %v3051_v24 = vpop.f32.mrb[90].mxu1 }
 0x60b   :  { %v8901_v13 = vpop.f32.mrb[91].mxu1 }
 0x614   :  { %v3140_v4 = vpop.f32.mrb[76].mxu0 }
 0x615   :  { %v3346_v35 = vpack.c.bf16 %v3140_v4, %v3048_v10  ;;  %v8912_v40 = vpop.f32.mrb[77].mxu0 }
 0x616   :  { %v3143_v5 = vpop.f32.mrb[78].mxu0 }
 0x617   :  { %v8913_v20 = vpop.f32.mrb[79].mxu0  ;;  %8962 = vmatprep.mubr.bf16.mxu1 %v3346_v35 }
 0x624   :  { %v3232_v55 = vpop.f32.mrb[92].mxu1 }
 0x625   :  { %v8924_v56 = vpop.f32.mrb[93].mxu1 }
 0x626   :  { %v3235_v53 = vpop.f32.mrb[94].mxu1 }
 0x627   :  { %v8925_v62 = vpop.f32.mrb[95].mxu1 }
 0x634   :  { %v3324_v18 = vpop.f32.mrb[80].mxu0 }
 0x635   :  { %v3347_v17 = vpack.c.bf16 %v3324_v18, %v3232_v55  ;;  %v8936_v3 = vpop.f32.mrb[81].mxu0 }
 0x636   :  { %v3327_v48 = vpop.f32.mrb[82].mxu0 }
 0x637   :  { %v8937_v12 = vpop.f32.mrb[83].mxu0  ;;  %8963 = vmatmul.mubr.bf16.gmra.mrb[104].mxu1 %v3347_v17 }
 0x674   :  { %v8956_v25 = vpop.f32.mrb[96].mxu1 }
 0x675   :  { %v3450_v0 = vpop.f32.mrb[97].mxu1  ;;  %v3459_v46 = vadd.f32 %v8956_v25, %v3367_v27  ;;  %v9574_v25 = vld [vmem:[#allocation8 + $0x8] sm:$0xff]  }
 0x676   :  { %v3451_v44 = vadd.f32 %v3450_v0, %v3367_v27  ;;  %v8957_v38 = vpop.f32.mrb[98].mxu1  ;;  %v9575_v0 = vld [vmem:[#allocation8 + $0x10] sm:$0xff]  }
 0x677   :  { %v3453_v26 = vpop.f32.mrb[99].mxu1  ;;  %v3462_v15 = vadd.f32 %v8957_v38, %v3367_v27  ;;  %v3499_v45 = vadd.f32 %v3459_v46, %v10439_v36  ;;  %v9576_v38 = vld [vmem:[#allocation8 + $0x18] sm:$0xff]  }
 0x678   :  { %v3454_v60 = vadd.f32 %v3453_v26, %v3367_v27  ;;  %v3497_v9 = vadd.f32 %v3451_v44, %v10426_v22 }
 0x679   :  { %v3500_v51 = vadd.f32 %v3462_v15, %v10442_v37 }
 0x67a   :  { %3509 = vadd.xlane.f32.xlu0 %v3497_v9  ;;  %v3498_v63 = vadd.f32 %v3454_v60, %v10429_v23  ;;  %v9577_v60 = vld [vmem:[#allocation8 + $0x20] sm:$0xff]  }
 0x67c   :  { %3511 = vadd.xlane.f32.xlu1 %v3498_v63 }
 0x67e   :  { %3513 = vadd.xlane.f32.xlu0 %v3499_v45 }
 0x680   :  { %3515 = vadd.xlane.f32.xlu1 %v3500_v51 }
 0x69c   :  { %v8960_v21 = vpop.f32.mrb[100].mxu1 }
 0x69d   :  { %v3466_v11 = vpop.f32.mrb[101].mxu1  ;;  %v3475_v57 = vadd.f32 %v8960_v21, %v3367_v27 }
 0x69e   :  { %v3467_v33 = vadd.f32 %v3466_v11, %v3367_v27  ;;  %v8961_v7 = vpop.f32.mrb[102].mxu1 }
 0x69f   :  { %v3469_v41 = vpop.f32.mrb[103].mxu1  ;;  %v3478_v16 = vadd.f32 %v8961_v7, %v3367_v27  ;;  %v11241_v36 = vadd.f32 %v3475_v57, %v10464_v54 }
 0x6a0   :  { %v3470_v2 = vadd.f32 %v3469_v41, %v3367_v27  ;;  %v11233_v22 = vadd.f32 %v3467_v33, %v10453_v49  ;;  %v9578_v33 = vld [vmem:[#allocation8 + $0x28] sm:$0xff]  }
 0x6a1   :  { %v11245_v37 = vadd.f32 %v3478_v16, %v10467_v43 }
 0x6a2   :  { %3517 = vadd.xlane.f32.xlu0 %v11233_v22  ;;  %v11237_v23 = vadd.f32 %v3470_v2, %v10456_v52 }
 0x6a4   :  { %3519 = vadd.xlane.f32.xlu1 %v11237_v23 }
 0x6a6   :  { %3521 = vadd.xlane.f32.xlu0 %v11241_v36 }
 0x6a8   :  { %3523 = vadd.xlane.f32.xlu1 %v11245_v37 }
 0x707   :  { %v3510_v49 = vpop.xlane.xlu0 %3509 }
 0x708   :  { %v3533_v14 = vmul.f32 0.03125, %v3510_v49  ;;  %v9579_v49 = vld [vmem:[#allocation8 + $0x30] sm:$0xff]  }
 0x709   :  { %v3512_v1 = vpop.xlane.xlu1 %3511 }
 0x70a   :  { %v8964_v39 = vpop.f32.mrb[104].mxu1  ;;  %v3534_v58 = vmul.f32 0.03125, %v3512_v1  ;;  %v3545_v28 = vsub.f32 %v3497_v9, %v3533_v14  ;;  %v9580_v1 = vld [vmem:[#allocation8 + $0x38] sm:$0xff]  }
 0x70b   :  { %v3491_v6 = vadd.f32 %v8964_v39, %v3367_v27  ;;  %v3482_v52 = vpop.f32.mrb[105].mxu1  ;;  %v3514_v59 = vpop.xlane.xlu0 %3513 }
 0x70c   :  { %v8965_v61 = vpop.f32.mrb[106].mxu1  ;;  %v3483_v10 = vadd.f32 %v3482_v52, %v3367_v27  ;;  %v3535_v54 = vmul.f32 0.03125, %v3514_v59  ;;  %v3546_v4 = vsub.f32 %v3498_v63, %v3534_v58  ;;  %v11260_v56 = vmul.f32 %v10327_v19, %v3545_v28 }
 0x70d   :  { %v3494_v34 = vadd.f32 %v8965_v61, %v3367_v27  ;;  %v3485_v24 = vpop.f32.mrb[107].mxu1  ;;  %v3516_v13 = vpop.xlane.xlu1 %3515  ;;  %v11249_v43 = vadd.f32 %v3491_v6, %v10491_v29  ;;  %v12700_v29 = vld [vmem:[#allocation16_spill] sm:$0xff] }
 0x70e   :  { %v3486_v35 = vadd.f32 %v3485_v24, %v3367_v27  ;;  %v3536_v40 = vmul.f32 0.03125, %v3516_v13  ;;  %v3547_v20 = vsub.f32 %v3499_v45, %v3535_v54  ;;  %v11257_v55 = vadd.f32 %v3483_v10, %v10478_v32  ;;  %v9573_v27 = vld [vmem:[#allocation8] sm:$0xff]  }
 0x70f   :  { %3529 = vadd.xlane.f32.xlu0 %v11249_v43  ;;  %v11253_v5 = vadd.f32 %v3494_v34, %v10494_v30  ;;  %v11267_v18 = vmul.f32 %v10327_v19, %v3546_v4  ;;  %v3569_v30 = vmul.f32 %v11260_v56, %v11260_v56  ;;  %8966 = vmatprep.subr.bf16.mxu0 %v9573_v27 }
 0x710   :  { %v3548_v53 = vsub.f32 %v3500_v51, %v3536_v40  ;;  %v11264_v62 = vadd.f32 %v3486_v35, %v12700_v29  ;;  %v11273_v32 = vmul.f32 %v10327_v19, %v3547_v20  ;;  %8967 = vmatpush3.bf16.msra.mxu0 %v9573_v27 }
 0x711   :  { %3531 = vadd.xlane.f32.xlu1 %v11253_v5  ;;  %v3570_v17 = vmul.f32 %v11267_v18, %v11267_v18  ;;  %8968 = vmatprep.subr.bf16.mxu0 %v9574_v25 }
 0x712   :  { %v11278_v3 = vmul.f32 %v10327_v19, %v3548_v53  ;;  %v3571_v48 = vmul.f32 %v11273_v32, %v11273_v32 }
 0x713   :  { %3525 = vadd.xlane.f32.xlu0 %v11257_v55 }
 0x714   :  { %v3572_v12 = vmul.f32 %v11278_v3, %v11278_v3  ;;  %8969 = vmatpush3.bf16.msra.mxu0 %v9574_v25 }
 0x715   :  { %3527 = vadd.xlane.f32.xlu1 %v11264_v62  ;;  %8970 = vmatprep.subr.bf16.mxu0 %v9575_v0 }
 0x717   :  { %3581 = vadd.xlane.f32.xlu0 %v3569_v30 }
 0x718   :  { %8971 = vmatpush3.bf16.msra.mxu0 %v9575_v0 }
 0x719   :  { %3583 = vadd.xlane.f32.xlu1 %v3570_v17  ;;  %8972 = vmatprep.subr.bf16.mxu0 %v9576_v38 }
 0x71b   :  { %3585 = vadd.xlane.f32.xlu0 %v3571_v48 }
 0x71c   :  { %8973 = vmatpush3.bf16.msra.mxu0 %v9576_v38 }
 0x71d   :  { %3587 = vadd.xlane.f32.xlu1 %v3572_v12  ;;  %8974 = vmatprep.subr.bf16.mxu0 %v9577_v60 }
 0x720   :  { %8975 = vmatpush3.bf16.msra.mxu0 %v9577_v60 }
 0x721   :  { %8976 = vmatprep.subr.bf16.mxu0 %v9578_v33 }
 0x724   :  { %8977 = vmatpush3.bf16.msra.mxu0 %v9578_v33 }
 0x725   :  { %8978 = vmatprep.subr.bf16.mxu0 %v9579_v49 }
 0x728   :  { %8979 = vmatpush3.bf16.msra.mxu0 %v9579_v49 }
 0x729   :  { %8980 = vmatprep.subr.bf16.mxu0 %v9580_v1 }
 0x72c   :  { %8981 = vmatpush3.bf16.msra.mxu0 %v9580_v1 }
 0x72f   :  { %v3518_v44 = vpop.xlane.xlu0 %3517 }
 0x730   :  { %v3537_v26 = vmul.f32 0.03125, %v3518_v44 }
 0x731   :  { %v3520_v46 = vpop.xlane.xlu1 %3519 }
 0x732   :  { %v3549_v9 = vsub.f32 %v11233_v22, %v3537_v26  ;;  %v3538_v15 = vmul.f32 0.03125, %v3520_v46  ;;  %v12701_v46 = vld [vmem:[#allocation18_spill] sm:$0xff] }
 0x733   :  { %v3522_v63 = vpop.xlane.xlu0 %3521  ;;  %v11334_v60 = vrot.slane %v11224_v50, %v12701_v46 }
 0x734   :  { %v3550_v45 = vsub.f32 %v11237_v23, %v3538_v15  ;;  %v3539_v51 = vmul.f32 0.03125, %v3522_v63  ;;  %v11287_v21 = vmul.f32 %v10327_v19, %v3549_v9 }
 0x735   :  { %v3524_v11 = vpop.xlane.xlu1 %3523 }
 0x736   :  { %v3551_v7 = vsub.f32 %v11241_v36, %v3539_v51  ;;  %v3540_v41 = vmul.f32 0.03125, %v3524_v11  ;;  %v3573_v57 = vmul.f32 %v11287_v21, %v11287_v21  ;;  %v11293_v2 = vmul.f32 %v10327_v19, %v3550_v45  ;;  %v12702_v11 = vld [vmem:[#allocation19_spill] sm:$0xff] }
 0x737   :  { %v11341_v33 = vrot.slane %v11224_v50, %v12702_v11 }
 0x738   :  { %v3552_v22 = vsub.f32 %v11245_v37, %v3540_v41  ;;  %3589 = vadd.xlane.f32.xlu0 %v3573_v57  ;;  %v3574_v16 = vmul.f32 %v11293_v2, %v11293_v2  ;;  %v11299_v23 = vmul.f32 %v10327_v19, %v3551_v7 }
 0x73a   :  { %3591 = vadd.xlane.f32.xlu1 %v3574_v16  ;;  %v3575_v36 = vmul.f32 %v11299_v23, %v11299_v23  ;;  %v11304_v14 = vmul.f32 %v10327_v19, %v3552_v22 }
 0x73c   :  { %3593 = vadd.xlane.f32.xlu0 %v3575_v36  ;;  %v3576_v37 = vmul.f32 %v11304_v14, %v11304_v14 }
 0x73e   :  { %3595 = vadd.xlane.f32.xlu1 %v3576_v37 }
 0x79c   :  { %v3530_v39 = vpop.xlane.xlu0 %3529 }
 0x79d   :  { %v3543_v58 = vmul.f32 0.03125, %v3530_v39 }
 0x79e   :  { %v3532_v6 = vpop.xlane.xlu1 %3531 }
 0x79f   :  { %v3544_v52 = vmul.f32 0.03125, %v3532_v6  ;;  %v3555_v61 = vsub.f32 %v11249_v43, %v3543_v58 }
 0x7a0   :  { %v3526_v59 = vpop.xlane.xlu0 %3525 }
 0x7a1   :  { %v3541_v28 = vmul.f32 0.03125, %v3526_v59  ;;  %v3556_v24 = vsub.f32 %v11253_v5, %v3544_v52  ;;  %v11316_v53 = vmul.f32 %v10327_v19, %v3555_v61 }
 0x7a2   :  { %v3528_v10 = vpop.xlane.xlu1 %3527 }
 0x7a3   :  { %v3553_v54 = vsub.f32 %v11257_v55, %v3541_v28  ;;  %v3542_v34 = vmul.f32 0.03125, %v3528_v10  ;;  %v11324_v17 = vmul.f32 %v10327_v19, %v3556_v24  ;;  %v3579_v44 = vmul.f32 %v11316_v53, %v11316_v53 }
 0x7a4   :  { %v3582_v13 = vpop.xlane.xlu0 %3581 }
 0x7a5   :  { %v3554_v4 = vsub.f32 %v11264_v62, %v3542_v34  ;;  %v3605_v35 = vmul.f32 0.03125, %v3582_v13  ;;  %v11313_v40 = vmul.f32 %v10327_v19, %v3553_v54  ;;  %v3580_v26 = vmul.f32 %v11324_v17, %v11324_v17 }
 0x7a6   :  { %v3584_v20 = vpop.xlane.xlu1 %3583 }
 0x7a7   :  { %v3617_v29 = vadd.f32 1e-12, %v3605_v35  ;;  %v3606_v30 = vmul.f32 0.03125, %v3584_v20  ;;  %v3577_v43 = vmul.f32 %v11313_v40, %v11313_v40  ;;  %v11321_v55 = vmul.f32 %v10327_v19, %v3554_v4 }
 0x7a8   :  { %v3586_v5 = vpop.xlane.xlu0 %3585 }
 0x7a9   :  { %9765 = vrsqrt.f32 %v3617_v29  ;;  %v3618_v62 = vadd.f32 1e-12, %v3606_v30  ;;  %v3607_v48 = vmul.f32 0.03125, %v3586_v5  ;;  %3597 = vadd.xlane.f32.xlu0 %v3577_v43  ;;  %v3578_v12 = vmul.f32 %v11321_v55, %v11321_v55 }
 0x7aa   :  { %v3588_v27 = vpop.xlane.xlu1 %3587 }
 0x7ab   :  { %9767 = vrsqrt.f32 %v3618_v62  ;;  %v3619_v25 = vadd.f32 1e-12, %v3607_v48  ;;  %v3608_v0 = vmul.f32 0.03125, %v3588_v27  ;;  %3599 = vadd.xlane.f32.xlu1 %v3578_v12 }
 0x7ad   :  { %9769 = vrsqrt.f32 %v3619_v25  ;;  %v3620_v38 = vadd.f32 1e-12, %v3608_v0  ;;  %3601 = vadd.xlane.f32.xlu0 %v3579_v44 }
 0x7af   :  { %9771 = vrsqrt.f32 %v3620_v38  ;;  %3603 = vadd.xlane.f32.xlu1 %v3580_v26  ;;  %v9581_v26 = vld [vmem:[#allocation10] sm:$0xff]  }
 0x7b0   :  { %8994 = vmatprep.subr.bf16.mxu1 %v9581_v26 }
 0x7b1   :  { %8995 = vmatpush3.bf16.msra.mxu1 %v9581_v26 }
 0x7b3   :  { %v9766_v9 = vpop.eup %9765 }
 0x7b4   :  { %v3641_v15 = vmul.f32 %v9766_v9, %v11260_v56  ;;  %v9583_v9 = vld [vmem:[#allocation10 + $0x10] sm:$0xff]  }
 0x7b5   :  { %v9768_v63 = vpop.eup %9767 }
 0x7b6   :  { %v3642_v45 = vmul.f32 %v9768_v63, %v11267_v18  ;;  %v3657_v51 = vmul.f32 %v11334_v60, %v3641_v15  ;;  %v9584_v15 = vld [vmem:[#allocation10 + $0x18] sm:$0xff]   ;;  %v9585_v63 = vld [vmem:[#allocation10 + $0x20] sm:$0xff]  }
 0x7b7   :  { %v9770_v7 = vpop.eup %9769 }
 0x7b8   :  { %v3658_v41 = vmul.f32 %v11334_v60, %v3642_v45  ;;  %v3643_v57 = vmul.f32 %v9770_v7, %v11273_v32  ;;  %v11346_v16 = vadd.f32 %v11341_v33, %v3657_v51  ;;  %v9586_v45 = vld [vmem:[#allocation10 + $0x28] sm:$0xff]  }
 0x7b9   :  { %v9772_v22 = vpop.eup %9771 }
 0x7ba   :  { %v11349_v56 = vadd.f32 %v11341_v33, %v3658_v41  ;;  %v3644_v18 = vmul.f32 %v9772_v22, %v11278_v3  ;;  %v3659_v49 = vmul.f32 %v11334_v60, %v3643_v57  ;;  %v9587_v57 = vld [vmem:[#allocation10 + $0x30] sm:$0xff]  }
 0x7bc   :  { %v3685_v36 = vpack.c.bf16 %v11349_v56, %v11346_v16  ;;  %v3660_v37 = vmul.f32 %v11334_v60, %v3644_v18  ;;  %v11357_v1 = vadd.f32 %v11341_v33, %v3659_v49 }
 0x7be   :  { %8982 = vmatprep.mubr.bf16.mxu0 %v3685_v36  ;;  %v11360_v32 = vadd.f32 %v11341_v33, %v3660_v37 }
 0x7c0   :  { %v3686_v39 = vpack.c.bf16 %v11360_v32, %v11357_v1 }
 0x7c2   :  { %8983 = vmatmul.mubr.bf16.vlgmr.msra.gmra.mrb[84].mxu0 %v3686_v39 }
 0x7c5   :  { %v3590_v58 = vpop.xlane.xlu0 %3589 }
 0x7c6   :  { %v3609_v3 = vmul.f32 0.03125, %v3590_v58  ;;  %v9588_v58 = vld [vmem:[#allocation10 + $0x38] sm:$0xff]  }
 0x7c7   :  { %v3592_v6 = vpop.xlane.xlu1 %3591 }
 0x7c8   :  { %v3621_v52 = vadd.f32 1e-12, %v3609_v3  ;;  %v3610_v59 = vmul.f32 0.03125, %v3592_v6 }
 0x7c9   :  { %v3594_v28 = vpop.xlane.xlu0 %3593 }
 0x7ca   :  { %9773 = vrsqrt.f32 %v3621_v52  ;;  %v3622_v61 = vadd.f32 1e-12, %v3610_v59  ;;  %v3611_v10 = vmul.f32 0.03125, %v3594_v28 }
 0x7cb   :  { %v3596_v54 = vpop.xlane.xlu1 %3595 }
 0x7cc   :  { %9775 = vrsqrt.f32 %v3622_v61  ;;  %v3623_v34 = vadd.f32 1e-12, %v3611_v10  ;;  %v3612_v24 = vmul.f32 0.03125, %v3596_v54 }
 0x7ce   :  { %9777 = vrsqrt.f32 %v3623_v34  ;;  %v3624_v13 = vadd.f32 1e-12, %v3612_v24 }
 0x7d0   :  { %9779 = vrsqrt.f32 %v3624_v13 }
 0x7d4   :  { %v9774_v4 = vpop.eup %9773 }
 0x7d5   :  { %v3645_v35 = vmul.f32 %v9774_v4, %v11287_v21 }
 0x7d6   :  { %v9776_v20 = vpop.eup %9775 }
 0x7d7   :  { %v3646_v29 = vmul.f32 %v9776_v20, %v11293_v2  ;;  %v3661_v30 = vmul.f32 %v11334_v60, %v3645_v35 }
 0x7d8   :  { %v9778_v43 = vpop.eup %9777 }
 0x7d9   :  { %v3662_v5 = vmul.f32 %v11334_v60, %v3646_v29  ;;  %v3647_v62 = vmul.f32 %v9778_v43, %v11299_v23  ;;  %v11370_v12 = vadd.f32 %v11341_v33, %v3661_v30 }
 0x7da   :  { %v9780_v48 = vpop.eup %9779 }
 0x7db   :  { %v11373_v27 = vadd.f32 %v11341_v33, %v3662_v5  ;;  %v3648_v25 = vmul.f32 %v9780_v48, %v11304_v14  ;;  %v3663_v21 = vmul.f32 %v11334_v60, %v3647_v62  ;;  %v9582_v14 = vld [vmem:[#allocation10 + $0x8] sm:$0xff]   ;;  %v12703_v62 = vmov 0  }
 0x7dc   :  { %8996 = vmatprep.subr.bf16.mxu1 %v9582_v14 }
 0x7dd   :  { %v3687_v2 = vpack.c.bf16 %v11373_v27, %v11370_v12  ;;  %v3664_v0 = vmul.f32 %v11334_v60, %v3648_v25  ;;  %v11381_v44 = vadd.f32 %v11341_v33, %v3663_v21  ;;  %8997 = vmatpush3.bf16.msra.mxu1 %v9582_v14 }
 0x7de   :  { %8998 = vmatprep.subr.bf16.mxu1 %v9583_v9 }
 0x7df   :  { %8986 = vmatprep.mubr.bf16.mxu0 %v3687_v2  ;;  %v11384_v23 = vadd.f32 %v11341_v33, %v3664_v0 }
 0x7e1   :  { %v3688_v38 = vpack.c.bf16 %v11384_v23, %v11381_v44  ;;  %8999 = vmatpush3.bf16.msra.mxu1 %v9583_v9 }
 0x7e2   :  { %9000 = vmatprep.subr.bf16.mxu1 %v9584_v15 }
 0x7e3   :  { %8987 = vmatmul.mubr.bf16.gmra.mrb[88].mxu0 %v3688_v38 }
 0x7e5   :  { %9001 = vmatpush3.bf16.msra.mxu1 %v9584_v15 }
 0x7e6   :  { %9002 = vmatprep.subr.bf16.mxu1 %v9585_v63 }
 0x7e9   :  { %9003 = vmatpush3.bf16.msra.mxu1 %v9585_v63 }
 0x7ea   :  { %9004 = vmatprep.subr.bf16.mxu1 %v9586_v45 }
 0x7ed   :  { %9005 = vmatpush3.bf16.msra.mxu1 %v9586_v45 }
 0x7ee   :  { %9006 = vmatprep.subr.bf16.mxu1 %v9587_v57 }
 0x7f1   :  { %9007 = vmatpush3.bf16.msra.mxu1 %v9587_v57 }
 0x7f2   :  { %9008 = vmatprep.subr.bf16.mxu1 %v9588_v58 }
 0x7f5   :  { %9009 = vmatpush3.bf16.msra.mxu1 %v9588_v58 }
 0x836   :  { %v3598_v51 = vpop.xlane.xlu0 %3597 }
 0x837   :  { %v3613_v7 = vmul.f32 0.03125, %v3598_v51 }
 0x838   :  { %v3600_v41 = vpop.xlane.xlu1 %3599 }
 0x839   :  { %v3625_v22 = vadd.f32 1e-12, %v3613_v7  ;;  %v3614_v18 = vmul.f32 0.03125, %v3600_v41 }
 0x83a   :  { %v3602_v49 = vpop.xlane.xlu0 %3601 }
 0x83b   :  { %9781 = vrsqrt.f32 %v3625_v22  ;;  %v3626_v36 = vadd.f32 1e-12, %v3614_v18  ;;  %v3615_v37 = vmul.f32 0.03125, %v3602_v49 }
 0x83c   :  { %v3604_v39 = vpop.xlane.xlu1 %3603 }
 0x83d   :  { %9783 = vrsqrt.f32 %v3626_v36  ;;  %v3627_v3 = vadd.f32 1e-12, %v3615_v37  ;;  %v3616_v6 = vmul.f32 0.03125, %v3604_v39 }
 0x83f   :  { %9785 = vrsqrt.f32 %v3627_v3  ;;  %v3628_v52 = vadd.f32 1e-12, %v3616_v6 }
 0x841   :  { %9787 = vrsqrt.f32 %v3628_v52 }
 0x845   :  { %v9782_v59 = vpop.eup %9781 }
 0x846   :  { %v3649_v28 = vmul.f32 %v9782_v59, %v11313_v40 }
 0x847   :  { %v9784_v61 = vpop.eup %9783 }
 0x848   :  { %v3650_v10 = vmul.f32 %v9784_v61, %v11321_v55  ;;  %v3665_v54 = vmul.f32 %v11334_v60, %v3649_v28 }
 0x849   :  { %v9786_v34 = vpop.eup %9785 }
 0x84a   :  { %v3666_v24 = vmul.f32 %v11334_v60, %v3650_v10  ;;  %v3651_v13 = vmul.f32 %v9786_v34, %v11316_v53  ;;  %v11394_v35 = vadd.f32 %v11341_v33, %v3665_v54 }
 0x84b   :  { %v9788_v4 = vpop.eup %9787 }
 0x84c   :  { %v11397_v20 = vadd.f32 %v11341_v33, %v3666_v24  ;;  %v3652_v29 = vmul.f32 %v9788_v4, %v11324_v17  ;;  %v3667_v40 = vmul.f32 %v11334_v60, %v3651_v13  ;;  %v12704_v17 = vld [vmem:[#allocation17_spill] sm:$0xff] }
 0x84d   :  { %v12687_v48 = vsub.s32 3, %v12704_v17 }
 0x84e   :  { %v3689_v55 = vpack.c.bf16 %v11397_v20, %v11394_v35  ;;  %v3668_v30 = vmul.f32 %v11334_v60, %v3652_v29  ;;  %v11405_v43 = vadd.f32 %v11341_v33, %v3667_v40 }
 0x84f   :  { %v11417_v25 = vrot.slane %v11224_v50, %v12687_v48 }
 0x850   :  { %8990 = vmatprep.mubr.bf16.mxu0 %v3689_v55  ;;  %v11408_v53 = vadd.f32 %v11341_v33, %v3668_v30 }
 0x852   :  { %v3690_v5 = vpack.c.bf16 %v11408_v53, %v11405_v43 }
 0x854   :  { %8991 = vmatmul.mubr.bf16.gmra.mrb[92].mxu0 %v3690_v5 }
 0x855   :  { %4510 = vmatprep.mubr.bf16.mxu0 %v12703_v62 }
 0x895   :  { %v8984_v60 = vpop.f32.mrb[84].mxu0 }
 0x896   :  { %v3802_v21 = vadd.f32 %v8984_v60, %v11417_v25  ;;  %v3793_v2 = vpop.f32.mrb[85].mxu0 }
 0x897   :  { %v3794_v33 = vadd.f32 %v3793_v2, %v11417_v25  ;;  %v8985_v0 = vpop.f32.mrb[86].mxu0 }
 0x898   :  { %v3854_v38 = vmul.f32 0.044715, %v3802_v21  ;;  %v3805_v26 = vadd.f32 %v8985_v0, %v11417_v25  ;;  %v3796_v14 = vpop.f32.mrb[87].mxu0  ;;  %v3842_v4 = vmul.f32 0.5, %v3802_v21 }
 0x899   :  { %v3852_v9 = vmul.f32 0.044715, %v3794_v33  ;;  %v3797_v15 = vadd.f32 %v3796_v14, %v11417_v25  ;;  %v3840_v55 = vmul.f32 0.5, %v3794_v33 }
 0x89a   :  { %v3866_v63 = vmul.f32 %v3854_v38, %v3802_v21  ;;  %v3855_v45 = vmul.f32 0.044715, %v3805_v26  ;;  %v3843_v29 = vmul.f32 0.5, %v3805_v26 }
 0x89b   :  { %v3864_v51 = vmul.f32 %v3852_v9, %v3794_v33  ;;  %v3853_v7 = vmul.f32 0.044715, %v3797_v15  ;;  %v3841_v30 = vmul.f32 0.5, %v3797_v15 }
 0x89c   :  { %v3878_v41 = vmul.f32 %v3866_v63, %v3802_v21  ;;  %v3867_v57 = vmul.f32 %v3855_v45, %v3805_v26 }
 0x89d   :  { %v3876_v22 = vmul.f32 %v3864_v51, %v3794_v33  ;;  %v3865_v18 = vmul.f32 %v3853_v7, %v3797_v15 }
 0x89e   :  { %v3890_v49 = vadd.f32 %v3878_v41, %v3802_v21  ;;  %v3879_v36 = vmul.f32 %v3867_v57, %v3805_v26 }
 0x89f   :  { %v3877_v37 = vmul.f32 %v3865_v18, %v3797_v15  ;;  %v3888_v39 = vadd.f32 %v3876_v22, %v3794_v33 }
 0x8a0   :  { %v3902_v58 = vmul.f32 0.7978846, %v3890_v49  ;;  %v3891_v3 = vadd.f32 %v3879_v36, %v3805_v26 }
 0x8a1   :  { %v3889_v6 = vadd.f32 %v3877_v37, %v3797_v15  ;;  %v3900_v52 = vmul.f32 0.7978846, %v3888_v39 }
 0x8a2   :  { %9789 = vtanh.f32 %v3902_v58  ;;  %v3903_v59 = vmul.f32 0.7978846, %v3891_v3 }
 0x8a3   :  { %v3901_v28 = vmul.f32 0.7978846, %v3889_v6  ;;  %9791 = vtanh.f32 %v3900_v52 }
 0x8a4   :  { %9793 = vtanh.f32 %v3903_v59 }
 0x8a5   :  { %9795 = vtanh.f32 %v3901_v28 }
 0x8ac   :  { %v9790_v61 = vpop.eup %9789 }
 0x8ad   :  { %v9792_v10 = vpop.eup %9791  ;;  %v3926_v54 = vadd.f32 1.0, %v9790_v61 }
 0x8ae   :  { %v9794_v34 = vpop.eup %9793  ;;  %v3924_v24 = vadd.f32 1.0, %v9792_v10 }
 0x8af   :  { %v9796_v13 = vpop.eup %9795  ;;  %v3927_v40 = vadd.f32 1.0, %v9794_v34  ;;  %v3938_v60 = vmul.f32 %v3926_v54, %v3842_v4 }
 0x8b0   :  { %v3925_v5 = vadd.f32 1.0, %v9796_v13  ;;  %v3936_v0 = vmul.f32 %v3924_v24, %v3840_v55 }
 0x8b1   :  { %v3939_v2 = vmul.f32 %v3927_v40, %v3843_v29 }
 0x8b2   :  { %v3937_v38 = vmul.f32 %v3925_v5, %v3841_v30 }
 0x8b3   :  { %v3949_v14 = vpack.c.bf16 %v3939_v2, %v3938_v60 }
 0x8b4   :  { %v3948_v9 = vpack.c.bf16 %v3937_v38, %v3936_v0 }
 0x8b6   :  { %v8988_v63 = vpop.f32.mrb[88].mxu0  ;;  %9010 = vmatprep.mubr.bf16.mxu1 %v3948_v9 }
 0x8b7   :  { %v3818_v45 = vadd.f32 %v8988_v63, %v11417_v25  ;;  %v3809_v51 = vpop.f32.mrb[89].mxu0  ;;  %9011 = vmatmul.mubr.bf16.vlgmr.msra.gmra.mrb[108].mxu1 %v3949_v14 }
 0x8b8   :  { %v3810_v7 = vadd.f32 %v3809_v51, %v11417_v25  ;;  %v8989_v21 = vpop.f32.mrb[90].mxu0 }
 0x8b9   :  { %v3858_v26 = vmul.f32 0.044715, %v3818_v45  ;;  %v3821_v33 = vadd.f32 %v8989_v21, %v11417_v25  ;;  %v3812_v15 = vpop.f32.mrb[91].mxu0  ;;  %v3846_v60 = vmul.f32 0.5, %v3818_v45 }
 0x8ba   :  { %v3856_v41 = vmul.f32 0.044715, %v3810_v7  ;;  %v3813_v57 = vadd.f32 %v3812_v15, %v11417_v25  ;;  %v3844_v38 = vmul.f32 0.5, %v3810_v7 }
 0x8bb   :  { %v3870_v22 = vmul.f32 %v3858_v26, %v3818_v45  ;;  %v3859_v18 = vmul.f32 0.044715, %v3821_v33  ;;  %v3847_v2 = vmul.f32 0.5, %v3821_v33 }
 0x8bc   :  { %v3868_v49 = vmul.f32 %v3856_v41, %v3810_v7  ;;  %v3857_v36 = vmul.f32 0.044715, %v3813_v57  ;;  %v3845_v14 = vmul.f32 0.5, %v3813_v57 }
 0x8bd   :  { %v3882_v37 = vmul.f32 %v3870_v22, %v3818_v45  ;;  %v3871_v39 = vmul.f32 %v3859_v18, %v3821_v33 }
 0x8be   :  { %v3880_v58 = vmul.f32 %v3868_v49, %v3810_v7  ;;  %v3869_v3 = vmul.f32 %v3857_v36, %v3813_v57 }
 0x8bf   :  { %v3883_v6 = vmul.f32 %v3871_v39, %v3821_v33  ;;  %v3894_v52 = vadd.f32 %v3882_v37, %v3818_v45 }
 0x8c0   :  { %v3881_v59 = vmul.f32 %v3869_v3, %v3813_v57  ;;  %v3892_v28 = vadd.f32 %v3880_v58, %v3810_v7 }
 0x8c1   :  { %v3895_v61 = vadd.f32 %v3883_v6, %v3821_v33  ;;  %v3906_v10 = vmul.f32 0.7978846, %v3894_v52 }
 0x8c2   :  { %v3893_v54 = vadd.f32 %v3881_v59, %v3813_v57  ;;  %v3904_v34 = vmul.f32 0.7978846, %v3892_v28 }
 0x8c3   :  { %v3907_v24 = vmul.f32 0.7978846, %v3895_v61  ;;  %9797 = vtanh.f32 %v3906_v10 }
 0x8c4   :  { %v3905_v13 = vmul.f32 0.7978846, %v3893_v54  ;;  %9799 = vtanh.f32 %v3904_v34 }
 0x8c5   :  { %9801 = vtanh.f32 %v3907_v24 }
 0x8c6   :  { %9803 = vtanh.f32 %v3905_v13 }
 0x8cd   :  { %v9798_v4 = vpop.eup %9797 }
 0x8ce   :  { %v9800_v29 = vpop.eup %9799  ;;  %v3930_v40 = vadd.f32 1.0, %v9798_v4 }
 0x8cf   :  { %v9802_v55 = vpop.eup %9801  ;;  %v3928_v30 = vadd.f32 1.0, %v9800_v29 }
 0x8d0   :  { %v9804_v5 = vpop.eup %9803  ;;  %v3931_v0 = vadd.f32 1.0, %v9802_v55  ;;  %v3942_v63 = vmul.f32 %v3930_v40, %v3846_v60 }
 0x8d1   :  { %v3929_v9 = vadd.f32 1.0, %v9804_v5  ;;  %v3940_v21 = vmul.f32 %v3928_v30, %v3844_v38 }
 0x8d2   :  { %v3943_v51 = vmul.f32 %v3931_v0, %v3847_v2 }
 0x8d3   :  { %v3941_v26 = vmul.f32 %v3929_v9, %v3845_v14 }
 0x8d4   :  { %v3951_v15 = vpack.c.bf16 %v3943_v51, %v3942_v63 }
 0x8d5   :  { %v3950_v41 = vpack.c.bf16 %v3941_v26, %v3940_v21 }
 0x8d7   :  { %9014 = vmatprep.mubr.bf16.mxu1 %v3950_v41 }
 0x8d8   :  { %9015 = vmatmul.mubr.bf16.gmra.mrb[112].mxu1 %v3951_v15 }
 0x927   :  { %v8992_v22 = vpop.f32.mrb[92].mxu0 }
 0x928   :  { %v3834_v18 = vadd.f32 %v8992_v22, %v11417_v25  ;;  %v3825_v49 = vpop.f32.mrb[93].mxu0 }
 0x929   :  { %v3826_v36 = vadd.f32 %v3825_v49, %v11417_v25  ;;  %v8993_v45 = vpop.f32.mrb[94].mxu0 }
 0x92a   :  { %v3862_v33 = vmul.f32 0.044715, %v3834_v18  ;;  %v3837_v7 = vadd.f32 %v8993_v45, %v11417_v25  ;;  %v3828_v57 = vpop.f32.mrb[95].mxu0  ;;  %v3850_v9 = vmul.f32 0.5, %v3834_v18 }
 0x92b   :  { %v3860_v37 = vmul.f32 0.044715, %v3826_v36  ;;  %v3829_v39 = vadd.f32 %v3828_v57, %v11417_v25  ;;  %v3848_v21 = vmul.f32 0.5, %v3826_v36 }
 0x92c   :  { %v3874_v58 = vmul.f32 %v3862_v33, %v3834_v18  ;;  %v3863_v3 = vmul.f32 0.044715, %v3837_v7  ;;  %v3851_v63 = vmul.f32 0.5, %v3837_v7 }
 0x92d   :  { %v3872_v6 = vmul.f32 %v3860_v37, %v3826_v36  ;;  %v3861_v52 = vmul.f32 0.044715, %v3829_v39  ;;  %v3849_v26 = vmul.f32 0.5, %v3829_v39  ;;  %v12686_v37 = vsub.s32 4, %v12704_v17 }
 0x92e   :  { %v3886_v59 = vmul.f32 %v3874_v58, %v3834_v18  ;;  %v3875_v28 = vmul.f32 %v3863_v3, %v3837_v7 }
 0x92f   :  { %v3884_v61 = vmul.f32 %v3872_v6, %v3826_v36  ;;  %v3873_v10 = vmul.f32 %v3861_v52, %v3829_v39  ;;  %v3973_v58 = vrot.slane %v11224_v50, %v12686_v37 }
 0x930   :  { %v3887_v54 = vmul.f32 %v3875_v28, %v3837_v7  ;;  %v3898_v34 = vadd.f32 %v3886_v59, %v3834_v18 }
 0x931   :  { %v3885_v24 = vmul.f32 %v3873_v10, %v3829_v39  ;;  %v3896_v13 = vadd.f32 %v3884_v61, %v3826_v36 }
 0x932   :  { %v3899_v4 = vadd.f32 %v3887_v54, %v3837_v7  ;;  %v3910_v29 = vmul.f32 0.7978846, %v3898_v34 }
 0x933   :  { %v3897_v40 = vadd.f32 %v3885_v24, %v3829_v39  ;;  %v3908_v55 = vmul.f32 0.7978846, %v3896_v13 }
 0x934   :  { %v3911_v30 = vmul.f32 0.7978846, %v3899_v4  ;;  %9805 = vtanh.f32 %v3910_v29 }
 0x935   :  { %v3909_v5 = vmul.f32 0.7978846, %v3897_v40  ;;  %9807 = vtanh.f32 %v3908_v55 }
 0x936   :  { %9809 = vtanh.f32 %v3911_v30  ;;  %v9591_v30 = vld [vmem:[#allocation5 + $0xc4] ss:$12 sps:$4 sm:$0xff]  }
 0x937   :  { %9811 = vtanh.f32 %v3909_v5  ;;  %4478 = vmatprep.subr.bf16.mxu0 %v9591_v30  ;;  %v9595_v30 = vld [vmem:[#allocation5 + $0xf0] ss:$12 sps:$4 sm:$0xff]  }
 0x93e   :  { %v9806_v25 = vpop.eup %9805 }
 0x93f   :  { %v9808_v60 = vpop.eup %9807  ;;  %v3934_v2 = vadd.f32 1.0, %v9806_v25 }
 0x940   :  { %v9810_v0 = vpop.eup %9809  ;;  %v3932_v38 = vadd.f32 1.0, %v9808_v60 }
 0x941   :  { %v9812_v14 = vpop.eup %9811  ;;  %v3935_v51 = vadd.f32 1.0, %v9810_v0  ;;  %v3946_v41 = vmul.f32 %v3934_v2, %v3850_v9 }
 0x942   :  { %v3933_v15 = vadd.f32 1.0, %v9812_v14  ;;  %v3944_v49 = vmul.f32 %v3932_v38, %v3848_v21 }
 0x943   :  { %v3947_v22 = vmul.f32 %v3935_v51, %v3851_v63 }
 0x944   :  { %v3945_v45 = vmul.f32 %v3933_v15, %v3849_v26 }
 0x945   :  { %v3953_v33 = vpack.c.bf16 %v3947_v22, %v3946_v41 }
 0x946   :  { %v3952_v57 = vpack.c.bf16 %v3945_v45, %v3944_v49 }
 0x948   :  { %9018 = vmatprep.mubr.bf16.mxu1 %v3952_v57 }
 0x949   :  { %9019 = vmatmul.mubr.bf16.gmra.mrb[116].mxu1 %v3953_v33 }
 0x98a   :  { %v9012_v18 = vpop.f32.mrb[108].mxu1 }
 0x98b   :  { %v4056_v7 = vpop.f32.mrb[109].mxu1  ;;  %v4065_v6 = vadd.f32 %v9012_v18, %v3973_v58 }
 0x98c   :  { %v4057_v3 = vadd.f32 %v4056_v7, %v3973_v58  ;;  %v9013_v36 = vpop.f32.mrb[110].mxu1 }
 0x98d   :  { %v4059_v39 = vpop.f32.mrb[111].mxu1  ;;  %v4068_v28 = vadd.f32 %v9013_v36, %v3973_v58  ;;  %v4105_v10 = vadd.f32 %v4065_v6, %v11357_v1 }
 0x98e   :  { %v4060_v52 = vadd.f32 %v4059_v39, %v3973_v58  ;;  %v4103_v59 = vadd.f32 %v4057_v3, %v11346_v16 }
 0x98f   :  { %v4106_v54 = vadd.f32 %v4068_v28, %v11360_v32 }
 0x990   :  { %4115 = vadd.xlane.f32.xlu0 %v4103_v59  ;;  %v4104_v61 = vadd.f32 %v4060_v52, %v11349_v56  ;;  %v9592_v52 = vld [vmem:[#allocation5 + $0xd8] ss:$12 sps:$4 sm:$0xff]  }
 0x992   :  { %4117 = vadd.xlane.f32.xlu1 %v4104_v61 }
 0x994   :  { %4119 = vadd.xlane.f32.xlu0 %v4105_v10 }
 0x996   :  { %4121 = vadd.xlane.f32.xlu1 %v4106_v54 }
 0x9ab   :  { %v9016_v50 = vpop.f32.mrb[112].mxu1 }
 0x9ac   :  { %v4072_v34 = vpop.f32.mrb[113].mxu1  ;;  %v4081_v29 = vadd.f32 %v9016_v50, %v3973_v58 }
 0x9ad   :  { %v4073_v24 = vadd.f32 %v4072_v34, %v3973_v58  ;;  %v9017_v13 = vpop.f32.mrb[114].mxu1 }
 0x9ae   :  { %v4075_v4 = vpop.f32.mrb[115].mxu1  ;;  %v4084_v55 = vadd.f32 %v9017_v13, %v3973_v58  ;;  %v11447_v1 = vadd.f32 %v4081_v29, %v11381_v44 }
 0x9af   :  { %v11440_v40 = vadd.f32 %v4073_v24, %v11370_v12  ;;  %v4076_v16 = vadd.f32 %v4075_v4, %v3973_v58  ;;  %v9589_v12 = vld [vmem:[#allocation5 + $0xc0] ss:$12 sps:$4 sm:$0xff]  }
 0x9b0   :  { %v11451_v32 = vadd.f32 %v4084_v55, %v11384_v23  ;;  %4479 = vmatpush1.bf16.msra.mxu0 %v9589_v12 }
 0x9b1   :  { %v11443_v56 = vadd.f32 %v4076_v16, %v11373_v27  ;;  %4123 = vadd.xlane.f32.xlu0 %v11440_v40 }
 0x9b3   :  { %4125 = vadd.xlane.f32.xlu1 %v11443_v56 }
 0x9b5   :  { %4127 = vadd.xlane.f32.xlu0 %v11447_v1 }
 0x9b7   :  { %4129 = vadd.xlane.f32.xlu1 %v11451_v32 }
 0xa1c   :  { %v9020_v27 = vpop.f32.mrb[116].mxu1 }
 0xa1d   :  { %v4088_v5 = vpop.f32.mrb[117].mxu1  ;;  %v4116_v25 = vpop.xlane.xlu0 %4115  ;;  %v4097_v22 = vadd.f32 %v9020_v27, %v3973_v58  ;;  %v9598_v27 = vld [vmem:[#allocation5 + $0xc8] ss:$12 sps:$4 sm:$0xff]  }
 0xa1e   :  { %v4089_v60 = vadd.f32 %v4088_v5, %v3973_v58  ;;  %v4139_v2 = vmul.f32 0.03125, %v4116_v25  ;;  %v9021_v44 = vpop.f32.mrb[118].mxu1  ;;  %9022 = vmatprep.subr.bf16.mxu1 %v9598_v27 }
 0xa1f   :  { %v4118_v0 = vpop.xlane.xlu1 %4117  ;;  %v4091_v38 = vpop.f32.mrb[119].mxu1  ;;  %v4100_v18 = vadd.f32 %v9021_v44, %v3973_v58  ;;  %v11474_v3 = vadd.f32 %v4097_v22, %v11405_v43  ;;  %9023 = vmatpush3.bf16.msra.mxu1 %v9598_v27  ;;  %v9614_v22 = vld [vmem:[#allocation5 + $0x128] ss:$12 sps:$4 sm:$0xff]  }
 0xa20   :  { %v11456_v14 = vadd.f32 %v4089_v60, %v11394_v35  ;;  %v4151_v23 = vsub.f32 %v4103_v59, %v4139_v2  ;;  %v4140_v9 = vmul.f32 0.03125, %v4118_v0  ;;  %v4092_v63 = vadd.f32 %v4091_v38, %v3973_v58  ;;  %v9594_v59 = vld [vmem:[#allocation5 + $0xdc] ss:$12 sps:$4 sm:$0xff]   ;;  %v9601_v60 = vld [vmem:[#allocation5 + $0x10c] ss:$12 sps:$4 sm:$0xff]  }
 0xa21   :  { %v4120_v51 = vpop.xlane.xlu0 %4119  ;;  %v11480_v39 = vadd.f32 %v4100_v18, %v11408_v53  ;;  %4480 = vmatprep.subr.bf16.mxu0 %v9594_v59  ;;  %v9602_v2 = vld [vmem:[#allocation5 + $0xe0] ss:$12 sps:$4 sm:$0xff]   ;;  %v9606_v38 = vld [vmem:[#allocation5 + $0xf8] ss:$12 sps:$4 sm:$0xff]  }
 0xa22   :  { %v11459_v21 = vmul.f32 %v10327_v19, %v4151_v23  ;;  %v4152_v26 = vsub.f32 %v4104_v61, %v4140_v9  ;;  %v11462_v15 = vadd.f32 %v4092_v63, %v11397_v20  ;;  %v4141_v41 = vmul.f32 0.03125, %v4120_v51  ;;  %4131 = vadd.xlane.f32.xlu0 %v11456_v14  ;;  %4481 = vmatpush1.bf16.msra.mxu0 %v9592_v52  ;;  %v9603_v9 = vld [vmem:[#allocation5 + $0x120] ss:$12 sps:$4 sm:$0xff]   ;;  %v9609_v63 = vld [vmem:[#allocation5 + $0x13c] ss:$12 sps:$4 sm:$0xff]  }
 0xa23   :  { %v4122_v49 = vpop.xlane.xlu1 %4121  ;;  %9024 = vmatprep.subr.bf16.mxu1 %v9602_v2  ;;  %v9610_v51 = vld [vmem:[#allocation5 + $0x110] ss:$12 sps:$4 sm:$0xff]   ;;  %v9619_v18 = vld [vmem:[#allocation5 + $0x158] ss:$12 sps:$4 sm:$0xff]  }
 0xa24   :  { %v11466_v45 = vmul.f32 %v10327_v19, %v4152_v26  ;;  %v4153_v35 = vsub.f32 %v4105_v10, %v4141_v41  ;;  %v4142_v33 = vmul.f32 0.03125, %v4122_v49  ;;  %4133 = vadd.xlane.f32.xlu1 %v11462_v15  ;;  %v4175_v57 = vmul.f32 %v11459_v21, %v11459_v21  ;;  %9025 = vmatpush3.bf16.msra.mxu1 %v9602_v2  ;;  %v9607_v26 = vld [vmem:[#allocation5 + $0x138] ss:$12 sps:$4 sm:$0xff]   ;;  %v9613_v41 = vld [vmem:[#allocation5 + $0x154] ss:$12 sps:$4 sm:$0xff]  }
 0xa25   :  { %9026 = vmatprep.subr.bf16.mxu1 %v9606_v38  ;;  %v9611_v49 = vld [vmem:[#allocation5 + $0x150] ss:$12 sps:$4 sm:$0xff]   ;;  %v12685_v2 = vsub.s32 5, %v12704_v17 }
 0xa26   :  { %v4154_v7 = vsub.f32 %v4106_v54, %v4142_v33  ;;  %4187 = vadd.xlane.f32.xlu0 %v4175_v57  ;;  %v4176_v20 = vmul.f32 %v11466_v45, %v11466_v45  ;;  %v11477_v36 = vmul.f32 %v10327_v19, %v4153_v35  ;;  %v9617_v35 = vld [vmem:[#allocation5 + $0x16c] ss:$12 sps:$4 sm:$0xff]   ;;  %v9615_v57 = vld [vmem:[#allocation5 + $0x168] ss:$12 sps:$4 sm:$0xff]  }
 0xa27   :  { %v9618_v33 = vld [vmem:[#allocation5 + $0x140] ss:$12 sps:$4 sm:$0xff]  }
 0xa28   :  { %4189 = vadd.xlane.f32.xlu1 %v4176_v20  ;;  %v11483_v6 = vmul.f32 %v10327_v19, %v4154_v7  ;;  %v4177_v58 = vmul.f32 %v11477_v36, %v11477_v36  ;;  %9027 = vmatpush3.bf16.msra.mxu1 %v9606_v38  ;;  %v9620_v7 = vld [vmem:[#allocation5 + $0x170] ss:$12 sps:$4 sm:$0xff]  }
 0xa29   :  { %9028 = vmatprep.subr.bf16.mxu1 %v9610_v51 }
 0xa2a   :  { %4135 = vadd.xlane.f32.xlu0 %v11474_v3  ;;  %v4178_v43 = vmul.f32 %v11483_v6, %v11483_v6 }
 0xa2c   :  { %4137 = vadd.xlane.f32.xlu1 %v11480_v39  ;;  %9029 = vmatpush3.bf16.msra.mxu1 %v9610_v51  ;;  %v12684_v51 = vsub.s32 6, %v12704_v17 }
 0xa2d   :  { %9030 = vmatprep.subr.bf16.mxu1 %v9614_v22 }
 0xa2e   :  { %4191 = vadd.xlane.f32.xlu0 %v4177_v58 }
 0xa30   :  { %4193 = vadd.xlane.f32.xlu1 %v4178_v43  ;;  %9031 = vmatpush3.bf16.msra.mxu1 %v9614_v22 }
 0xa31   :  { %9032 = vmatprep.subr.bf16.mxu1 %v9618_v33 }
 0xa34   :  { %9033 = vmatpush3.bf16.msra.mxu1 %v9618_v33 }
 0xa35   :  { %9034 = vmatprep.subr.bf16.mxu1 %v9619_v18 }
 0xa38   :  { %9035 = vmatpush3.bf16.msra.mxu1 %v9619_v18 }
 0xa39   :  { %9036 = vmatprep.subr.bf16.mxu1 %v9620_v7 }
 0xa3c   :  { %9037 = vmatpush3.bf16.msra.mxu1 %v9620_v7 }
 0xa3d   :  { %9056 = vmatprep.subr.bf16.mxu1 %v12699_v42 }
 0xa3e   :  { %v4124_v53 = vpop.xlane.xlu0 %4123 }
 0xa3f   :  { %v4143_v28 = vmul.f32 0.03125, %v4124_v53 }
 0xa40   :  { %v4126_v61 = vpop.xlane.xlu1 %4125 }
 0xa41   :  { %v4155_v10 = vsub.f32 %v11440_v40, %v4143_v28  ;;  %v4144_v54 = vmul.f32 0.03125, %v4126_v61  ;;  %v9597_v40 = vld [vmem:[#allocation5 + $0xf4] ss:$12 sps:$4 sm:$0xff]  }
 0xa42   :  { %v4128_v50 = vpop.xlane.xlu0 %4127  ;;  %4482 = vmatprep.subr.bf16.mxu0 %v9597_v40 }
 0xa43   :  { %v11493_v34 = vmul.f32 %v10327_v19, %v4155_v10  ;;  %v4156_v24 = vsub.f32 %v11443_v56, %v4144_v54  ;;  %v4145_v13 = vmul.f32 0.03125, %v4128_v50  ;;  %4483 = vmatpush1.bf16.msra.mxu0 %v9595_v30 }
 0xa44   :  { %v4130_v4 = vpop.xlane.xlu1 %4129  ;;  %4484 = vmatprep.subr.bf16.mxu0 %v9601_v60 }
 0xa45   :  { %v11497_v29 = vmul.f32 %v10327_v19, %v4156_v24  ;;  %v4157_v16 = vsub.f32 %v11447_v1, %v4145_v13  ;;  %v4146_v55 = vmul.f32 0.03125, %v4130_v4  ;;  %v4179_v12 = vmul.f32 %v11493_v34, %v11493_v34  ;;  %v9599_v1 = vld [vmem:[#allocation5 + $0x108] ss:$12 sps:$4 sm:$0xff]  }
 0xa47   :  { %v11503_v5 = vmul.f32 %v10327_v19, %v4157_v16  ;;  %v4158_v25 = vsub.f32 %v11451_v32, %v4146_v55  ;;  %4195 = vadd.xlane.f32.xlu0 %v4179_v12  ;;  %v4180_v56 = vmul.f32 %v11497_v29, %v11497_v29  ;;  %v9605_v32 = vld [vmem:[#allocation5 + $0x124] ss:$12 sps:$4 sm:$0xff]   ;;  %4485 = vmatpush1.bf16.msra.mxu0 %v9599_v1 }
 0xa48   :  { %4486 = vmatprep.subr.bf16.mxu0 %v9605_v32 }
 0xa49   :  { %v11509_v44 = vmul.f32 %v10327_v19, %v4158_v25  ;;  %4197 = vadd.xlane.f32.xlu1 %v4180_v56  ;;  %v4181_v0 = vmul.f32 %v11503_v5, %v11503_v5 }
 0xa4b   :  { %4199 = vadd.xlane.f32.xlu0 %v4181_v0  ;;  %v4182_v23 = vmul.f32 %v11509_v44, %v11509_v44  ;;  %4487 = vmatpush1.bf16.msra.mxu0 %v9603_v9 }
 0xa4c   :  { %4488 = vmatprep.subr.bf16.mxu0 %v9609_v63 }
 0xa4d   :  { %4201 = vadd.xlane.f32.xlu1 %v4182_v23 }
 0xa4f   :  { %4489 = vmatpush1.bf16.msra.mxu0 %v9607_v26 }
 0xa50   :  { %4490 = vmatprep.subr.bf16.mxu0 %v9613_v41 }
 0xa53   :  { %4491 = vmatpush1.bf16.msra.mxu0 %v9611_v49 }
 0xa54   :  { %4492 = vmatprep.subr.bf16.mxu0 %v9617_v35 }
 0xa57   :  { %4493 = vmatpush1.bf16.msra.mxu0 %v9615_v57 }
 0xa58   :  { %9050 = vmatprep.subr.bf16.mxu0 %v12699_v42 }
 0xaaf   :  { %v4132_v20 = vpop.xlane.xlu0 %4131 }
 0xab0   :  { %v4147_v58 = vmul.f32 0.03125, %v4132_v20 }
 0xab1   :  { %v4134_v43 = vpop.xlane.xlu1 %4133 }
 0xab2   :  { %v4159_v52 = vsub.f32 %v11456_v14, %v4147_v58  ;;  %v4148_v59 = vmul.f32 0.03125, %v4134_v43 }
 0xab3   :  { %v4188_v53 = vpop.xlane.xlu0 %4187 }
 0xab4   :  { %v11519_v28 = vmul.f32 %v10327_v19, %v4159_v52  ;;  %v4160_v61 = vsub.f32 %v11462_v15, %v4148_v59  ;;  %v4211_v10 = vmul.f32 0.03125, %v4188_v53 }
 0xab5   :  { %v4190_v54 = vpop.xlane.xlu1 %4189 }
 0xab6   :  { %v11523_v50 = vmul.f32 %v10327_v19, %v4160_v61  ;;  %v4223_v24 = vadd.f32 1e-12, %v4211_v10  ;;  %v4212_v13 = vmul.f32 0.03125, %v4190_v54  ;;  %v4183_v4 = vmul.f32 %v11519_v28, %v11519_v28 }
 0xab7   :  { %v4136_v16 = vpop.xlane.xlu0 %4135 }
 0xab8   :  { %9813 = vrsqrt.f32 %v4223_v24  ;;  %v4224_v14 = vadd.f32 1e-12, %v4212_v13  ;;  %v4149_v55 = vmul.f32 0.03125, %v4136_v16  ;;  %4203 = vadd.xlane.f32.xlu0 %v4183_v4  ;;  %v4184_v12 = vmul.f32 %v11523_v50, %v11523_v50 }
 0xab9   :  { %v4138_v30 = vpop.xlane.xlu1 %4137 }
 0xaba   :  { %9815 = vrsqrt.f32 %v4224_v14  ;;  %v4161_v15 = vsub.f32 %v11474_v3, %v4149_v55  ;;  %v4150_v40 = vmul.f32 0.03125, %v4138_v30  ;;  %4205 = vadd.xlane.f32.xlu1 %v4184_v12 }
 0xabb   :  { %v4192_v27 = vpop.xlane.xlu0 %4191 }
 0xabc   :  { %v11531_v25 = vmul.f32 %v10327_v19, %v4161_v15  ;;  %v4162_v56 = vsub.f32 %v11480_v39, %v4150_v40  ;;  %v4213_v60 = vmul.f32 0.03125, %v4192_v27  ;;  %v10005_v39 = vld [vmem:[%s12671_s8] sm:$0x7f] }
 0xabd   :  { %v4194_v1 = vpop.xlane.xlu1 %4193  ;;  %v11547_v63 = vrot.slane %v10005_v39, %v12685_v2  ;;  %v11555_v33 = vrot.slane %v10005_v39, %v12684_v51 }
 0xabe   :  { %v11536_v0 = vmul.f32 %v10327_v19, %v4162_v56  ;;  %v4225_v32 = vadd.f32 1e-12, %v4213_v60  ;;  %v4214_v38 = vmul.f32 0.03125, %v4194_v1  ;;  %v4185_v3 = vmul.f32 %v11531_v25, %v11531_v25 }
 0xac0   :  { %9817 = vrsqrt.f32 %v4225_v32  ;;  %v4226_v23 = vadd.f32 1e-12, %v4214_v38  ;;  %4207 = vadd.xlane.f32.xlu0 %v4185_v3  ;;  %v4186_v9 = vmul.f32 %v11536_v0, %v11536_v0 }
 0xac2   :  { %v9814_v26 = vpop.eup %9813  ;;  %9819 = vrsqrt.f32 %v4226_v23  ;;  %4209 = vadd.xlane.f32.xlu1 %v4186_v9 }
 0xac3   :  { %v4247_v41 = vmul.f32 %v9814_v26, %v11459_v21 }
 0xac4   :  { %v9816_v22 = vpop.eup %9815 }
 0xac5   :  { %v4263_v49 = vmul.f32 %v11547_v63, %v4247_v41  ;;  %v4248_v35 = vmul.f32 %v9816_v22, %v11466_v45 }
 0xac7   :  { %v4264_v57 = vmul.f32 %v11547_v63, %v4248_v35  ;;  %v11559_v18 = vadd.f32 %v11555_v33, %v4263_v49 }
 0xac9   :  { %v11562_v7 = vadd.f32 %v11555_v33, %v4264_v57 }
 0xaca   :  { %v9818_v20 = vpop.eup %9817 }
 0xacb   :  { %v4293_v21 = vpack.c.bf16 %v11562_v7, %v11559_v18  ;;  %v4249_v58 = vmul.f32 %v9818_v20, %v11477_v36 }
 0xacc   :  { %v9820_v43 = vpop.eup %9819 }
 0xacd   :  { %4511 = vmatmul.mubr.bf16.vlgmr.msra.gmra.mrb[96].mxu0 %v4293_v21  ;;  %9038 = vmatprep.mubr.bf16.mxu1 %v4293_v21  ;;  %v4250_v45 = vmul.f32 %v9820_v43, %v11483_v6  ;;  %v4265_v52 = vmul.f32 %v11547_v63, %v4249_v58 }
 0xace   :  { %4520 = vmatprep.mubr.bf16.mxu0 %v12703_v62 }
 0xacf   :  { %v4266_v59 = vmul.f32 %v11547_v63, %v4250_v45  ;;  %v11572_v53 = vadd.f32 %v11555_v33, %v4265_v52 }
 0xad1   :  { %v11575_v61 = vadd.f32 %v11555_v33, %v4266_v59 }
 0xad3   :  { %v4294_v36 = vpack.c.bf16 %v11575_v61, %v11572_v53 }
 0xad4   :  { %v4196_v10 = vpop.xlane.xlu0 %4195 }
 0xad5   :  { %v4215_v54 = vmul.f32 0.03125, %v4196_v10  ;;  %4521 = vmatmul.mubr.bf16.gmra.mrb[100].mxu0 %v4294_v36  ;;  %9039 = vmatmul.mubr.bf16.vlgmr.msra.gmra.mrb[120].mxu1 %v4294_v36 }
 0xad6   :  { %v4198_v6 = vpop.xlane.xlu1 %4197  ;;  %4530 = vmatprep.mubr.bf16.mxu0 %v12703_v62 }
 0xad7   :  { %v4227_v24 = vadd.f32 1e-12, %v4215_v54  ;;  %v4216_v13 = vmul.f32 0.03125, %v4198_v6 }
 0xad8   :  { %v4200_v4 = vpop.xlane.xlu0 %4199 }
 0xad9   :  { %9821 = vrsqrt.f32 %v4227_v24  ;;  %v4228_v16 = vadd.f32 1e-12, %v4216_v13  ;;  %v4217_v14 = vmul.f32 0.03125, %v4200_v4 }
 0xada   :  { %v4202_v55 = vpop.xlane.xlu1 %4201 }
 0xadb   :  { %9823 = vrsqrt.f32 %v4228_v16  ;;  %v4229_v12 = vadd.f32 1e-12, %v4217_v14  ;;  %v4218_v30 = vmul.f32 0.03125, %v4202_v55 }
 0xadd   :  { %9825 = vrsqrt.f32 %v4229_v12  ;;  %v4230_v15 = vadd.f32 1e-12, %v4218_v30 }
 0xadf   :  { %9827 = vrsqrt.f32 %v4230_v15 }
 0xae3   :  { %v9822_v40 = vpop.eup %9821 }
 0xae4   :  { %v4251_v27 = vmul.f32 %v9822_v40, %v11493_v34 }
 0xae5   :  { %v9824_v56 = vpop.eup %9823 }
 0xae6   :  { %v4252_v60 = vmul.f32 %v9824_v56, %v11497_v29  ;;  %v4267_v1 = vmul.f32 %v11547_v63, %v4251_v27 }
 0xae7   :  { %v9826_v32 = vpop.eup %9825 }
 0xae8   :  { %v4268_v38 = vmul.f32 %v11547_v63, %v4252_v60  ;;  %v4253_v3 = vmul.f32 %v9826_v32, %v11503_v5  ;;  %v11586_v9 = vadd.f32 %v11555_v33, %v4267_v1 }
 0xae9   :  { %v9828_v23 = vpop.eup %9827 }
 0xaea   :  { %v11589_v39 = vadd.f32 %v11555_v33, %v4268_v38  ;;  %v4254_v26 = vmul.f32 %v9828_v23, %v11509_v44  ;;  %v4269_v34 = vmul.f32 %v11547_v63, %v4253_v3 }
 0xaec   :  { %v4295_v29 = vpack.c.bf16 %v11589_v39, %v11586_v9  ;;  %v4270_v41 = vmul.f32 %v11547_v63, %v4254_v26  ;;  %v11597_v5 = vadd.f32 %v11555_v33, %v4269_v34 }
 0xaee   :  { %4531 = vmatmul.mubr.bf16.gmra.mrb[104].mxu0 %v4295_v29  ;;  %9042 = vmatprep.mubr.bf16.mxu1 %v4295_v29  ;;  %v11600_v22 = vadd.f32 %v11555_v33, %v4270_v41 }
 0xaef   :  { %4540 = vmatprep.mubr.bf16.mxu0 %v12703_v62 }
 0xaf0   :  { %v4296_v44 = vpack.c.bf16 %v11600_v22, %v11597_v5 }
 0xaf2   :  { %9043 = vmatmul.mubr.bf16.gmra.mrb[124].mxu1 %v4296_v44 }
 0xaf6   :  { %4541 = vmatmul.mubr.bf16.gmra.mrb[108].mxu0 %v4296_v44 }
 0xaf7   :  { %4550 = vmatprep.mubr.bf16.mxu0 %v12703_v62 }
 0xb45   :  { %v4204_v49 = vpop.xlane.xlu0 %4203 }
 0xb46   :  { %v4219_v35 = vmul.f32 0.03125, %v4204_v49 }
 0xb47   :  { %v4206_v57 = vpop.xlane.xlu1 %4205 }
 0xb48   :  { %v4231_v20 = vadd.f32 1e-12, %v4219_v35  ;;  %v4220_v21 = vmul.f32 0.03125, %v4206_v57 }
 0xb4a   :  { %9829 = vrsqrt.f32 %v4231_v20  ;;  %v4232_v58 = vadd.f32 1e-12, %v4220_v21 }
 0xb4c   :  { %9831 = vrsqrt.f32 %v4232_v58 }
 0xb4d   :  { %v4208_v43 = vpop.xlane.xlu0 %4207 }
 0xb4e   :  { %v4221_v45 = vmul.f32 0.03125, %v4208_v43 }
 0xb4f   :  { %v4210_v52 = vpop.xlane.xlu1 %4209 }
 0xb50   :  { %v4233_v59 = vadd.f32 1e-12, %v4221_v45  ;;  %v4222_v36 = vmul.f32 0.03125, %v4210_v52 }
 0xb52   :  { %9833 = vrsqrt.f32 %v4233_v59  ;;  %v4234_v10 = vadd.f32 1e-12, %v4222_v36 }
 0xb54   :  { %v9830_v54 = vpop.eup %9829  ;;  %9835 = vrsqrt.f32 %v4234_v10 }
 0xb55   :  { %v4255_v6 = vmul.f32 %v9830_v54, %v11519_v28 }
 0xb56   :  { %v9832_v24 = vpop.eup %9831 }
 0xb57   :  { %v4256_v13 = vmul.f32 %v9832_v24, %v11523_v50  ;;  %v4271_v4 = vmul.f32 %v11547_v63, %v4255_v6 }
 0xb59   :  { %v4272_v16 = vmul.f32 %v11547_v63, %v4256_v13  ;;  %v11611_v14 = vadd.f32 %v11555_v33, %v4271_v4 }
 0xb5b   :  { %v11614_v55 = vadd.f32 %v11555_v33, %v4272_v16 }
 0xb5c   :  { %v9834_v12 = vpop.eup %9833 }
 0xb5d   :  { %v4297_v30 = vpack.c.bf16 %v11614_v55, %v11611_v14  ;;  %v4257_v15 = vmul.f32 %v9834_v12, %v11531_v25 }
 0xb5e   :  { %v9836_v28 = vpop.eup %9835 }
 0xb5f   :  { %4551 = vmatmul.mubr.bf16.gmra.mrb[112].mxu0 %v4297_v30  ;;  %9046 = vmatprep.mubr.bf16.mxu1 %v4297_v30  ;;  %v4258_v50 = vmul.f32 %v9836_v28, %v11536_v0  ;;  %v4273_v40 = vmul.f32 %v11547_v63, %v4257_v15 }
 0xb60   :  { %4560 = vmatprep.mubr.bf16.mxu0 %v12703_v62  ;;  %v11638_v62 = vld [vmem:[%s12667_s4 + $0x3] sm:$0x7] }
 0xb61   :  { %v4274_v27 = vmul.f32 %v11547_v63, %v4258_v50  ;;  %v11624_v56 = vadd.f32 %v11555_v33, %v4273_v40  ;;  %v11642_v0 = vrot.slane %v11638_v62, %v12701_v46 }
 0xb63   :  { %12705 = vst [vmem:[#allocation16_spill] sm:$0xff] %v11624_v56  ;;  %v11627_v60 = vadd.f32 %v11555_v33, %v4274_v27  ;;  %v11646_v33 = vrot.slane %v11638_v62, %v10514_v31 }
 0xb65   :  { %12706 = vst [vmem:[#allocation20_spill] sm:$0xff] %v11627_v60  ;;  %v4298_v25 = vpack.c.bf16 %v11627_v60, %v11624_v56 }
 0xb67   :  { %4561 = vmatmul.mubr.bf16.gmra.mrb[116].mxu0 %v4298_v25  ;;  %9047 = vmatmul.mubr.bf16.gmra.mrb[128].mxu1 %v4298_v25 }
 0xb68   :  { %9052 = vmatprep.mubr.msk.bf16.mxu0 %vm10184_vm3, %v12699_v42  ;;  %9058 = vmatprep.mubr.msk.bf16.mxu1 %vm10184_vm3, %v12699_v42 }
 0xba0   :  { %v4512_v63 = vpop.f32.mrb[96].mxu0 }
 0xba1   :  { %v4514_v1 = vpop.f32.mrb[97].mxu0  ;;  %v4513_v34 = vadd.f32 %v4512_v63, %v11646_v33 }
 0xba2   :  { %v4515_v32 = vadd.f32 %v4514_v1, %v11642_v0  ;;  %v4516_v38 = vpop.f32.mrb[98].mxu0 }
 0xba3   :  { %v4518_v3 = vpop.f32.mrb[99].mxu0  ;;  %v4652_v57 = vmul.f32 %v10522_v8, %v4513_v34  ;;  %v4653_v58 = vmul.f32 %v10534_v47, %v4513_v34  ;;  %v4517_v6 = vadd.f32 %v4516_v38, %v11646_v33 }
 0xba4   :  { %v4700_v23 = vmul.f32 %v10522_v8, %v4515_v32  ;;  %v4701_v26 = vmul.f32 %v10534_v47, %v4515_v32  ;;  %v4519_v44 = vadd.f32 %v4518_v3, %v11642_v0 }
 0xba5   :  { %v4676_v54 = vpack.c.bf16 %v4652_v57, %v4652_v57  ;;  %v4677_v24 = vpack.c.bf16 %v4653_v58, %v4653_v58  ;;  %v4654_v12 = vmul.f32 %v10522_v8, %v4517_v6  ;;  %v4655_v30 = vmul.f32 %v10534_v47, %v4517_v6 }
 0xba6   :  { %v4724_v29 = vpack.c.bf16 %v4700_v23, %v4700_v23  ;;  %v4725_v41 = vpack.c.bf16 %v4701_v26, %v4701_v26  ;;  %v4702_v43 = vmul.f32 %v10522_v8, %v4519_v44  ;;  %v4703_v59 = vmul.f32 %v10534_v47, %v4519_v44 }
 0xba7   :  { %v4678_v50 = vpack.c.bf16 %v4654_v12, %v4654_v12  ;;  %v4679_v27 = vpack.c.bf16 %v4655_v30, %v4655_v30 }
 0xba8   :  { %v4522_v49 = vpop.f32.mrb[100].mxu0  ;;  %v11653_v35 = vpop.f32.mrb[120].mxu1  ;;  %9051 = vmatpush3.bf16.xpose.msra.mxu0 %v4724_v29  ;;  %9057 = vmatpush3.bf16.xpose.msra.mxu1 %v4725_v41  ;;  %v4726_v13 = vpack.c.bf16 %v4702_v43, %v4702_v43  ;;  %v4727_v16 = vpack.c.bf16 %v4703_v59, %v4703_v59 }
 0xba9   :  { %v4524_v20 = vpop.f32.mrb[101].mxu0  ;;  %v11656_v21 = vpop.f32.mrb[121].mxu1  ;;  %9062 = vmatprep.subr.bf16.mxu0 %v12699_v42  ;;  %9068 = vmatprep.subr.bf16.mxu1 %v12699_v42  ;;  %v4523_v40 = vadd.f32 %v4522_v49, %v11646_v33 }
 0xbaa   :  { %v4526_v45 = vpop.f32.mrb[102].mxu0  ;;  %v11662_v52 = vpop.f32.mrb[122].mxu1  ;;  %v4525_v4 = vadd.f32 %v4524_v20, %v11642_v0 }
 0xbab   :  { %v4528_v36 = vpop.f32.mrb[103].mxu0  ;;  %v11665_v10 = vpop.f32.mrb[123].mxu1  ;;  %v4656_v32 = vmul.f32 %v10522_v8, %v4523_v40  ;;  %v4657_v38 = vmul.f32 %v10534_v47, %v4523_v40  ;;  %v4527_v34 = vadd.f32 %v4526_v45, %v11646_v33 }
 0xbac   :  { %v4704_v15 = vmul.f32 %v10522_v8, %v4525_v4  ;;  %v4705_v28 = vmul.f32 %v10534_v47, %v4525_v4  ;;  %v4529_v63 = vadd.f32 %v4528_v36, %v11642_v0 }
 0xbad   :  { %v4680_v26 = vpack.c.bf16 %v4656_v32, %v4656_v32  ;;  %v4681_v29 = vpack.c.bf16 %v4657_v38, %v4657_v38  ;;  %v4658_v49 = vmul.f32 %v10522_v8, %v4527_v34  ;;  %v4659_v20 = vmul.f32 %v10534_v47, %v4527_v34 }
 0xbae   :  { %v4728_v25 = vpack.c.bf16 %v4704_v15, %v4704_v15  ;;  %v4729_v1 = vpack.c.bf16 %v4705_v28, %v4705_v28  ;;  %v4706_v3 = vmul.f32 %v10522_v8, %v4529_v63  ;;  %v4707_v23 = vmul.f32 %v10534_v47, %v4529_v63 }
 0xbaf   :  { %9053 = vmatmul.mubr.bf16.vlgmr.msra.gmra.mrb[120].mxu0 %v4676_v54  ;;  %9059 = vmatmul.mubr.bf16.vlgmr.msra.gmra.mrb[132].mxu1 %v4677_v24  ;;  %v4682_v36 = vpack.c.bf16 %v4658_v49, %v4658_v49 }
 0xbb0   :  { %9063 = vmatpush3.bf16.xpose.msra.mxu0 %v4726_v13  ;;  %9069 = vmatpush3.bf16.xpose.msra.mxu1 %v4727_v16  ;;  %v4730_v41 = vpack.c.bf16 %v4706_v3, %v4706_v3  ;;  %v4731_v44 = vpack.c.bf16 %v4707_v23, %v4707_v23  ;;  %v4683_v13 = vpack.c.bf16 %v4659_v20, %v4659_v20 }
 0xbb1   :  { %9064 = vmatprep.mubr.msk.bf16.mxu0 %vm10184_vm3, %v12699_v42  ;;  %9070 = vmatprep.mubr.msk.bf16.mxu1 %vm10184_vm3, %v12699_v42 }
 0xbb2   :  { %9074 = vmatprep.subr.bf16.mxu0 %v12699_v42  ;;  %9080 = vmatprep.subr.bf16.mxu1 %v12699_v42 }
 0xbb7   :  { %9065 = vmatmul.mubr.bf16.vlgmr.msra.gmra.mrb[124].mxu0 %v4678_v50  ;;  %9071 = vmatmul.mubr.bf16.vlgmr.msra.gmra.mrb[136].mxu1 %v4679_v27 }
 0xbb8   :  { %9075 = vmatpush3.bf16.xpose.msra.mxu0 %v4728_v25  ;;  %9081 = vmatpush3.bf16.xpose.msra.mxu1 %v4729_v1 }
 0xbb9   :  { %9076 = vmatprep.mubr.msk.bf16.mxu0 %vm10184_vm3, %v12699_v42  ;;  %9082 = vmatprep.mubr.msk.bf16.mxu1 %vm10184_vm3, %v12699_v42 }
 0xbba   :  { %9086 = vmatprep.subr.bf16.mxu0 %v12699_v42  ;;  %9092 = vmatprep.subr.bf16.mxu1 %v12699_v42 }
 0xbbf   :  { %9077 = vmatmul.mubr.bf16.vlgmr.msra.gmra.mrb[128].mxu0 %v4680_v26  ;;  %9083 = vmatmul.mubr.bf16.vlgmr.msra.gmra.mrb[140].mxu1 %v4681_v29 }
 0xbc0   :  { %9087 = vmatpush3.bf16.xpose.msra.mxu0 %v4730_v41  ;;  %9093 = vmatpush3.bf16.xpose.msra.mxu1 %v4731_v44 }
 0xbc1   :  { %v4532_v57 = vpop.f32.mrb[104].mxu0  ;;  %9088 = vmatprep.mubr.msk.bf16.mxu0 %vm10184_vm3, %v12699_v42  ;;  %9094 = vmatprep.mubr.msk.bf16.mxu1 %vm10184_vm3, %v12699_v42 }
 0xbc2   :  { %v4534_v58 = vpop.f32.mrb[105].mxu0  ;;  %9098 = vmatprep.subr.bf16.mxu0 %v12699_v42  ;;  %9104 = vmatprep.subr.bf16.mxu1 %v12699_v42  ;;  %v4533_v4 = vadd.f32 %v4532_v57, %v11646_v33 }
 0xbc3   :  { %v4535_v43 = vadd.f32 %v4534_v58, %v11642_v0  ;;  %v4536_v45 = vpop.f32.mrb[106].mxu0 }
 0xbc4   :  { %v4538_v59 = vpop.f32.mrb[107].mxu0  ;;  %v4660_v27 = vmul.f32 %v10522_v8, %v4533_v4  ;;  %v4661_v63 = vmul.f32 %v10534_v47, %v4533_v4  ;;  %v4537_v34 = vadd.f32 %v4536_v45, %v11646_v33 }
 0xbc5   :  { %v4708_v54 = vmul.f32 %v10522_v8, %v4535_v43  ;;  %v4709_v6 = vmul.f32 %v10534_v47, %v4535_v43  ;;  %v11703_v24 = vpop.f32.mrb[124].mxu1  ;;  %v4539_v28 = vadd.f32 %v4538_v59, %v11642_v0 }
 0xbc6   :  { %v11706_v16 = vpop.f32.mrb[125].mxu1  ;;  %v4684_v23 = vpack.c.bf16 %v4660_v27, %v4660_v27  ;;  %v4685_v26 = vpack.c.bf16 %v4661_v63, %v4661_v63  ;;  %v4662_v49 = vmul.f32 %v10522_v8, %v4537_v34  ;;  %v4663_v57 = vmul.f32 %v10534_v47, %v4537_v34 }
 0xbc7   :  { %v4732_v12 = vpack.c.bf16 %v4708_v54, %v4708_v54  ;;  %v4733_v30 = vpack.c.bf16 %v4709_v6, %v4709_v6  ;;  %v11708_v15 = vpop.f32.mrb[126].mxu1  ;;  %9089 = vmatmul.mubr.bf16.vlgmr.msra.gmra.mrb[132].mxu0 %v4682_v36  ;;  %9095 = vmatmul.mubr.bf16.vlgmr.msra.gmra.mrb[144].mxu1 %v4683_v13  ;;  %v4710_v32 = vmul.f32 %v10522_v8, %v4539_v28 }
 0xbc8   :  { %v11711_v50 = vpop.f32.mrb[127].mxu1  ;;  %9100 = vmatprep.mubr.msk.bf16.mxu0 %vm10184_vm3, %v12699_v42  ;;  %9106 = vmatprep.mubr.msk.bf16.mxu1 %vm10184_vm3, %v12699_v42  ;;  %v4711_v3 = vmul.f32 %v10534_v47, %v4539_v28  ;;  %v4686_v43 = vpack.c.bf16 %v4662_v49, %v4662_v49  ;;  %v4687_v59 = vpack.c.bf16 %v4663_v57, %v4663_v57 }
 0xbc9   :  { %v4542_v40 = vpop.f32.mrb[108].mxu0  ;;  %9099 = vmatpush3.bf16.xpose.msra.mxu0 %v4732_v12  ;;  %9105 = vmatpush3.bf16.xpose.msra.mxu1 %v4733_v30  ;;  %v4734_v29 = vpack.c.bf16 %v4710_v32, %v4710_v32 }
 0xbca   :  { %v4544_v25 = vpop.f32.mrb[109].mxu0  ;;  %9110 = vmatprep.subr.bf16.mxu0 %v12699_v42  ;;  %9116 = vmatprep.subr.bf16.mxu1 %v12699_v42  ;;  %v4735_v44 = vpack.c.bf16 %v4711_v3, %v4711_v3  ;;  %v4543_v45 = vadd.f32 %v4542_v40, %v11646_v33 }
 0xbcb   :  { %v4546_v1 = vpop.f32.mrb[110].mxu0  ;;  %v4545_v41 = vadd.f32 %v4544_v25, %v11642_v0 }
 0xbcc   :  { %v4548_v38 = vpop.f32.mrb[111].mxu0  ;;  %v4664_v13 = vmul.f32 %v10522_v8, %v4543_v45  ;;  %v4665_v4 = vmul.f32 %v10534_v47, %v4543_v45  ;;  %v4547_v40 = vadd.f32 %v4546_v1, %v11646_v33 }
 0xbcd   :  { %v4712_v20 = vmul.f32 %v10522_v8, %v4545_v41  ;;  %v4713_v58 = vmul.f32 %v10534_v47, %v4545_v41  ;;  %v4549_v54 = vadd.f32 %v4548_v38, %v11642_v0 }
 0xbce   :  { %v4688_v28 = vpack.c.bf16 %v4664_v13, %v4664_v13  ;;  %v4689_v27 = vpack.c.bf16 %v4665_v4, %v4665_v4  ;;  %v4666_v32 = vmul.f32 %v10522_v8, %v4547_v40  ;;  %v4667_v38 = vmul.f32 %v10534_v47, %v4547_v40 }
 0xbcf   :  { %v4736_v36 = vpack.c.bf16 %v4712_v20, %v4712_v20  ;;  %v4737_v6 = vpack.c.bf16 %v4713_v58, %v4713_v58  ;;  %v4714_v12 = vmul.f32 %v10522_v8, %v4549_v54  ;;  %v4715_v30 = vmul.f32 %v10534_v47, %v4549_v54 }
 0xbd0   :  { %9101 = vmatmul.mubr.bf16.vlgmr.msra.gmra.mrb[136].mxu0 %v4684_v23  ;;  %9107 = vmatmul.mubr.bf16.vlgmr.msra.gmra.mrb[148].mxu1 %v4685_v26  ;;  %v4690_v1 = vpack.c.bf16 %v4666_v32, %v4666_v32  ;;  %v4691_v3 = vpack.c.bf16 %v4667_v38, %v4667_v38 }
 0xbd1   :  { %9111 = vmatpush3.bf16.xpose.msra.mxu0 %v4734_v29  ;;  %9117 = vmatpush3.bf16.xpose.msra.mxu1 %v4735_v44  ;;  %v4738_v25 = vpack.c.bf16 %v4714_v12, %v4714_v12  ;;  %v4739_v63 = vpack.c.bf16 %v4715_v30, %v4715_v30 }
 0xbd2   :  { %9112 = vmatprep.mubr.msk.bf16.mxu0 %vm10184_vm3, %v12699_v42  ;;  %9118 = vmatprep.mubr.msk.bf16.mxu1 %vm10184_vm3, %v12699_v42 }
 0xbd3   :  { %9122 = vmatprep.subr.bf16.mxu0 %v12699_v42  ;;  %9128 = vmatprep.subr.bf16.mxu1 %v12699_v42 }
 0xbd8   :  { %9113 = vmatmul.mubr.bf16.vlgmr.msra.gmra.mrb[140].mxu0 %v4686_v43  ;;  %9119 = vmatmul.mubr.bf16.vlgmr.msra.gmra.mrb[152].mxu1 %v4687_v59 }
 0xbd9   :  { %9123 = vmatpush3.bf16.xpose.msra.mxu0 %v4736_v36  ;;  %9129 = vmatpush3.bf16.xpose.msra.mxu1 %v4737_v6 }
 0xbda   :  { %9124 = vmatprep.mubr.msk.bf16.mxu0 %vm10184_vm3, %v12699_v42  ;;  %9130 = vmatprep.mubr.msk.bf16.mxu1 %vm10184_vm3, %v12699_v42 }
 0xbdb   :  { %9134 = vmatprep.subr.bf16.mxu0 %v12699_v42  ;;  %9140 = vmatprep.subr.bf16.mxu1 %v12699_v42 }
 0xbe0   :  { %9125 = vmatmul.mubr.bf16.vlgmr.msra.gmra.mrb[144].mxu0 %v4688_v28  ;;  %9131 = vmatmul.mubr.bf16.vlgmr.msra.gmra.mrb[156].mxu1 %v4689_v27 }
 0xbe1   :  { %9135 = vmatpush3.bf16.xpose.msra.mxu0 %v4738_v25  ;;  %9141 = vmatpush3.bf16.xpose.msra.mxu1 %v4739_v63 }
 0xbe2   :  { %9136 = vmatprep.mubr.msk.bf16.mxu0 %vm10184_vm3, %v12699_v42  ;;  %9142 = vmatprep.mubr.msk.bf16.mxu1 %vm10184_vm3, %v12699_v42 }
 0xbe3   :  { %9146 = vmatprep.subr.bf16.mxu0 %v12699_v42  ;;  %9152 = vmatprep.subr.bf16.mxu1 %v12699_v42 }
 0xbe8   :  { %9137 = vmatmul.mubr.bf16.vlgmr.msra.gmra.mrb[148].mxu0 %v4690_v1  ;;  %9143 = vmatmul.mubr.bf16.vlgmr.msra.gmra.mrb[160].mxu1 %v4691_v3 }
 0xbe9   :  { %9148 = vmatprep.mubr.msk.bf16.mxu0 %vm10184_vm3, %v12699_v42  ;;  %9154 = vmatprep.mubr.msk.bf16.mxu1 %vm10184_vm3, %v12699_v42 }
 0xc32   :  { %v4552_v23 = vpop.f32.mrb[112].mxu0 }
 0xc33   :  { %v4554_v26 = vpop.f32.mrb[113].mxu0  ;;  %v4553_v57 = vadd.f32 %v4552_v23, %v11646_v33 }
 0xc34   :  { %v4555_v34 = vadd.f32 %v4554_v26, %v11642_v0  ;;  %v4556_v29 = vpop.f32.mrb[114].mxu0 }
 0xc35   :  { %v4558_v41 = vpop.f32.mrb[115].mxu0  ;;  %v4668_v36 = vmul.f32 %v10522_v8, %v4553_v57  ;;  %v4669_v13 = vmul.f32 %v10534_v47, %v4553_v57  ;;  %v4557_v63 = vadd.f32 %v4556_v29, %v11646_v33 }
 0xc36   :  { %v4716_v44 = vmul.f32 %v10522_v8, %v4555_v34  ;;  %v4717_v49 = vmul.f32 %v10534_v47, %v4555_v34  ;;  %v4559_v43 = vadd.f32 %v4558_v41, %v11642_v0 }
 0xc37   :  { %v4692_v25 = vpack.c.bf16 %v4668_v36, %v4668_v36  ;;  %v4693_v32 = vpack.c.bf16 %v4669_v13, %v4669_v13  ;;  %v4670_v23 = vmul.f32 %v10522_v8, %v4557_v63  ;;  %v4671_v26 = vmul.f32 %v10534_v47, %v4557_v63 }
 0xc38   :  { %v4740_v20 = vpack.c.bf16 %v4716_v44, %v4716_v44  ;;  %v4741_v58 = vpack.c.bf16 %v4717_v49, %v4717_v49  ;;  %v4718_v4 = vmul.f32 %v10522_v8, %v4559_v43  ;;  %v4719_v28 = vmul.f32 %v10534_v47, %v4559_v43 }
 0xc39   :  { %v4694_v41 = vpack.c.bf16 %v4670_v23, %v4670_v23  ;;  %v4695_v49 = vpack.c.bf16 %v4671_v26, %v4671_v26 }
 0xc3a   :  { %v4562_v45 = vpop.f32.mrb[116].mxu0  ;;  %v11765_v59 = vpop.f32.mrb[128].mxu1  ;;  %9147 = vmatpush3.bf16.xpose.msra.mxu0 %v4740_v20  ;;  %9153 = vmatpush3.bf16.xpose.msra.mxu1 %v4741_v58  ;;  %v4742_v38 = vpack.c.bf16 %v4718_v4, %v4718_v4  ;;  %v4743_v3 = vpack.c.bf16 %v4719_v28, %v4719_v28  ;;  %v11795_v58 = vrot.slane %v11638_v62, %v12702_v11 }
 0xc3b   :  { %v4564_v54 = vpop.f32.mrb[117].mxu0  ;;  %v11768_v6 = vpop.f32.mrb[129].mxu1  ;;  %9158 = vmatprep.subr.bf16.mxu0 %v12699_v42  ;;  %9164 = vmatprep.subr.bf16.mxu1 %v12699_v42  ;;  %v4563_v44 = vadd.f32 %v4562_v45, %v11646_v33 }
 0xc3c   :  { %v4566_v12 = vpop.f32.mrb[118].mxu0  ;;  %v11774_v30 = vpop.f32.mrb[130].mxu1  ;;  %v4565_v1 = vadd.f32 %v4564_v54, %v11642_v0  ;;  %v11807_v62 = vadd.f32 %v11656_v21, %v11795_v58  ;;  %v11813_v13 = vadd.f32 %v11665_v10, %v11795_v58 }
 0xc3d   :  { %v4568_v40 = vpop.f32.mrb[119].mxu0  ;;  %v11777_v27 = vpop.f32.mrb[131].mxu1  ;;  %v4672_v36 = vmul.f32 %v10522_v8, %v4563_v44  ;;  %v4673_v45 = vmul.f32 %v10534_v47, %v4563_v44  ;;  %v4567_v28 = vadd.f32 %v4566_v12, %v11646_v33 }
 0xc3e   :  { %v4720_v34 = vmul.f32 %v10522_v8, %v4565_v1  ;;  %v4721_v29 = vmul.f32 %v10534_v47, %v4565_v1  ;;  %v4569_v20 = vadd.f32 %v4568_v40, %v11642_v0  ;;  %v4748_v63 = vmul.f32 %v10522_v8, %v11807_v62 }
 0xc3f   :  { %v4696_v4 = vpack.c.bf16 %v4672_v36, %v4672_v36  ;;  %v4697_v40 = vpack.c.bf16 %v4673_v45, %v4673_v45  ;;  %v4750_v21 = vmul.f32 %v10522_v8, %v11813_v13  ;;  %v4675_v33 = vmul.f32 %v10534_v47, %v4567_v28 }
 0xc40   :  { %v4744_v57 = vpack.c.bf16 %v4720_v34, %v4720_v34  ;;  %v4745_v43 = vpack.c.bf16 %v4721_v29, %v4721_v29  ;;  %v4722_v54 = vmul.f32 %v10522_v8, %v4569_v20  ;;  %v4723_v0 = vmul.f32 %v10534_v47, %v4569_v20  ;;  %v10006_v29 = vld [vmem:[%s12664_s1] ss:$0 sm:$0xff] }
 0xc41   :  { %9149 = vmatmul.mubr.bf16.vlgmr.msra.gmra.mrb[152].mxu0 %v4692_v25  ;;  %9155 = vmatmul.mubr.bf16.vlgmr.msra.gmra.mrb[164].mxu1 %v4693_v32  ;;  %v4772_v10 = vpack.c.bf16 %v4748_v63, %v4748_v63  ;;  %v4774_v12 = vpack.c.bf16 %v4750_v21, %v4750_v21  ;;  %v10008_v63 = vld [vmem:[%s12664_s1 + $0x2] ss:$0 sm:$0xff] }
 0xc42   :  { %9159 = vmatpush3.bf16.xpose.msra.mxu0 %v4742_v38  ;;  %9165 = vmatpush3.bf16.xpose.msra.mxu1 %v4743_v3  ;;  %v4746_v25 = vpack.c.bf16 %v4722_v54, %v4722_v54  ;;  %v4747_v32 = vpack.c.bf16 %v4723_v0, %v4723_v0  ;;  %v4674_v38 = vmul.f32 %v10522_v8, %v4567_v28 }
 0xc43   :  { %9160 = vmatprep.mubr.msk.bf16.mxu0 %vm10184_vm3, %v12699_v42  ;;  %9166 = vmatprep.mubr.msk.bf16.mxu1 %vm10184_vm3, %v12699_v42  ;;  %v4699_v3 = vpack.c.bf16 %v4675_v33, %v4675_v33  ;;  %v6048_v23 = vsel %vm2228_vm5, %v4772_v10, 0  ;;  %v6140_v26 = vsel %vm2228_vm5, %v4774_v12, 0  ;;  %v10009_v10 = vld [vmem:[%s12664_s1 + $0x3] ss:$0 sm:$0xff] }
 0xc44   :  { %9170 = vmatprep.subr.bf16.mxu0 %v12699_v42  ;;  %9176 = vmatprep.subr.bf16.mxu1 %v12699_v42  ;;  %v4698_v1 = vpack.c.bf16 %v4674_v38, %v4674_v38 }
 0xc49   :  { %9161 = vmatmul.mubr.bf16.vlgmr.msra.gmra.mrb[156].mxu0 %v4694_v41  ;;  %9167 = vmatmul.mubr.bf16.vlgmr.msra.gmra.mrb[168].mxu1 %v4695_v49 }
 0xc4a   :  { %9171 = vmatpush3.bf16.xpose.msra.mxu0 %v4744_v57  ;;  %9177 = vmatpush3.bf16.xpose.msra.mxu1 %v4745_v43  ;;  %v10007_v43 = vld [vmem:[%s12664_s1 + $0x1] ss:$0 sm:$0xff] }
 0xc4b   :  { %9172 = vmatprep.mubr.msk.bf16.mxu0 %vm10184_vm3, %v12699_v42  ;;  %9178 = vmatprep.mubr.msk.bf16.mxu1 %vm10184_vm3, %v12699_v42 }
 0xc4c   :  { %9182 = vmatprep.subr.bf16.mxu0 %v12699_v42  ;;  %9188 = vmatprep.subr.bf16.mxu1 %v12699_v42 }
 0xc51   :  { %9173 = vmatmul.mubr.bf16.vlgmr.msra.gmra.mrb[160].mxu0 %v4696_v4  ;;  %9179 = vmatmul.mubr.bf16.vlgmr.msra.gmra.mrb[172].mxu1 %v4697_v40 }
 0xc52   :  { %9183 = vmatpush3.bf16.xpose.msra.mxu0 %v4746_v25  ;;  %9189 = vmatpush3.bf16.xpose.msra.mxu1 %v4747_v32 }
 0xc53   :  { %9184 = vmatprep.mubr.msk.bf16.mxu0 %vm10184_vm3, %v12699_v42  ;;  %9190 = vmatprep.mubr.msk.bf16.mxu1 %vm10184_vm3, %v12699_v42 }
 0xc54   :  { %9194 = vmatprep.subr.bf16.mxu0 %v12699_v42  ;;  %9206 = vmatprep.subr.bf16.mxu1 %v12699_v42 }
 0xc59   :  { %9185 = vmatmul.mubr.bf16.vlgmr.msra.gmra.mrb[164].mxu0 %v4698_v1  ;;  %9191 = vmatmul.mubr.bf16.vlgmr.msra.gmra.mrb[176].mxu1 %v4699_v3 }
 0xc5a   :  { %9195 = vmatpush3.bf16.msra.mxu0 %v6048_v23  ;;  %9207 = vmatpush3.bf16.msra.mxu1 %v6140_v26 }
 0xc5b   :  { %9196 = vmatprep.mubr.msk.bf16.mxu0 %vm10184_vm3, %v12699_v42  ;;  %9200 = vmatprep.subr.bf16.mxu0 %v12699_v42 }
 0xc5c   :  { %9208 = vmatprep.mubr.msk.bf16.mxu1 %vm10184_vm3, %v12699_v42  ;;  %9212 = vmatprep.subr.bf16.mxu1 %v12699_v42 }
 0xc82   :  { %v4830_v34 = vpop.f32.mrb[120].mxu0  ;;  %v4870_v44 = vpop.f32.mrb[132].mxu1 }
 0xc83   :  { %v11839_v41 = vadd.f32 %v10006_v29, %v4830_v34  ;;  %v9054_v49 = vpop.f32.mrb[121].mxu0  ;;  %v9060_v57 = vpop.f32.mrb[133].mxu1  ;;  %v11844_v36 = vadd.f32 %v10007_v43, %v4870_v44 }
 0xc84   :  { %v4833_v20 = vpop.f32.mrb[122].mxu0  ;;  %v4873_v45 = vpop.f32.mrb[134].mxu1  ;;  %v10010_v49 = vld [vmem:[%s12664_s1 + $0x4] ss:$0 sm:$0xff] }
 0xc85   :  { %v9055_v54 = vpop.f32.mrb[123].mxu0  ;;  %v5756_v0 = vsel %vm1936_vm6, %v11839_v41, -inf  ;;  %v9061_v4 = vpop.f32.mrb[135].mxu1  ;;  %v5759_v28 = vsel %vm1936_vm6, %v11844_v36, -inf }
 0xc86   :  { %5757 = vmax.xlane.f32.xlu0 %v5756_v0  ;;  %v10011_v54 = vld [vmem:[%s12664_s1 + $0x5] ss:$0 sm:$0xff] }
 0xc8a   :  { %5760 = vmax.xlane.f32.xlu0 %v5759_v28  ;;  %v4910_v40 = vpop.f32.mrb[124].mxu0  ;;  %v4950_v25 = vpop.f32.mrb[136].mxu1 }
 0xc8b   :  { %v11853_v32 = vadd.f32 %v10008_v63, %v4910_v40  ;;  %v9066_v21 = vpop.f32.mrb[125].mxu0  ;;  %v9072_v38 = vpop.f32.mrb[137].mxu1  ;;  %v11858_v12 = vadd.f32 %v10009_v10, %v4950_v25 }
 0xc8c   :  { %v4913_v33 = vpop.f32.mrb[126].mxu0  ;;  %v4953_v1 = vpop.f32.mrb[138].mxu1 }
 0xc8d   :  { %v9067_v3 = vpop.f32.mrb[127].mxu0  ;;  %v5762_v23 = vsel %vm1936_vm6, %v11853_v32, -inf  ;;  %v9073_v26 = vpop.f32.mrb[139].mxu1  ;;  %v5765_v34 = vsel %vm1936_vm6, %v11858_v12, -inf  ;;  %v10012_v33 = vld [vmem:[%s12664_s1 + $0x6] ss:$0 sm:$0xff] }
 0xc8e   :  { %5763 = vmax.xlane.f32.xlu1 %v5762_v23  ;;  %v10013_v26 = vld [vmem:[%s12664_s1 + $0x7] ss:$0 sm:$0xff] }
 0xc92   :  { %5766 = vmax.xlane.f32.xlu1 %v5765_v34  ;;  %v4990_v29 = vpop.f32.mrb[128].mxu0  ;;  %v5030_v44 = vpop.f32.mrb[140].mxu1 }
 0xc93   :  { %v11867_v57 = vadd.f32 %v10010_v49, %v4990_v29  ;;  %v9078_v20 = vpop.f32.mrb[129].mxu0  ;;  %v9084_v43 = vpop.f32.mrb[141].mxu1  ;;  %v11872_v0 = vadd.f32 %v10011_v54, %v5030_v44  ;;  %v10014_v54 = vld [vmem:[%s12664_s1 + $0x8] ss:$0 sm:$0xff] }
 0xc94   :  { %v4993_v45 = vpop.f32.mrb[130].mxu0  ;;  %v5033_v4 = vpop.f32.mrb[142].mxu1 }
 0xc95   :  { %v9079_v28 = vpop.f32.mrb[131].mxu0  ;;  %v5768_v40 = vsel %vm1936_vm6, %v11867_v57, -inf  ;;  %v9085_v25 = vpop.f32.mrb[143].mxu1  ;;  %v5771_v63 = vsel %vm1936_vm6, %v11872_v0, -inf }
 0xc96   :  { %5769 = vmax.xlane.f32.xlu0 %v5768_v40 }
 0xc9a   :  { %5772 = vmax.xlane.f32.xlu0 %v5771_v63  ;;  %v5070_v21 = vpop.f32.mrb[132].mxu0  ;;  %v5110_v38 = vpop.f32.mrb[144].mxu1 }
 0xc9b   :  { %v11881_v10 = vadd.f32 %v10012_v33, %v5070_v21  ;;  %v9090_v1 = vpop.f32.mrb[133].mxu0  ;;  %v9096_v3 = vpop.f32.mrb[145].mxu1  ;;  %v11886_v34 = vadd.f32 %v10013_v26, %v5110_v38  ;;  %v10015_v21 = vld [vmem:[%s12664_s1 + $0x9] ss:$0 sm:$0xff] }
 0xc9c   :  { %v5073_v23 = vpop.f32.mrb[134].mxu0  ;;  %v5113_v29 = vpop.f32.mrb[146].mxu1 }
 0xc9d   :  { %v9091_v44 = vpop.f32.mrb[135].mxu0  ;;  %v5774_v49 = vsel %vm1936_vm6, %v11881_v10, -inf  ;;  %v9097_v20 = vpop.f32.mrb[147].mxu1  ;;  %v5777_v43 = vsel %vm1936_vm6, %v11886_v34, -inf }
 0xc9e   :  { %5775 = vmax.xlane.f32.xlu1 %v5774_v49  ;;  %v10016_v49 = vld [vmem:[%s12664_s1 + $0xa] ss:$0 sm:$0xff] }
 0xca2   :  { %5778 = vmax.xlane.f32.xlu1 %v5777_v43 }
 0xca3   :  { %v5150_v45 = vpop.f32.mrb[136].mxu0  ;;  %v5190_v28 = vpop.f32.mrb[148].mxu1 }
 0xca4   :  { %v11895_v4 = vadd.f32 %v10014_v54, %v5150_v45  ;;  %v9102_v40 = vpop.f32.mrb[137].mxu0  ;;  %v9108_v25 = vpop.f32.mrb[149].mxu1  ;;  %v11900_v38 = vadd.f32 %v10015_v21, %v5190_v28  ;;  %v10017_v28 = vld [vmem:[%s12664_s1 + $0xb] ss:$0 sm:$0xff] }
 0xca5   :  { %v5153_v63 = vpop.f32.mrb[138].mxu0  ;;  %v5193_v33 = vpop.f32.mrb[150].mxu1 }
 0xca6   :  { %v9103_v1 = vpop.f32.mrb[139].mxu0  ;;  %v5780_v3 = vsel %vm1936_vm6, %v11895_v4, -inf  ;;  %v9109_v23 = vpop.f32.mrb[151].mxu1  ;;  %v5783_v26 = vsel %vm1936_vm6, %v11900_v38, -inf }
 0xca7   :  { %5781 = vmax.xlane.f32.xlu0 %v5780_v3 }
 0xcab   :  { %5784 = vmax.xlane.f32.xlu0 %v5783_v26  ;;  %v5230_v29 = vpop.f32.mrb[140].mxu0  ;;  %v5270_v44 = vpop.f32.mrb[152].mxu1  ;;  %v10018_v26 = vld [vmem:[%s12664_s1 + $0xc] ss:$0 sm:$0xff] }
 0xcac   :  { %v11909_v20 = vadd.f32 %v10016_v49, %v5230_v29  ;;  %v9114_v43 = vpop.f32.mrb[141].mxu0  ;;  %v9120_v45 = vpop.f32.mrb[153].mxu1  ;;  %v11914_v40 = vadd.f32 %v10017_v28, %v5270_v44 }
 0xcad   :  { %v5233_v54 = vpop.f32.mrb[142].mxu0  ;;  %v5273_v25 = vpop.f32.mrb[154].mxu1  ;;  %v10019_v45 = vld [vmem:[%s12664_s1 + $0xd] ss:$0 sm:$0xff] }
 0xcae   :  { %v9115_v63 = vpop.f32.mrb[143].mxu0  ;;  %v5786_v21 = vsel %vm1936_vm6, %v11909_v20, -inf  ;;  %v9121_v33 = vpop.f32.mrb[155].mxu1  ;;  %v5789_v1 = vsel %vm1936_vm6, %v11914_v40, -inf }
 0xcaf   :  { %5787 = vmax.xlane.f32.xlu1 %v5786_v21 }
 0xcb3   :  { %5790 = vmax.xlane.f32.xlu1 %v5789_v1  ;;  %v5310_v3 = vpop.f32.mrb[144].mxu0  ;;  %v5350_v23 = vpop.f32.mrb[156].mxu1 }
 0xcb4   :  { %v11923_v29 = vadd.f32 %v10018_v26, %v5310_v3  ;;  %v9126_v44 = vpop.f32.mrb[145].mxu0  ;;  %v9132_v49 = vpop.f32.mrb[157].mxu1  ;;  %v11928_v54 = vadd.f32 %v10019_v45, %v5350_v23  ;;  %v10020_v26 = vld [vmem:[%s12664_s1 + $0xe] ss:$0 sm:$0xff]  ;;  %v10021_v45 = vld [vmem:[%s12664_s1 + $0xf] ss:$0 sm:$0xff] }
 0xcb5   :  { %v5313_v43 = vpop.f32.mrb[146].mxu0  ;;  %v5353_v28 = vpop.f32.mrb[158].mxu1 }
 0xcb6   :  { %v9127_v25 = vpop.f32.mrb[147].mxu0  ;;  %v5792_v63 = vsel %vm1936_vm6, %v11923_v29, -inf  ;;  %v9133_v21 = vpop.f32.mrb[159].mxu1  ;;  %v5795_v33 = vsel %vm1936_vm6, %v11928_v54, -inf }
 0xcb7   :  { %5793 = vmax.xlane.f32.xlu0 %v5792_v63 }
 0xcbb   :  { %5796 = vmax.xlane.f32.xlu0 %v5795_v33  ;;  %v5390_v1 = vpop.f32.mrb[148].mxu0  ;;  %v5430_v3 = vpop.f32.mrb[160].mxu1 }
 0xcbc   :  { %v11937_v44 = vadd.f32 %v10020_v26, %v5390_v1  ;;  %v9138_v23 = vpop.f32.mrb[149].mxu0  ;;  %v9144_v49 = vpop.f32.mrb[161].mxu1  ;;  %v11942_v28 = vadd.f32 %v10021_v45, %v5430_v3  ;;  %v10022_v3 = vld [vmem:[%s12664_s1 + $0x10] ss:$0 sm:$0xff] }
 0xcbd   :  { %v5393_v43 = vpop.f32.mrb[150].mxu0  ;;  %v5433_v25 = vpop.f32.mrb[162].mxu1 }
 0xcbe   :  { %v9139_v63 = vpop.f32.mrb[151].mxu0  ;;  %v5798_v21 = vsel %vm1936_vm6, %v11937_v44, -inf  ;;  %v9145_v33 = vpop.f32.mrb[163].mxu1  ;;  %v5801_v1 = vsel %vm1936_vm6, %v11942_v28, -inf }
 0xcbf   :  { %5799 = vmax.xlane.f32.xlu1 %v5798_v21 }
 0xcc3   :  { %5802 = vmax.xlane.f32.xlu1 %v5801_v1 }
 0xd13   :  { %v5758_v26 = vpop.xlane.xlu0 %5757 }
 0xd14   :  { %v5828_v23 = vsub.f32 %v11839_v41, %v5758_v26  ;;  %v5470_v49 = vpop.f32.mrb[152].mxu0  ;;  %v5510_v45 = vpop.f32.mrb[164].mxu1 }
 0xd15   :  { %v11952_v43 = vadd.f32 %v10022_v3, %v5470_v49  ;;  %v9150_v25 = vpop.f32.mrb[153].mxu0  ;;  %v9156_v51 = vpop.f32.mrb[165].mxu1 }
 0xd16   :  { %v5852_v63 = vmul.f32 1.442695, %v5828_v23  ;;  %v5473_v33 = vpop.f32.mrb[154].mxu0  ;;  %v5513_v21 = vpop.f32.mrb[166].mxu1  ;;  %v10023_v51 = vld [vmem:[%s12664_s1 + $0x12] ss:$0 sm:$0xff] }
 0xd17   :  { %v5761_v2 = vpop.xlane.xlu0 %5760  ;;  %v5804_v1 = vsel %vm1936_vm6, %v11952_v43, -inf  ;;  %v9157_v37 = vpop.f32.mrb[167].mxu1 }
 0xd18   :  { %9837 = vpow2.f32 %v5852_v63  ;;  %v9151_v41 = vpop.f32.mrb[155].mxu0  ;;  %5805 = vmax.xlane.f32.xlu0 %v5804_v1  ;;  %v5829_v26 = vsub.f32 %v11844_v36, %v5761_v2 }
 0xd1a   :  { %v5854_v21 = vmul.f32 1.442695, %v5829_v26  ;;  %v10024_v26 = vld [vmem:[%s12664_s1 + $0x11] ss:$0 sm:$0xff] }
 0xd1b   :  { %v5764_v48 = vpop.xlane.xlu1 %5763 }
 0xd1c   :  { %v5830_v49 = vsub.f32 %v11853_v32, %v5764_v48  ;;  %v5550_v3 = vpop.f32.mrb[156].mxu0  ;;  %v5590_v25 = vpop.f32.mrb[168].mxu1 }
 0xd1d   :  { %v11961_v23 = vadd.f32 %v10023_v51, %v5550_v3  ;;  %v9162_v33 = vpop.f32.mrb[157].mxu0  ;;  %v9168_v63 = vpop.f32.mrb[169].mxu1 }
 0xd1e   :  { %v5856_v17 = vmul.f32 1.442695, %v5830_v49  ;;  %v5553_v37 = vpop.f32.mrb[158].mxu0  ;;  %v5593_v41 = vpop.f32.mrb[170].mxu1  ;;  %v11971_v49 = vadd.f32 %v10024_v26, %v5510_v45 }
 0xd1f   :  { %v5767_v1 = vpop.xlane.xlu1 %5766  ;;  %v5810_v2 = vsel %vm1936_vm6, %v11961_v23, -inf  ;;  %v9169_v48 = vpop.f32.mrb[171].mxu1 }
 0xd20   :  { %9839 = vpow2.f32 %v5856_v17  ;;  %v9163_v36 = vpop.f32.mrb[159].mxu0  ;;  %5811 = vmax.xlane.f32.xlu1 %v5810_v2  ;;  %v5831_v3 = vsub.f32 %v11858_v12, %v5767_v1  ;;  %v10025_v1 = vld [vmem:[%s12664_s1 + $0x14] ss:$0 sm:$0xff]  ;;  %v5807_v11 = vsel %vm1936_vm6, %v11971_v49, -inf }
 0xd21   :  { %9841 = vpow2.f32 %v5854_v21 }
 0xd22   :  { %v11965_v32 = vpop.eup %9837  ;;  %v5858_v2 = vmul.f32 1.442695, %v5831_v3 }
 0xd23   :  { %v5770_v51 = vpop.xlane.xlu0 %5769  ;;  %v5900_v33 = vsel %vm1936_vm6, %v11965_v32, 0.0 }
 0xd24   :  { %v5832_v17 = vsub.f32 %v11867_v57, %v5770_v51  ;;  %5901 = vadd.xlane.f32.xlu0 %v5900_v33  ;;  %v5630_v63 = vpop.f32.mrb[160].mxu0  ;;  %v5670_v37 = vpop.f32.mrb[172].mxu1 }
 0xd25   :  { %v9174_v41 = vpop.f32.mrb[161].mxu0  ;;  %v9180_v48 = vpop.f32.mrb[173].mxu1  ;;  %v11979_v45 = vadd.f32 %v10025_v1, %v5630_v63  ;;  %v10026_v63 = vld [vmem:[%s12664_s1 + $0x13] ss:$0 sm:$0xff] }
 0xd26   :  { %v5860_v21 = vmul.f32 1.442695, %v5832_v17  ;;  %v5633_v12 = vpop.f32.mrb[162].mxu0  ;;  %v5673_v36 = vpop.f32.mrb[174].mxu1  ;;  %v11989_v41 = vadd.f32 %v10026_v63, %v5590_v25 }
 0xd27   :  { %v5773_v26 = vpop.xlane.xlu0 %5772  ;;  %v9175_v51 = vpop.f32.mrb[163].mxu0 }
 0xd28   :  { %9843 = vpow2.f32 %v5860_v21  ;;  %v5833_v57 = vsub.f32 %v11872_v0, %v5773_v26  ;;  %v9181_v33 = vpop.f32.mrb[175].mxu1  ;;  %5808 = vmax.xlane.f32.xlu0 %v5807_v11  ;;  %v5816_v0 = vsel %vm1936_vm6, %v11979_v45, -inf  ;;  %v10027_v51 = vld [vmem:[%s12664_s1 + $0x16] ss:$0 sm:$0xff] }
 0xd29   :  { %9845 = vpow2.f32 %v5858_v2 }
 0xd2a   :  { %v11984_v3 = vpop.eup %9839  ;;  %v5862_v17 = vmul.f32 1.442695, %v5833_v57 }
 0xd2b   :  { %v5776_v48 = vpop.xlane.xlu1 %5775  ;;  %v5906_v12 = vsel %vm1936_vm6, %v11984_v3, 0.0  ;;  %v11995_v21 = vpop.eup %9841 }
 0xd2c   :  { %v5834_v11 = vsub.f32 %v11881_v10, %v5776_v48  ;;  %5907 = vadd.xlane.f32.xlu1 %v5906_v12  ;;  %5817 = vmax.xlane.f32.xlu0 %v5816_v0  ;;  %v5710_v2 = vpop.f32.mrb[164].mxu0  ;;  %v5750_v1 = vpop.f32.mrb[176].mxu1  ;;  %9847 = vpow2.f32 %v5862_v17  ;;  %v5813_v10 = vsel %vm1936_vm6, %v11989_v41, -inf  ;;  %v5903_v48 = vsel %vm1936_vm6, %v11995_v21, 0.0 }
 0xd2d   :  { %v9186_v36 = vpop.f32.mrb[165].mxu0  ;;  %v9192_v25 = vpop.f32.mrb[177].mxu1  ;;  %v12001_v33 = vadd.f32 %v10027_v51, %v5710_v2  ;;  %v10028_v2 = vld [vmem:[%s12664_s1 + $0x15] ss:$0 sm:$0xff] }
 0xd2e   :  { %v5864_v26 = vmul.f32 1.442695, %v5834_v11  ;;  %v5713_v57 = vpop.f32.mrb[166].mxu0  ;;  %v5753_v63 = vpop.f32.mrb[178].mxu1  ;;  %v12013_v25 = vadd.f32 %v10028_v2, %v5670_v37 }
 0xd2f   :  { %v5779_v46 = vpop.xlane.xlu1 %5778  ;;  %v9187_v12 = vpop.f32.mrb[167].mxu0 }
 0xd30   :  { %9849 = vpow2.f32 %v5864_v26  ;;  %v5835_v17 = vsub.f32 %v11886_v34, %v5779_v46  ;;  %v9193_v0 = vpop.f32.mrb[179].mxu1  ;;  %5814 = vmax.xlane.f32.xlu1 %v5813_v10  ;;  %5904 = vadd.xlane.f32.xlu0 %v5903_v48  ;;  %v5822_v26 = vsel %vm1936_vm6, %v12001_v33, -inf  ;;  %v5819_v10 = vsel %vm1936_vm6, %v12013_v25, -inf }
 0xd32   :  { %v12008_v11 = vpop.eup %9843  ;;  %v5866_v36 = vmul.f32 1.442695, %v5835_v17 }
 0xd33   :  { %v5912_v57 = vsel %vm1936_vm6, %v12008_v11, 0.0  ;;  %v12019_v46 = vpop.eup %9845 }
 0xd34   :  { %v5782_v34 = vpop.xlane.xlu0 %5781  ;;  %5913 = vadd.xlane.f32.xlu0 %v5912_v57  ;;  %5823 = vmax.xlane.f32.xlu1 %v5822_v26  ;;  %9851 = vpow2.f32 %v5866_v36  ;;  %v5909_v37 = vsel %vm1936_vm6, %v12019_v46, 0.0 }
 0xd35   :  { %v5836_v51 = vsub.f32 %v11895_v4, %v5782_v34  ;;  %v10029_v4 = vld [vmem:[%s12664_s1 + $0x17] ss:$0 sm:$0xff] }
 0xd36   :  { %v12026_v48 = vpop.eup %9847  ;;  %v12034_v36 = vadd.f32 %v10029_v4, %v5750_v1 }
 0xd37   :  { %v5868_v63 = vmul.f32 1.442695, %v5836_v51  ;;  %v5915_v57 = vsel %vm1936_vm6, %v12026_v48, 0.0 }
 0xd38   :  { %v5785_v17 = vpop.xlane.xlu0 %5784  ;;  %5820 = vmax.xlane.f32.xlu0 %v5819_v10  ;;  %5910 = vadd.xlane.f32.xlu1 %v5909_v37  ;;  %v5825_v51 = vsel %vm1936_vm6, %v12034_v36, -inf }
 0xd39   :  { %9853 = vpow2.f32 %v5868_v63  ;;  %v5837_v12 = vsub.f32 %v11900_v38, %v5785_v17 }
 0xd3a   :  { %v12029_v0 = vpop.eup %9849 }
 0xd3b   :  { %v5870_v2 = vmul.f32 1.442695, %v5837_v12  ;;  %v5918_v26 = vsel %vm1936_vm6, %v12029_v0, 0.0 }
 0xd3c   :  { %5916 = vadd.xlane.f32.xlu0 %v5915_v57  ;;  %5919 = vadd.xlane.f32.xlu1 %v5918_v26  ;;  %v5788_v34 = vpop.xlane.xlu1 %5787 }
 0xd3d   :  { %9855 = vpow2.f32 %v5870_v2  ;;  %v5838_v38 = vsub.f32 %v11909_v20, %v5788_v34 }
 0xd3e   :  { %v12043_v63 = vpop.eup %9851 }
 0xd3f   :  { %v5872_v1 = vmul.f32 1.442695, %v5838_v38  ;;  %v5921_v12 = vsel %vm1936_vm6, %v12043_v63, 0.0 }
 0xd40   :  { %5826 = vmax.xlane.f32.xlu1 %v5825_v51  ;;  %v5791_v10 = vpop.xlane.xlu1 %5790 }
 0xd41   :  { %9857 = vpow2.f32 %v5872_v1  ;;  %v5839_v37 = vsub.f32 %v11914_v40, %v5791_v10 }
 0xd43   :  { %v12046_v17 = vpop.eup %9853  ;;  %v5874_v4 = vmul.f32 1.442695, %v5839_v37 }
 0xd44   :  { %5922 = vadd.xlane.f32.xlu1 %v5921_v12  ;;  %v5924_v20 = vsel %vm1936_vm6, %v12046_v17, 0.0  ;;  %v5794_v2 = vpop.xlane.xlu0 %5793 }
 0xd45   :  { %5925 = vadd.xlane.f32.xlu0 %v5924_v20  ;;  %9859 = vpow2.f32 %v5874_v4  ;;  %v5840_v57 = vsub.f32 %v11923_v29, %v5794_v2 }
 0xd47   :  { %v12053_v26 = vpop.eup %9855  ;;  %v5876_v34 = vmul.f32 1.442695, %v5840_v57 }
 0xd48   :  { %v5927_v40 = vsel %vm1936_vm6, %v12053_v26, 0.0  ;;  %v5797_v38 = vpop.xlane.xlu0 %5796 }
 0xd49   :  { %5928 = vadd.xlane.f32.xlu0 %v5927_v40  ;;  %9861 = vpow2.f32 %v5876_v34  ;;  %v5841_v51 = vsub.f32 %v11928_v54, %v5797_v38 }
 0xd4b   :  { %v12058_v1 = vpop.eup %9857  ;;  %v5878_v10 = vmul.f32 1.442695, %v5841_v51 }
 0xd4c   :  { %v5800_v37 = vpop.xlane.xlu1 %5799  ;;  %v5930_v12 = vsel %vm1936_vm6, %v12058_v1, 0.0 }
 0xd4d   :  { %9863 = vpow2.f32 %v5878_v10  ;;  %v5842_v29 = vsub.f32 %v11937_v44, %v5800_v37  ;;  %5931 = vadd.xlane.f32.xlu1 %v5930_v12 }
 0xd4f   :  { %v12063_v4 = vpop.eup %9859  ;;  %v5880_v20 = vmul.f32 1.442695, %v5842_v29 }
 0xd50   :  { %v5803_v2 = vpop.xlane.xlu1 %5802  ;;  %v5933_v57 = vsel %vm1936_vm6, %v12063_v4, 0.0 }
 0xd51   :  { %9865 = vpow2.f32 %v5880_v20  ;;  %v5843_v54 = vsub.f32 %v11942_v28, %v5803_v2  ;;  %5934 = vadd.xlane.f32.xlu1 %v5933_v57 }
 0xd53   :  { %v12068_v34 = vpop.eup %9861  ;;  %v5882_v40 = vmul.f32 1.442695, %v5843_v54 }
 0xd54   :  { %v5936_v38 = vsel %vm1936_vm6, %v12068_v34, 0.0 }
 0xd55   :  { %9867 = vpow2.f32 %v5882_v40  ;;  %5937 = vadd.xlane.f32.xlu0 %v5936_v38 }
 0xd57   :  { %v12072_v44 = vpop.eup %9863 }
 0xd58   :  { %v5939_v51 = vsel %vm1936_vm6, %v12072_v44, 0.0 }
 0xd59   :  { %5940 = vadd.xlane.f32.xlu0 %v5939_v51 }
 0xd5b   :  { %v12076_v10 = vpop.eup %9865 }
 0xd5c   :  { %v5942_v28 = vsel %vm1936_vm6, %v12076_v10, 0.0 }
 0xd5d   :  { %5943 = vadd.xlane.f32.xlu1 %v5942_v28 }
 0xd5f   :  { %v12080_v37 = vpop.eup %9867 }
 0xd60   :  { %v5945_v12 = vsel %vm1936_vm6, %v12080_v37, 0.0 }
 0xd61   :  { %5946 = vadd.xlane.f32.xlu1 %v5945_v12 }
 0xda5   :  { %v5806_v29 = vpop.xlane.xlu0 %5805 }
 0xda6   :  { %v5844_v20 = vsub.f32 %v11952_v43, %v5806_v29 }
 0xda8   :  { %v5884_v2 = vmul.f32 1.442695, %v5844_v20  ;;  %v4749_v20 = vmul.f32 %v10534_v47, %v11807_v62 }
 0xdaa   :  { %9869 = vpow2.f32 %v5884_v2 }
 0xdad   :  { %v5812_v57 = vpop.xlane.xlu1 %5811 }
 0xdae   :  { %v5846_v54 = vsub.f32 %v11961_v23, %v5812_v57 }
 0xdb0   :  { %v5888_v40 = vmul.f32 1.442695, %v5846_v54 }
 0xdb1   :  { %v5902_v38 = vpop.xlane.xlu0 %5901 }
 0xdb2   :  { %9871 = vpow2.f32 %v5888_v40 }
 0xdb3   :  { %9873 = vrcp.f32 %v5902_v38 }
 0xdb4   :  { %v12086_v51 = vpop.eup %9869 }
 0xdb5   :  { %v5809_v28 = vpop.xlane.xlu0 %5808  ;;  %v5948_v60 = vsel %vm1936_vm6, %v12086_v51, 0.0 }
 0xdb6   :  { %v5845_v12 = vsub.f32 %v11971_v49, %v5809_v28  ;;  %5949 = vadd.xlane.f32.xlu0 %v5948_v60  ;;  %v4773_v60 = vpack.c.bf16 %v4749_v20, %v4749_v20 }
 0xdb8   :  { %v5886_v56 = vmul.f32 1.442695, %v5845_v12 }
 0xdb9   :  { %v5908_v43 = vpop.xlane.xlu1 %5907  ;;  %v5818_v29 = vpop.xlane.xlu0 %5817 }
 0xdba   :  { %9875 = vpow2.f32 %v5886_v56  ;;  %v5848_v23 = vsub.f32 %v11979_v45, %v5818_v29  ;;  %v4614_v45 = vadd.f32 %v11653_v35, %v11795_v58 }
 0xdbb   :  { %9877 = vrcp.f32 %v5908_v43 }
 0xdbc   :  { %v12094_v2 = vpop.eup %9871  ;;  %v5892_v57 = vmul.f32 1.442695, %v5848_v23  ;;  %v4751_v23 = vmul.f32 %v10534_v47, %v11813_v13  ;;  %v4752_v13 = vmul.f32 %v10522_v8, %v4614_v45 }
 0xdbd   :  { %v9874_v54 = vpop.eup %9873  ;;  %v5815_v40 = vpop.xlane.xlu1 %5814  ;;  %v5954_v49 = vsel %vm1936_vm6, %v12094_v2, 0.0 }
 0xdbe   :  { %v5905_v38 = vpop.xlane.xlu0 %5904  ;;  %v5996_v28 = vmul.f32 %v9874_v54, %v11965_v32  ;;  %9879 = vpow2.f32 %v5892_v57  ;;  %v5847_v12 = vsub.f32 %v11989_v41, %v5815_v40  ;;  %5955 = vadd.xlane.f32.xlu1 %v5954_v49  ;;  %v6094_v32 = vsel %vm2228_vm5, %v4773_v60, 0 }
 0xdbf   :  { %9881 = vrcp.f32 %v5905_v38  ;;  %v4775_v49 = vpack.c.bf16 %v4751_v23, %v4751_v23  ;;  %v4617_v23 = vadd.f32 %v11662_v52, %v11795_v58 }
 0xdc0   :  { %v5890_v56 = vmul.f32 1.442695, %v5847_v12  ;;  %v6020_v62 = vpack.c.bf16 %v5996_v28, %v5996_v28 }
 0xdc1   :  { %v5824_v29 = vpop.xlane.xlu1 %5823 }
 0xdc2   :  { %v5914_v43 = vpop.xlane.xlu0 %5913  ;;  %9883 = vpow2.f32 %v5890_v56  ;;  %9197 = vmatmul.mubr.msk.bf16.vlgmr.msra.gmra.mrb[168].mxu0 %vm1936_vm6, %v6020_v62  ;;  %v5850_v20 = vsub.f32 %v12001_v33, %v5824_v29 }
 0xdc3   :  { %9201 = vmatpush3.bf16.msra.mxu0 %v6094_v32  ;;  %9885 = vrcp.f32 %v5914_v43  ;;  %9202 = vmatprep.mubr.msk.bf16.mxu0 %vm10184_vm3, %v12699_v42  ;;  %v4776_v43 = vpack.c.bf16 %v4752_v13, %v4752_v13 }
 0xdc4   :  { %v12109_v41 = vpop.eup %9875  ;;  %v5896_v35 = vmul.f32 1.442695, %v5850_v20  ;;  %9218 = vmatprep.subr.bf16.mxu0 %v12699_v42 }
 0xdc5   :  { %v9878_v57 = vpop.eup %9877  ;;  %v5911_v40 = vpop.xlane.xlu1 %5910  ;;  %v5951_v38 = vsel %vm1936_vm6, %v12109_v41, 0.0 }
 0xdc6   :  { %v5821_v54 = vpop.xlane.xlu0 %5820  ;;  %v5998_v33 = vmul.f32 %v9878_v57, %v11984_v3  ;;  %9887 = vpow2.f32 %v5896_v35  ;;  %5952 = vadd.xlane.f32.xlu0 %v5951_v38  ;;  %v6232_v38 = vsel %vm2228_vm5, %v4776_v43, 0 }
 0xdc7   :  { %v5849_v60 = vsub.f32 %v12013_v25, %v5821_v54  ;;  %9889 = vrcp.f32 %v5911_v40  ;;  %v6186_v25 = vsel %vm2228_vm5, %v4775_v49, 0  ;;  %v4754_v40 = vmul.f32 %v10522_v8, %v4617_v23 }
 0xdc8   :  { %v12117_v28 = vpop.eup %9879  ;;  %v6022_v56 = vpack.c.bf16 %v5998_v33, %v5998_v33 }
 0xdc9   :  { %v5894_v12 = vmul.f32 1.442695, %v5849_v60  ;;  %v9882_v62 = vpop.eup %9881  ;;  %v5920_v29 = vpop.xlane.xlu1 %5919  ;;  %v5960_v32 = vsel %vm1936_vm6, %v12117_v28, 0.0  ;;  %v4778_v43 = vpack.c.bf16 %v4754_v40, %v4754_v40 }
 0xdca   :  { %v5997_v3 = vmul.f32 %v9882_v62, %v11995_v21  ;;  %9209 = vmatmul.mubr.msk.bf16.vlgmr.msra.gmra.mrb[180].mxu1 %vm1936_vm6, %v6022_v56  ;;  %5961 = vadd.xlane.f32.xlu0 %v5960_v32  ;;  %v5917_v35 = vpop.xlane.xlu0 %5916  ;;  %v4753_v21 = vmul.f32 %v10534_v47, %v4614_v45 }
 0xdcb   :  { %9891 = vpow2.f32 %v5894_v12  ;;  %9213 = vmatpush3.bf16.msra.mxu1 %v6186_v25  ;;  %9214 = vmatprep.mubr.msk.bf16.mxu1 %vm10184_vm3, %v12699_v42 }
 0xdcc   :  { %v12128_v20 = vpop.eup %9883  ;;  %9893 = vrcp.f32 %v5920_v29  ;;  %v6021_v57 = vpack.c.bf16 %v5997_v3, %v5997_v3  ;;  %9230 = vmatprep.subr.bf16.mxu1 %v12699_v42  ;;  %v4777_v56 = vpack.c.bf16 %v4753_v21, %v4753_v21  ;;  %v4755_v21 = vmul.f32 %v10534_v47, %v4617_v23 }
 0xdcd   :  { %v9886_v52 = vpop.eup %9885  ;;  %v5827_v13 = vpop.xlane.xlu1 %5826  ;;  %v5957_v54 = vsel %vm1936_vm6, %v12128_v20, 0.0  ;;  %9895 = vrcp.f32 %v5917_v35 }
 0xdce   :  { %9203 = vmatmul.mubr.msk.bf16.vlgmr.msra.gmra.mrb[168].mxu0 %vm1936_vm6, %v6021_v57  ;;  %v5851_v49 = vsub.f32 %v12034_v36, %v5827_v13  ;;  %5958 = vadd.xlane.f32.xlu1 %v5957_v54  ;;  %v6000_v45 = vmul.f32 %v9886_v52, %v12008_v11  ;;  %v6278_v11 = vsel %vm2228_vm5, %v4777_v56, 0  ;;  %v4622_v13 = vadd.f32 %v11706_v16, %v11795_v58 }
 0xdcf   :  { %9219 = vmatpush3.bf16.msra.mxu0 %v6232_v38  ;;  %9220 = vmatprep.mubr.msk.bf16.mxu0 %vm10184_vm3, %v12699_v42  ;;  %v4779_v16 = vpack.c.bf16 %v4755_v21, %v4755_v21  ;;  %v4625_v56 = vadd.f32 %v11711_v50, %v11795_v58 }
 0xdd0   :  { %v12140_v33 = vpop.eup %9887  ;;  %v5898_v60 = vmul.f32 1.442695, %v5851_v49  ;;  %9224 = vmatprep.subr.bf16.mxu0 %v12699_v42  ;;  %v6024_v35 = vpack.c.bf16 %v6000_v45, %v6000_v45  ;;  %v4756_v40 = vmul.f32 %v10522_v8, %v4622_v13 }
 0xdd1   :  { %v9890_v12 = vpop.eup %9889  ;;  %v5966_v62 = vsel %vm1936_vm6, %v12140_v33, 0.0  ;;  %v5923_v29 = vpop.xlane.xlu1 %5922  ;;  %v4758_v50 = vmul.f32 %v10522_v8, %v4625_v56 }
 0xdd2   :  { %v5999_v36 = vmul.f32 %v9890_v12, %v12019_v46  ;;  %9897 = vpow2.f32 %v5898_v60  ;;  %5967 = vadd.xlane.f32.xlu1 %v5966_v62  ;;  %v5926_v3 = vpop.xlane.xlu0 %5925  ;;  %v6324_v46 = vsel %vm2228_vm5, %v4778_v43, 0  ;;  %v4780_v12 = vpack.c.bf16 %v4756_v40, %v4756_v40 }
 0xdd3   :  { %9899 = vrcp.f32 %v5923_v29  ;;  %v6370_v62 = vsel %vm2228_vm5, %v4779_v16, 0  ;;  %v4630_v16 = vadd.f32 %v11703_v24, %v11795_v58  ;;  %v4759_v40 = vmul.f32 %v10534_v47, %v4625_v56 }
 0xdd4   :  { %v6023_v25 = vpack.c.bf16 %v5999_v36, %v5999_v36  ;;  %9901 = vrcp.f32 %v5926_v3  ;;  %v4757_v3 = vmul.f32 %v10534_v47, %v4622_v13 }
 0xdd5   :  { %v12147_v32 = vpop.eup %9891 }
 0xdd6   :  { %v5963_v57 = vsel %vm1936_vm6, %v12147_v32, 0.0  ;;  %v9894_v52 = vpop.eup %9893  ;;  %9215 = vmatmul.mubr.msk.bf16.vlgmr.msra.gmra.mrb[180].mxu1 %vm1936_vm6, %v6023_v25  ;;  %9221 = vmatmul.mubr.msk.bf16.vlgmr.msra.gmra.mrb[172].mxu0 %vm1936_vm6, %v6024_v35  ;;  %v5929_v43 = vpop.xlane.xlu0 %5928  ;;  %v6416_v25 = vsel %vm2228_vm5, %v4780_v12, 0 }
 0xdd7   :  { %9225 = vmatpush3.bf16.msra.mxu0 %v6278_v11  ;;  %9231 = vmatpush3.bf16.msra.mxu1 %v6324_v46  ;;  %v6002_v54 = vmul.f32 %v9894_v52, %v12029_v0  ;;  %v9896_v23 = vpop.eup %9895  ;;  %v4782_v52 = vpack.c.bf16 %v4758_v50, %v4758_v50 }
 0xdd8   :  { %5964 = vadd.xlane.f32.xlu0 %v5963_v57  ;;  %9232 = vmatprep.mubr.msk.bf16.mxu1 %vm10184_vm3, %v12699_v42  ;;  %v6001_v49 = vmul.f32 %v9896_v23, %v12026_v48  ;;  %v4781_v57 = vpack.c.bf16 %v4757_v3, %v4757_v3  ;;  %v4761_v3 = vmul.f32 %v10534_v47, %v4630_v16 }
 0xdd9   :  { %9236 = vmatprep.subr.bf16.mxu1 %v12699_v42  ;;  %9226 = vmatprep.mubr.msk.bf16.mxu0 %vm10184_vm3, %v12699_v42  ;;  %v6026_v45 = vpack.c.bf16 %v6002_v54, %v6002_v54 }
 0xdda   :  { %9242 = vmatprep.subr.bf16.mxu0 %v12699_v42  ;;  %v5932_v0 = vpop.xlane.xlu1 %5931  ;;  %v6025_v36 = vpack.c.bf16 %v6001_v49, %v6001_v49 }
 0xddb   :  { %9903 = vrcp.f32 %v5932_v0  ;;  %v4760_v0 = vmul.f32 %v10522_v8, %v4630_v16 }
 0xddc   :  { %v12166_v38 = vpop.eup %9897  ;;  %9905 = vrcp.f32 %v5929_v43 }
 0xddd   :  { %v5969_v60 = vsel %vm1936_vm6, %v12166_v38, 0.0  ;;  %v9900_v48 = vpop.eup %9899 }
 0xdde   :  { %9233 = vmatmul.mubr.msk.bf16.vlgmr.msra.gmra.mrb[184].mxu1 %vm1936_vm6, %v6026_v45  ;;  %5970 = vadd.xlane.f32.xlu1 %v5969_v60  ;;  %v9902_v29 = vpop.eup %9901  ;;  %v6003_v35 = vmul.f32 %v9900_v48, %v12043_v63  ;;  %v5935_v21 = vpop.xlane.xlu1 %5934  ;;  %v6462_v63 = vsel %vm2228_vm5, %v4781_v57, 0  ;;  %v4783_v45 = vpack.c.bf16 %v4759_v40, %v4759_v40 }
 0xddf   :  { %9237 = vmatpush3.bf16.msra.mxu1 %v6370_v62  ;;  %9238 = vmatprep.mubr.msk.bf16.mxu1 %vm10184_vm3, %v12699_v42  ;;  %v6004_v11 = vmul.f32 %v9902_v29, %v12046_v17  ;;  %9907 = vrcp.f32 %v5935_v21  ;;  %v6508_v17 = vsel %vm2228_vm5, %v4782_v52, 0  ;;  %v4784_v62 = vpack.c.bf16 %v4760_v0, %v4760_v0 }
 0xde0   :  { %9254 = vmatprep.subr.bf16.mxu1 %v12699_v42  ;;  %v6027_v46 = vpack.c.bf16 %v6003_v35, %v6003_v35  ;;  %v6554_v48 = vsel %vm2228_vm5, %v4783_v45, 0 }
 0xde1   :  { %v6028_v54 = vpack.c.bf16 %v6004_v11, %v6004_v11  ;;  %v4785_v11 = vpack.c.bf16 %v4761_v3, %v4761_v3 }
 0xde2   :  { %9227 = vmatmul.mubr.msk.bf16.vlgmr.msra.gmra.mrb[172].mxu0 %vm1936_vm6, %v6025_v36  ;;  %v5938_v13 = vpop.xlane.xlu0 %5937 }
 0xde3   :  { %9243 = vmatpush3.bf16.msra.mxu0 %v6416_v25  ;;  %9244 = vmatprep.mubr.msk.bf16.mxu0 %vm10184_vm3, %v12699_v42  ;;  %9909 = vrcp.f32 %v5938_v13 }
 0xde4   :  { %9248 = vmatprep.subr.bf16.mxu0 %v12699_v42 }
 0xde5   :  { %v9904_v23 = vpop.eup %9903 }
 0xde6   :  { %v6006_v49 = vmul.f32 %v9904_v23, %v12058_v1  ;;  %v9906_v24 = vpop.eup %9905  ;;  %v4633_v1 = vadd.f32 %v11708_v15, %v11795_v58  ;;  %v5941_v36 = vpop.xlane.xlu0 %5940  ;;  %v6600_v15 = vsel %vm2228_vm5, %v4784_v62, 0  ;;  %v4638_v23 = vadd.f32 %v11768_v6, %v11795_v58 }
 0xde7   :  { %v6005_v60 = vmul.f32 %v9906_v24, %v12053_v26 }
 0xde8   :  { %v6030_v56 = vpack.c.bf16 %v6006_v49, %v6006_v49  ;;  %v4762_v50 = vmul.f32 %v10522_v8, %v4633_v1 }
 0xde9   :  { %v9908_v43 = vpop.eup %9907  ;;  %v6029_v29 = vpack.c.bf16 %v6005_v60, %v6005_v60 }
 0xdea   :  { %9239 = vmatmul.mubr.msk.bf16.vlgmr.msra.gmra.mrb[184].mxu1 %vm1936_vm6, %v6027_v46  ;;  %9245 = vmatmul.mubr.msk.bf16.vlgmr.msra.gmra.mrb[176].mxu0 %vm1936_vm6, %v6028_v54  ;;  %v5944_v12 = vpop.xlane.xlu1 %5943  ;;  %v6007_v25 = vmul.f32 %v9908_v43, %v12063_v4  ;;  %v4786_v57 = vpack.c.bf16 %v4762_v50, %v4762_v50  ;;  %v4763_v54 = vmul.f32 %v10534_v47, %v4633_v1  ;;  %v6646_v4 = vsel %vm2228_vm5, %v4785_v11, 0 }
 0xdeb   :  { %9249 = vmatpush3.bf16.msra.mxu0 %v6462_v63  ;;  %9255 = vmatpush3.bf16.msra.mxu1 %v6508_v17  ;;  %9911 = vrcp.f32 %v5944_v12  ;;  %v4764_v63 = vmul.f32 %v10522_v8, %v4638_v23  ;;  %v4765_v43 = vmul.f32 %v10534_v47, %v4638_v23  ;;  %v4646_v11 = vadd.f32 %v11765_v59, %v11795_v58 }
 0xdec   :  { %9256 = vmatprep.mubr.msk.bf16.mxu1 %vm10184_vm3, %v12699_v42  ;;  %9260 = vmatprep.subr.bf16.mxu1 %v12699_v42  ;;  %9913 = vrcp.f32 %v5941_v36  ;;  %v6031_v21 = vpack.c.bf16 %v6007_v25, %v6007_v25  ;;  %v4787_v6 = vpack.c.bf16 %v4763_v54, %v4763_v54 }
 0xded   :  { %9250 = vmatprep.mubr.msk.bf16.mxu0 %vm10184_vm3, %v12699_v42  ;;  %9266 = vmatprep.subr.bf16.mxu0 %v12699_v42  ;;  %v9910_v26 = vpop.eup %9909  ;;  %v4788_v24 = vpack.c.bf16 %v4764_v63, %v4764_v63 }
 0xdee   :  { %v6008_v35 = vmul.f32 %v9910_v26, %v12068_v34  ;;  %v5947_v52 = vpop.xlane.xlu1 %5946  ;;  %v6692_v34 = vsel %vm2228_vm5, %v4786_v57, 0  ;;  %v6738_v0 = vsel %vm2228_vm5, %v4787_v6, 0  ;;  %v4769_v6 = vmul.f32 %v10534_v47, %v4646_v11 }
 0xdef   :  { %9915 = vrcp.f32 %v5947_v52 }
 0xdf0   :  { %v6032_v13 = vpack.c.bf16 %v6008_v35, %v6008_v35 }
 0xdf2   :  { %9257 = vmatmul.mubr.msk.bf16.vlgmr.msra.gmra.mrb[188].mxu1 %vm1936_vm6, %v6030_v56 }
 0xdf3   :  { %9261 = vmatpush3.bf16.msra.mxu1 %v6554_v48  ;;  %9262 = vmatprep.mubr.msk.bf16.mxu1 %vm10184_vm3, %v12699_v42 }
 0xdf4   :  { %9278 = vmatprep.subr.bf16.mxu1 %v12699_v42 }
 0xdf5   :  { %v9912_v46 = vpop.eup %9911 }
 0xdf6   :  { %9251 = vmatmul.mubr.msk.bf16.vlgmr.msra.gmra.mrb[176].mxu0 %vm1936_vm6, %v6029_v29  ;;  %v6010_v16 = vmul.f32 %v9912_v46, %v12076_v10  ;;  %v9914_v40 = vpop.eup %9913  ;;  %v4641_v10 = vadd.f32 %v11777_v27, %v11795_v58  ;;  %v4789_v29 = vpack.c.bf16 %v4765_v43, %v4765_v43  ;;  %v9622_v43 = vld [vmem:[#allocation7 + $0x48] sm:$0xff]  }
 0xdf7   :  { %9267 = vmatpush3.bf16.msra.mxu0 %v6600_v15  ;;  %9268 = vmatprep.mubr.msk.bf16.mxu0 %vm10184_vm3, %v12699_v42  ;;  %v6009_v17 = vmul.f32 %v9914_v40, %v12072_v44  ;;  %v6784_v44 = vsel %vm2228_vm5, %v4788_v24, 0 }
 0xdf8   :  { %9272 = vmatprep.subr.bf16.mxu0 %v12699_v42  ;;  %v6034_v49 = vpack.c.bf16 %v6010_v16, %v6010_v16  ;;  %v4766_v12 = vmul.f32 %v10522_v8, %v4641_v10  ;;  %v4767_v50 = vmul.f32 %v10534_v47, %v4641_v10  ;;  %v6830_v15 = vsel %vm2228_vm5, %v4789_v29, 0  ;;  %v9623_v29 = vld [vmem:[#allocation7 + $0x50] sm:$0xff]  }
 0xdf9   :  { %v6033_v45 = vpack.c.bf16 %v6009_v17, %v6009_v17  ;;  %v9916_v60 = vpop.eup %9915 }
 0xdfa   :  { %v6011_v27 = vmul.f32 %v9916_v60, %v12080_v37  ;;  %v4790_v56 = vpack.c.bf16 %v4766_v12, %v4766_v12  ;;  %v9621_v60 = vld [vmem:[#allocation7 + $0x40] sm:$0xff]  }
 0xdfc   :  { %v6035_v62 = vpack.c.bf16 %v6011_v27, %v6011_v27  ;;  %v6876_v1 = vsel %vm2228_vm5, %v4790_v56, 0 }
 0xdfe   :  { %9263 = vmatmul.mubr.msk.bf16.vlgmr.msra.gmra.mrb[188].mxu1 %vm1936_vm6, %v6031_v21  ;;  %9269 = vmatmul.mubr.msk.bf16.vlgmr.msra.gmra.mrb[180].mxu0 %vm1936_vm6, %v6032_v13  ;;  %v4768_v13 = vmul.f32 %v10522_v8, %v4646_v11 }
 0xdff   :  { %9273 = vmatpush3.bf16.msra.mxu0 %v6646_v4  ;;  %9279 = vmatpush3.bf16.msra.mxu1 %v6692_v34 }
 0xe00   :  { %9280 = vmatprep.mubr.msk.bf16.mxu1 %vm10184_vm3, %v12699_v42  ;;  %9284 = vmatprep.subr.bf16.mxu1 %v12699_v42  ;;  %v4792_v23 = vpack.c.bf16 %v4768_v13, %v4768_v13 }
 0xe01   :  { %9274 = vmatprep.mubr.msk.bf16.mxu0 %vm10184_vm3, %v12699_v42  ;;  %9290 = vmatprep.subr.bf16.mxu0 %v12699_v42 }
 0xe02   :  { %v6968_v17 = vsel %vm2228_vm5, %v4792_v23, 0 }
 0xe06   :  { %9281 = vmatmul.mubr.msk.bf16.vlgmr.msra.gmra.mrb[192].mxu1 %vm1936_vm6, %v6034_v49  ;;  %v4793_v49 = vpack.c.bf16 %v4769_v6, %v4769_v6 }
 0xe07   :  { %9285 = vmatpush3.bf16.msra.mxu1 %v6738_v0  ;;  %9286 = vmatprep.mubr.msk.bf16.mxu1 %vm10184_vm3, %v12699_v42 }
 0xe08   :  { %9302 = vmatprep.subr.bf16.mxu1 %v12699_v42 }
 0xe0a   :  { %9275 = vmatmul.mubr.msk.bf16.vlgmr.msra.gmra.mrb[180].mxu0 %vm1936_vm6, %v6033_v45 }
 0xe0b   :  { %9291 = vmatpush3.bf16.msra.mxu0 %v6784_v44  ;;  %9292 = vmatprep.mubr.msk.bf16.mxu0 %vm10184_vm3, %v12699_v42 }
 0xe0c   :  { %9296 = vmatprep.subr.bf16.mxu0 %v12699_v42 }
 0xe12   :  { %9287 = vmatmul.mubr.msk.bf16.vlgmr.msra.gmra.mrb[192].mxu1 %vm1936_vm6, %v6035_v62 }
 0xe13   :  { %9303 = vmatpush3.bf16.msra.mxu1 %v6876_v1  ;;  %9304 = vmatprep.mubr.msk.bf16.mxu1 %vm10184_vm3, %v12699_v42 }
 0xe14   :  { %9308 = vmatprep.subr.bf16.mxu1 %v12699_v42 }
 0xe43   :  { %v5950_v48 = vpop.xlane.xlu0 %5949 }
 0xe44   :  { %9917 = vrcp.f32 %v5950_v48 }
 0xe4b   :  { %v5956_v36 = vpop.xlane.xlu1 %5955 }
 0xe4c   :  { %9919 = vrcp.f32 %v5956_v36 }
 0xe4e   :  { %v9918_v37 = vpop.eup %9917 }
 0xe4f   :  { %v6012_v26 = vmul.f32 %v9918_v37, %v12086_v51  ;;  %v4791_v51 = vpack.c.bf16 %v4767_v50, %v4767_v50  ;;  %v9627_v50 = vld [vmem:[#allocation7 + $0x70] sm:$0xff]  }
 0xe51   :  { %v6036_v3 = vpack.c.bf16 %v6012_v26, %v6012_v26  ;;  %v6922_v46 = vsel %vm2228_vm5, %v4791_v51, 0  ;;  %v9624_v26 = vld [vmem:[#allocation7 + $0x58] sm:$0xff]  }
 0xe53   :  { %9293 = vmatmul.mubr.msk.bf16.vlgmr.msra.gmra.mrb[184].mxu0 %vm1936_vm6, %v6036_v3  ;;  %v5953_v25 = vpop.xlane.xlu0 %5952  ;;  %v9625_v3 = vld [vmem:[#allocation7 + $0x60] sm:$0xff]  }
 0xe54   :  { %9297 = vmatpush3.bf16.msra.mxu0 %v6830_v15  ;;  %9921 = vrcp.f32 %v5953_v25  ;;  %9298 = vmatprep.mubr.msk.bf16.mxu0 %vm10184_vm3, %v12699_v42 }
 0xe55   :  { %9314 = vmatprep.subr.bf16.mxu0 %v12699_v42 }
 0xe56   :  { %v9920_v35 = vpop.eup %9919 }
 0xe57   :  { %v6014_v57 = vmul.f32 %v9920_v35, %v12094_v2  ;;  %v5962_v52 = vpop.xlane.xlu0 %5961  ;;  %v4649_v2 = vadd.f32 %v11774_v30, %v11795_v58 }
 0xe58   :  { %9923 = vrcp.f32 %v5962_v52 }
 0xe59   :  { %v6038_v21 = vpack.c.bf16 %v6014_v57, %v6014_v57  ;;  %v4770_v63 = vmul.f32 %v10522_v8, %v4649_v2  ;;  %v4771_v12 = vmul.f32 %v10534_v47, %v4649_v2 }
 0xe5b   :  { %9305 = vmatmul.mubr.msk.bf16.vlgmr.msra.gmra.mrb[196].mxu1 %vm1936_vm6, %v6038_v21  ;;  %v5959_v54 = vpop.xlane.xlu1 %5958  ;;  %v4794_v24 = vpack.c.bf16 %v4770_v63, %v4770_v63  ;;  %v4795_v47 = vpack.c.bf16 %v4771_v12, %v4771_v12 }
 0xe5c   :  { %9309 = vmatpush3.bf16.msra.mxu1 %v6922_v46  ;;  %9925 = vrcp.f32 %v5959_v54  ;;  %9310 = vmatprep.mubr.msk.bf16.mxu1 %vm10184_vm3, %v12699_v42 }
 0xe5d   :  { %9326 = vmatprep.subr.bf16.mxu1 %v12699_v42  ;;  %v7060_v44 = vsel %vm2228_vm5, %v4794_v24, 0  ;;  %v7106_v48 = vsel %vm2228_vm5, %v4795_v47, 0 }
 0xe5e   :  { %v9922_v59 = vpop.eup %9921 }
 0xe5f   :  { %v6013_v4 = vmul.f32 %v9922_v59, %v12109_v41  ;;  %v5968_v34 = vpop.xlane.xlu1 %5967 }
 0xe60   :  { %9927 = vrcp.f32 %v5968_v34 }
 0xe61   :  { %v6037_v16 = vpack.c.bf16 %v6013_v4, %v6013_v4 }
 0xe62   :  { %v9924_v40 = vpop.eup %9923 }
 0xe63   :  { %9299 = vmatmul.mubr.msk.bf16.vlgmr.msra.gmra.mrb[184].mxu0 %vm1936_vm6, %v6037_v16  ;;  %v6016_v30 = vmul.f32 %v9924_v40, %v12117_v28  ;;  %v7014_v28 = vsel %vm2228_vm5, %v4793_v49, 0 }
 0xe64   :  { %9315 = vmatpush3.bf16.msra.mxu0 %v6968_v17  ;;  %9316 = vmatprep.mubr.msk.bf16.mxu0 %vm10184_vm3, %v12699_v42 }
 0xe65   :  { %v5965_v58 = vpop.xlane.xlu0 %5964  ;;  %9320 = vmatprep.subr.bf16.mxu0 %v12699_v42  ;;  %v6040_v0 = vpack.c.bf16 %v6016_v30, %v6016_v30 }
 0xe66   :  { %v9926_v41 = vpop.eup %9925  ;;  %9929 = vrcp.f32 %v5965_v58 }
 0xe67   :  { %v6015_v10 = vmul.f32 %v9926_v41, %v12128_v20 }
 0xe69   :  { %v6039_v8 = vpack.c.bf16 %v6015_v10, %v6015_v10 }
 0xe6a   :  { %v9928_v45 = vpop.eup %9927 }
 0xe6b   :  { %9311 = vmatmul.mubr.msk.bf16.vlgmr.msra.gmra.mrb[196].mxu1 %vm1936_vm6, %v6039_v8  ;;  %9317 = vmatmul.mubr.msk.bf16.vlgmr.msra.gmra.mrb[188].mxu0 %vm1936_vm6, %v6040_v0  ;;  %v5971_v27 = vpop.xlane.xlu1 %5970  ;;  %v6018_v20 = vmul.f32 %v9928_v45, %v12140_v33 }
 0xe6c   :  { %9321 = vmatpush3.bf16.msra.mxu0 %v7014_v28  ;;  %9327 = vmatpush3.bf16.msra.mxu1 %v7060_v44  ;;  %9931 = vrcp.f32 %v5971_v27 }
 0xe6d   :  { %9328 = vmatprep.mubr.msk.bf16.mxu1 %vm10184_vm3, %v12699_v42  ;;  %9332 = vmatprep.subr.bf16.mxu1 %v12699_v42  ;;  %v6042_v1 = vpack.c.bf16 %v6018_v20, %v6018_v20 }
 0xe6e   :  { %9322 = vmatprep.mubr.msk.bf16.mxu0 %vm10184_vm3, %v12699_v42  ;;  %9338 = vmatprep.subr.bf16.mxu0 %v9621_v60 }
 0xe70   :  { %v9930_v56 = vpop.eup %9929 }
 0xe71   :  { %v6017_v62 = vmul.f32 %v9930_v56, %v12147_v32 }
 0xe73   :  { %9329 = vmatmul.mubr.msk.bf16.vlgmr.msra.gmra.mrb[200].mxu1 %vm1936_vm6, %v6042_v1  ;;  %v6041_v33 = vpack.c.bf16 %v6017_v62, %v6017_v62 }
 0xe74   :  { %9333 = vmatpush3.bf16.msra.mxu1 %v7106_v48  ;;  %9334 = vmatprep.mubr.msk.bf16.mxu1 %vm10184_vm3, %v12699_v42  ;;  %v9626_v42 = vld [vmem:[#allocation7 + $0x68] sm:$0xff]  }
 0xe76   :  { %v9932_v36 = vpop.eup %9931 }
 0xe77   :  { %9323 = vmatmul.mubr.msk.bf16.vlgmr.msra.gmra.mrb[188].mxu0 %vm1936_vm6, %v6041_v33  ;;  %v6019_v37 = vmul.f32 %v9932_v36, %v12166_v38  ;;  %v9628_v38 = vld [vmem:[#allocation7 + $0x78] sm:$0xff]  }
 0xe78   :  { %9339 = vmatpush3.bf16.msra.mxu0 %v9621_v60 }
 0xe79   :  { %9340 = vmatprep.subr.bf16.mxu0 %v9622_v43  ;;  %v6043_v32 = vpack.c.bf16 %v6019_v37, %v6019_v37 }
 0xe7c   :  { %9341 = vmatpush3.bf16.msra.mxu0 %v9622_v43 }
 0xe7d   :  { %9342 = vmatprep.subr.bf16.mxu0 %v9623_v29 }
 0xe7f   :  { %9335 = vmatmul.mubr.msk.bf16.vlgmr.msra.gmra.mrb[200].mxu1 %vm1936_vm6, %v6043_v32 }
 0xe80   :  { %9343 = vmatpush3.bf16.msra.mxu0 %v9623_v29 }
 0xe81   :  { %9344 = vmatprep.subr.bf16.mxu0 %v9624_v26 }
 0xe84   :  { %9345 = vmatpush3.bf16.msra.mxu0 %v9624_v26 }
 0xe85   :  { %9346 = vmatprep.subr.bf16.mxu0 %v9625_v3 }
 0xe88   :  { %9347 = vmatpush3.bf16.msra.mxu0 %v9625_v3 }
 0xe89   :  { %9348 = vmatprep.subr.bf16.mxu0 %v9626_v42 }
 0xe8c   :  { %9349 = vmatpush3.bf16.msra.mxu0 %v9626_v42 }
 0xe8d   :  { %9350 = vmatprep.subr.bf16.mxu0 %v9627_v50 }
 0xe90   :  { %9351 = vmatpush3.bf16.msra.mxu0 %v9627_v50 }
 0xe91   :  { %9352 = vmatprep.subr.bf16.mxu0 %v9628_v38 }
 0xe94   :  { %9353 = vmatpush3.bf16.msra.mxu0 %v9628_v38 }
 0xea1   :  { %v6130_v15 = vpop.f32.mrb[168].mxu0 }
 0xea2   :  { %v9204_v25 = vpop.f32.mrb[169].mxu0 }
 0xea3   :  { %v6133_v35 = vpop.f32.mrb[170].mxu0 }
 0xea4   :  { %v9205_v11 = vpop.f32.mrb[171].mxu0  ;;  %v12305_v35 = vld [vmem:[%s12671_s8 + $0x8] sm:$0x7f] }
 0xea5   :  { %v7186_v11 = vrot.slane %v12305_v35, %v10514_v31 }
 0xea9   :  { %v6222_v51 = vpop.f32.mrb[180].mxu1 }
 0xeaa   :  { %v7160_v57 = vpack.c.bf16 %v6222_v51, %v6130_v15  ;;  %v9216_v52 = vpop.f32.mrb[181].mxu1 }
 0xeab   :  { %v6225_v21 = vpop.f32.mrb[182].mxu1 }
 0xeac   :  { %v9217_v13 = vpop.f32.mrb[183].mxu1  ;;  %9354 = vmatprep.mubr.bf16.mxu0 %v7160_v57 }
 0xeb5   :  { %v6314_v46 = vpop.f32.mrb[172].mxu0 }
 0xeb6   :  { %v9228_v54 = vpop.f32.mrb[173].mxu0 }
 0xeb7   :  { %v6317_v59 = vpop.f32.mrb[174].mxu0 }
 0xeb8   :  { %v9229_v23 = vpop.f32.mrb[175].mxu0 }
 0xebd   :  { %v6406_v2 = vpop.f32.mrb[184].mxu1 }
 0xebe   :  { %v7161_v4 = vpack.c.bf16 %v6406_v2, %v6314_v46  ;;  %v9240_v34 = vpop.f32.mrb[185].mxu1 }
 0xebf   :  { %v6409_v16 = vpop.f32.mrb[186].mxu1 }
 0xec0   :  { %v9241_v40 = vpop.f32.mrb[187].mxu1  ;;  %9355 = vmatmul.mubr.bf16.vlgmr.msra.gmra.mrb[192].mxu0 %v7161_v4 }
 0xec9   :  { %v6498_v6 = vpop.f32.mrb[176].mxu0 }
 0xeca   :  { %v9252_v63 = vpop.f32.mrb[177].mxu0 }
 0xecb   :  { %v6501_v17 = vpop.f32.mrb[178].mxu0 }
 0xecc   :  { %v9253_v30 = vpop.f32.mrb[179].mxu0 }
 0xed1   :  { %v6590_v58 = vpop.f32.mrb[188].mxu1 }
 0xed2   :  { %v7162_v41 = vpack.c.bf16 %v6590_v58, %v6498_v6  ;;  %v9264_v49 = vpop.f32.mrb[189].mxu1 }
 0xed3   :  { %v6593_v24 = vpop.f32.mrb[190].mxu1 }
 0xed4   :  { %v9265_v10 = vpop.f32.mrb[191].mxu1  ;;  %9358 = vmatprep.mubr.bf16.mxu0 %v7162_v41 }
 0xedd   :  { %v6682_v8 = vpop.f32.mrb[180].mxu0 }
 0xede   :  { %v9276_v0 = vpop.f32.mrb[181].mxu0 }
 0xedf   :  { %v6685_v45 = vpop.f32.mrb[182].mxu0 }
 0xee0   :  { %v9277_v60 = vpop.f32.mrb[183].mxu0 }
 0xee5   :  { %v6774_v12 = vpop.f32.mrb[192].mxu1 }
 0xee6   :  { %v7163_v28 = vpack.c.bf16 %v6774_v12, %v6682_v8  ;;  %v9288_v44 = vpop.f32.mrb[193].mxu1 }
 0xee7   :  { %v6777_v27 = vpop.f32.mrb[194].mxu1 }
 0xee8   :  { %v9289_v20 = vpop.f32.mrb[195].mxu1  ;;  %9359 = vmatmul.mubr.bf16.gmra.mrb[196].mxu0 %v7163_v28 }
 0xf36   :  { %v6866_v47 = vpop.f32.mrb[184].mxu0 }
 0xf37   :  { %v9300_v56 = vpop.f32.mrb[185].mxu0 }
 0xf38   :  { %v6869_v62 = vpop.f32.mrb[186].mxu0 }
 0xf39   :  { %v9301_v1 = vpop.f32.mrb[187].mxu0 }
 0xf3e   :  { %v6958_v48 = vpop.f32.mrb[196].mxu1 }
 0xf3f   :  { %v7164_v33 = vpack.c.bf16 %v6958_v48, %v6866_v47  ;;  %v9312_v43 = vpop.f32.mrb[197].mxu1  ;;  %v12707_v48 = vld [vmem:[#allocation16_spill] sm:$0xff] }
 0xf40   :  { %v6961_v36 = vpop.f32.mrb[198].mxu1 }
 0xf41   :  { %v9313_v37 = vpop.f32.mrb[199].mxu1  ;;  %9362 = vmatprep.mubr.bf16.mxu0 %v7164_v33  ;;  %v12708_v36 = vld [vmem:[#allocation20_spill] sm:$0xff] }
 0xf4a   :  { %v7050_v29 = vpop.f32.mrb[188].mxu0 }
 0xf4b   :  { %v9324_v32 = vpop.f32.mrb[189].mxu0 }
 0xf4c   :  { %v7053_v26 = vpop.f32.mrb[190].mxu0 }
 0xf4d   :  { %v9325_v3 = vpop.f32.mrb[191].mxu0 }
 0xf52   :  { %v7142_v42 = vpop.f32.mrb[200].mxu1 }
 0xf53   :  { %v7165_v50 = vpack.c.bf16 %v7142_v42, %v7050_v29  ;;  %v9336_v38 = vpop.f32.mrb[201].mxu1 }
 0xf54   :  { %v7145_v15 = vpop.f32.mrb[202].mxu1  ;;  %v9629_v38 = vld [vmem:[#allocation8 + $0x40] sm:$0xff]  }
 0xf55   :  { %v9337_v25 = vpop.f32.mrb[203].mxu1  ;;  %9363 = vmatmul.mubr.bf16.gmra.mrb[200].mxu0 %v7165_v50  ;;  %9366 = vmatprep.subr.bf16.mxu1 %v9629_v38  ;;  %v9630_v15 = vld [vmem:[#allocation8 + $0x48] sm:$0xff]  }
 0xf56   :  { %9367 = vmatpush3.bf16.msra.mxu1 %v9629_v38 }
 0xf57   :  { %9368 = vmatprep.subr.bf16.mxu1 %v9630_v15 }
 0xf5a   :  { %9369 = vmatpush3.bf16.msra.mxu1 %v9630_v15 }
 0xf93   :  { %v9356_v51 = vpop.f32.mrb[192].mxu0 }
 0xf94   :  { %v7269_v57 = vpop.f32.mrb[193].mxu0  ;;  %v7278_v46 = vadd.f32 %v9356_v51, %v7186_v11 }
 0xf95   :  { %v7270_v52 = vadd.f32 %v7269_v57, %v7186_v11  ;;  %v9357_v21 = vpop.f32.mrb[194].mxu0 }
 0xf96   :  { %v7272_v13 = vpop.f32.mrb[195].mxu0  ;;  %v7281_v23 = vadd.f32 %v9357_v21, %v7186_v11  ;;  %v7318_v4 = vadd.f32 %v7278_v46, %v11572_v53 }
 0xf97   :  { %v7316_v54 = vadd.f32 %v7270_v52, %v11559_v18  ;;  %v7273_v59 = vadd.f32 %v7272_v13, %v7186_v11 }
 0xf98   :  { %v7319_v34 = vadd.f32 %v7281_v23, %v11575_v61 }
 0xf99   :  { %v7317_v2 = vadd.f32 %v7273_v59, %v11562_v7  ;;  %7328 = vadd.xlane.f32.xlu0 %v7316_v54 }
 0xf9b   :  { %7330 = vadd.xlane.f32.xlu1 %v7317_v2 }
 0xf9d   :  { %7332 = vadd.xlane.f32.xlu0 %v7318_v4 }
 0xf9f   :  { %7334 = vadd.xlane.f32.xlu1 %v7319_v34 }
 0xfbb   :  { %v9360_v31 = vpop.f32.mrb[196].mxu0 }
 0xfbc   :  { %v7285_v16 = vpop.f32.mrb[197].mxu0  ;;  %v7294_v17 = vadd.f32 %v9360_v31, %v7186_v11 }
 0xfbd   :  { %v7286_v40 = vadd.f32 %v7285_v16, %v7186_v11  ;;  %v9361_v6 = vpop.f32.mrb[198].mxu0 }
 0xfbe   :  { %v7288_v63 = vpop.f32.mrb[199].mxu0  ;;  %v7297_v58 = vadd.f32 %v9361_v6, %v7186_v11  ;;  %v12321_v53 = vadd.f32 %v7294_v17, %v11597_v5  ;;  %v9631_v6 = vld [vmem:[#allocation8 + $0x50] sm:$0xff]  }
 0xfbf   :  { %v12314_v18 = vadd.f32 %v7286_v40, %v11586_v9  ;;  %v7289_v30 = vadd.f32 %v7288_v63, %v7186_v11  ;;  %9370 = vmatprep.subr.bf16.mxu1 %v9631_v6 }
 0xfc0   :  { %v12325_v61 = vadd.f32 %v7297_v58, %v11600_v22  ;;  %9371 = vmatpush3.bf16.msra.mxu1 %v9631_v6  ;;  %v9633_v58 = vld [vmem:[#allocation8 + $0x60] sm:$0xff]  }
 0xfc1   :  { %v12317_v7 = vadd.f32 %v7289_v30, %v11589_v39  ;;  %7336 = vadd.xlane.f32.xlu0 %v12314_v18 }
 0xfc3   :  { %7338 = vadd.xlane.f32.xlu1 %v12317_v7 }
 0xfc5   :  { %7340 = vadd.xlane.f32.xlu0 %v12321_v53 }
 0xfc7   :  { %7342 = vadd.xlane.f32.xlu1 %v12325_v61 }
0x1026   :  { %v7329_v9 = vpop.xlane.xlu0 %7328 }
0x1027   :  { %v7352_v41 = vmul.f32 0.03125, %v7329_v9 }
0x1028   :  { %v7331_v49 = vpop.xlane.xlu1 %7330  ;;  %v9364_v24 = vpop.f32.mrb[200].mxu0 }
0x1029   :  { %v7301_v39 = vpop.f32.mrb[201].mxu0  ;;  %v7353_v10 = vmul.f32 0.03125, %v7331_v49  ;;  %v7364_v5 = vsub.f32 %v7316_v54, %v7352_v41  ;;  %v7310_v12 = vadd.f32 %v9364_v24, %v7186_v11 }
0x102a   :  { %v7302_v8 = vadd.f32 %v7301_v39, %v7186_v11  ;;  %v7333_v0 = vpop.xlane.xlu0 %7332  ;;  %v9365_v45 = vpop.f32.mrb[202].mxu0 }
0x102b   :  { %v7304_v60 = vpop.f32.mrb[203].mxu0  ;;  %v7354_v22 = vmul.f32 0.03125, %v7333_v0  ;;  %v7365_v20 = vsub.f32 %v7317_v2, %v7353_v10  ;;  %v7313_v47 = vadd.f32 %v9365_v45, %v7186_v11  ;;  %v12337_v1 = vmul.f32 %v10327_v19, %v7364_v5 }
0x102c   :  { %v12330_v28 = vadd.f32 %v7302_v8, %v11611_v14  ;;  %v7305_v44 = vadd.f32 %v7304_v60, %v7186_v11  ;;  %v7335_v27 = vpop.xlane.xlu1 %7334  ;;  %v12340_v33 = vadd.f32 %v7310_v12, %v12707_v48 }
0x102d   :  { %v7355_v62 = vmul.f32 0.03125, %v7335_v27  ;;  %v7366_v43 = vsub.f32 %v7318_v4, %v7354_v22  ;;  %v12344_v14 = vmul.f32 %v10327_v19, %v7365_v20  ;;  %v12347_v37 = vadd.f32 %v7313_v47, %v12708_v36 }
0x102e   :  { %v12333_v56 = vadd.f32 %v7305_v44, %v11614_v55  ;;  %7344 = vadd.xlane.f32.xlu0 %v12330_v28  ;;  %v7388_v32 = vmul.f32 %v12337_v1, %v12337_v1 }
0x102f   :  { %v7367_v55 = vsub.f32 %v7319_v34, %v7355_v62  ;;  %v12351_v29 = vmul.f32 %v10327_v19, %v7366_v43  ;;  %v7389_v3 = vmul.f32 %v12344_v14, %v12344_v14 }
0x1030   :  { %7346 = vadd.xlane.f32.xlu1 %v12333_v56 }
0x1031   :  { %v12357_v26 = vmul.f32 %v10327_v19, %v7367_v55  ;;  %v7390_v42 = vmul.f32 %v12351_v29, %v12351_v29 }
0x1032   :  { %7348 = vadd.xlane.f32.xlu0 %v12340_v33 }
0x1033   :  { %v7391_v50 = vmul.f32 %v12357_v26, %v12357_v26 }
0x1034   :  { %7350 = vadd.xlane.f32.xlu1 %v12347_v37 }
0x1036   :  { %7400 = vadd.xlane.f32.xlu0 %v7388_v32 }
0x1038   :  { %7402 = vadd.xlane.f32.xlu1 %v7389_v3 }
0x103a   :  { %7404 = vadd.xlane.f32.xlu0 %v7390_v42 }
0x103c   :  { %7406 = vadd.xlane.f32.xlu1 %v7391_v50 }
0x104e   :  { %v7337_v25 = vpop.xlane.xlu0 %7336 }
0x104f   :  { %v7356_v11 = vmul.f32 0.03125, %v7337_v25  ;;  %v12709_v25 = vld [vmem:[#allocation18_spill] sm:$0xff] }
0x1050   :  { %v7339_v51 = vpop.xlane.xlu1 %7338 }
0x1051   :  { %v7368_v57 = vsub.f32 %v12314_v18, %v7356_v11  ;;  %v7357_v52 = vmul.f32 0.03125, %v7339_v51  ;;  %v9632_v18 = vld [vmem:[#allocation8 + $0x58] sm:$0xff]   ;;  %v12415_v11 = vrot.slane %v12305_v35, %v12709_v25 }
0x1052   :  { %v7341_v21 = vpop.xlane.xlu0 %7340  ;;  %9372 = vmatprep.subr.bf16.mxu1 %v9632_v18 }
0x1053   :  { %v12367_v13 = vmul.f32 %v10327_v19, %v7368_v57  ;;  %v7369_v46 = vsub.f32 %v12317_v7, %v7357_v52  ;;  %v7358_v54 = vmul.f32 0.03125, %v7341_v21  ;;  %9373 = vmatpush3.bf16.msra.mxu1 %v9632_v18  ;;  %v9634_v7 = vld [vmem:[#allocation8 + $0x68] sm:$0xff]  }
0x1054   :  { %v7343_v59 = vpop.xlane.xlu1 %7342  ;;  %9374 = vmatprep.subr.bf16.mxu1 %v9633_v58 }
0x1055   :  { %v12371_v23 = vmul.f32 %v10327_v19, %v7369_v46  ;;  %v7370_v2 = vsub.f32 %v12321_v53, %v7358_v54  ;;  %v7359_v4 = vmul.f32 0.03125, %v7343_v59  ;;  %v7392_v34 = vmul.f32 %v12367_v13, %v12367_v13  ;;  %v9635_v53 = vld [vmem:[#allocation8 + $0x70] sm:$0xff]   ;;  %v12710_v54 = vld [vmem:[#allocation19_spill] sm:$0xff] }
0x1056   :  { %v12422_v59 = vrot.slane %v12305_v35, %v12710_v54 }
0x1057   :  { %v12377_v31 = vmul.f32 %v10327_v19, %v7370_v2  ;;  %v7371_v16 = vsub.f32 %v12325_v61, %v7359_v4  ;;  %7408 = vadd.xlane.f32.xlu0 %v7392_v34  ;;  %v7393_v40 = vmul.f32 %v12371_v23, %v12371_v23  ;;  %9375 = vmatpush3.bf16.msra.mxu1 %v9633_v58  ;;  %v9636_v61 = vld [vmem:[#allocation8 + $0x78] sm:$0xff]  }
0x1058   :  { %9376 = vmatprep.subr.bf16.mxu1 %v9634_v7 }
0x1059   :  { %v12383_v63 = vmul.f32 %v10327_v19, %v7371_v16  ;;  %7410 = vadd.xlane.f32.xlu1 %v7393_v40  ;;  %v7394_v17 = vmul.f32 %v12377_v31, %v12377_v31 }
0x105b   :  { %7412 = vadd.xlane.f32.xlu0 %v7394_v17  ;;  %v7395_v30 = vmul.f32 %v12383_v63, %v12383_v63  ;;  %9377 = vmatpush3.bf16.msra.mxu1 %v9634_v7 }
0x105c   :  { %9378 = vmatprep.subr.bf16.mxu1 %v9635_v53 }
0x105d   :  { %7414 = vadd.xlane.f32.xlu1 %v7395_v30 }
0x105f   :  { %9379 = vmatpush3.bf16.msra.mxu1 %v9635_v53 }
0x1060   :  { %9380 = vmatprep.subr.bf16.mxu1 %v9636_v61 }
0x1063   :  { %9381 = vmatpush3.bf16.msra.mxu1 %v9636_v61 }
0x10bb   :  { %v7345_v9 = vpop.xlane.xlu0 %7344 }
0x10bc   :  { %v7360_v41 = vmul.f32 0.03125, %v7345_v9 }
0x10bd   :  { %v7347_v49 = vpop.xlane.xlu1 %7346 }
0x10be   :  { %v7372_v24 = vsub.f32 %v12330_v28, %v7360_v41  ;;  %v7361_v39 = vmul.f32 0.03125, %v7347_v49 }
0x10bf   :  { %v7349_v10 = vpop.xlane.xlu0 %7348 }
0x10c0   :  { %v12391_v8 = vmul.f32 %v10327_v19, %v7372_v24  ;;  %v7373_v0 = vsub.f32 %v12333_v56, %v7361_v39  ;;  %v7362_v45 = vmul.f32 0.03125, %v7349_v10 }
0x10c1   :  { %v7351_v5 = vpop.xlane.xlu1 %7350 }
0x10c2   :  { %v12395_v60 = vmul.f32 %v10327_v19, %v7373_v0  ;;  %v7374_v12 = vsub.f32 %v12340_v33, %v7362_v45  ;;  %v7363_v22 = vmul.f32 0.03125, %v7351_v5  ;;  %v7396_v44 = vmul.f32 %v12391_v8, %v12391_v8 }
0x10c3   :  { %v7401_v27 = vpop.xlane.xlu0 %7400 }
0x10c4   :  { %v12401_v28 = vmul.f32 %v10327_v19, %v7374_v12  ;;  %v7375_v20 = vsub.f32 %v12347_v37, %v7363_v22  ;;  %v7424_v47 = vmul.f32 0.03125, %v7401_v27  ;;  %7416 = vadd.xlane.f32.xlu0 %v7396_v44  ;;  %v7397_v56 = vmul.f32 %v12395_v60, %v12395_v60 }
0x10c5   :  { %v7403_v62 = vpop.xlane.xlu1 %7402 }
0x10c6   :  { %v12407_v48 = vmul.f32 %v10327_v19, %v7375_v20  ;;  %v7436_v33 = vadd.f32 1e-12, %v7424_v47  ;;  %v7425_v43 = vmul.f32 0.03125, %v7403_v62  ;;  %7418 = vadd.xlane.f32.xlu1 %v7397_v56  ;;  %v7398_v36 = vmul.f32 %v12401_v28, %v12401_v28 }
0x10c7   :  { %v7405_v55 = vpop.xlane.xlu0 %7404 }
0x10c8   :  { %9933 = vrsqrt.f32 %v7436_v33  ;;  %v7437_v32 = vadd.f32 1e-12, %v7425_v43  ;;  %v7426_v3 = vmul.f32 0.03125, %v7405_v55  ;;  %7420 = vadd.xlane.f32.xlu0 %v7398_v36  ;;  %v7399_v37 = vmul.f32 %v12407_v48, %v12407_v48 }
0x10c9   :  { %v7407_v42 = vpop.xlane.xlu1 %7406 }
0x10ca   :  { %9935 = vrsqrt.f32 %v7437_v32  ;;  %v7438_v50 = vadd.f32 1e-12, %v7426_v3  ;;  %v7427_v38 = vmul.f32 0.03125, %v7407_v42  ;;  %7422 = vadd.xlane.f32.xlu1 %v7399_v37  ;;  %v9637_v37 = vld [vmem:[#allocation10 + $0x40] sm:$0xff]   ;;  %v9639_v42 = vld [vmem:[#allocation10 + $0x50] sm:$0xff]  }
0x10cb   :  { %9394 = vmatprep.subr.bf16.mxu0 %v9637_v37 }
0x10cc   :  { %9937 = vrsqrt.f32 %v7438_v50  ;;  %v7439_v15 = vadd.f32 1e-12, %v7427_v38  ;;  %9395 = vmatpush3.bf16.msra.mxu0 %v9637_v37  ;;  %v9640_v50 = vld [vmem:[#allocation10 + $0x58] sm:$0xff]   ;;  %v9641_v38 = vld [vmem:[#allocation10 + $0x60] sm:$0xff]  }
0x10ce   :  { %9939 = vrsqrt.f32 %v7439_v15 }
0x10d2   :  { %v9934_v51 = vpop.eup %9933 }
0x10d3   :  { %v7460_v57 = vmul.f32 %v9934_v51, %v12337_v1 }
0x10d4   :  { %v9936_v52 = vpop.eup %9935 }
0x10d5   :  { %v7461_v21 = vmul.f32 %v9936_v52, %v12344_v14  ;;  %v7476_v46 = vmul.f32 %v12415_v11, %v7460_v57  ;;  %v9642_v57 = vld [vmem:[#allocation10 + $0x68] sm:$0xff]  }
0x10d6   :  { %v9938_v2 = vpop.eup %9937 }
0x10d7   :  { %v7462_v4 = vmul.f32 %v9938_v2, %v12351_v29  ;;  %v7477_v34 = vmul.f32 %v12415_v11, %v7461_v21  ;;  %v12428_v6 = vadd.f32 %v12422_v59, %v7476_v46 }
0x10d8   :  { %v9940_v16 = vpop.eup %9939 }
0x10d9   :  { %v7463_v40 = vmul.f32 %v9940_v16, %v12357_v26  ;;  %v12431_v1 = vadd.f32 %v12422_v59, %v7477_v34  ;;  %v7478_v14 = vmul.f32 %v12415_v11, %v7462_v4  ;;  %v9643_v34 = vld [vmem:[#allocation10 + $0x70] sm:$0xff]  }
0x10db   :  { %v7504_v17 = vpack.c.bf16 %v12431_v1, %v12428_v6  ;;  %v7479_v18 = vmul.f32 %v12415_v11, %v7463_v40  ;;  %v12438_v29 = vadd.f32 %v12422_v59, %v7478_v14 }
0x10dd   :  { %9382 = vmatprep.mubr.bf16.mxu1 %v7504_v17  ;;  %v12441_v30 = vadd.f32 %v12422_v59, %v7479_v18  ;;  %v9644_v17 = vld [vmem:[#allocation10 + $0x78] sm:$0xff]  }
0x10df   :  { %v7505_v26 = vpack.c.bf16 %v12441_v30, %v12438_v29 }
0x10e1   :  { %9383 = vmatmul.mubr.bf16.vlgmr.msra.gmra.mrb[204].mxu1 %v7505_v26 }
0x10e4   :  { %v7409_v58 = vpop.xlane.xlu0 %7408 }
0x10e5   :  { %v7428_v7 = vmul.f32 0.03125, %v7409_v58 }
0x10e6   :  { %v7411_v53 = vpop.xlane.xlu1 %7410 }
0x10e7   :  { %v7440_v61 = vadd.f32 1e-12, %v7428_v7  ;;  %v7429_v9 = vmul.f32 0.03125, %v7411_v53 }
0x10e8   :  { %v7413_v41 = vpop.xlane.xlu0 %7412 }
0x10e9   :  { %9941 = vrsqrt.f32 %v7440_v61  ;;  %v7441_v49 = vadd.f32 1e-12, %v7429_v9  ;;  %v7430_v24 = vmul.f32 0.03125, %v7413_v41 }
0x10ea   :  { %v7415_v39 = vpop.xlane.xlu1 %7414 }
0x10eb   :  { %9943 = vrsqrt.f32 %v7441_v49  ;;  %v7442_v10 = vadd.f32 1e-12, %v7430_v24  ;;  %v7431_v0 = vmul.f32 0.03125, %v7415_v39 }
0x10ed   :  { %9945 = vrsqrt.f32 %v7442_v10  ;;  %v7443_v45 = vadd.f32 1e-12, %v7431_v0 }
0x10ef   :  { %9947 = vrsqrt.f32 %v7443_v45 }
0x10f3   :  { %v9942_v5 = vpop.eup %9941 }
0x10f4   :  { %v7464_v12 = vmul.f32 %v9942_v5, %v12367_v13 }
0x10f5   :  { %v9944_v22 = vpop.eup %9943 }
0x10f6   :  { %v7465_v44 = vmul.f32 %v9944_v22, %v12371_v23  ;;  %v7480_v27 = vmul.f32 %v12415_v11, %v7464_v12  ;;  %v12711_v12 = vld [vmem:[#allocation17_spill] sm:$0xff] }
0x10f7   :  { %v9946_v20 = vpop.eup %9945 }
0x10f8   :  { %v7481_v47 = vmul.f32 %v12415_v11, %v7465_v44  ;;  %v7466_v56 = vmul.f32 %v9946_v20, %v12377_v31  ;;  %v12451_v33 = vadd.f32 %v12422_v59, %v7480_v27 }
0x10f9   :  { %v9948_v62 = vpop.eup %9947 }
0x10fa   :  { %v12454_v43 = vadd.f32 %v12422_v59, %v7481_v47  ;;  %v7467_v36 = vmul.f32 %v9948_v62, %v12383_v63  ;;  %v7482_v13 = vmul.f32 %v12415_v11, %v7466_v56  ;;  %v9638_v63 = vld [vmem:[#allocation10 + $0x48] sm:$0xff]  }
0x10fb   :  { %9396 = vmatprep.subr.bf16.mxu0 %v9638_v63 }
0x10fc   :  { %v7506_v23 = vpack.c.bf16 %v12454_v43, %v12451_v33  ;;  %v7483_v55 = vmul.f32 %v12415_v11, %v7467_v36  ;;  %v12462_v32 = vadd.f32 %v12422_v59, %v7482_v13  ;;  %9397 = vmatpush3.bf16.msra.mxu0 %v9638_v63 }
0x10fd   :  { %9398 = vmatprep.subr.bf16.mxu0 %v9639_v42 }
0x10fe   :  { %9386 = vmatprep.mubr.bf16.mxu1 %v7506_v23  ;;  %v12465_v31 = vadd.f32 %v12422_v59, %v7483_v55 }
0x1100   :  { %v7507_v3 = vpack.c.bf16 %v12465_v31, %v12462_v32  ;;  %9399 = vmatpush3.bf16.msra.mxu0 %v9639_v42 }
0x1101   :  { %9400 = vmatprep.subr.bf16.mxu0 %v9640_v50 }
0x1102   :  { %9387 = vmatmul.mubr.bf16.gmra.mrb[208].mxu1 %v7507_v3 }
0x1104   :  { %9401 = vmatpush3.bf16.msra.mxu0 %v9640_v50 }
0x1105   :  { %9402 = vmatprep.subr.bf16.mxu0 %v9641_v38 }
0x1108   :  { %9403 = vmatpush3.bf16.msra.mxu0 %v9641_v38 }
0x1109   :  { %9404 = vmatprep.subr.bf16.mxu0 %v9642_v57 }
0x110c   :  { %9405 = vmatpush3.bf16.msra.mxu0 %v9642_v57 }
0x110d   :  { %9406 = vmatprep.subr.bf16.mxu0 %v9643_v34 }
0x1110   :  { %9407 = vmatpush3.bf16.msra.mxu0 %v9643_v34 }
0x1111   :  { %9408 = vmatprep.subr.bf16.mxu0 %v9644_v17 }
0x1114   :  { %9409 = vmatpush3.bf16.msra.mxu0 %v9644_v17 }
0x1151   :  { %v7417_v15 = vpop.xlane.xlu0 %7416 }
0x1152   :  { %v7432_v25 = vmul.f32 0.03125, %v7417_v15 }
0x1153   :  { %v7419_v51 = vpop.xlane.xlu1 %7418 }
0x1154   :  { %v7444_v52 = vadd.f32 1e-12, %v7432_v25  ;;  %v7433_v21 = vmul.f32 0.03125, %v7419_v51 }
0x1155   :  { %v7421_v46 = vpop.xlane.xlu0 %7420 }
0x1156   :  { %9949 = vrsqrt.f32 %v7444_v52  ;;  %v7445_v54 = vadd.f32 1e-12, %v7433_v21  ;;  %v7434_v2 = vmul.f32 0.03125, %v7421_v46 }
0x1157   :  { %v7423_v4 = vpop.xlane.xlu1 %7422 }
0x1158   :  { %9951 = vrsqrt.f32 %v7445_v54  ;;  %v7446_v16 = vadd.f32 1e-12, %v7434_v2  ;;  %v7435_v40 = vmul.f32 0.03125, %v7423_v4 }
0x115a   :  { %9953 = vrsqrt.f32 %v7446_v16  ;;  %v7447_v14 = vadd.f32 1e-12, %v7435_v40 }
0x115c   :  { %9955 = vrsqrt.f32 %v7447_v14 }
0x1160   :  { %v9950_v18 = vpop.eup %9949 }
0x1161   :  { %v7468_v26 = vmul.f32 %v9950_v18, %v12391_v8 }
0x1162   :  { %v9952_v58 = vpop.eup %9951 }
0x1163   :  { %v7469_v7 = vmul.f32 %v9952_v58, %v12395_v60  ;;  %v7484_v53 = vmul.f32 %v12415_v11, %v7468_v26 }
0x1164   :  { %v9954_v61 = vpop.eup %9953 }
0x1165   :  { %v7485_v9 = vmul.f32 %v12415_v11, %v7469_v7  ;;  %v7470_v41 = vmul.f32 %v9954_v61, %v12401_v28  ;;  %v12475_v24 = vadd.f32 %v12422_v59, %v7484_v53 }
0x1166   :  { %v9956_v49 = vpop.eup %9955 }
0x1167   :  { %v12478_v39 = vadd.f32 %v12422_v59, %v7485_v9  ;;  %v7471_v8 = vmul.f32 %v9956_v49, %v12407_v48  ;;  %v7486_v10 = vmul.f32 %v12415_v11, %v7470_v41  ;;  %v12712_v48 = vsub.s32 3, %v12711_v12 }
0x1169   :  { %v7508_v60 = vpack.c.bf16 %v12478_v39, %v12475_v24  ;;  %v7487_v0 = vmul.f32 %v12415_v11, %v7471_v8  ;;  %v12486_v45 = vadd.f32 %v12422_v59, %v7486_v10  ;;  %v12496_v22 = vrot.slane %v12305_v35, %v12712_v48 }
0x116b   :  { %9390 = vmatprep.mubr.bf16.mxu1 %v7508_v60  ;;  %v12489_v28 = vadd.f32 %v12422_v59, %v7487_v0 }
0x116d   :  { %v7509_v5 = vpack.c.bf16 %v12489_v28, %v12486_v45 }
0x116f   :  { %9391 = vmatmul.mubr.bf16.gmra.mrb[212].mxu1 %v7509_v5 }
0x11b4   :  { %v9384_v44 = vpop.f32.mrb[204].mxu1 }
0x11b5   :  { %v7622_v27 = vadd.f32 %v9384_v44, %v12496_v22  ;;  %v7613_v11 = vpop.f32.mrb[205].mxu1 }
0x11b6   :  { %v7614_v20 = vadd.f32 %v7613_v11, %v12496_v22  ;;  %v9385_v47 = vpop.f32.mrb[206].mxu1 }
0x11b7   :  { %v7674_v56 = vmul.f32 0.044715, %v7622_v27  ;;  %v7625_v59 = vadd.f32 %v9385_v47, %v12496_v22  ;;  %v7616_v62 = vpop.f32.mrb[207].mxu1  ;;  %v7662_v26 = vmul.f32 0.5, %v7622_v27 }
0x11b8   :  { %v7672_v36 = vmul.f32 0.044715, %v7614_v20  ;;  %v7617_v13 = vadd.f32 %v7616_v62, %v12496_v22  ;;  %v7660_v53 = vmul.f32 0.5, %v7614_v20 }
0x11b9   :  { %v7686_v23 = vmul.f32 %v7674_v56, %v7622_v27  ;;  %v7675_v55 = vmul.f32 0.044715, %v7625_v59  ;;  %v7663_v58 = vmul.f32 0.5, %v7625_v59 }
0x11ba   :  { %v7684_v3 = vmul.f32 %v7672_v36, %v7614_v20  ;;  %v7673_v37 = vmul.f32 0.044715, %v7617_v13  ;;  %v7661_v61 = vmul.f32 0.5, %v7617_v13 }
0x11bb   :  { %v7698_v63 = vmul.f32 %v7686_v23, %v7622_v27  ;;  %v7687_v42 = vmul.f32 %v7675_v55, %v7625_v59 }
0x11bc   :  { %v7696_v50 = vmul.f32 %v7684_v3, %v7614_v20  ;;  %v7685_v38 = vmul.f32 %v7673_v37, %v7617_v13 }
0x11bd   :  { %v7710_v15 = vadd.f32 %v7698_v63, %v7622_v27  ;;  %v7699_v25 = vmul.f32 %v7687_v42, %v7625_v59 }
0x11be   :  { %v7697_v51 = vmul.f32 %v7685_v38, %v7617_v13  ;;  %v7708_v57 = vadd.f32 %v7696_v50, %v7614_v20 }
0x11bf   :  { %v7722_v52 = vmul.f32 0.7978846, %v7710_v15  ;;  %v7711_v21 = vadd.f32 %v7699_v25, %v7625_v59 }
0x11c0   :  { %v7709_v46 = vadd.f32 %v7697_v51, %v7617_v13  ;;  %v7720_v54 = vmul.f32 0.7978846, %v7708_v57 }
0x11c1   :  { %9957 = vtanh.f32 %v7722_v52  ;;  %v7723_v2 = vmul.f32 0.7978846, %v7711_v21 }
0x11c2   :  { %v7721_v4 = vmul.f32 0.7978846, %v7709_v46  ;;  %9959 = vtanh.f32 %v7720_v54 }
0x11c3   :  { %9961 = vtanh.f32 %v7723_v2 }
0x11c4   :  { %9963 = vtanh.f32 %v7721_v4 }
0x11cb   :  { %v9958_v34 = vpop.eup %9957 }
0x11cc   :  { %v9960_v16 = vpop.eup %9959  ;;  %v7746_v40 = vadd.f32 1.0, %v9958_v34 }
0x11cd   :  { %v9962_v14 = vpop.eup %9961  ;;  %v7744_v17 = vadd.f32 1.0, %v9960_v16 }
0x11ce   :  { %v9964_v18 = vpop.eup %9963  ;;  %v7747_v7 = vadd.f32 1.0, %v9962_v14  ;;  %v7758_v41 = vmul.f32 %v7746_v40, %v7662_v26 }
0x11cf   :  { %v7745_v9 = vadd.f32 1.0, %v9964_v18  ;;  %v7756_v8 = vmul.f32 %v7744_v17, %v7660_v53 }
0x11d0   :  { %v7759_v49 = vmul.f32 %v7747_v7, %v7663_v58 }
0x11d1   :  { %v7757_v10 = vmul.f32 %v7745_v9, %v7661_v61 }
0x11d2   :  { %v7769_v60 = vpack.c.bf16 %v7759_v49, %v7758_v41 }
0x11d3   :  { %v7768_v0 = vpack.c.bf16 %v7757_v10, %v7756_v8 }
0x11d5   :  { %v9388_v5 = vpop.f32.mrb[208].mxu1  ;;  %9410 = vmatprep.mubr.bf16.mxu0 %v7768_v0 }
0x11d6   :  { %v7638_v48 = vadd.f32 %v9388_v5, %v12496_v22  ;;  %v7629_v44 = vpop.f32.mrb[209].mxu1  ;;  %9411 = vmatmul.mubr.bf16.vlgmr.msra.gmra.mrb[204].mxu0 %v7769_v60 }
0x11d7   :  { %v7630_v11 = vadd.f32 %v7629_v44, %v12496_v22  ;;  %v9389_v27 = vpop.f32.mrb[210].mxu1 }
0x11d8   :  { %v7678_v47 = vmul.f32 0.044715, %v7638_v48  ;;  %v7641_v20 = vadd.f32 %v9389_v27, %v12496_v22  ;;  %v7632_v56 = vpop.f32.mrb[211].mxu1  ;;  %v7666_v17 = vmul.f32 0.5, %v7638_v48 }
0x11d9   :  { %v7676_v59 = vmul.f32 0.044715, %v7630_v11  ;;  %v7633_v62 = vadd.f32 %v7632_v56, %v12496_v22  ;;  %v7664_v58 = vmul.f32 0.5, %v7630_v11 }
0x11da   :  { %v7690_v36 = vmul.f32 %v7678_v47, %v7638_v48  ;;  %v7679_v13 = vmul.f32 0.044715, %v7641_v20  ;;  %v7667_v18 = vmul.f32 0.5, %v7641_v20 }
0x11db   :  { %v7688_v23 = vmul.f32 %v7676_v59, %v7630_v11  ;;  %v7677_v55 = vmul.f32 0.044715, %v7633_v62  ;;  %v7665_v7 = vmul.f32 0.5, %v7633_v62 }
0x11dc   :  { %v7702_v3 = vmul.f32 %v7690_v36, %v7638_v48  ;;  %v7691_v37 = vmul.f32 %v7679_v13, %v7641_v20 }
0x11dd   :  { %v7700_v63 = vmul.f32 %v7688_v23, %v7630_v11  ;;  %v7689_v42 = vmul.f32 %v7677_v55, %v7633_v62 }
0x11de   :  { %v7703_v50 = vmul.f32 %v7691_v37, %v7641_v20  ;;  %v7714_v38 = vadd.f32 %v7702_v3, %v7638_v48 }
0x11df   :  { %v7701_v15 = vmul.f32 %v7689_v42, %v7633_v62  ;;  %v7712_v25 = vadd.f32 %v7700_v63, %v7630_v11 }
0x11e0   :  { %v7715_v51 = vadd.f32 %v7703_v50, %v7641_v20  ;;  %v7726_v57 = vmul.f32 0.7978846, %v7714_v38 }
0x11e1   :  { %v7713_v52 = vadd.f32 %v7701_v15, %v7633_v62  ;;  %v7724_v21 = vmul.f32 0.7978846, %v7712_v25 }
0x11e2   :  { %v7727_v46 = vmul.f32 0.7978846, %v7715_v51  ;;  %9965 = vtanh.f32 %v7726_v57 }
0x11e3   :  { %v7725_v54 = vmul.f32 0.7978846, %v7713_v52  ;;  %9967 = vtanh.f32 %v7724_v21 }
0x11e4   :  { %9969 = vtanh.f32 %v7727_v46 }
0x11e5   :  { %9971 = vtanh.f32 %v7725_v54 }
0x11ec   :  { %v9966_v2 = vpop.eup %9965 }
0x11ed   :  { %v9968_v4 = vpop.eup %9967  ;;  %v7750_v34 = vadd.f32 1.0, %v9966_v2 }
0x11ee   :  { %v9970_v16 = vpop.eup %9969  ;;  %v7748_v40 = vadd.f32 1.0, %v9968_v4 }
0x11ef   :  { %v9972_v14 = vpop.eup %9971  ;;  %v7751_v26 = vadd.f32 1.0, %v9970_v16  ;;  %v7762_v61 = vmul.f32 %v7750_v34, %v7666_v17 }
0x11f0   :  { %v7749_v53 = vadd.f32 1.0, %v9972_v14  ;;  %v7760_v41 = vmul.f32 %v7748_v40, %v7664_v58 }
0x11f1   :  { %v7763_v9 = vmul.f32 %v7751_v26, %v7667_v18 }
0x11f2   :  { %v7761_v49 = vmul.f32 %v7749_v53, %v7665_v7 }
0x11f3   :  { %v7771_v8 = vpack.c.bf16 %v7763_v9, %v7762_v61 }
0x11f4   :  { %v7770_v10 = vpack.c.bf16 %v7761_v49, %v7760_v41  ;;  %v12713_v49 = vsub.s32 4, %v12711_v12 }
0x11f6   :  { %9414 = vmatprep.mubr.bf16.mxu0 %v7770_v10 }
0x11f7   :  { %9415 = vmatmul.mubr.bf16.gmra.mrb[208].mxu0 %v7771_v8  ;;  %v7794_v8 = vrot.slane %v12305_v35, %v12713_v49 }
0x1242   :  { %v9392_v60 = vpop.f32.mrb[212].mxu1 }
0x1243   :  { %v7654_v0 = vadd.f32 %v9392_v60, %v12496_v22  ;;  %v7645_v5 = vpop.f32.mrb[213].mxu1 }
0x1244   :  { %v7646_v44 = vadd.f32 %v7645_v5, %v12496_v22  ;;  %v9393_v48 = vpop.f32.mrb[214].mxu1 }
0x1245   :  { %v7682_v27 = vmul.f32 0.044715, %v7654_v0  ;;  %v7657_v11 = vadd.f32 %v9393_v48, %v12496_v22  ;;  %v7648_v47 = vpop.f32.mrb[215].mxu1  ;;  %v7670_v16 = vmul.f32 0.5, %v7654_v0 }
0x1246   :  { %v7680_v20 = vmul.f32 0.044715, %v7646_v44  ;;  %v7649_v56 = vadd.f32 %v7648_v47, %v12496_v22  ;;  %v7668_v17 = vmul.f32 0.5, %v7646_v44 }
0x1247   :  { %v7694_v59 = vmul.f32 %v7682_v27, %v7654_v0  ;;  %v7683_v62 = vmul.f32 0.044715, %v7657_v11  ;;  %v7671_v40 = vmul.f32 0.5, %v7657_v11 }
0x1248   :  { %v7692_v36 = vmul.f32 %v7680_v20, %v7646_v44  ;;  %v7681_v13 = vmul.f32 0.044715, %v7649_v56  ;;  %v7669_v18 = vmul.f32 0.5, %v7649_v56 }
0x1249   :  { %v7706_v23 = vmul.f32 %v7694_v59, %v7654_v0  ;;  %v7695_v55 = vmul.f32 %v7683_v62, %v7657_v11 }
0x124a   :  { %v7704_v3 = vmul.f32 %v7692_v36, %v7646_v44  ;;  %v7693_v37 = vmul.f32 %v7681_v13, %v7649_v56 }
0x124b   :  { %v7707_v63 = vmul.f32 %v7695_v55, %v7657_v11  ;;  %v7718_v42 = vadd.f32 %v7706_v23, %v7654_v0 }
0x124c   :  { %v7705_v50 = vmul.f32 %v7693_v37, %v7649_v56  ;;  %v7716_v38 = vadd.f32 %v7704_v3, %v7646_v44 }
0x124d   :  { %v7719_v15 = vadd.f32 %v7707_v63, %v7657_v11  ;;  %v7730_v25 = vmul.f32 0.7978846, %v7718_v42 }
0x124e   :  { %v7717_v51 = vadd.f32 %v7705_v50, %v7649_v56  ;;  %v7728_v57 = vmul.f32 0.7978846, %v7716_v38 }
0x124f   :  { %v7731_v52 = vmul.f32 0.7978846, %v7719_v15  ;;  %9973 = vtanh.f32 %v7730_v25 }
0x1250   :  { %v7729_v21 = vmul.f32 0.7978846, %v7717_v51  ;;  %9975 = vtanh.f32 %v7728_v57 }
0x1251   :  { %9977 = vtanh.f32 %v7731_v52 }
0x1252   :  { %9979 = vtanh.f32 %v7729_v21 }
0x1259   :  { %v9974_v22 = vpop.eup %9973 }
0x125a   :  { %v9976_v46 = vpop.eup %9975  ;;  %v7754_v54 = vadd.f32 1.0, %v9974_v22 }
0x125b   :  { %v9978_v2 = vpop.eup %9977  ;;  %v7752_v4 = vadd.f32 1.0, %v9976_v46 }
0x125c   :  { %v9980_v34 = vpop.eup %9979  ;;  %v7755_v14 = vadd.f32 1.0, %v9978_v2  ;;  %v7766_v58 = vmul.f32 %v7754_v54, %v7670_v16 }
0x125d   :  { %v7753_v26 = vadd.f32 1.0, %v9980_v34  ;;  %v7764_v53 = vmul.f32 %v7752_v4, %v7668_v17 }
0x125e   :  { %v7767_v7 = vmul.f32 %v7755_v14, %v7671_v40 }
0x125f   :  { %v7765_v61 = vmul.f32 %v7753_v26, %v7669_v18 }
0x1260   :  { %v7773_v9 = vpack.c.bf16 %v7767_v7, %v7766_v58 }
0x1261   :  { %v7772_v41 = vpack.c.bf16 %v7765_v61, %v7764_v53 }
0x1263   :  { %9418 = vmatprep.mubr.bf16.mxu0 %v7772_v41 }
0x1264   :  { %9419 = vmatmul.mubr.bf16.gmra.mrb[212].mxu0 %v7773_v9 }
0x12a9   :  { %v9412_v10 = vpop.f32.mrb[204].mxu0 }
0x12aa   :  { %v7886_v60 = vadd.f32 %v9412_v10, %v7794_v8  ;;  %v7877_v0 = vpop.f32.mrb[205].mxu0 }
0x12ab   :  { %v9413_v5 = vpop.f32.mrb[206].mxu0  ;;  %v7878_v48 = vadd.f32 %v7877_v0, %v7794_v8 }
0x12ac   :  { %v7926_v44 = vadd.f32 %v7886_v60, %v12438_v29  ;;  %v7889_v27 = vadd.f32 %v9413_v5, %v7794_v8  ;;  %v7880_v11 = vpop.f32.mrb[207].mxu0 }
0x12ad   :  { %v7881_v20 = vadd.f32 %v7880_v11, %v7794_v8  ;;  %v7924_v56 = vadd.f32 %v7878_v48, %v12428_v6 }
0x12ae   :  { %v7927_v47 = vadd.f32 %v7889_v27, %v12441_v30  ;;  %7940 = vadd.xlane.f32.xlu0 %v7926_v44 }
0x12af   :  { %v7925_v59 = vadd.f32 %v7881_v20, %v12431_v1 }
0x12b0   :  { %7942 = vadd.xlane.f32.xlu1 %v7927_v47 }
0x12b2   :  { %7936 = vadd.xlane.f32.xlu0 %v7924_v56 }
0x12b4   :  { %7938 = vadd.xlane.f32.xlu1 %v7925_v59 }
0x12ca   :  { %v9416_v35 = vpop.f32.mrb[208].mxu0 }
0x12cb   :  { %v7902_v62 = vadd.f32 %v9416_v35, %v7794_v8  ;;  %v7893_v36 = vpop.f32.mrb[209].mxu0 }
0x12cc   :  { %v9417_v13 = vpop.f32.mrb[210].mxu0  ;;  %v7894_v23 = vadd.f32 %v7893_v36, %v7794_v8 }
0x12cd   :  { %v7930_v29 = vadd.f32 %v7902_v62, %v12462_v32  ;;  %v7905_v55 = vadd.f32 %v9417_v13, %v7794_v8  ;;  %v7896_v3 = vpop.f32.mrb[211].mxu0 }
0x12ce   :  { %v7897_v37 = vadd.f32 %v7896_v3, %v7794_v8  ;;  %v7928_v6 = vadd.f32 %v7894_v23, %v12451_v33 }
0x12cf   :  { %v7931_v30 = vadd.f32 %v7905_v55, %v12465_v31  ;;  %7948 = vadd.xlane.f32.xlu0 %v7930_v29 }
0x12d0   :  { %v7929_v1 = vadd.f32 %v7897_v37, %v12454_v43 }
0x12d1   :  { %7950 = vadd.xlane.f32.xlu1 %v7931_v30 }
0x12d3   :  { %7944 = vadd.xlane.f32.xlu0 %v7928_v6 }
0x12d5   :  { %7946 = vadd.xlane.f32.xlu1 %v7929_v1 }
0x1337   :  { %v9420_v63 = vpop.f32.mrb[212].mxu0 }
0x1338   :  { %v7909_v42 = vpop.f32.mrb[213].mxu0  ;;  %v7918_v32 = vadd.f32 %v9420_v63, %v7794_v8 }
0x1339   :  { %v7910_v50 = vadd.f32 %v7909_v42, %v7794_v8  ;;  %v9421_v38 = vpop.f32.mrb[214].mxu0 }
0x133a   :  { %v7912_v15 = vpop.f32.mrb[215].mxu0  ;;  %v7921_v52 = vadd.f32 %v9421_v38, %v7794_v8  ;;  %v12529_v46 = vadd.f32 %v7918_v32, %v12486_v45 }
0x133b   :  { %v12522_v25 = vadd.f32 %v7910_v50, %v12475_v24  ;;  %v7913_v51 = vadd.f32 %v7912_v15, %v7794_v8  ;;  %v7941_v31 = vpop.xlane.xlu0 %7940 }
0x133c   :  { %v7962_v57 = vmul.f32 0.03125, %v7941_v31  ;;  %v12536_v34 = vadd.f32 %v7921_v52, %v12489_v28 }
0x133d   :  { %v12525_v33 = vadd.f32 %v7913_v51, %v12478_v39  ;;  %v7943_v21 = vpop.xlane.xlu1 %7942  ;;  %7952 = vadd.xlane.f32.xlu0 %v12522_v25 }
0x133e   :  { %v7974_v43 = vsub.f32 %v7926_v44, %v7962_v57  ;;  %v7963_v22 = vmul.f32 0.03125, %v7943_v21 }
0x133f   :  { %7954 = vadd.xlane.f32.xlu1 %v12525_v33  ;;  %v7937_v54 = vpop.xlane.xlu0 %7936 }
0x1340   :  { %v12533_v24 = vmul.f32 %v10327_v19, %v7974_v43  ;;  %v7975_v2 = vsub.f32 %v7927_v47, %v7963_v22  ;;  %v7960_v4 = vmul.f32 0.03125, %v7937_v54 }
0x1341   :  { %v7939_v39 = vpop.xlane.xlu1 %7938  ;;  %7956 = vadd.xlane.f32.xlu0 %v12529_v46 }
0x1342   :  { %v12540_v16 = vmul.f32 %v10327_v19, %v7975_v2  ;;  %v7972_v40 = vsub.f32 %v7924_v56, %v7960_v4  ;;  %v7961_v45 = vmul.f32 0.03125, %v7939_v39  ;;  %v7998_v14 = vmul.f32 %v12533_v24, %v12533_v24 }
0x1343   :  { %7958 = vadd.xlane.f32.xlu1 %v12536_v34 }
0x1344   :  { %v12546_v17 = vmul.f32 %v10327_v19, %v7972_v40  ;;  %v7973_v18 = vsub.f32 %v7925_v59, %v7961_v45  ;;  %v7999_v28 = vmul.f32 %v12540_v16, %v12540_v16  ;;  %v10030_v40 = vld [vmem:[%s12671_s8 + $0x8] sm:$0x7f]  ;;  %v12714_v45 = vsub.s32 5, %v12711_v12  ;;  %s10185_s8 = smov [#allocation11]  }
0x1345   :  { %8012 = vadd.xlane.f32.xlu0 %v7998_v14  ;;  %s8129_s17 = sshll.u32 %s10185_s8, 4  ;;  %s8130_s17 = int_to_ptr.vmem [resolvable:$true] %s8129_s17 }
0x1346   :  { %v12551_v26 = vmul.f32 %v10327_v19, %v7973_v18  ;;  %v7996_v58 = vmul.f32 %v12546_v17, %v12546_v17  ;;  %v12606_v14 = vrot.slane %v10030_v40, %v12714_v45  ;;  %s10141_s4 = scalar_lea.vmem %s8130_s17, 1536  ;;  %p10146_p13 = scmp.lt.s32.totalorder %s8130_s17, %s8130_s17 }
0x1347   :  { %8014 = vadd.xlane.f32.xlu1 %v7999_v28  ;;  %v12715_v28 = vsub.s32 6, %v12711_v12  ;;  %p10142_p12 = scmp.ne.s32.totalorder %s8130_s17, %s10141_s4  ;;  %p10147_p0 = scmp.lt.s32.totalorder %s10141_s4, %s10141_s4 }
0x1348   :  { %v7997_v7 = vmul.f32 %v12551_v26, %v12551_v26 }
0x1349   :  { %8008 = vadd.xlane.f32.xlu0 %v7996_v58  ;;  %v12610_v58 = vrot.slane %v10030_v40, %v12715_v28  ;;  %p10148_p1 = por %p10147_p0, %p10146_p13 }
0x134b   :  { %8010 = vadd.xlane.f32.xlu1 %v7997_v7  ;;  %p10149_p2 = pnand %p10148_p1, %p10142_p12 }
0x135c   :  { %v7949_v53 = vpop.xlane.xlu0 %7948 }
0x135d   :  { %v7966_v61 = vmul.f32 0.03125, %v7949_v53 }
0x135e   :  { %v7951_v9 = vpop.xlane.xlu1 %7950 }
0x135f   :  { %v7978_v41 = vsub.f32 %v7930_v29, %v7966_v61  ;;  %v7967_v49 = vmul.f32 0.03125, %v7951_v9 }
0x1360   :  { %v7945_v8 = vpop.xlane.xlu0 %7944 }
0x1361   :  { %v12558_v10 = vmul.f32 %v10327_v19, %v7978_v41  ;;  %v7979_v60 = vsub.f32 %v7931_v30, %v7967_v49  ;;  %v7964_v0 = vmul.f32 0.03125, %v7945_v8 }
0x1362   :  { %v7947_v5 = vpop.xlane.xlu1 %7946 }
0x1363   :  { %v12561_v44 = vmul.f32 %v10327_v19, %v7979_v60  ;;  %v7976_v48 = vsub.f32 %v7928_v6, %v7964_v0  ;;  %v7965_v27 = vmul.f32 0.03125, %v7947_v5  ;;  %v8002_v11 = vmul.f32 %v12558_v10, %v12558_v10 }
0x1365   :  { %v12566_v47 = vmul.f32 %v10327_v19, %v7976_v48  ;;  %v7977_v20 = vsub.f32 %v7929_v1, %v7965_v27  ;;  %8020 = vadd.xlane.f32.xlu0 %v8002_v11  ;;  %v8003_v56 = vmul.f32 %v12561_v44, %v12561_v44 }
0x1367   :  { %v12571_v59 = vmul.f32 %v10327_v19, %v7977_v20  ;;  %8022 = vadd.xlane.f32.xlu1 %v8003_v56  ;;  %v8000_v35 = vmul.f32 %v12566_v47, %v12566_v47 }
0x1369   :  { %8016 = vadd.xlane.f32.xlu0 %v8000_v35  ;;  %v8001_v62 = vmul.f32 %v12571_v59, %v12571_v59 }
0x136b   :  { %8018 = vadd.xlane.f32.xlu1 %v8001_v62 }
0x13ca   :  { %v7953_v36 = vpop.xlane.xlu0 %7952 }
0x13cb   :  { %v7968_v13 = vmul.f32 0.03125, %v7953_v36 }
0x13cc   :  { %v7955_v29 = vpop.xlane.xlu1 %7954 }
0x13cd   :  { %v7980_v23 = vsub.f32 %v12522_v25, %v7968_v13  ;;  %v7969_v55 = vmul.f32 0.03125, %v7955_v29 }
0x13ce   :  { %v7957_v3 = vpop.xlane.xlu0 %7956 }
0x13cf   :  { %v12579_v30 = vmul.f32 %v10327_v19, %v7980_v23  ;;  %v7981_v37 = vsub.f32 %v12525_v33, %v7969_v55  ;;  %v7970_v6 = vmul.f32 0.03125, %v7957_v3 }
0x13d0   :  { %v7959_v1 = vpop.xlane.xlu1 %7958 }
0x13d1   :  { %v12583_v63 = vmul.f32 %v10327_v19, %v7981_v37  ;;  %v7982_v42 = vsub.f32 %v12529_v46, %v7970_v6  ;;  %v7971_v50 = vmul.f32 0.03125, %v7959_v1  ;;  %v8004_v38 = vmul.f32 %v12579_v30, %v12579_v30 }
0x13d2   :  { %v8013_v15 = vpop.xlane.xlu0 %8012 }
0x13d3   :  { %v12589_v32 = vmul.f32 %v10327_v19, %v7982_v42  ;;  %v7983_v25 = vsub.f32 %v12536_v34, %v7971_v50  ;;  %v8034_v51 = vmul.f32 0.03125, %v8013_v15  ;;  %8024 = vadd.xlane.f32.xlu0 %v8004_v38  ;;  %v8005_v31 = vmul.f32 %v12583_v63, %v12583_v63 }
0x13d4   :  { %v8015_v57 = vpop.xlane.xlu1 %8014 }
0x13d5   :  { %v12595_v52 = vmul.f32 %v10327_v19, %v7983_v25  ;;  %v8046_v33 = vadd.f32 1e-12, %v8034_v51  ;;  %v8035_v21 = vmul.f32 0.03125, %v8015_v57  ;;  %8026 = vadd.xlane.f32.xlu1 %v8005_v31  ;;  %v8006_v43 = vmul.f32 %v12589_v32, %v12589_v32 }
0x13d6   :  { %v8009_v22 = vpop.xlane.xlu0 %8008 }
0x13d7   :  { %9981 = vrsqrt.f32 %v8046_v33  ;;  %v8047_v46 = vadd.f32 1e-12, %v8035_v21  ;;  %v8032_v54 = vmul.f32 0.03125, %v8009_v22  ;;  %8028 = vadd.xlane.f32.xlu0 %v8006_v43  ;;  %v8007_v2 = vmul.f32 %v12595_v52, %v12595_v52 }
0x13d8   :  { %v8011_v4 = vpop.xlane.xlu1 %8010 }
0x13d9   :  { %9983 = vrsqrt.f32 %v8047_v46  ;;  %v8044_v34 = vadd.f32 1e-12, %v8032_v54  ;;  %v8033_v39 = vmul.f32 0.03125, %v8011_v4  ;;  %8030 = vadd.xlane.f32.xlu1 %v8007_v2 }
0x13db   :  { %9985 = vrsqrt.f32 %v8044_v34  ;;  %v8045_v19 = vadd.f32 1e-12, %v8033_v39 }
0x13dd   :  { %9987 = vrsqrt.f32 %v8045_v19 }
0x13e1   :  { %v9982_v18 = vpop.eup %9981 }
0x13e2   :  { %v8070_v7 = vmul.f32 %v9982_v18, %v12533_v24 }
0x13e3   :  { %v9984_v53 = vpop.eup %9983 }
0x13e4   :  { %v8086_v61 = vmul.f32 %v12606_v14, %v8070_v7  ;;  %v8071_v9 = vmul.f32 %v9984_v53, %v12540_v16 }
0x13e5   :  { %v9986_v41 = vpop.eup %9985 }
0x13e6   :  { %v8102_v49 = vadd.f32 %v12610_v58, %v8086_v61  ;;  %v8087_v8 = vmul.f32 %v12606_v14, %v8071_v9  ;;  %v8068_v60 = vmul.f32 %v9986_v41, %v12546_v17 }
0x13e7   :  { %v9988_v0 = vpop.eup %9987 }
0x13e8   :  { %8114 = vst [vmem:[#allocation11 + $0x10] sm:$0xff] %v8102_v49  ;;  %v8103_v12 = vadd.f32 %v12610_v58, %v8087_v8  ;;  %v8084_v5 = vmul.f32 %v12606_v14, %v8068_v60  ;;  %v8069_v24 = vmul.f32 %v9988_v0, %v12551_v26 }
0x13ea   :  { %8115 = vst [vmem:[#allocation11 + $0x18] sm:$0xff] %v8103_v12  ;;  %v8100_v48 = vadd.f32 %v12610_v58, %v8084_v5  ;;  %v8085_v16 = vmul.f32 %v12606_v14, %v8069_v24 }
0x13ec   :  { %8112 = vst [vmem:[#allocation11] sm:$0xff] %v8100_v48  ;;  %v8101_v27 = vadd.f32 %v12610_v58, %v8085_v16 }
0x13ee   :  { %8113 = vst [vmem:[#allocation11 + $0x8] sm:$0xff] %v8101_v27 }
0x13f2   :  { %v8021_v11 = vpop.xlane.xlu0 %8020 }
0x13f3   :  { %v8038_v20 = vmul.f32 0.03125, %v8021_v11 }
0x13f4   :  { %v8023_v17 = vpop.xlane.xlu1 %8022 }
0x13f5   :  { %v8050_v56 = vadd.f32 1e-12, %v8038_v20  ;;  %v8039_v35 = vmul.f32 0.03125, %v8023_v17 }
0x13f6   :  { %v8017_v62 = vpop.xlane.xlu0 %8016 }
0x13f7   :  { %9989 = vrsqrt.f32 %v8050_v56  ;;  %v8051_v36 = vadd.f32 1e-12, %v8039_v35  ;;  %v8036_v13 = vmul.f32 0.03125, %v8017_v62 }
0x13f8   :  { %v8019_v29 = vpop.xlane.xlu1 %8018 }
0x13f9   :  { %9991 = vrsqrt.f32 %v8051_v36  ;;  %v8048_v26 = vadd.f32 1e-12, %v8036_v13  ;;  %v8037_v23 = vmul.f32 0.03125, %v8019_v29 }
0x13fb   :  { %9993 = vrsqrt.f32 %v8048_v26  ;;  %v8049_v55 = vadd.f32 1e-12, %v8037_v23 }
0x13fd   :  { %9995 = vrsqrt.f32 %v8049_v55 }
0x1401   :  { %v9990_v3 = vpop.eup %9989 }
0x1402   :  { %v8074_v37 = vmul.f32 %v9990_v3, %v12558_v10 }
0x1403   :  { %v9992_v6 = vpop.eup %9991 }
0x1404   :  { %v8090_v1 = vmul.f32 %v12606_v14, %v8074_v37  ;;  %v8075_v42 = vmul.f32 %v9992_v6, %v12561_v44 }
0x1405   :  { %v9994_v50 = vpop.eup %9993 }
0x1406   :  { %v8106_v38 = vadd.f32 %v12610_v58, %v8090_v1  ;;  %v8091_v15 = vmul.f32 %v12606_v14, %v8075_v42  ;;  %v8072_v25 = vmul.f32 %v9994_v50, %v12566_v47 }
0x1407   :  { %v9996_v51 = vpop.eup %9995 }
0x1408   :  { %8118 = vst [vmem:[#allocation11 + $0x30] sm:$0xff] %v8106_v38  ;;  %v8107_v31 = vadd.f32 %v12610_v58, %v8091_v15  ;;  %v8088_v57 = vmul.f32 %v12606_v14, %v8072_v25  ;;  %v8073_v10 = vmul.f32 %v9996_v51, %v12571_v59 }
0x140a   :  { %8119 = vst [vmem:[#allocation11 + $0x38] sm:$0xff] %v8107_v31  ;;  %v8104_v33 = vadd.f32 %v12610_v58, %v8088_v57  ;;  %v8089_v44 = vmul.f32 %v12606_v14, %v8073_v10 }
0x140c   :  { %8116 = vst [vmem:[#allocation11 + $0x20] sm:$0xff] %v8104_v33  ;;  %v8105_v21 = vadd.f32 %v12610_v58, %v8089_v44 }
0x140e   :  { %8117 = vst [vmem:[#allocation11 + $0x28] sm:$0xff] %v8105_v21 }
0x1460   :  { %v8025_v43 = vpop.xlane.xlu0 %8024 }
0x1461   :  { %v8040_v22 = vmul.f32 0.03125, %v8025_v43 }
0x1462   :  { %v8027_v47 = vpop.xlane.xlu1 %8026 }
0x1463   :  { %v8052_v46 = vadd.f32 1e-12, %v8040_v22  ;;  %v8041_v54 = vmul.f32 0.03125, %v8027_v47 }
0x1464   :  { %v8029_v2 = vpop.xlane.xlu0 %8028 }
0x1465   :  { %9997 = vrsqrt.f32 %v8052_v46  ;;  %v8053_v4 = vadd.f32 1e-12, %v8041_v54  ;;  %v8042_v34 = vmul.f32 0.03125, %v8029_v2 }
0x1466   :  { %v8031_v39 = vpop.xlane.xlu1 %8030 }
0x1467   :  { %9999 = vrsqrt.f32 %v8053_v4  ;;  %v8054_v59 = vadd.f32 1e-12, %v8042_v34  ;;  %v8043_v19 = vmul.f32 0.03125, %v8031_v39 }
0x1469   :  { %10001 = vrsqrt.f32 %v8054_v59  ;;  %v8055_v40 = vadd.f32 1e-12, %v8043_v19 }
0x146b   :  { %10003 = vrsqrt.f32 %v8055_v40 }
0x146f   :  { %v9998_v45 = vpop.eup %9997 }
0x1470   :  { %v8076_v18 = vmul.f32 %v9998_v45, %v12579_v30 }
0x1471   :  { %v10000_v28 = vpop.eup %9999 }
0x1472   :  { %v8092_v7 = vmul.f32 %v12606_v14, %v8076_v18  ;;  %v8077_v53 = vmul.f32 %v10000_v28, %v12583_v63 }
0x1473   :  { %v10002_v61 = vpop.eup %10001 }
0x1474   :  { %v8108_v9 = vadd.f32 %v12610_v58, %v8092_v7  ;;  %v8093_v41 = vmul.f32 %v12606_v14, %v8077_v53  ;;  %v8078_v49 = vmul.f32 %v10002_v61, %v12589_v32 }
0x1475   :  { %v10004_v8 = vpop.eup %10003 }
0x1476   :  { %8120 = vst [vmem:[#allocation11 + $0x40] sm:$0xff] %v8108_v9  ;;  %v8109_v60 = vadd.f32 %v12610_v58, %v8093_v41  ;;  %v8094_v0 = vmul.f32 %v12606_v14, %v8078_v49  ;;  %v8079_v30 = vmul.f32 %v10004_v8, %v12595_v52 }
0x1478   :  { %8121 = vst [vmem:[#allocation11 + $0x48] sm:$0xff] %v8109_v60  ;;  %v8110_v63 = vadd.f32 %v12610_v58, %v8094_v0  ;;  %v8095_v12 = vmul.f32 %v12606_v14, %v8079_v30 }
0x147a   :  { %8122 = vst [vmem:[#allocation11 + $0x50] sm:$0xff] %v8110_v63  ;;  %v8111_v5 = vadd.f32 %v12610_v58, %v8095_v12 }
0x147c   :  { %8123 = vst [vmem:[#allocation11 + $0x58] sm:$0xff] %v8111_v5 }
0x147d   :  { %10152 = shalt.err (!%p10149_p2)
}
0x147e   :  { %s10153_s0 = scalar_lea.hbm %s12672_s9, 1536 }
0x147f   :  { %p10154_p3 = scmp.ne.s32.totalorder %s12672_s9, %s10153_s0  ;;  %p10157_p4 = scmp.lt.u32.totalorder %s10153_s0, %s12672_s9 }
0x1481   :  { %p10159_p5 = pnand %p10157_p4, %p10154_p3 }
0x1483   :  { %10162 = shalt.err (!%p10159_p5)
}
0x1484   :  { %8135 = dma.vmem_to_hbm [thread:$0]  %s8130_s17, 1536, %s12672_s9, [#allocation4], %s10178_s6, %s10178_s6, %s10179_s24  }
0x1485   :  { %10169 = dma.done.wait [#allocation4], 1536  }
0x1486   :  { %10170 = vsyncadd [#allocation4], 4294965760 }
0x1487   :  { %8139 = vsyncpa [#allocation3], 1 }
0x1488   :  { %8140 = vsyncpa [#allocation6], 1 }
0x1489   :  { %8141 = vsyncpa [#allocation9], 1 }
0x148a   :  { %8142 = vsyncpa [#allocation4], 1 }

</bundles_post_ra>
